<compile_context>
chip_gen: v7x
topology: tpu7x:2x2x1
jax: 0.10.0
libtpu: 0.0.40
codegen_flags: <defaults>
</compile_context>

<pallas_src>
import functools
import numpy as np

import jax
import jax.numpy as jnp
from jax.experimental import pallas as pl
from jax.experimental.pallas import tpu as pltpu

LN_EPS = 1e-6                        # norm_layer = partial(nn.LayerNorm, eps=1e-6)
MXU_DTYPE = jnp.bfloat16             # matmul operand dtype (f32 accumulation)
VMEM_LIMIT_BYTES = 48 * 1024 * 1024  # < v7x 64 MiB physical VMEM; >= any tile budget here


def _round_up(x, m):
    return ((x + m - 1) // m) * m


def _row_tile(m, max_tile=256):
    """Pick a row tile (multiple of 8) and the padded row count."""
    tm = max_tile if m >= max_tile else _round_up(m, 8)
    return tm, _round_up(m, tm)


# ----------------------------- Pallas kernels ------------------------------

@functools.lru_cache(maxsize=None)
def _get_linear_kernel(pre_ln, pre_gelu, post_gelu, has_res):
    def kernel(*refs):
        idx = 0
        x_ref = refs[idx]; idx += 1
        w_ref = refs[idx]; idx += 1
        b_ref = refs[idx]; idx += 1
        if pre_ln:
            g_ref = refs[idx]; idx += 1
            bt_ref = refs[idx]; idx += 1
        if has_res:
            r_ref = refs[idx]; idx += 1
        o_ref = refs[idx]

        x = x_ref[...]
        if pre_ln:
            mu = jnp.mean(x, axis=-1, keepdims=True)
            var = jnp.mean((x - mu) ** 2, axis=-1, keepdims=True)
            x = (x - mu) * jax.lax.rsqrt(var + LN_EPS) * g_ref[...] + bt_ref[...]
        if pre_gelu:
            # TODO(synk): torch nn.GELU uses exact erf; tanh approximation used here
            # for Mosaic-friendly lowering (numerically very close).
            x = jax.nn.gelu(x, approximate=True)
        y = jnp.dot(x.astype(MXU_DTYPE), w_ref[...].astype(MXU_DTYPE),
                    preferred_element_type=jnp.float32) + b_ref[...]
        if post_gelu:
            y = jax.nn.gelu(y, approximate=True)
        if has_res:
            y = y + r_ref[...]
        o_ref[...] = y
    return kernel


def linear(x, w, b, *, ln=None, pre_gelu=False, post_gelu=False, residual=None):
    """y = [gelu]([LN](x)) @ w + b (+ residual, optionally gelu(y)).

    Tiled over (M rows, N cols) with K whole; LN/GELU ride as the matmul's
    pre-epilogue and the residual add as its post-epilogue, so neither the
    normalized activation nor the residual sum round-trips HBM separately.
    """
    orig = x.shape
    K = orig[-1]
    M = int(np.prod(orig[:-1]))
    N = w.shape[1]

    x2 = x.reshape(M, K)
    TM, Mp = _row_tile(M)
    if Mp != M:
        x2 = jnp.pad(x2, ((0, Mp - M), (0, 0)))
    TN = 256 if (N % 256 == 0 and N > 256) else N

    in_specs = [
        pl.BlockSpec((TM, K), lambda i, j: (i, 0)),
        pl.BlockSpec((K, TN), lambda i, j: (0, j)),
        pl.BlockSpec((1, TN), lambda i, j: (0, j)),
    ]
    args = [x2, w, b.reshape(1, N)]
    if ln is not None:
        g, beta = ln
        in_specs += [pl.BlockSpec((1, K), lambda i, j: (0, 0)),
                     pl.BlockSpec((1, K), lambda i, j: (0, 0))]
        args += [g.reshape(1, K), beta.reshape(1, K)]
    if residual is not None:
        r2 = residual.reshape(M, N)
        if Mp != M:
            r2 = jnp.pad(r2, ((0, Mp - M), (0, 0)))
        in_specs += [pl.BlockSpec((TM, TN), lambda i, j: (i, j))]
        args += [r2]

    trans = (Mp * K if pre_gelu else 0) + (Mp * N if post_gelu else 0)
    bytes_acc = 4 * (Mp * K + K * N + Mp * N)
    if residual is not None:
        bytes_acc += 4 * Mp * N
    cost = pl.CostEstimate(flops=2 * Mp * K * N, transcendentals=trans,
                           bytes_accessed=bytes_acc)

    out = pl.pallas_call(
        _get_linear_kernel(ln is not None, pre_gelu, post_gelu, residual is not None),
        out_shape=jax.ShapeDtypeStruct((Mp, N), jnp.float32),
        grid=(Mp // TM, N // TN),
        in_specs=in_specs,
        out_specs=pl.BlockSpec((TM, TN), lambda i, j: (i, j)),
        compiler_params=pltpu.CompilerParams(
            dimension_semantics=("parallel", "parallel"),
            vmem_limit_bytes=VMEM_LIMIT_BYTES),
        cost_estimate=cost,
    )(*args)
    if Mp != M:
        out = out[:M]
    return out.reshape(orig[:-1] + (N,))


def _layernorm_kernel(x_ref, g_ref, b_ref, o_ref):
    x = x_ref[...]
    mu = jnp.mean(x, axis=-1, keepdims=True)
    var = jnp.mean((x - mu) ** 2, axis=-1, keepdims=True)
    o_ref[...] = (x - mu) * jax.lax.rsqrt(var + LN_EPS) * g_ref[...] + b_ref[...]


def layernorm(x, g, b):
    """Standalone LayerNorm (only used where the normalized tensor is itself the output)."""
    orig = x.shape
    D = orig[-1]
    M = int(np.prod(orig[:-1]))
    x2 = x.reshape(M, D)
    TM, Mp = _row_tile(M)
    if Mp != M:
        x2 = jnp.pad(x2, ((0, Mp - M), (0, 0)))
    out = pl.pallas_call(
        _layernorm_kernel,
        out_shape=jax.ShapeDtypeStruct((Mp, D), jnp.float32),
        grid=(Mp // TM,),
        in_specs=[pl.BlockSpec((TM, D), lambda i: (i, 0)),
                  pl.BlockSpec((1, D), lambda i: (0, 0)),
                  pl.BlockSpec((1, D), lambda i: (0, 0))],
        out_specs=pl.BlockSpec((TM, D), lambda i: (i, 0)),
        compiler_params=pltpu.CompilerParams(
            dimension_semantics=("parallel",),
            vmem_limit_bytes=VMEM_LIMIT_BYTES),
    )(x2, g.reshape(1, D), b.reshape(1, D))
    if Mp != M:
        out = out[:M]
    return out.reshape(orig)


@functools.lru_cache(maxsize=None)
def _get_attn_kernel(scale, num_heads):
    def kernel(q_ref, k_ref, v_ref, o_ref):
        # One batch element per program; all heads handled here (amortizes grid overhead).
        q_all = q_ref[0, :, 0]      # (S, H, Dh)
        k_all = k_ref[0, :, 0]
        v_all = v_ref[0, :, 0]
        outs = []
        for h in range(num_heads):
            q = (q_all[:, h, :] * scale).astype(MXU_DTYPE)   # scale folded into q
            k = k_all[:, h, :].astype(MXU_DTYPE)
            v = v_all[:, h, :].astype(MXU_DTYPE)
            # contract last axes directly (no explicit k.T / XLU transpose)
            s = jax.lax.dot_general(q, k, (((1,), (1,)), ((), ())),
                                    preferred_element_type=jnp.float32)
            s = s - jnp.max(s, axis=-1, keepdims=True)
            p = jnp.exp(s)
            p = p * pl.reciprocal(jnp.sum(p, axis=-1, keepdims=True), approx=True)
            outs.append(jnp.dot(p.astype(MXU_DTYPE), v,
                                preferred_element_type=jnp.float32))
        # lane-dense (S, H*Dh) output: heads concatenated along the lane axis
        o_ref[0] = jnp.concatenate(outs, axis=-1)
    return kernel


def attention(qkv, scale):
    """qkv: (B, S, 3, H, Dh) in timm packing; returns (B, S, H*Dh).

    The three in_specs index the same qkv tensor at offsets 0/1/2 along the packed-3
    axis, so no HBM-side (3,B,H,S,Dh) transpose is ever materialized.
    """
    B, S, _, H, Dh = qkv.shape
    D = H * Dh

    def qkv_spec(which):
        return pl.BlockSpec((1, S, 1, H, Dh), lambda b: (b, 0, which, 0, 0))

    cost = pl.CostEstimate(flops=4 * B * H * S * S * Dh,
                           transcendentals=B * H * S * S,
                           bytes_accessed=4 * (3 * B * S * D + B * S * D))
    return pl.pallas_call(
        _get_attn_kernel(float(scale), H),
        out_shape=jax.ShapeDtypeStruct((B, S, D), jnp.float32),
        grid=(B,),
        in_specs=[qkv_spec(0), qkv_spec(1), qkv_spec(2)],
        out_specs=pl.BlockSpec((1, S, D), lambda b: (b, 0, 0)),
        compiler_params=pltpu.CompilerParams(
            dimension_semantics=("parallel",),
            vmem_limit_bytes=VMEM_LIMIT_BYTES),
        cost_estimate=cost,
    )(qkv, qkv, qkv)


def _recon_loss_kernel(pred_ref, tgt_ref, mask_ref, num_ref, den_ref):
    @pl.when(pl.program_id(0) == 0)
    def _():
        num_ref[...] = jnp.zeros_like(num_ref)
        den_ref[...] = jnp.zeros_like(den_ref)
    d = pred_ref[...] - tgt_ref[...]
    m = mask_ref[...]                                     # (TR, 1)
    per_patch = jnp.mean(d * d, axis=-1, keepdims=True)   # (TR, 1)
    num_ref[...] += jnp.sum(per_patch * m).reshape(1, 1)
    den_ref[...] += jnp.sum(m).reshape(1, 1)


def masked_mse_loss(pred, target, mask):
    N, L, D = pred.shape
    R = N * L
    p2 = pred.reshape(R, D)
    t2 = target.reshape(R, D)
    m2 = mask.astype(jnp.float32).reshape(R, 1)
    TR, Rp = _row_tile(R)
    if Rp != R:
        pad = ((0, Rp - R), (0, 0))
        p2, t2, m2 = jnp.pad(p2, pad), jnp.pad(t2, pad), jnp.pad(m2, pad)
    num, den = pl.pallas_call(
        _recon_loss_kernel,
        out_shape=(jax.ShapeDtypeStruct((1, 1), jnp.float32),
                   jax.ShapeDtypeStruct((1, 1), jnp.float32)),
        grid=(Rp // TR,),
        in_specs=[pl.BlockSpec((TR, D), lambda i: (i, 0)),
                  pl.BlockSpec((TR, D), lambda i: (i, 0)),
                  pl.BlockSpec((TR, 1), lambda i: (i, 0))],
        out_specs=(pl.BlockSpec((1, 1), lambda i: (0, 0)),
                   pl.BlockSpec((1, 1), lambda i: (0, 0))),
        compiler_params=pltpu.CompilerParams(
            dimension_semantics=("arbitrary",),
            vmem_limit_bytes=VMEM_LIMIT_BYTES),
    )(p2, t2, m2)
    # final divide in JAX; guard against sum(mask)==0 (torch reference would NaN).
    return num[0, 0] / jnp.maximum(den[0, 0], 1e-6)


# --------------------------- model (JAX glue + kernels) ---------------------------

def patchify_for_embed(imgs, p):
    """Conv2d(stride=p) equivalent flattening: per-patch order (C, ph, pw)."""
    N, C, H, W = imgs.shape
    h, w = H // p, W // p
    x = imgs.reshape(N, C, h, p, w, p)
    x = jnp.transpose(x, (0, 2, 4, 1, 3, 5))  # N h w C p p
    return x.reshape(N, h * w, C * p * p)


def patchify_target(imgs, p):
    """MRM_GEN.patchify: einsum('nchpwq->nhwpqc'), per-patch order (ph, pw, C)."""
    N, C, H, W = imgs.shape
    h, w = H // p, W // p
    x = imgs.reshape(N, C, h, p, w, p)
    x = jnp.transpose(x, (0, 2, 4, 3, 5, 1))  # n h w p q c
    return x.reshape(N, h * w, p * p * C)


def random_masking(x, guide_mask, mask_ratio, key):
    N, L, D = x.shape
    len_keep = int(L * (1 - mask_ratio))
    noise = jax.random.uniform(key, (N, L), jnp.float32)
    noise = noise + 0.8 * (guide_mask == 0).astype(jnp.float32)
    ids_shuffle = jnp.argsort(noise, axis=1)
    ids_restore = jnp.argsort(ids_shuffle, axis=1)
    ids_keep = ids_shuffle[:, :len_keep]
    x_masked = jnp.take_along_axis(x, ids_keep[:, :, None], axis=1)
    mask = jnp.concatenate(
        [jnp.zeros((N, len_keep), jnp.float32), jnp.ones((N, L - len_keep), jnp.float32)],
        axis=1)
    mask = jnp.take_along_axis(mask, ids_restore, axis=1)
    return x_masked, mask, ids_restore


def block_forward(x, bp, num_heads):
    """timm Block: pre-LN MHSA + pre-LN MLP with residuals.
    LN1/LN2 are fused into the QKV/FC1 matmuls; MLP GELU is FC2's pre-epilogue;
    both residual adds are fused into the proj/FC2 matmul epilogues."""
    B, S, D = x.shape
    Dh = D // num_heads
    qkv = linear(x, bp['qkv_w'], bp['qkv_b'], ln=(bp['ln1_g'], bp['ln1_b']))  # (B,S,3D)
    qkv = qkv.reshape(B, S, 3, num_heads, Dh)        # timm qkv packing; contiguous reshape only
    o = attention(qkv, Dh ** -0.5)                   # (B, S, D), lane-dense
    x = linear(o, bp['proj_w'], bp['proj_b'], residual=x)
    h = linear(x, bp['fc1_w'], bp['fc1_b'], ln=(bp['ln2_g'], bp['ln2_b']))
    x = linear(h, bp['fc2_w'], bp['fc2_b'], pre_gelu=True, residual=x)
    return x


def forward_scan_encoder(imgs, guide_mask, mask_ratio, params, cfg, key):
    """Encoder up to (but not including) the final LayerNorm; callers either fuse the
    final norm into the next matmul (msm path) or apply it standalone (gen path)."""
    p = cfg['patch_size']
    x = linear(patchify_for_embed(imgs, p), params['patch_w'], params['patch_b'])
    x = x + params['pos_embed'][:, 1:, :]
    if mask_ratio > 0:
        x, mask, ids_restore = random_masking(x, guide_mask, mask_ratio, key)
    else:
        mask, ids_restore = None, None
    cls = params['cls_token'] + params['pos_embed'][:, :1, :]
    cls = jnp.broadcast_to(cls, (x.shape[0], 1, cls.shape[-1]))
    x = jnp.concatenate([cls, x], axis=1)
    for bp in params['blocks']:
        x = block_forward(x, bp, cfg['num_heads'])
    return x, mask, ids_restore


def scan_mlp_forward(latents_prenorm, params):
    # encoder final LayerNorm fused into scan_mlp's first linear;
    # scan_mlp's internal LayerNorm + GELU fused into its second linear.
    h = linear(latents_prenorm, params['scan_w1'], params['scan_b1'],
               ln=(params['norm_g'], params['norm_b']))
    return linear(h, params['scan_w2'], params['scan_b2'],
                  ln=(params['scan_ln_g'], params['scan_ln_b']), pre_gelu=True)


def forward_scan_decoder(x, ids_restore, params, cfg):
    B, Skeep, Dd = x.shape
    L = ids_restore.shape[1]
    mask_tokens = jnp.broadcast_to(params['mask_token'], (B, L + 1 - Skeep, Dd))
    x_ = jnp.concatenate([x[:, 1:, :], mask_tokens], axis=1)
    x_ = jnp.take_along_axis(x_, ids_restore[:, :, None], axis=1)
    x = jnp.concatenate([x[:, :1, :], x_], axis=1)
    x = x + params['decoder_pos_embed']
    for bp in params['decoder_blocks']:
        x = block_forward(x, bp, cfg['decoder_num_heads'])
    # decoder_norm fused into decoder_pred
    x = linear(x, params['decoder_pred_w'], params['decoder_pred_b'],
               ln=(params['decoder_norm_g'], params['decoder_norm_b']))
    return x[:, 1:, :]


def reconstruction_loss(imgs, pred, mask, cfg):
    target = patchify_target(imgs, cfg['patch_size'])
    # norm_pix_loss = False (module default)
    return masked_mse_loss(pred, target, mask)


def mrm_gen_forward(imgs, guide_mask, params, mask_key, *, cfg,
                    mask_ratio=0.5, loss_keys=('msm', 'gen')):
    """Training-mode forward of MRM_GEN."""
    out = {}
    if 'msm' in loss_keys:
        latents, mask, ids_restore = forward_scan_encoder(
            imgs, guide_mask, mask_ratio, params, cfg, mask_key)
        feats = scan_mlp_forward(latents, params)
        pred = forward_scan_decoder(feats, ids_restore, params, cfg)
        out['msm'] = reconstruction_loss(imgs, pred, mask, cfg)
    if 'gen' in loss_keys:
        gen_pre, _, _ = forward_scan_encoder(
            imgs, None, 0.0, params, cfg, mask_key)
        gen_latents = layernorm(gen_pre, params['norm_g'], params['norm_b'])[:, 1:, :]
        # TODO(synk): EncoderDecoder language model (self.language_model) is not defined
        # in the reference source, so the captioning ('gen') loss / LanguageModelCriterion
        # cannot be reproduced faithfully; we return the visual latents it would consume.
        out['gen_img_latents'] = gen_latents
    return out


# ------------------------------- parameter init -------------------------------

def _w(key, shape):
    return 0.02 * jax.random.normal(key, shape, jnp.float32)


def init_block_params(key, dim, mlp_ratio):
    ks = jax.random.split(key, 4)
    hidden = int(dim * mlp_ratio)
    return {
        'ln1_g': jnp.ones((dim,), jnp.float32), 'ln1_b': jnp.zeros((dim,), jnp.float32),
        'qkv_w': _w(ks[0], (dim, 3 * dim)), 'qkv_b': jnp.zeros((3 * dim,), jnp.float32),
        'proj_w': _w(ks[1], (dim, dim)), 'proj_b': jnp.zeros((dim,), jnp.float32),
        'ln2_g': jnp.ones((dim,), jnp.float32), 'ln2_b': jnp.zeros((dim,), jnp.float32),
        'fc1_w': _w(ks[2], (dim, hidden)), 'fc1_b': jnp.zeros((hidden,), jnp.float32),
        'fc2_w': _w(ks[3], (hidden, dim)), 'fc2_b': jnp.zeros((dim,), jnp.float32),
    }


def init_params(key, cfg):
    E, Dd = cfg['embed_dim'], cfg['decoder_embed_dim']
    p, C = cfg['patch_size'], cfg['in_channels']
    L = (cfg['img_size'] // p) ** 2
    patch_dim = C * p * p
    ks = jax.random.split(key, 10)
    params = {
        'patch_w': _w(ks[0], (patch_dim, E)), 'patch_b': jnp.zeros((E,), jnp.float32),
        'cls_token': _w(ks[1], (1, 1, E)),
        'pos_embed': _w(ks[2], (1, L + 1, E)),
        'norm_g': jnp.ones((E,), jnp.float32), 'norm_b': jnp.zeros((E,), jnp.float32),
        'scan_w1': _w(ks[3], (E, Dd)), 'scan_b1': jnp.zeros((Dd,), jnp.float32),
        'scan_ln_g': jnp.ones((Dd,), jnp.float32), 'scan_ln_b': jnp.zeros((Dd,), jnp.float32),
        'scan_w2': _w(ks[4], (Dd, Dd)), 'scan_b2': jnp.zeros((Dd,), jnp.float32),
        'mask_token': _w(ks[5], (1, 1, Dd)),
        'decoder_pos_embed': _w(ks[6], (1, L + 1, Dd)),
        'decoder_norm_g': jnp.ones((Dd,), jnp.float32),
        'decoder_norm_b': jnp.zeros((Dd,), jnp.float32),
        'decoder_pred_w': _w(ks[7], (Dd, patch_dim)),
        'decoder_pred_b': jnp.zeros((patch_dim,), jnp.float32),
    }
    bkeys = jax.random.split(ks[8], cfg['depth'])
    params['blocks'] = [init_block_params(bkeys[i], E, cfg['mlp_ratio'])
                        for i in range(cfg['depth'])]
    dkeys = jax.random.split(ks[9], cfg['decoder_depth'])
    params['decoder_blocks'] = [init_block_params(dkeys[i], Dd, cfg['mlp_ratio'])
                                for i in range(cfg['decoder_depth'])]
    return params


# ----------------------------------- main -----------------------------------

if __name__ == "__main__":
    cfg = dict(img_size=32, patch_size=8, in_channels=3,
               embed_dim=64, depth=2, num_heads=4, mlp_ratio=4.0,
               decoder_embed_dim=32, decoder_depth=1, decoder_num_heads=4)

    root = jax.random.PRNGKey(0)
    k_params, k_img, k_guide, k_mask = jax.random.split(root, 4)

    params = init_params(k_params, cfg)

    N = 2
    L = (cfg['img_size'] // cfg['patch_size']) ** 2  # 16 patches
    imgs = jax.random.normal(k_img, (N, cfg['in_channels'], cfg['img_size'], cfg['img_size']),
                             jnp.float32)
    guide_mask = (jax.random.uniform(k_guide, (N, L)) > 0.5).astype(jnp.int32)

    fwd = jax.jit(functools.partial(mrm_gen_forward, cfg=cfg,
                                    mask_ratio=0.5, loss_keys=('msm', 'gen')))
    out = fwd(imgs, guide_mask, params, k_mask)
    out = jax.block_until_ready(out)

    msm = float(out['msm'])
    assert np.isfinite(msm), "msm loss is not finite"
    assert out['gen_img_latents'].shape == (N, L, cfg['embed_dim'])
    print("KERNEL_OK")
</pallas_src>

<mosaic_0001>
module attributes {stable_mosaic.version = 11 : i64} {
  func.func @kernel(%arg0: i32, %arg1: i32, %arg2: memref<32x192xf32, #tpu.memory_space<vmem>>, %arg3: memref<192x64xf32, #tpu.memory_space<vmem>>, %arg4: memref<1x64xf32, #tpu.memory_space<vmem>>, %arg5: memref<32x64xf32, #tpu.memory_space<vmem>>) attributes {dimension_semantics = [#tpu.dimension_semantics<parallel>, #tpu.dimension_semantics<parallel>], iteration_bounds = array<i64: 1, 1>, scalar_prefetch = 0 : i64, scratch_operands = 0 : i64, tpu.core_type = #tpu.core_type<tc>, window_params = [{transform_indices = @transform_0, window_bounds = array<i64: 32, 192>}, {transform_indices = @transform_1, window_bounds = array<i64: 192, 64>}, {transform_indices = @transform_2, window_bounds = array<i64: 1, 64>}, {transform_indices = @transform_3, window_bounds = array<i64: 32, 64>}]} {
    %c0 = arith.constant 0 : index
    %c0_0 = arith.constant 0 : index
    %0 = vector.load %arg2[%c0, %c0_0] : memref<32x192xf32, #tpu.memory_space<vmem>>, vector<32x192xf32>
    %1 = arith.truncf %0 : vector<32x192xf32> to vector<32x192xbf16>
    %c0_1 = arith.constant 0 : index
    %c0_2 = arith.constant 0 : index
    %2 = vector.load %arg3[%c0_1, %c0_2] : memref<192x64xf32, #tpu.memory_space<vmem>>, vector<192x64xf32>
    %3 = arith.truncf %2 : vector<192x64xf32> to vector<192x64xbf16>
    %cst = arith.constant dense<0.000000e+00> : vector<32x64xf32>
    %4 = tpu.matmul %1, %3, %cst {dimension_numbers = #tpu.dot_dimension_numbers<[1], [0], [0], [1], [0, 0, 1, 1], [], []>} : vector<32x192xbf16>, vector<192x64xbf16>, vector<32x64xf32> -> vector<32x64xf32>
    %c0_3 = arith.constant 0 : index
    %c0_4 = arith.constant 0 : index
    %5 = vector.load %arg4[%c0_3, %c0_4] : memref<1x64xf32, #tpu.memory_space<vmem>>, vector<1x64xf32>
    %6 = vector.broadcast %5 : vector<1x64xf32> to vector<32x64xf32>
    %7 = arith.addf %4, %6 : vector<32x64xf32>
    %c0_5 = arith.constant 0 : index
    %c0_6 = arith.constant 0 : index
    %8 = vector.load %arg5[%c0_5, %c0_6] : memref<32x64xf32, #tpu.memory_space<vmem>>, vector<32x64xf32>
    tpu.vector_store %arg5[%c0_5, %c0_6], %7 {strides = array<i32>} : memref<32x64xf32, #tpu.memory_space<vmem>>, vector<32x64xf32>,
    return
  }
  func.func @transform_0(%arg0: i32, %arg1: i32) -> (i32, i32) {
    %c0_i32 = arith.constant 0 : i32
    %c0_i32_0 = arith.constant 0 : i32
    return %arg0, %c0_i32 : i32, i32
  }
  func.func @transform_1(%arg0: i32, %arg1: i32) -> (i32, i32) {
    %c0_i32 = arith.constant 0 : i32
    %c0_i32_0 = arith.constant 0 : i32
    return %c0_i32, %arg1 : i32, i32
  }
  func.func @transform_2(%arg0: i32, %arg1: i32) -> (i32, i32) {
    %c0_i32 = arith.constant 0 : i32
    %c0_i32_0 = arith.constant 0 : i32
    return %c0_i32, %arg1 : i32, i32
  }
  func.func @transform_3(%arg0: i32, %arg1: i32) -> (i32, i32) {
    %c0_i32 = arith.constant 0 : i32
    return %arg0, %arg1 : i32, i32
  }
}

module attributes {stable_mosaic.version = 11 : i64} {
  func.func @kernel(%arg0: i32, %arg1: memref<1x17x1x4x16xf32, #tpu.memory_space<vmem>>, %arg2: memref<1x17x1x4x16xf32, #tpu.memory_space<vmem>>, %arg3: memref<1x17x1x4x16xf32, #tpu.memory_space<vmem>>, %arg4: memref<1x17x64xf32, #tpu.memory_space<vmem>>) attributes {dimension_semantics = [#tpu.dimension_semantics<parallel>], iteration_bounds = array<i64: 2>, scalar_prefetch = 0 : i64, scratch_operands = 0 : i64, tpu.core_type = #tpu.core_type<tc>, window_params = [{transform_indices = @transform_0, window_bounds = array<i64: 1, 17, 1, 4, 16>}, {transform_indices = @transform_1, window_bounds = array<i64: 1, 17, 1, 4, 16>}, {transform_indices = @transform_2, window_bounds = array<i64: 1, 17, 1, 4, 16>}, {transform_indices = @transform_3, window_bounds = array<i64: 1, 17, 64>}]} {
    %c0 = arith.constant 0 : index
    %c0_0 = arith.constant 0 : index
    %c0_1 = arith.constant 0 : index
    %c0_2 = arith.constant 0 : index
    %c0_3 = arith.constant 0 : index
    %0 = vector.load %arg1[%c0, %c0_0, %c0_1, %c0_2, %c0_3] : memref<1x17x1x4x16xf32, #tpu.memory_space<vmem>>, vector<1x17x1x4x16xf32>
    %1 = vector.shape_cast %0 : vector<1x17x1x4x16xf32> to vector<17x4x16xf32>
    %c0_4 = arith.constant 0 : index
    %c0_5 = arith.constant 0 : index
    %c0_6 = arith.constant 0 : index
    %c0_7 = arith.constant 0 : index
    %c0_8 = arith.constant 0 : index
    %2 = vector.load %arg2[%c0_4, %c0_5, %c0_6, %c0_7, %c0_8] : memref<1x17x1x4x16xf32, #tpu.memory_space<vmem>>, vector<1x17x1x4x16xf32>
    %3 = vector.shape_cast %2 : vector<1x17x1x4x16xf32> to vector<17x4x16xf32>
    %c0_9 = arith.constant 0 : index
    %c0_10 = arith.constant 0 : index
    %c0_11 = arith.constant 0 : index
    %c0_12 = arith.constant 0 : index
    %c0_13 = arith.constant 0 : index
    %4 = vector.load %arg3[%c0_9, %c0_10, %c0_11, %c0_12, %c0_13] : memref<1x17x1x4x16xf32, #tpu.memory_space<vmem>>, vector<1x17x1x4x16xf32>
    %5 = vector.shape_cast %4 : vector<1x17x1x4x16xf32> to vector<17x4x16xf32>
    %6 = vector.extract_strided_slice %1 {offsets = [0, 0, 0], sizes = [17, 1, 16], strides = [1, 1, 1]} : vector<17x4x16xf32> to vector<17x1x16xf32>
    %7 = vector.shape_cast %6 : vector<17x1x16xf32> to vector<17x16xf32>
    %cst = arith.constant 2.500000e-01 : f32
    %8 = vector.broadcast %cst : f32 to vector<17x16xf32>
    %9 = arith.mulf %7, %8 : vector<17x16xf32>
    %10 = arith.truncf %9 : vector<17x16xf32> to vector<17x16xbf16>
    %11 = vector.extract_strided_slice %3 {offsets = [0, 0, 0], sizes = [17, 1, 16], strides = [1, 1, 1]} : vector<17x4x16xf32> to vector<17x1x16xf32>
    %12 = vector.shape_cast %11 : vector<17x1x16xf32> to vector<17x16xf32>
    %13 = arith.truncf %12 : vector<17x16xf32> to vector<17x16xbf16>
    %14 = vector.extract_strided_slice %5 {offsets = [0, 0, 0], sizes = [17, 1, 16], strides = [1, 1, 1]} : vector<17x4x16xf32> to vector<17x1x16xf32>
    %15 = vector.shape_cast %14 : vector<17x1x16xf32> to vector<17x16xf32>
    %16 = arith.truncf %15 : vector<17x16xf32> to vector<17x16xbf16>
    %cst_14 = arith.constant dense<0.000000e+00> : vector<17x17xf32>
    %17 = tpu.matmul %10, %13, %cst_14 {dimension_numbers = #tpu.dot_dimension_numbers<[1], [1], [0], [0], [0, 0, 1, 0], [], []>} : vector<17x16xbf16>, vector<17x16xbf16>, vector<17x17xf32> -> vector<17x17xf32>
    %cst_15 = arith.constant dense<0xFF800000> : vector<17xf32>
    %18 = vector.multi_reduction <maximumf>, %17, %cst_15 [1] : vector<17x17xf32> to vector<17xf32>
    %19 = vector.shape_cast %18 : vector<17xf32> to vector<17x1xf32>
    %20 = vector.broadcast %19 : vector<17x1xf32> to vector<17x17xf32>
    %21 = arith.subf %17, %20 : vector<17x17xf32>
    %22 = math.exp %21 : vector<17x17xf32>
    %cst_16 = arith.constant dense<0.000000e+00> : vector<17xf32>
    %23 = vector.multi_reduction <add>, %22, %cst_16 [1] : vector<17x17xf32> to vector<17xf32>
    %24 = vector.shape_cast %23 : vector<17xf32> to vector<17x1xf32>
    %25 = tpu.reciprocal %24 {approx = true} : vector<17x1xf32> -> vector<17x1xf32>
    %26 = vector.broadcast %25 : vector<17x1xf32> to vector<17x17xf32>
    %27 = arith.mulf %22, %26 : vector<17x17xf32>
    %28 = arith.truncf %27 : vector<17x17xf32> to vector<17x17xbf16>
    %cst_17 = arith.constant dense<0.000000e+00> : vector<17x16xf32>
    %29 = tpu.matmul %28, %16, %cst_17 {dimension_numbers = #tpu.dot_dimension_numbers<[1], [0], [0], [1], [0, 0, 1, 1], [], []>} : vector<17x17xbf16>, vector<17x16xbf16>, vector<17x16xf32> -> vector<17x16xf32>
    %30 = vector.extract_strided_slice %1 {offsets = [0, 1, 0], sizes = [17, 1, 16], strides = [1, 1, 1]} : vector<17x4x16xf32> to vector<17x1x16xf32>
    %31 = vector.shape_cast %30 : vector<17x1x16xf32> to vector<17x16xf32>
    %cst_18 = arith.constant 2.500000e-01 : f32
    %32 = vector.broadcast %cst_18 : f32 to vector<17x16xf32>
    %33 = arith.mulf %31, %32 : vector<17x16xf32>
    %34 = arith.truncf %33 : vector<17x16xf32> to vector<17x16xbf16>
    %35 = vector.extract_strided_slice %3 {offsets = [0, 1, 0], sizes = [17, 1, 16], strides = [1, 1, 1]} : vector<17x4x16xf32> to vector<17x1x16xf32>
    %36 = vector.shape_cast %35 : vector<17x1x16xf32> to vector<17x16xf32>
    %37 = arith.truncf %36 : vector<17x16xf32> to vector<17x16xbf16>
    %38 = vector.extract_strided_slice %5 {offsets = [0, 1, 0], sizes = [17, 1, 16], strides = [1, 1, 1]} : vector<17x4x16xf32> to vector<17x1x16xf32>
    %39 = vector.shape_cast %38 : vector<17x1x16xf32> to vector<17x16xf32>
    %40 = arith.truncf %39 : vector<17x16xf32> to vector<17x16xbf16>
    %cst_19 = arith.constant dense<0.000000e+00> : vector<17x17xf32>
    %41 = tpu.matmul %34, %37, %cst_19 {dimension_numbers = #tpu.dot_dimension_numbers<[1], [1], [0], [0], [0, 0, 1, 0], [], []>} : vector<17x16xbf16>, vector<17x16xbf16>, vector<17x17xf32> -> vector<17x17xf32>
    %cst_20 = arith.constant dense<0xFF800000> : vector<17xf32>
    %42 = vector.multi_reduction <maximumf>, %41, %cst_20 [1] : vector<17x17xf32> to vector<17xf32>
    %43 = vector.shape_cast %42 : vector<17xf32> to vector<17x1xf32>
    %44 = vector.broadcast %43 : vector<17x1xf32> to vector<17x17xf32>
    %45 = arith.subf %41, %44 : vector<17x17xf32>
    %46 = math.exp %45 : vector<17x17xf32>
    %cst_21 = arith.constant dense<0.000000e+00> : vector<17xf32>
    %47 = vector.multi_reduction <add>, %46, %cst_21 [1] : vector<17x17xf32> to vector<17xf32>
    %48 = vector.shape_cast %47 : vector<17xf32> to vector<17x1xf32>
    %49 = tpu.reciprocal %48 {approx = true} : vector<17x1xf32> -> vector<17x1xf32>
    %50 = vector.broadcast %49 : vector<17x1xf32> to vector<17x17xf32>
    %51 = arith.mulf %46, %50 : vector<17x17xf32>
    %52 = arith.truncf %51 : vector<17x17xf32> to vector<17x17xbf16>
    %cst_22 = arith.constant dense<0.000000e+00> : vector<17x16xf32>
    %53 = tpu.matmul %52, %40, %cst_22 {dimension_numbers = #tpu.dot_dimension_numbers<[1], [0], [0], [1], [0, 0, 1, 1], [], []>} : vector<17x17xbf16>, vector<17x16xbf16>, vector<17x16xf32> -> vector<17x16xf32>
    %54 = vector.extract_strided_slice %1 {offsets = [0, 2, 0], sizes = [17, 1, 16], strides = [1, 1, 1]} : vector<17x4x16xf32> to vector<17x1x16xf32>
    %55 = vector.shape_cast %54 : vector<17x1x16xf32> to vector<17x16xf32>
    %cst_23 = arith.constant 2.500000e-01 : f32
    %56 = vector.broadcast %cst_23 : f32 to vector<17x16xf32>
    %57 = arith.mulf %55, %56 : vector<17x16xf32>
    %58 = arith.truncf %57 : vector<17x16xf32> to vector<17x16xbf16>
    %59 = vector.extract_strided_slice %3 {offsets = [0, 2, 0], sizes = [17, 1, 16], strides = [1, 1, 1]} : vector<17x4x16xf32> to vector<17x1x16xf32>
    %60 = vector.shape_cast %59 : vector<17x1x16xf32> to vector<17x16xf32>
    %61 = arith.truncf %60 : vector<17x16xf32> to vector<17x16xbf16>
    %62 = vector.extract_strided_slice %5 {offsets = [0, 2, 0], sizes = [17, 1, 16], strides = [1, 1, 1]} : vector<17x4x16xf32> to vector<17x1x16xf32>
    %63 = vector.shape_cast %62 : vector<17x1x16xf32> to vector<17x16xf32>
    %64 = arith.truncf %63 : vector<17x16xf32> to vector<17x16xbf16>
    %cst_24 = arith.constant dense<0.000000e+00> : vector<17x17xf32>
    %65 = tpu.matmul %58, %61, %cst_24 {dimension_numbers = #tpu.dot_dimension_numbers<[1], [1], [0], [0], [0, 0, 1, 0], [], []>} : vector<17x16xbf16>, vector<17x16xbf16>, vector<17x17xf32> -> vector<17x17xf32>
    %cst_25 = arith.constant dense<0xFF800000> : vector<17xf32>
    %66 = vector.multi_reduction <maximumf>, %65, %cst_25 [1] : vector<17x17xf32> to vector<17xf32>
    %67 = vector.shape_cast %66 : vector<17xf32> to vector<17x1xf32>
    %68 = vector.broadcast %67 : vector<17x1xf32> to vector<17x17xf32>
    %69 = arith.subf %65, %68 : vector<17x17xf32>
    %70 = math.exp %69 : vector<17x17xf32>
    %cst_26 = arith.constant dense<0.000000e+00> : vector<17xf32>
    %71 = vector.multi_reduction <add>, %70, %cst_26 [1] : vector<17x17xf32> to vector<17xf32>
    %72 = vector.shape_cast %71 : vector<17xf32> to vector<17x1xf32>
    %73 = tpu.reciprocal %72 {approx = true} : vector<17x1xf32> -> vector<17x1xf32>
    %74 = vector.broadcast %73 : vector<17x1xf32> to vector<17x17xf32>
    %75 = arith.mulf %70, %74 : vector<17x17xf32>
    %76 = arith.truncf %75 : vector<17x17xf32> to vector<17x17xbf16>
    %cst_27 = arith.constant dense<0.000000e+00> : vector<17x16xf32>
    %77 = tpu.matmul %76, %64, %cst_27 {dimension_numbers = #tpu.dot_dimension_numbers<[1], [0], [0], [1], [0, 0, 1, 1], [], []>} : vector<17x17xbf16>, vector<17x16xbf16>, vector<17x16xf32> -> vector<17x16xf32>
    %78 = vector.extract_strided_slice %1 {offsets = [0, 3, 0], sizes = [17, 1, 16], strides = [1, 1, 1]} : vector<17x4x16xf32> to vector<17x1x16xf32>
    %79 = vector.shape_cast %78 : vector<17x1x16xf32> to vector<17x16xf32>
    %cst_28 = arith.constant 2.500000e-01 : f32
    %80 = vector.broadcast %cst_28 : f32 to vector<17x16xf32>
    %81 = arith.mulf %79, %80 : vector<17x16xf32>
    %82 = arith.truncf %81 : vector<17x16xf32> to vector<17x16xbf16>
    %83 = vector.extract_strided_slice %3 {offsets = [0, 3, 0], sizes = [17, 1, 16], strides = [1, 1, 1]} : vector<17x4x16xf32> to vector<17x1x16xf32>
    %84 = vector.shape_cast %83 : vector<17x1x16xf32> to vector<17x16xf32>
    %85 = arith.truncf %84 : vector<17x16xf32> to vector<17x16xbf16>
    %86 = vector.extract_strided_slice %5 {offsets = [0, 3, 0], sizes = [17, 1, 16], strides = [1, 1, 1]} : vector<17x4x16xf32> to vector<17x1x16xf32>
    %87 = vector.shape_cast %86 : vector<17x1x16xf32> to vector<17x16xf32>
    %88 = arith.truncf %87 : vector<17x16xf32> to vector<17x16xbf16>
    %cst_29 = arith.constant dense<0.000000e+00> : vector<17x17xf32>
    %89 = tpu.matmul %82, %85, %cst_29 {dimension_numbers = #tpu.dot_dimension_numbers<[1], [1], [0], [0], [0, 0, 1, 0], [], []>} : vector<17x16xbf16>, vector<17x16xbf16>, vector<17x17xf32> -> vector<17x17xf32>
    %cst_30 = arith.constant dense<0xFF800000> : vector<17xf32>
    %90 = vector.multi_reduction <maximumf>, %89, %cst_30 [1] : vector<17x17xf32> to vector<17xf32>
    %91 = vector.shape_cast %90 : vector<17xf32> to vector<17x1xf32>
    %92 = vector.broadcast %91 : vector<17x1xf32> to vector<17x17xf32>
    %93 = arith.subf %89, %92 : vector<17x17xf32>
    %94 = math.exp %93 : vector<17x17xf32>
    %cst_31 = arith.constant dense<0.000000e+00> : vector<17xf32>
    %95 = vector.multi_reduction <add>, %94, %cst_31 [1] : vector<17x17xf32> to vector<17xf32>
    %96 = vector.shape_cast %95 : vector<17xf32> to vector<17x1xf32>
    %97 = tpu.reciprocal %96 {approx = true} : vector<17x1xf32> -> vector<17x1xf32>
    %98 = vector.broadcast %97 : vector<17x1xf32> to vector<17x17xf32>
    %99 = arith.mulf %94, %98 : vector<17x17xf32>
    %100 = arith.truncf %99 : vector<17x17xf32> to vector<17x17xbf16>
    %cst_32 = arith.constant dense<0.000000e+00> : vector<17x16xf32>
    %101 = tpu.matmul %100, %88, %cst_32 {dimension_numbers = #tpu.dot_dimension_numbers<[1], [0], [0], [1], [0, 0, 1, 1], [], []>} : vector<17x17xbf16>, vector<17x16xbf16>, vector<17x16xf32> -> vector<17x16xf32>
    %102 = tpu.concatenate %29, %53, %77, %101 in 1 : vector<17x16xf32>, vector<17x16xf32>, vector<17x16xf32>, vector<17x16xf32> -> vector<17x64xf32>
    %c0_33 = arith.constant 0 : index
    %c0_34 = arith.constant 0 : index
    %c0_35 = arith.constant 0 : index
    %103 = vector.load %arg4[%c0_33, %c0_34, %c0_35] : memref<1x17x64xf32, #tpu.memory_space<vmem>>, vector<1x17x64xf32>
    %104 = vector.shape_cast %103 : vector<1x17x64xf32> to vector<17x64xf32>
    %105 = vector.shape_cast %102 : vector<17x64xf32> to vector<1x17x64xf32>
    tpu.vector_store %arg4[%c0_33, %c0_34, %c0_35], %105 {strides = array<i32>} : memref<1x17x64xf32, #tpu.memory_space<vmem>>, vector<1x17x64xf32>,
    return
  }
  func.func @transform_0(%arg0: i32) -> (i32, i32, i32, i32, i32) {
    %c0_i32 = arith.constant 0 : i32
    %c0_i32_0 = arith.constant 0 : i32
    %c0_i32_1 = arith.constant 0 : i32
    %c0_i32_2 = arith.constant 0 : i32
    %c0_i32_3 = arith.constant 0 : i32
    return %arg0, %c0_i32, %c0_i32_0, %c0_i32_1, %c0_i32_2 : i32, i32, i32, i32, i32
  }
  func.func @transform_1(%arg0: i32) -> (i32, i32, i32, i32, i32) {
    %c0_i32 = arith.constant 0 : i32
    %c1_i32 = arith.constant 1 : i32
    %c0_i32_0 = arith.constant 0 : i32
    %c0_i32_1 = arith.constant 0 : i32
    %c0_i32_2 = arith.constant 0 : i32
    return %arg0, %c0_i32, %c1_i32, %c0_i32_0, %c0_i32_1 : i32, i32, i32, i32, i32
  }
  func.func @transform_2(%arg0: i32) -> (i32, i32, i32, i32, i32) {
    %c0_i32 = arith.constant 0 : i32
    %c2_i32 = arith.constant 2 : i32
    %c0_i32_0 = arith.constant 0 : i32
    %c0_i32_1 = arith.constant 0 : i32
    %c0_i32_2 = arith.constant 0 : i32
    return %arg0, %c0_i32, %c2_i32, %c0_i32_0, %c0_i32_1 : i32, i32, i32, i32, i32
  }
  func.func @transform_3(%arg0: i32) -> (i32, i32, i32) {
    %c0_i32 = arith.constant 0 : i32
    %c0_i32_0 = arith.constant 0 : i32
    %c0_i32_1 = arith.constant 0 : i32
    return %arg0, %c0_i32, %c0_i32_0 : i32, i32, i32
  }
}

module attributes {stable_mosaic.version = 11 : i64} {
  func.func @kernel(%arg0: i32, %arg1: i32, %arg2: memref<40x64xf32, #tpu.memory_space<vmem>>, %arg3: memref<64x192xf32, #tpu.memory_space<vmem>>, %arg4: memref<1x192xf32, #tpu.memory_space<vmem>>, %arg5: memref<1x64xf32, #tpu.memory_space<vmem>>, %arg6: memref<1x64xf32, #tpu.memory_space<vmem>>, %arg7: memref<40x192xf32, #tpu.memory_space<vmem>>) attributes {dimension_semantics = [#tpu.dimension_semantics<parallel>, #tpu.dimension_semantics<parallel>], iteration_bounds = array<i64: 1, 1>, scalar_prefetch = 0 : i64, scratch_operands = 0 : i64, tpu.core_type = #tpu.core_type<tc>, window_params = [{transform_indices = @transform_0, window_bounds = array<i64: 40, 64>}, {transform_indices = @transform_1, window_bounds = array<i64: 64, 192>}, {transform_indices = @transform_2, window_bounds = array<i64: 1, 192>}, {pipeline_mode = #tpu.pipeline_mode<synchronous>, transform_indices = @transform_3, window_bounds = array<i64: 1, 64>}, {pipeline_mode = #tpu.pipeline_mode<synchronous>, transform_indices = @transform_4, window_bounds = array<i64: 1, 64>}, {transform_indices = @transform_5, window_bounds = array<i64: 40, 192>}]} {
    %c0 = arith.constant 0 : index
    %c0_0 = arith.constant 0 : index
    %0 = vector.load %arg2[%c0, %c0_0] : memref<40x64xf32, #tpu.memory_space<vmem>>, vector<40x64xf32>
    %cst = arith.constant dense<0.000000e+00> : vector<40xf32>
    %1 = vector.multi_reduction <add>, %0, %cst [1] : vector<40x64xf32> to vector<40xf32>
    %2 = vector.shape_cast %1 : vector<40xf32> to vector<40x1xf32>
    %cst_1 = arith.constant 6.400000e+01 : f32
    %3 = vector.broadcast %cst_1 : f32 to vector<40x1xf32>
    %4 = arith.divf %2, %3 : vector<40x1xf32>
    %5 = vector.broadcast %4 : vector<40x1xf32> to vector<40x64xf32>
    %6 = arith.subf %0, %5 : vector<40x64xf32>
    %7 = arith.mulf %6, %6 : vector<40x64xf32>
    %cst_2 = arith.constant dense<0.000000e+00> : vector<40xf32>
    %8 = vector.multi_reduction <add>, %7, %cst_2 [1] : vector<40x64xf32> to vector<40xf32>
    %9 = vector.shape_cast %8 : vector<40xf32> to vector<40x1xf32>
    %cst_3 = arith.constant 6.400000e+01 : f32
    %10 = vector.broadcast %cst_3 : f32 to vector<40x1xf32>
    %11 = arith.divf %9, %10 : vector<40x1xf32>
    %12 = vector.broadcast %4 : vector<40x1xf32> to vector<40x64xf32>
    %13 = arith.subf %0, %12 : vector<40x64xf32>
    %cst_4 = arith.constant 9.99999997E-7 : f32
    %14 = vector.broadcast %cst_4 : f32 to vector<40x1xf32>
    %15 = arith.addf %11, %14 : vector<40x1xf32>
    %16 = math.rsqrt %15 : vector<40x1xf32>
    %17 = vector.broadcast %16 : vector<40x1xf32> to vector<40x64xf32>
    %18 = arith.mulf %13, %17 : vector<40x64xf32>
    %c0_5 = arith.constant 0 : index
    %c0_6 = arith.constant 0 : index
    %19 = vector.load %arg5[%c0_5, %c0_6] : memref<1x64xf32, #tpu.memory_space<vmem>>, vector<1x64xf32>
    %20 = vector.broadcast %19 : vector<1x64xf32> to vector<40x64xf32>
    %21 = arith.mulf %18, %20 : vector<40x64xf32>
    %c0_7 = arith.constant 0 : index
    %c0_8 = arith.constant 0 : index
    %22 = vector.load %arg6[%c0_7, %c0_8] : memref<1x64xf32, #tpu.memory_space<vmem>>, vector<1x64xf32>
    %23 = vector.broadcast %22 : vector<1x64xf32> to vector<40x64xf32>
    %24 = arith.addf %21, %23 : vector<40x64xf32>
    %25 = arith.truncf %24 : vector<40x64xf32> to vector<40x64xbf16>
    %c0_9 = arith.constant 0 : index
    %c0_10 = arith.constant 0 : index
    %26 = vector.load %arg3[%c0_9, %c0_10] : memref<64x192xf32, #tpu.memory_space<vmem>>, vector<64x192xf32>
    %27 = arith.truncf %26 : vector<64x192xf32> to vector<64x192xbf16>
    %cst_11 = arith.constant dense<0.000000e+00> : vector<40x192xf32>
    %28 = tpu.matmul %25, %27, %cst_11 {dimension_numbers = #tpu.dot_dimension_numbers<[1], [0], [0], [1], [0, 0, 1, 1], [], []>} : vector<40x64xbf16>, vector<64x192xbf16>, vector<40x192xf32> -> vector<40x192xf32>
    %c0_12 = arith.constant 0 : index
    %c0_13 = arith.constant 0 : index
    %29 = vector.load %arg4[%c0_12, %c0_13] : memref<1x192xf32, #tpu.memory_space<vmem>>, vector<1x192xf32>
    %30 = vector.broadcast %29 : vector<1x192xf32> to vector<40x192xf32>
    %31 = arith.addf %28, %30 : vector<40x192xf32>
    %c0_14 = arith.constant 0 : index
    %c0_15 = arith.constant 0 : index
    %32 = vector.load %arg7[%c0_14, %c0_15] : memref<40x192xf32, #tpu.memory_space<vmem>>, vector<40x192xf32>
    tpu.vector_store %arg7[%c0_14, %c0_15], %31 {strides = array<i32>} : memref<40x192xf32, #tpu.memory_space<vmem>>, vector<40x192xf32>,
    return
  }
  func.func @transform_0(%arg0: i32, %arg1: i32) -> (i32, i32) {
    %c0_i32 = arith.constant 0 : i32
    %c0_i32_0 = arith.constant 0 : i32
    return %arg0, %c0_i32 : i32, i32
  }
  func.func @transform_1(%arg0: i32, %arg1: i32) -> (i32, i32) {
    %c0_i32 = arith.constant 0 : i32
    %c0_i32_0 = arith.constant 0 : i32
    return %c0_i32, %arg1 : i32, i32
  }
  func.func @transform_2(%arg0: i32, %arg1: i32) -> (i32, i32) {
    %c0_i32 = arith.constant 0 : i32
    %c0_i32_0 = arith.constant 0 : i32
    return %c0_i32, %arg1 : i32, i32
  }
  func.func @transform_3(%arg0: i32, %arg1: i32) -> (i32, i32) {
    %c0_i32 = arith.constant 0 : i32
    %c0_i32_0 = arith.constant 0 : i32
    %c0_i32_1 = arith.constant 0 : i32
    return %c0_i32, %c0_i32_0 : i32, i32
  }
  func.func @transform_4(%arg0: i32, %arg1: i32) -> (i32, i32) {
    %c0_i32 = arith.constant 0 : i32
    %c0_i32_0 = arith.constant 0 : i32
    %c0_i32_1 = arith.constant 0 : i32
    return %c0_i32, %c0_i32_0 : i32, i32
  }
  func.func @transform_5(%arg0: i32, %arg1: i32) -> (i32, i32) {
    %c0_i32 = arith.constant 0 : i32
    return %arg0, %arg1 : i32, i32
  }
}

module attributes {stable_mosaic.version = 11 : i64} {
  func.func @kernel(%arg0: i32, %arg1: i32, %arg2: memref<40x64xf32, #tpu.memory_space<vmem>>, %arg3: memref<64x64xf32, #tpu.memory_space<vmem>>, %arg4: memref<1x64xf32, #tpu.memory_space<vmem>>, %arg5: memref<40x64xf32, #tpu.memory_space<vmem>>, %arg6: memref<40x64xf32, #tpu.memory_space<vmem>>) attributes {dimension_semantics = [#tpu.dimension_semantics<parallel>, #tpu.dimension_semantics<parallel>], iteration_bounds = array<i64: 1, 1>, scalar_prefetch = 0 : i64, scratch_operands = 0 : i64, tpu.core_type = #tpu.core_type<tc>, window_params = [{transform_indices = @transform_0, window_bounds = array<i64: 40, 64>}, {transform_indices = @transform_1, window_bounds = array<i64: 64, 64>}, {transform_indices = @transform_2, window_bounds = array<i64: 1, 64>}, {transform_indices = @transform_3, window_bounds = array<i64: 40, 64>}, {transform_indices = @transform_4, window_bounds = array<i64: 40, 64>}]} {
    %c0 = arith.constant 0 : index
    %c0_0 = arith.constant 0 : index
    %0 = vector.load %arg2[%c0, %c0_0] : memref<40x64xf32, #tpu.memory_space<vmem>>, vector<40x64xf32>
    %1 = arith.truncf %0 : vector<40x64xf32> to vector<40x64xbf16>
    %c0_1 = arith.constant 0 : index
    %c0_2 = arith.constant 0 : index
    %2 = vector.load %arg3[%c0_1, %c0_2] : memref<64x64xf32, #tpu.memory_space<vmem>>, vector<64x64xf32>
    %3 = arith.truncf %2 : vector<64x64xf32> to vector<64x64xbf16>
    %cst = arith.constant dense<0.000000e+00> : vector<40x64xf32>
    %4 = tpu.matmul %1, %3, %cst {dimension_numbers = #tpu.dot_dimension_numbers<[1], [0], [0], [1], [0, 0, 1, 1], [], []>} : vector<40x64xbf16>, vector<64x64xbf16>, vector<40x64xf32> -> vector<40x64xf32>
    %c0_3 = arith.constant 0 : index
    %c0_4 = arith.constant 0 : index
    %5 = vector.load %arg4[%c0_3, %c0_4] : memref<1x64xf32, #tpu.memory_space<vmem>>, vector<1x64xf32>
    %6 = vector.broadcast %5 : vector<1x64xf32> to vector<40x64xf32>
    %7 = arith.addf %4, %6 : vector<40x64xf32>
    %c0_5 = arith.constant 0 : index
    %c0_6 = arith.constant 0 : index
    %8 = vector.load %arg5[%c0_5, %c0_6] : memref<40x64xf32, #tpu.memory_space<vmem>>, vector<40x64xf32>
    %9 = arith.addf %7, %8 : vector<40x64xf32>
    %c0_7 = arith.constant 0 : index
    %c0_8 = arith.constant 0 : index
    %10 = vector.load %arg6[%c0_7, %c0_8] : memref<40x64xf32, #tpu.memory_space<vmem>>, vector<40x64xf32>
    tpu.vector_store %arg6[%c0_7, %c0_8], %9 {strides = array<i32>} : memref<40x64xf32, #tpu.memory_space<vmem>>, vector<40x64xf32>,
    return
  }
  func.func @transform_0(%arg0: i32, %arg1: i32) -> (i32, i32) {
    %c0_i32 = arith.constant 0 : i32
    %c0_i32_0 = arith.constant 0 : i32
    return %arg0, %c0_i32 : i32, i32
  }
  func.func @transform_1(%arg0: i32, %arg1: i32) -> (i32, i32) {
    %c0_i32 = arith.constant 0 : i32
    %c0_i32_0 = arith.constant 0 : i32
    return %c0_i32, %arg1 : i32, i32
  }
  func.func @transform_2(%arg0: i32, %arg1: i32) -> (i32, i32) {
    %c0_i32 = arith.constant 0 : i32
    %c0_i32_0 = arith.constant 0 : i32
    return %c0_i32, %arg1 : i32, i32
  }
  func.func @transform_3(%arg0: i32, %arg1: i32) -> (i32, i32) {
    %c0_i32 = arith.constant 0 : i32
    return %arg0, %arg1 : i32, i32
  }
  func.func @transform_4(%arg0: i32, %arg1: i32) -> (i32, i32) {
    %c0_i32 = arith.constant 0 : i32
    return %arg0, %arg1 : i32, i32
  }
}

module attributes {stable_mosaic.version = 11 : i64} {
  func.func @kernel(%arg0: i32, %arg1: i32, %arg2: memref<40x64xf32, #tpu.memory_space<vmem>>, %arg3: memref<64x256xf32, #tpu.memory_space<vmem>>, %arg4: memref<1x256xf32, #tpu.memory_space<vmem>>, %arg5: memref<1x64xf32, #tpu.memory_space<vmem>>, %arg6: memref<1x64xf32, #tpu.memory_space<vmem>>, %arg7: memref<40x256xf32, #tpu.memory_space<vmem>>) attributes {dimension_semantics = [#tpu.dimension_semantics<parallel>, #tpu.dimension_semantics<parallel>], iteration_bounds = array<i64: 1, 1>, scalar_prefetch = 0 : i64, scratch_operands = 0 : i64, tpu.core_type = #tpu.core_type<tc>, window_params = [{transform_indices = @transform_0, window_bounds = array<i64: 40, 64>}, {transform_indices = @transform_1, window_bounds = array<i64: 64, 256>}, {transform_indices = @transform_2, window_bounds = array<i64: 1, 256>}, {pipeline_mode = #tpu.pipeline_mode<synchronous>, transform_indices = @transform_3, window_bounds = array<i64: 1, 64>}, {pipeline_mode = #tpu.pipeline_mode<synchronous>, transform_indices = @transform_4, window_bounds = array<i64: 1, 64>}, {transform_indices = @transform_5, window_bounds = array<i64: 40, 256>}]} {
    %c0 = arith.constant 0 : index
    %c0_0 = arith.constant 0 : index
    %0 = vector.load %arg2[%c0, %c0_0] : memref<40x64xf32, #tpu.memory_space<vmem>>, vector<40x64xf32>
    %cst = arith.constant dense<0.000000e+00> : vector<40xf32>
    %1 = vector.multi_reduction <add>, %0, %cst [1] : vector<40x64xf32> to vector<40xf32>
    %2 = vector.shape_cast %1 : vector<40xf32> to vector<40x1xf32>
    %cst_1 = arith.constant 6.400000e+01 : f32
    %3 = vector.broadcast %cst_1 : f32 to vector<40x1xf32>
    %4 = arith.divf %2, %3 : vector<40x1xf32>
    %5 = vector.broadcast %4 : vector<40x1xf32> to vector<40x64xf32>
    %6 = arith.subf %0, %5 : vector<40x64xf32>
    %7 = arith.mulf %6, %6 : vector<40x64xf32>
    %cst_2 = arith.constant dense<0.000000e+00> : vector<40xf32>
    %8 = vector.multi_reduction <add>, %7, %cst_2 [1] : vector<40x64xf32> to vector<40xf32>
    %9 = vector.shape_cast %8 : vector<40xf32> to vector<40x1xf32>
    %cst_3 = arith.constant 6.400000e+01 : f32
    %10 = vector.broadcast %cst_3 : f32 to vector<40x1xf32>
    %11 = arith.divf %9, %10 : vector<40x1xf32>
    %12 = vector.broadcast %4 : vector<40x1xf32> to vector<40x64xf32>
    %13 = arith.subf %0, %12 : vector<40x64xf32>
    %cst_4 = arith.constant 9.99999997E-7 : f32
    %14 = vector.broadcast %cst_4 : f32 to vector<40x1xf32>
    %15 = arith.addf %11, %14 : vector<40x1xf32>
    %16 = math.rsqrt %15 : vector<40x1xf32>
    %17 = vector.broadcast %16 : vector<40x1xf32> to vector<40x64xf32>
    %18 = arith.mulf %13, %17 : vector<40x64xf32>
    %c0_5 = arith.constant 0 : index
    %c0_6 = arith.constant 0 : index
    %19 = vector.load %arg5[%c0_5, %c0_6] : memref<1x64xf32, #tpu.memory_space<vmem>>, vector<1x64xf32>
    %20 = vector.broadcast %19 : vector<1x64xf32> to vector<40x64xf32>
    %21 = arith.mulf %18, %20 : vector<40x64xf32>
    %c0_7 = arith.constant 0 : index
    %c0_8 = arith.constant 0 : index
    %22 = vector.load %arg6[%c0_7, %c0_8] : memref<1x64xf32, #tpu.memory_space<vmem>>, vector<1x64xf32>
    %23 = vector.broadcast %22 : vector<1x64xf32> to vector<40x64xf32>
    %24 = arith.addf %21, %23 : vector<40x64xf32>
    %25 = arith.truncf %24 : vector<40x64xf32> to vector<40x64xbf16>
    %c0_9 = arith.constant 0 : index
    %c0_10 = arith.constant 0 : index
    %26 = vector.load %arg3[%c0_9, %c0_10] : memref<64x256xf32, #tpu.memory_space<vmem>>, vector<64x256xf32>
    %27 = arith.truncf %26 : vector<64x256xf32> to vector<64x256xbf16>
    %cst_11 = arith.constant dense<0.000000e+00> : vector<40x256xf32>
    %28 = tpu.matmul %25, %27, %cst_11 {dimension_numbers = #tpu.dot_dimension_numbers<[1], [0], [0], [1], [0, 0, 1, 1], [], []>} : vector<40x64xbf16>, vector<64x256xbf16>, vector<40x256xf32> -> vector<40x256xf32>
    %c0_12 = arith.constant 0 : index
    %c0_13 = arith.constant 0 : index
    %29 = vector.load %arg4[%c0_12, %c0_13] : memref<1x256xf32, #tpu.memory_space<vmem>>, vector<1x256xf32>
    %30 = vector.broadcast %29 : vector<1x256xf32> to vector<40x256xf32>
    %31 = arith.addf %28, %30 : vector<40x256xf32>
    %c0_14 = arith.constant 0 : index
    %c0_15 = arith.constant 0 : index
    %32 = vector.load %arg7[%c0_14, %c0_15] : memref<40x256xf32, #tpu.memory_space<vmem>>, vector<40x256xf32>
    tpu.vector_store %arg7[%c0_14, %c0_15], %31 {strides = array<i32>} : memref<40x256xf32, #tpu.memory_space<vmem>>, vector<40x256xf32>,
    return
  }
  func.func @transform_0(%arg0: i32, %arg1: i32) -> (i32, i32) {
    %c0_i32 = arith.constant 0 : i32
    %c0_i32_0 = arith.constant 0 : i32
    return %arg0, %c0_i32 : i32, i32
  }
  func.func @transform_1(%arg0: i32, %arg1: i32) -> (i32, i32) {
    %c0_i32 = arith.constant 0 : i32
    %c0_i32_0 = arith.constant 0 : i32
    return %c0_i32, %arg1 : i32, i32
  }
  func.func @transform_2(%arg0: i32, %arg1: i32) -> (i32, i32) {
    %c0_i32 = arith.constant 0 : i32
    %c0_i32_0 = arith.constant 0 : i32
    return %c0_i32, %arg1 : i32, i32
  }
  func.func @transform_3(%arg0: i32, %arg1: i32) -> (i32, i32) {
    %c0_i32 = arith.constant 0 : i32
    %c0_i32_0 = arith.constant 0 : i32
    %c0_i32_1 = arith.constant 0 : i32
    return %c0_i32, %c0_i32_0 : i32, i32
  }
  func.func @transform_4(%arg0: i32, %arg1: i32) -> (i32, i32) {
    %c0_i32 = arith.constant 0 : i32
    %c0_i32_0 = arith.constant 0 : i32
    %c0_i32_1 = arith.constant 0 : i32
    return %c0_i32, %c0_i32_0 : i32, i32
  }
  func.func @transform_5(%arg0: i32, %arg1: i32) -> (i32, i32) {
    %c0_i32 = arith.constant 0 : i32
    return %arg0, %arg1 : i32, i32
  }
}

module attributes {stable_mosaic.version = 11 : i64} {
  func.func @kernel(%arg0: i32, %arg1: i32, %arg2: memref<40x256xf32, #tpu.memory_space<vmem>>, %arg3: memref<256x64xf32, #tpu.memory_space<vmem>>, %arg4: memref<1x64xf32, #tpu.memory_space<vmem>>, %arg5: memref<40x64xf32, #tpu.memory_space<vmem>>, %arg6: memref<40x64xf32, #tpu.memory_space<vmem>>) attributes {dimension_semantics = [#tpu.dimension_semantics<parallel>, #tpu.dimension_semantics<parallel>], iteration_bounds = array<i64: 1, 1>, scalar_prefetch = 0 : i64, scratch_operands = 0 : i64, tpu.core_type = #tpu.core_type<tc>, window_params = [{transform_indices = @transform_0, window_bounds = array<i64: 40, 256>}, {transform_indices = @transform_1, window_bounds = array<i64: 256, 64>}, {transform_indices = @transform_2, window_bounds = array<i64: 1, 64>}, {transform_indices = @transform_3, window_bounds = array<i64: 40, 64>}, {transform_indices = @transform_4, window_bounds = array<i64: 40, 64>}]} {
    %c0 = arith.constant 0 : index
    %c0_0 = arith.constant 0 : index
    %0 = vector.load %arg2[%c0, %c0_0] : memref<40x256xf32, #tpu.memory_space<vmem>>, vector<40x256xf32>
    %1 = arith.mulf %0, %0 : vector<40x256xf32>
    %2 = arith.mulf %0, %1 : vector<40x256xf32>
    %cst = arith.constant 4.471500e-02 : f32
    %3 = vector.broadcast %cst : f32 to vector<40x256xf32>
    %4 = arith.mulf %3, %2 : vector<40x256xf32>
    %5 = arith.addf %0, %4 : vector<40x256xf32>
    %cst_1 = arith.constant 0.797884583 : f32
    %6 = vector.broadcast %cst_1 : f32 to vector<40x256xf32>
    %7 = arith.mulf %6, %5 : vector<40x256xf32>
    %8 = math.tanh %7 : vector<40x256xf32>
    %cst_2 = arith.constant 1.000000e+00 : f32
    %9 = vector.broadcast %cst_2 : f32 to vector<40x256xf32>
    %10 = arith.addf %9, %8 : vector<40x256xf32>
    %cst_3 = arith.constant 5.000000e-01 : f32
    %11 = vector.broadcast %cst_3 : f32 to vector<40x256xf32>
    %12 = arith.mulf %11, %10 : vector<40x256xf32>
    %13 = arith.mulf %0, %12 : vector<40x256xf32>
    %14 = arith.truncf %13 : vector<40x256xf32> to vector<40x256xbf16>
    %c0_4 = arith.constant 0 : index
    %c0_5 = arith.constant 0 : index
    %15 = vector.load %arg3[%c0_4, %c0_5] : memref<256x64xf32, #tpu.memory_space<vmem>>, vector<256x64xf32>
    %16 = arith.truncf %15 : vector<256x64xf32> to vector<256x64xbf16>
    %cst_6 = arith.constant dense<0.000000e+00> : vector<40x64xf32>
    %17 = tpu.matmul %14, %16, %cst_6 {dimension_numbers = #tpu.dot_dimension_numbers<[1], [0], [0], [1], [0, 0, 1, 1], [], []>} : vector<40x256xbf16>, vector<256x64xbf16>, vector<40x64xf32> -> vector<40x64xf32>
    %c0_7 = arith.constant 0 : index
    %c0_8 = arith.constant 0 : index
    %18 = vector.load %arg4[%c0_7, %c0_8] : memref<1x64xf32, #tpu.memory_space<vmem>>, vector<1x64xf32>
    %19 = vector.broadcast %18 : vector<1x64xf32> to vector<40x64xf32>
    %20 = arith.addf %17, %19 : vector<40x64xf32>
    %c0_9 = arith.constant 0 : index
    %c0_10 = arith.constant 0 : index
    %21 = vector.load %arg5[%c0_9, %c0_10] : memref<40x64xf32, #tpu.memory_space<vmem>>, vector<40x64xf32>
    %22 = arith.addf %20, %21 : vector<40x64xf32>
    %c0_11 = arith.constant 0 : index
    %c0_12 = arith.constant 0 : index
    %23 = vector.load %arg6[%c0_11, %c0_12] : memref<40x64xf32, #tpu.memory_space<vmem>>, vector<40x64xf32>
    tpu.vector_store %arg6[%c0_11, %c0_12], %22 {strides = array<i32>} : memref<40x64xf32, #tpu.memory_space<vmem>>, vector<40x64xf32>,
    return
  }
  func.func @transform_0(%arg0: i32, %arg1: i32) -> (i32, i32) {
    %c0_i32 = arith.constant 0 : i32
    %c0_i32_0 = arith.constant 0 : i32
    return %arg0, %c0_i32 : i32, i32
  }
  func.func @transform_1(%arg0: i32, %arg1: i32) -> (i32, i32) {
    %c0_i32 = arith.constant 0 : i32
    %c0_i32_0 = arith.constant 0 : i32
    return %c0_i32, %arg1 : i32, i32
  }
  func.func @transform_2(%arg0: i32, %arg1: i32) -> (i32, i32) {
    %c0_i32 = arith.constant 0 : i32
    %c0_i32_0 = arith.constant 0 : i32
    return %c0_i32, %arg1 : i32, i32
  }
  func.func @transform_3(%arg0: i32, %arg1: i32) -> (i32, i32) {
    %c0_i32 = arith.constant 0 : i32
    return %arg0, %arg1 : i32, i32
  }
  func.func @transform_4(%arg0: i32, %arg1: i32) -> (i32, i32) {
    %c0_i32 = arith.constant 0 : i32
    return %arg0, %arg1 : i32, i32
  }
}

module attributes {stable_mosaic.version = 11 : i64} {
  func.func @_layernorm_kernel(%arg0: i32, %arg1: memref<40x64xf32, #tpu.memory_space<vmem>>, %arg2: memref<1x64xf32, #tpu.memory_space<vmem>>, %arg3: memref<1x64xf32, #tpu.memory_space<vmem>>, %arg4: memref<40x64xf32, #tpu.memory_space<vmem>>) attributes {dimension_semantics = [#tpu.dimension_semantics<parallel>], iteration_bounds = array<i64: 1>, scalar_prefetch = 0 : i64, scratch_operands = 0 : i64, tpu.core_type = #tpu.core_type<tc>, window_params = [{transform_indices = @transform_0, window_bounds = array<i64: 40, 64>}, {pipeline_mode = #tpu.pipeline_mode<synchronous>, transform_indices = @transform_1, window_bounds = array<i64: 1, 64>}, {pipeline_mode = #tpu.pipeline_mode<synchronous>, transform_indices = @transform_2, window_bounds = array<i64: 1, 64>}, {transform_indices = @transform_3, window_bounds = array<i64: 40, 64>}]} {
    %c0 = arith.constant 0 : index
    %c0_0 = arith.constant 0 : index
    %0 = vector.load %arg1[%c0, %c0_0] : memref<40x64xf32, #tpu.memory_space<vmem>>, vector<40x64xf32>
    %cst = arith.constant dense<0.000000e+00> : vector<40xf32>
    %1 = vector.multi_reduction <add>, %0, %cst [1] : vector<40x64xf32> to vector<40xf32>
    %2 = vector.shape_cast %1 : vector<40xf32> to vector<40x1xf32>
    %cst_1 = arith.constant 6.400000e+01 : f32
    %3 = vector.broadcast %cst_1 : f32 to vector<40x1xf32>
    %4 = arith.divf %2, %3 : vector<40x1xf32>
    %5 = vector.broadcast %4 : vector<40x1xf32> to vector<40x64xf32>
    %6 = arith.subf %0, %5 : vector<40x64xf32>
    %7 = arith.mulf %6, %6 : vector<40x64xf32>
    %cst_2 = arith.constant dense<0.000000e+00> : vector<40xf32>
    %8 = vector.multi_reduction <add>, %7, %cst_2 [1] : vector<40x64xf32> to vector<40xf32>
    %9 = vector.shape_cast %8 : vector<40xf32> to vector<40x1xf32>
    %cst_3 = arith.constant 6.400000e+01 : f32
    %10 = vector.broadcast %cst_3 : f32 to vector<40x1xf32>
    %11 = arith.divf %9, %10 : vector<40x1xf32>
    %12 = vector.broadcast %4 : vector<40x1xf32> to vector<40x64xf32>
    %13 = arith.subf %0, %12 : vector<40x64xf32>
    %cst_4 = arith.constant 9.99999997E-7 : f32
    %14 = vector.broadcast %cst_4 : f32 to vector<40x1xf32>
    %15 = arith.addf %11, %14 : vector<40x1xf32>
    %16 = math.rsqrt %15 : vector<40x1xf32>
    %17 = vector.broadcast %16 : vector<40x1xf32> to vector<40x64xf32>
    %18 = arith.mulf %13, %17 : vector<40x64xf32>
    %c0_5 = arith.constant 0 : index
    %c0_6 = arith.constant 0 : index
    %19 = vector.load %arg2[%c0_5, %c0_6] : memref<1x64xf32, #tpu.memory_space<vmem>>, vector<1x64xf32>
    %20 = vector.broadcast %19 : vector<1x64xf32> to vector<40x64xf32>
    %21 = arith.mulf %18, %20 : vector<40x64xf32>
    %c0_7 = arith.constant 0 : index
    %c0_8 = arith.constant 0 : index
    %22 = vector.load %arg3[%c0_7, %c0_8] : memref<1x64xf32, #tpu.memory_space<vmem>>, vector<1x64xf32>
    %23 = vector.broadcast %22 : vector<1x64xf32> to vector<40x64xf32>
    %24 = arith.addf %21, %23 : vector<40x64xf32>
    %c0_9 = arith.constant 0 : index
    %c0_10 = arith.constant 0 : index
    %25 = vector.load %arg4[%c0_9, %c0_10] : memref<40x64xf32, #tpu.memory_space<vmem>>, vector<40x64xf32>
    tpu.vector_store %arg4[%c0_9, %c0_10], %24 {strides = array<i32>} : memref<40x64xf32, #tpu.memory_space<vmem>>, vector<40x64xf32>,
    return
  }
  func.func @transform_0(%arg0: i32) -> (i32, i32) {
    %c0_i32 = arith.constant 0 : i32
    %c0_i32_0 = arith.constant 0 : i32
    return %arg0, %c0_i32 : i32, i32
  }
  func.func @transform_1(%arg0: i32) -> (i32, i32) {
    %c0_i32 = arith.constant 0 : i32
    %c0_i32_0 = arith.constant 0 : i32
    %c0_i32_1 = arith.constant 0 : i32
    return %c0_i32, %c0_i32_0 : i32, i32
  }
  func.func @transform_2(%arg0: i32) -> (i32, i32) {
    %c0_i32 = arith.constant 0 : i32
    %c0_i32_0 = arith.constant 0 : i32
    %c0_i32_1 = arith.constant 0 : i32
    return %c0_i32, %c0_i32_0 : i32, i32
  }
  func.func @transform_3(%arg0: i32) -> (i32, i32) {
    %c0_i32 = arith.constant 0 : i32
    %c0_i32_0 = arith.constant 0 : i32
    return %arg0, %c0_i32 : i32, i32
  }
}

module attributes {stable_mosaic.version = 11 : i64} {
  func.func @kernel(%arg0: i32, %arg1: i32, %arg2: memref<24x64xf32, #tpu.memory_space<vmem>>, %arg3: memref<64x64xf32, #tpu.memory_space<vmem>>, %arg4: memref<1x64xf32, #tpu.memory_space<vmem>>, %arg5: memref<24x64xf32, #tpu.memory_space<vmem>>, %arg6: memref<24x64xf32, #tpu.memory_space<vmem>>) attributes {dimension_semantics = [#tpu.dimension_semantics<parallel>, #tpu.dimension_semantics<parallel>], iteration_bounds = array<i64: 1, 1>, scalar_prefetch = 0 : i64, scratch_operands = 0 : i64, tpu.core_type = #tpu.core_type<tc>, window_params = [{transform_indices = @transform_0, window_bounds = array<i64: 24, 64>}, {transform_indices = @transform_1, window_bounds = array<i64: 64, 64>}, {transform_indices = @transform_2, window_bounds = array<i64: 1, 64>}, {transform_indices = @transform_3, window_bounds = array<i64: 24, 64>}, {transform_indices = @transform_4, window_bounds = array<i64: 24, 64>}]} {
    %c0 = arith.constant 0 : index
    %c0_0 = arith.constant 0 : index
    %0 = vector.load %arg2[%c0, %c0_0] : memref<24x64xf32, #tpu.memory_space<vmem>>, vector<24x64xf32>
    %1 = arith.truncf %0 : vector<24x64xf32> to vector<24x64xbf16>
    %c0_1 = arith.constant 0 : index
    %c0_2 = arith.constant 0 : index
    %2 = vector.load %arg3[%c0_1, %c0_2] : memref<64x64xf32, #tpu.memory_space<vmem>>, vector<64x64xf32>
    %3 = arith.truncf %2 : vector<64x64xf32> to vector<64x64xbf16>
    %cst = arith.constant dense<0.000000e+00> : vector<24x64xf32>
    %4 = tpu.matmul %1, %3, %cst {dimension_numbers = #tpu.dot_dimension_numbers<[1], [0], [0], [1], [0, 0, 1, 1], [], []>} : vector<24x64xbf16>, vector<64x64xbf16>, vector<24x64xf32> -> vector<24x64xf32>
    %c0_3 = arith.constant 0 : index
    %c0_4 = arith.constant 0 : index
    %5 = vector.load %arg4[%c0_3, %c0_4] : memref<1x64xf32, #tpu.memory_space<vmem>>, vector<1x64xf32>
    %6 = vector.broadcast %5 : vector<1x64xf32> to vector<24x64xf32>
    %7 = arith.addf %4, %6 : vector<24x64xf32>
    %c0_5 = arith.constant 0 : index
    %c0_6 = arith.constant 0 : index
    %8 = vector.load %arg5[%c0_5, %c0_6] : memref<24x64xf32, #tpu.memory_space<vmem>>, vector<24x64xf32>
    %9 = arith.addf %7, %8 : vector<24x64xf32>
    %c0_7 = arith.constant 0 : index
    %c0_8 = arith.constant 0 : index
    %10 = vector.load %arg6[%c0_7, %c0_8] : memref<24x64xf32, #tpu.memory_space<vmem>>, vector<24x64xf32>
    tpu.vector_store %arg6[%c0_7, %c0_8], %9 {strides = array<i32>} : memref<24x64xf32, #tpu.memory_space<vmem>>, vector<24x64xf32>,
    return
  }
  func.func @transform_0(%arg0: i32, %arg1: i32) -> (i32, i32) {
    %c0_i32 = arith.constant 0 : i32
    %c0_i32_0 = arith.constant 0 : i32
    return %arg0, %c0_i32 : i32, i32
  }
  func.func @transform_1(%arg0: i32, %arg1: i32) -> (i32, i32) {
    %c0_i32 = arith.constant 0 : i32
    %c0_i32_0 = arith.constant 0 : i32
    return %c0_i32, %arg1 : i32, i32
  }
  func.func @transform_2(%arg0: i32, %arg1: i32) -> (i32, i32) {
    %c0_i32 = arith.constant 0 : i32
    %c0_i32_0 = arith.constant 0 : i32
    return %c0_i32, %arg1 : i32, i32
  }
  func.func @transform_3(%arg0: i32, %arg1: i32) -> (i32, i32) {
    %c0_i32 = arith.constant 0 : i32
    return %arg0, %arg1 : i32, i32
  }
  func.func @transform_4(%arg0: i32, %arg1: i32) -> (i32, i32) {
    %c0_i32 = arith.constant 0 : i32
    return %arg0, %arg1 : i32, i32
  }
}

module attributes {stable_mosaic.version = 11 : i64} {
  func.func @kernel(%arg0: i32, %arg1: memref<1x9x1x4x16xf32, #tpu.memory_space<vmem>>, %arg2: memref<1x9x1x4x16xf32, #tpu.memory_space<vmem>>, %arg3: memref<1x9x1x4x16xf32, #tpu.memory_space<vmem>>, %arg4: memref<1x9x64xf32, #tpu.memory_space<vmem>>) attributes {dimension_semantics = [#tpu.dimension_semantics<parallel>], iteration_bounds = array<i64: 2>, scalar_prefetch = 0 : i64, scratch_operands = 0 : i64, tpu.core_type = #tpu.core_type<tc>, window_params = [{transform_indices = @transform_0, window_bounds = array<i64: 1, 9, 1, 4, 16>}, {transform_indices = @transform_1, window_bounds = array<i64: 1, 9, 1, 4, 16>}, {transform_indices = @transform_2, window_bounds = array<i64: 1, 9, 1, 4, 16>}, {transform_indices = @transform_3, window_bounds = array<i64: 1, 9, 64>}]} {
    %c0 = arith.constant 0 : index
    %c0_0 = arith.constant 0 : index
    %c0_1 = arith.constant 0 : index
    %c0_2 = arith.constant 0 : index
    %c0_3 = arith.constant 0 : index
    %0 = vector.load %arg1[%c0, %c0_0, %c0_1, %c0_2, %c0_3] : memref<1x9x1x4x16xf32, #tpu.memory_space<vmem>>, vector<1x9x1x4x16xf32>
    %1 = vector.shape_cast %0 : vector<1x9x1x4x16xf32> to vector<9x4x16xf32>
    %c0_4 = arith.constant 0 : index
    %c0_5 = arith.constant 0 : index
    %c0_6 = arith.constant 0 : index
    %c0_7 = arith.constant 0 : index
    %c0_8 = arith.constant 0 : index
    %2 = vector.load %arg2[%c0_4, %c0_5, %c0_6, %c0_7, %c0_8] : memref<1x9x1x4x16xf32, #tpu.memory_space<vmem>>, vector<1x9x1x4x16xf32>
    %3 = vector.shape_cast %2 : vector<1x9x1x4x16xf32> to vector<9x4x16xf32>
    %c0_9 = arith.constant 0 : index
    %c0_10 = arith.constant 0 : index
    %c0_11 = arith.constant 0 : index
    %c0_12 = arith.constant 0 : index
    %c0_13 = arith.constant 0 : index
    %4 = vector.load %arg3[%c0_9, %c0_10, %c0_11, %c0_12, %c0_13] : memref<1x9x1x4x16xf32, #tpu.memory_space<vmem>>, vector<1x9x1x4x16xf32>
    %5 = vector.shape_cast %4 : vector<1x9x1x4x16xf32> to vector<9x4x16xf32>
    %6 = vector.extract_strided_slice %1 {offsets = [0, 0, 0], sizes = [9, 1, 16], strides = [1, 1, 1]} : vector<9x4x16xf32> to vector<9x1x16xf32>
    %7 = vector.shape_cast %6 : vector<9x1x16xf32> to vector<9x16xf32>
    %cst = arith.constant 2.500000e-01 : f32
    %8 = vector.broadcast %cst : f32 to vector<9x16xf32>
    %9 = arith.mulf %7, %8 : vector<9x16xf32>
    %10 = arith.truncf %9 : vector<9x16xf32> to vector<9x16xbf16>
    %11 = vector.extract_strided_slice %3 {offsets = [0, 0, 0], sizes = [9, 1, 16], strides = [1, 1, 1]} : vector<9x4x16xf32> to vector<9x1x16xf32>
    %12 = vector.shape_cast %11 : vector<9x1x16xf32> to vector<9x16xf32>
    %13 = arith.truncf %12 : vector<9x16xf32> to vector<9x16xbf16>
    %14 = vector.extract_strided_slice %5 {offsets = [0, 0, 0], sizes = [9, 1, 16], strides = [1, 1, 1]} : vector<9x4x16xf32> to vector<9x1x16xf32>
    %15 = vector.shape_cast %14 : vector<9x1x16xf32> to vector<9x16xf32>
    %16 = arith.truncf %15 : vector<9x16xf32> to vector<9x16xbf16>
    %cst_14 = arith.constant dense<0.000000e+00> : vector<9x9xf32>
    %17 = tpu.matmul %10, %13, %cst_14 {dimension_numbers = #tpu.dot_dimension_numbers<[1], [1], [0], [0], [0, 0, 1, 0], [], []>} : vector<9x16xbf16>, vector<9x16xbf16>, vector<9x9xf32> -> vector<9x9xf32>
    %cst_15 = arith.constant dense<0xFF800000> : vector<9xf32>
    %18 = vector.multi_reduction <maximumf>, %17, %cst_15 [1] : vector<9x9xf32> to vector<9xf32>
    %19 = vector.shape_cast %18 : vector<9xf32> to vector<9x1xf32>
    %20 = vector.broadcast %19 : vector<9x1xf32> to vector<9x9xf32>
    %21 = arith.subf %17, %20 : vector<9x9xf32>
    %22 = math.exp %21 : vector<9x9xf32>
    %cst_16 = arith.constant dense<0.000000e+00> : vector<9xf32>
    %23 = vector.multi_reduction <add>, %22, %cst_16 [1] : vector<9x9xf32> to vector<9xf32>
    %24 = vector.shape_cast %23 : vector<9xf32> to vector<9x1xf32>
    %25 = tpu.reciprocal %24 {approx = true} : vector<9x1xf32> -> vector<9x1xf32>
    %26 = vector.broadcast %25 : vector<9x1xf32> to vector<9x9xf32>
    %27 = arith.mulf %22, %26 : vector<9x9xf32>
    %28 = arith.truncf %27 : vector<9x9xf32> to vector<9x9xbf16>
    %cst_17 = arith.constant dense<0.000000e+00> : vector<9x16xf32>
    %29 = tpu.matmul %28, %16, %cst_17 {dimension_numbers = #tpu.dot_dimension_numbers<[1], [0], [0], [1], [0, 0, 1, 1], [], []>} : vector<9x9xbf16>, vector<9x16xbf16>, vector<9x16xf32> -> vector<9x16xf32>
    %30 = vector.extract_strided_slice %1 {offsets = [0, 1, 0], sizes = [9, 1, 16], strides = [1, 1, 1]} : vector<9x4x16xf32> to vector<9x1x16xf32>
    %31 = vector.shape_cast %30 : vector<9x1x16xf32> to vector<9x16xf32>
    %cst_18 = arith.constant 2.500000e-01 : f32
    %32 = vector.broadcast %cst_18 : f32 to vector<9x16xf32>
    %33 = arith.mulf %31, %32 : vector<9x16xf32>
    %34 = arith.truncf %33 : vector<9x16xf32> to vector<9x16xbf16>
    %35 = vector.extract_strided_slice %3 {offsets = [0, 1, 0], sizes = [9, 1, 16], strides = [1, 1, 1]} : vector<9x4x16xf32> to vector<9x1x16xf32>
    %36 = vector.shape_cast %35 : vector<9x1x16xf32> to vector<9x16xf32>
    %37 = arith.truncf %36 : vector<9x16xf32> to vector<9x16xbf16>
    %38 = vector.extract_strided_slice %5 {offsets = [0, 1, 0], sizes = [9, 1, 16], strides = [1, 1, 1]} : vector<9x4x16xf32> to vector<9x1x16xf32>
    %39 = vector.shape_cast %38 : vector<9x1x16xf32> to vector<9x16xf32>
    %40 = arith.truncf %39 : vector<9x16xf32> to vector<9x16xbf16>
    %cst_19 = arith.constant dense<0.000000e+00> : vector<9x9xf32>
    %41 = tpu.matmul %34, %37, %cst_19 {dimension_numbers = #tpu.dot_dimension_numbers<[1], [1], [0], [0], [0, 0, 1, 0], [], []>} : vector<9x16xbf16>, vector<9x16xbf16>, vector<9x9xf32> -> vector<9x9xf32>
    %cst_20 = arith.constant dense<0xFF800000> : vector<9xf32>
    %42 = vector.multi_reduction <maximumf>, %41, %cst_20 [1] : vector<9x9xf32> to vector<9xf32>
    %43 = vector.shape_cast %42 : vector<9xf32> to vector<9x1xf32>
    %44 = vector.broadcast %43 : vector<9x1xf32> to vector<9x9xf32>
    %45 = arith.subf %41, %44 : vector<9x9xf32>
    %46 = math.exp %45 : vector<9x9xf32>
    %cst_21 = arith.constant dense<0.000000e+00> : vector<9xf32>
    %47 = vector.multi_reduction <add>, %46, %cst_21 [1] : vector<9x9xf32> to vector<9xf32>
    %48 = vector.shape_cast %47 : vector<9xf32> to vector<9x1xf32>
    %49 = tpu.reciprocal %48 {approx = true} : vector<9x1xf32> -> vector<9x1xf32>
    %50 = vector.broadcast %49 : vector<9x1xf32> to vector<9x9xf32>
    %51 = arith.mulf %46, %50 : vector<9x9xf32>
    %52 = arith.truncf %51 : vector<9x9xf32> to vector<9x9xbf16>
    %cst_22 = arith.constant dense<0.000000e+00> : vector<9x16xf32>
    %53 = tpu.matmul %52, %40, %cst_22 {dimension_numbers = #tpu.dot_dimension_numbers<[1], [0], [0], [1], [0, 0, 1, 1], [], []>} : vector<9x9xbf16>, vector<9x16xbf16>, vector<9x16xf32> -> vector<9x16xf32>
    %54 = vector.extract_strided_slice %1 {offsets = [0, 2, 0], sizes = [9, 1, 16], strides = [1, 1, 1]} : vector<9x4x16xf32> to vector<9x1x16xf32>
    %55 = vector.shape_cast %54 : vector<9x1x16xf32> to vector<9x16xf32>
    %cst_23 = arith.constant 2.500000e-01 : f32
    %56 = vector.broadcast %cst_23 : f32 to vector<9x16xf32>
    %57 = arith.mulf %55, %56 : vector<9x16xf32>
    %58 = arith.truncf %57 : vector<9x16xf32> to vector<9x16xbf16>
    %59 = vector.extract_strided_slice %3 {offsets = [0, 2, 0], sizes = [9, 1, 16], strides = [1, 1, 1]} : vector<9x4x16xf32> to vector<9x1x16xf32>
    %60 = vector.shape_cast %59 : vector<9x1x16xf32> to vector<9x16xf32>
    %61 = arith.truncf %60 : vector<9x16xf32> to vector<9x16xbf16>
    %62 = vector.extract_strided_slice %5 {offsets = [0, 2, 0], sizes = [9, 1, 16], strides = [1, 1, 1]} : vector<9x4x16xf32> to vector<9x1x16xf32>
    %63 = vector.shape_cast %62 : vector<9x1x16xf32> to vector<9x16xf32>
    %64 = arith.truncf %63 : vector<9x16xf32> to vector<9x16xbf16>
    %cst_24 = arith.constant dense<0.000000e+00> : vector<9x9xf32>
    %65 = tpu.matmul %58, %61, %cst_24 {dimension_numbers = #tpu.dot_dimension_numbers<[1], [1], [0], [0], [0, 0, 1, 0], [], []>} : vector<9x16xbf16>, vector<9x16xbf16>, vector<9x9xf32> -> vector<9x9xf32>
    %cst_25 = arith.constant dense<0xFF800000> : vector<9xf32>
    %66 = vector.multi_reduction <maximumf>, %65, %cst_25 [1] : vector<9x9xf32> to vector<9xf32>
    %67 = vector.shape_cast %66 : vector<9xf32> to vector<9x1xf32>
    %68 = vector.broadcast %67 : vector<9x1xf32> to vector<9x9xf32>
    %69 = arith.subf %65, %68 : vector<9x9xf32>
    %70 = math.exp %69 : vector<9x9xf32>
    %cst_26 = arith.constant dense<0.000000e+00> : vector<9xf32>
    %71 = vector.multi_reduction <add>, %70, %cst_26 [1] : vector<9x9xf32> to vector<9xf32>
    %72 = vector.shape_cast %71 : vector<9xf32> to vector<9x1xf32>
    %73 = tpu.reciprocal %72 {approx = true} : vector<9x1xf32> -> vector<9x1xf32>
    %74 = vector.broadcast %73 : vector<9x1xf32> to vector<9x9xf32>
    %75 = arith.mulf %70, %74 : vector<9x9xf32>
    %76 = arith.truncf %75 : vector<9x9xf32> to vector<9x9xbf16>
    %cst_27 = arith.constant dense<0.000000e+00> : vector<9x16xf32>
    %77 = tpu.matmul %76, %64, %cst_27 {dimension_numbers = #tpu.dot_dimension_numbers<[1], [0], [0], [1], [0, 0, 1, 1], [], []>} : vector<9x9xbf16>, vector<9x16xbf16>, vector<9x16xf32> -> vector<9x16xf32>
    %78 = vector.extract_strided_slice %1 {offsets = [0, 3, 0], sizes = [9, 1, 16], strides = [1, 1, 1]} : vector<9x4x16xf32> to vector<9x1x16xf32>
    %79 = vector.shape_cast %78 : vector<9x1x16xf32> to vector<9x16xf32>
    %cst_28 = arith.constant 2.500000e-01 : f32
    %80 = vector.broadcast %cst_28 : f32 to vector<9x16xf32>
    %81 = arith.mulf %79, %80 : vector<9x16xf32>
    %82 = arith.truncf %81 : vector<9x16xf32> to vector<9x16xbf16>
    %83 = vector.extract_strided_slice %3 {offsets = [0, 3, 0], sizes = [9, 1, 16], strides = [1, 1, 1]} : vector<9x4x16xf32> to vector<9x1x16xf32>
    %84 = vector.shape_cast %83 : vector<9x1x16xf32> to vector<9x16xf32>
    %85 = arith.truncf %84 : vector<9x16xf32> to vector<9x16xbf16>
    %86 = vector.extract_strided_slice %5 {offsets = [0, 3, 0], sizes = [9, 1, 16], strides = [1, 1, 1]} : vector<9x4x16xf32> to vector<9x1x16xf32>
    %87 = vector.shape_cast %86 : vector<9x1x16xf32> to vector<9x16xf32>
    %88 = arith.truncf %87 : vector<9x16xf32> to vector<9x16xbf16>
    %cst_29 = arith.constant dense<0.000000e+00> : vector<9x9xf32>
    %89 = tpu.matmul %82, %85, %cst_29 {dimension_numbers = #tpu.dot_dimension_numbers<[1], [1], [0], [0], [0, 0, 1, 0], [], []>} : vector<9x16xbf16>, vector<9x16xbf16>, vector<9x9xf32> -> vector<9x9xf32>
    %cst_30 = arith.constant dense<0xFF800000> : vector<9xf32>
    %90 = vector.multi_reduction <maximumf>, %89, %cst_30 [1] : vector<9x9xf32> to vector<9xf32>
    %91 = vector.shape_cast %90 : vector<9xf32> to vector<9x1xf32>
    %92 = vector.broadcast %91 : vector<9x1xf32> to vector<9x9xf32>
    %93 = arith.subf %89, %92 : vector<9x9xf32>
    %94 = math.exp %93 : vector<9x9xf32>
    %cst_31 = arith.constant dense<0.000000e+00> : vector<9xf32>
    %95 = vector.multi_reduction <add>, %94, %cst_31 [1] : vector<9x9xf32> to vector<9xf32>
    %96 = vector.shape_cast %95 : vector<9xf32> to vector<9x1xf32>
    %97 = tpu.reciprocal %96 {approx = true} : vector<9x1xf32> -> vector<9x1xf32>
    %98 = vector.broadcast %97 : vector<9x1xf32> to vector<9x9xf32>
    %99 = arith.mulf %94, %98 : vector<9x9xf32>
    %100 = arith.truncf %99 : vector<9x9xf32> to vector<9x9xbf16>
    %cst_32 = arith.constant dense<0.000000e+00> : vector<9x16xf32>
    %101 = tpu.matmul %100, %88, %cst_32 {dimension_numbers = #tpu.dot_dimension_numbers<[1], [0], [0], [1], [0, 0, 1, 1], [], []>} : vector<9x9xbf16>, vector<9x16xbf16>, vector<9x16xf32> -> vector<9x16xf32>
    %102 = tpu.concatenate %29, %53, %77, %101 in 1 : vector<9x16xf32>, vector<9x16xf32>, vector<9x16xf32>, vector<9x16xf32> -> vector<9x64xf32>
    %c0_33 = arith.constant 0 : index
    %c0_34 = arith.constant 0 : index
    %c0_35 = arith.constant 0 : index
    %103 = vector.load %arg4[%c0_33, %c0_34, %c0_35] : memref<1x9x64xf32, #tpu.memory_space<vmem>>, vector<1x9x64xf32>
    %104 = vector.shape_cast %103 : vector<1x9x64xf32> to vector<9x64xf32>
    %105 = vector.shape_cast %102 : vector<9x64xf32> to vector<1x9x64xf32>
    tpu.vector_store %arg4[%c0_33, %c0_34, %c0_35], %105 {strides = array<i32>} : memref<1x9x64xf32, #tpu.memory_space<vmem>>, vector<1x9x64xf32>,
    return
  }
  func.func @transform_0(%arg0: i32) -> (i32, i32, i32, i32, i32) {
    %c0_i32 = arith.constant 0 : i32
    %c0_i32_0 = arith.constant 0 : i32
    %c0_i32_1 = arith.constant 0 : i32
    %c0_i32_2 = arith.constant 0 : i32
    %c0_i32_3 = arith.constant 0 : i32
    return %arg0, %c0_i32, %c0_i32_0, %c0_i32_1, %c0_i32_2 : i32, i32, i32, i32, i32
  }
  func.func @transform_1(%arg0: i32) -> (i32, i32, i32, i32, i32) {
    %c0_i32 = arith.constant 0 : i32
    %c1_i32 = arith.constant 1 : i32
    %c0_i32_0 = arith.constant 0 : i32
    %c0_i32_1 = arith.constant 0 : i32
    %c0_i32_2 = arith.constant 0 : i32
    return %arg0, %c0_i32, %c1_i32, %c0_i32_0, %c0_i32_1 : i32, i32, i32, i32, i32
  }
  func.func @transform_2(%arg0: i32) -> (i32, i32, i32, i32, i32) {
    %c0_i32 = arith.constant 0 : i32
    %c2_i32 = arith.constant 2 : i32
    %c0_i32_0 = arith.constant 0 : i32
    %c0_i32_1 = arith.constant 0 : i32
    %c0_i32_2 = arith.constant 0 : i32
    return %arg0, %c0_i32, %c2_i32, %c0_i32_0, %c0_i32_1 : i32, i32, i32, i32, i32
  }
  func.func @transform_3(%arg0: i32) -> (i32, i32, i32) {
    %c0_i32 = arith.constant 0 : i32
    %c0_i32_0 = arith.constant 0 : i32
    %c0_i32_1 = arith.constant 0 : i32
    return %arg0, %c0_i32, %c0_i32_0 : i32, i32, i32
  }
}

module attributes {stable_mosaic.version = 11 : i64} {
  func.func @kernel(%arg0: i32, %arg1: i32, %arg2: memref<24x64xf32, #tpu.memory_space<vmem>>, %arg3: memref<64x192xf32, #tpu.memory_space<vmem>>, %arg4: memref<1x192xf32, #tpu.memory_space<vmem>>, %arg5: memref<1x64xf32, #tpu.memory_space<vmem>>, %arg6: memref<1x64xf32, #tpu.memory_space<vmem>>, %arg7: memref<24x192xf32, #tpu.memory_space<vmem>>) attributes {dimension_semantics = [#tpu.dimension_semantics<parallel>, #tpu.dimension_semantics<parallel>], iteration_bounds = array<i64: 1, 1>, scalar_prefetch = 0 : i64, scratch_operands = 0 : i64, tpu.core_type = #tpu.core_type<tc>, window_params = [{transform_indices = @transform_0, window_bounds = array<i64: 24, 64>}, {transform_indices = @transform_1, window_bounds = array<i64: 64, 192>}, {transform_indices = @transform_2, window_bounds = array<i64: 1, 192>}, {pipeline_mode = #tpu.pipeline_mode<synchronous>, transform_indices = @transform_3, window_bounds = array<i64: 1, 64>}, {pipeline_mode = #tpu.pipeline_mode<synchronous>, transform_indices = @transform_4, window_bounds = array<i64: 1, 64>}, {transform_indices = @transform_5, window_bounds = array<i64: 24, 192>}]} {
    %c0 = arith.constant 0 : index
    %c0_0 = arith.constant 0 : index
    %0 = vector.load %arg2[%c0, %c0_0] : memref<24x64xf32, #tpu.memory_space<vmem>>, vector<24x64xf32>
    %cst = arith.constant dense<0.000000e+00> : vector<24xf32>
    %1 = vector.multi_reduction <add>, %0, %cst [1] : vector<24x64xf32> to vector<24xf32>
    %2 = vector.shape_cast %1 : vector<24xf32> to vector<24x1xf32>
    %cst_1 = arith.constant 6.400000e+01 : f32
    %3 = vector.broadcast %cst_1 : f32 to vector<24x1xf32>
    %4 = arith.divf %2, %3 : vector<24x1xf32>
    %5 = vector.broadcast %4 : vector<24x1xf32> to vector<24x64xf32>
    %6 = arith.subf %0, %5 : vector<24x64xf32>
    %7 = arith.mulf %6, %6 : vector<24x64xf32>
    %cst_2 = arith.constant dense<0.000000e+00> : vector<24xf32>
    %8 = vector.multi_reduction <add>, %7, %cst_2 [1] : vector<24x64xf32> to vector<24xf32>
    %9 = vector.shape_cast %8 : vector<24xf32> to vector<24x1xf32>
    %cst_3 = arith.constant 6.400000e+01 : f32
    %10 = vector.broadcast %cst_3 : f32 to vector<24x1xf32>
    %11 = arith.divf %9, %10 : vector<24x1xf32>
    %12 = vector.broadcast %4 : vector<24x1xf32> to vector<24x64xf32>
    %13 = arith.subf %0, %12 : vector<24x64xf32>
    %cst_4 = arith.constant 9.99999997E-7 : f32
    %14 = vector.broadcast %cst_4 : f32 to vector<24x1xf32>
    %15 = arith.addf %11, %14 : vector<24x1xf32>
    %16 = math.rsqrt %15 : vector<24x1xf32>
    %17 = vector.broadcast %16 : vector<24x1xf32> to vector<24x64xf32>
    %18 = arith.mulf %13, %17 : vector<24x64xf32>
    %c0_5 = arith.constant 0 : index
    %c0_6 = arith.constant 0 : index
    %19 = vector.load %arg5[%c0_5, %c0_6] : memref<1x64xf32, #tpu.memory_space<vmem>>, vector<1x64xf32>
    %20 = vector.broadcast %19 : vector<1x64xf32> to vector<24x64xf32>
    %21 = arith.mulf %18, %20 : vector<24x64xf32>
    %c0_7 = arith.constant 0 : index
    %c0_8 = arith.constant 0 : index
    %22 = vector.load %arg6[%c0_7, %c0_8] : memref<1x64xf32, #tpu.memory_space<vmem>>, vector<1x64xf32>
    %23 = vector.broadcast %22 : vector<1x64xf32> to vector<24x64xf32>
    %24 = arith.addf %21, %23 : vector<24x64xf32>
    %25 = arith.truncf %24 : vector<24x64xf32> to vector<24x64xbf16>
    %c0_9 = arith.constant 0 : index
    %c0_10 = arith.constant 0 : index
    %26 = vector.load %arg3[%c0_9, %c0_10] : memref<64x192xf32, #tpu.memory_space<vmem>>, vector<64x192xf32>
    %27 = arith.truncf %26 : vector<64x192xf32> to vector<64x192xbf16>
    %cst_11 = arith.constant dense<0.000000e+00> : vector<24x192xf32>
    %28 = tpu.matmul %25, %27, %cst_11 {dimension_numbers = #tpu.dot_dimension_numbers<[1], [0], [0], [1], [0, 0, 1, 1], [], []>} : vector<24x64xbf16>, vector<64x192xbf16>, vector<24x192xf32> -> vector<24x192xf32>
    %c0_12 = arith.constant 0 : index
    %c0_13 = arith.constant 0 : index
    %29 = vector.load %arg4[%c0_12, %c0_13] : memref<1x192xf32, #tpu.memory_space<vmem>>, vector<1x192xf32>
    %30 = vector.broadcast %29 : vector<1x192xf32> to vector<24x192xf32>
    %31 = arith.addf %28, %30 : vector<24x192xf32>
    %c0_14 = arith.constant 0 : index
    %c0_15 = arith.constant 0 : index
    %32 = vector.load %arg7[%c0_14, %c0_15] : memref<24x192xf32, #tpu.memory_space<vmem>>, vector<24x192xf32>
    tpu.vector_store %arg7[%c0_14, %c0_15], %31 {strides = array<i32>} : memref<24x192xf32, #tpu.memory_space<vmem>>, vector<24x192xf32>,
    return
  }
  func.func @transform_0(%arg0: i32, %arg1: i32) -> (i32, i32) {
    %c0_i32 = arith.constant 0 : i32
    %c0_i32_0 = arith.constant 0 : i32
    return %arg0, %c0_i32 : i32, i32
  }
  func.func @transform_1(%arg0: i32, %arg1: i32) -> (i32, i32) {
    %c0_i32 = arith.constant 0 : i32
    %c0_i32_0 = arith.constant 0 : i32
    return %c0_i32, %arg1 : i32, i32
  }
  func.func @transform_2(%arg0: i32, %arg1: i32) -> (i32, i32) {
    %c0_i32 = arith.constant 0 : i32
    %c0_i32_0 = arith.constant 0 : i32
    return %c0_i32, %arg1 : i32, i32
  }
  func.func @transform_3(%arg0: i32, %arg1: i32) -> (i32, i32) {
    %c0_i32 = arith.constant 0 : i32
    %c0_i32_0 = arith.constant 0 : i32
    %c0_i32_1 = arith.constant 0 : i32
    return %c0_i32, %c0_i32_0 : i32, i32
  }
  func.func @transform_4(%arg0: i32, %arg1: i32) -> (i32, i32) {
    %c0_i32 = arith.constant 0 : i32
    %c0_i32_0 = arith.constant 0 : i32
    %c0_i32_1 = arith.constant 0 : i32
    return %c0_i32, %c0_i32_0 : i32, i32
  }
  func.func @transform_5(%arg0: i32, %arg1: i32) -> (i32, i32) {
    %c0_i32 = arith.constant 0 : i32
    return %arg0, %arg1 : i32, i32
  }
}

module attributes {stable_mosaic.version = 11 : i64} {
  func.func @kernel(%arg0: i32, %arg1: i32, %arg2: memref<24x64xf32, #tpu.memory_space<vmem>>, %arg3: memref<64x256xf32, #tpu.memory_space<vmem>>, %arg4: memref<1x256xf32, #tpu.memory_space<vmem>>, %arg5: memref<1x64xf32, #tpu.memory_space<vmem>>, %arg6: memref<1x64xf32, #tpu.memory_space<vmem>>, %arg7: memref<24x256xf32, #tpu.memory_space<vmem>>) attributes {dimension_semantics = [#tpu.dimension_semantics<parallel>, #tpu.dimension_semantics<parallel>], iteration_bounds = array<i64: 1, 1>, scalar_prefetch = 0 : i64, scratch_operands = 0 : i64, tpu.core_type = #tpu.core_type<tc>, window_params = [{transform_indices = @transform_0, window_bounds = array<i64: 24, 64>}, {transform_indices = @transform_1, window_bounds = array<i64: 64, 256>}, {transform_indices = @transform_2, window_bounds = array<i64: 1, 256>}, {pipeline_mode = #tpu.pipeline_mode<synchronous>, transform_indices = @transform_3, window_bounds = array<i64: 1, 64>}, {pipeline_mode = #tpu.pipeline_mode<synchronous>, transform_indices = @transform_4, window_bounds = array<i64: 1, 64>}, {transform_indices = @transform_5, window_bounds = array<i64: 24, 256>}]} {
    %c0 = arith.constant 0 : index
    %c0_0 = arith.constant 0 : index
    %0 = vector.load %arg2[%c0, %c0_0] : memref<24x64xf32, #tpu.memory_space<vmem>>, vector<24x64xf32>
    %cst = arith.constant dense<0.000000e+00> : vector<24xf32>
    %1 = vector.multi_reduction <add>, %0, %cst [1] : vector<24x64xf32> to vector<24xf32>
    %2 = vector.shape_cast %1 : vector<24xf32> to vector<24x1xf32>
    %cst_1 = arith.constant 6.400000e+01 : f32
    %3 = vector.broadcast %cst_1 : f32 to vector<24x1xf32>
    %4 = arith.divf %2, %3 : vector<24x1xf32>
    %5 = vector.broadcast %4 : vector<24x1xf32> to vector<24x64xf32>
    %6 = arith.subf %0, %5 : vector<24x64xf32>
    %7 = arith.mulf %6, %6 : vector<24x64xf32>
    %cst_2 = arith.constant dense<0.000000e+00> : vector<24xf32>
    %8 = vector.multi_reduction <add>, %7, %cst_2 [1] : vector<24x64xf32> to vector<24xf32>
    %9 = vector.shape_cast %8 : vector<24xf32> to vector<24x1xf32>
    %cst_3 = arith.constant 6.400000e+01 : f32
    %10 = vector.broadcast %cst_3 : f32 to vector<24x1xf32>
    %11 = arith.divf %9, %10 : vector<24x1xf32>
    %12 = vector.broadcast %4 : vector<24x1xf32> to vector<24x64xf32>
    %13 = arith.subf %0, %12 : vector<24x64xf32>
    %cst_4 = arith.constant 9.99999997E-7 : f32
    %14 = vector.broadcast %cst_4 : f32 to vector<24x1xf32>
    %15 = arith.addf %11, %14 : vector<24x1xf32>
    %16 = math.rsqrt %15 : vector<24x1xf32>
    %17 = vector.broadcast %16 : vector<24x1xf32> to vector<24x64xf32>
    %18 = arith.mulf %13, %17 : vector<24x64xf32>
    %c0_5 = arith.constant 0 : index
    %c0_6 = arith.constant 0 : index
    %19 = vector.load %arg5[%c0_5, %c0_6] : memref<1x64xf32, #tpu.memory_space<vmem>>, vector<1x64xf32>
    %20 = vector.broadcast %19 : vector<1x64xf32> to vector<24x64xf32>
    %21 = arith.mulf %18, %20 : vector<24x64xf32>
    %c0_7 = arith.constant 0 : index
    %c0_8 = arith.constant 0 : index
    %22 = vector.load %arg6[%c0_7, %c0_8] : memref<1x64xf32, #tpu.memory_space<vmem>>, vector<1x64xf32>
    %23 = vector.broadcast %22 : vector<1x64xf32> to vector<24x64xf32>
    %24 = arith.addf %21, %23 : vector<24x64xf32>
    %25 = arith.truncf %24 : vector<24x64xf32> to vector<24x64xbf16>
    %c0_9 = arith.constant 0 : index
    %c0_10 = arith.constant 0 : index
    %26 = vector.load %arg3[%c0_9, %c0_10] : memref<64x256xf32, #tpu.memory_space<vmem>>, vector<64x256xf32>
    %27 = arith.truncf %26 : vector<64x256xf32> to vector<64x256xbf16>
    %cst_11 = arith.constant dense<0.000000e+00> : vector<24x256xf32>
    %28 = tpu.matmul %25, %27, %cst_11 {dimension_numbers = #tpu.dot_dimension_numbers<[1], [0], [0], [1], [0, 0, 1, 1], [], []>} : vector<24x64xbf16>, vector<64x256xbf16>, vector<24x256xf32> -> vector<24x256xf32>
    %c0_12 = arith.constant 0 : index
    %c0_13 = arith.constant 0 : index
    %29 = vector.load %arg4[%c0_12, %c0_13] : memref<1x256xf32, #tpu.memory_space<vmem>>, vector<1x256xf32>
    %30 = vector.broadcast %29 : vector<1x256xf32> to vector<24x256xf32>
    %31 = arith.addf %28, %30 : vector<24x256xf32>
    %c0_14 = arith.constant 0 : index
    %c0_15 = arith.constant 0 : index
    %32 = vector.load %arg7[%c0_14, %c0_15] : memref<24x256xf32, #tpu.memory_space<vmem>>, vector<24x256xf32>
    tpu.vector_store %arg7[%c0_14, %c0_15], %31 {strides = array<i32>} : memref<24x256xf32, #tpu.memory_space<vmem>>, vector<24x256xf32>,
    return
  }
  func.func @transform_0(%arg0: i32, %arg1: i32) -> (i32, i32) {
    %c0_i32 = arith.constant 0 : i32
    %c0_i32_0 = arith.constant 0 : i32
    return %arg0, %c0_i32 : i32, i32
  }
  func.func @transform_1(%arg0: i32, %arg1: i32) -> (i32, i32) {
    %c0_i32 = arith.constant 0 : i32
    %c0_i32_0 = arith.constant 0 : i32
    return %c0_i32, %arg1 : i32, i32
  }
  func.func @transform_2(%arg0: i32, %arg1: i32) -> (i32, i32) {
    %c0_i32 = arith.constant 0 : i32
    %c0_i32_0 = arith.constant 0 : i32
    return %c0_i32, %arg1 : i32, i32
  }
  func.func @transform_3(%arg0: i32, %arg1: i32) -> (i32, i32) {
    %c0_i32 = arith.constant 0 : i32
    %c0_i32_0 = arith.constant 0 : i32
    %c0_i32_1 = arith.constant 0 : i32
    return %c0_i32, %c0_i32_0 : i32, i32
  }
  func.func @transform_4(%arg0: i32, %arg1: i32) -> (i32, i32) {
    %c0_i32 = arith.constant 0 : i32
    %c0_i32_0 = arith.constant 0 : i32
    %c0_i32_1 = arith.constant 0 : i32
    return %c0_i32, %c0_i32_0 : i32, i32
  }
  func.func @transform_5(%arg0: i32, %arg1: i32) -> (i32, i32) {
    %c0_i32 = arith.constant 0 : i32
    return %arg0, %arg1 : i32, i32
  }
}

module attributes {stable_mosaic.version = 11 : i64} {
  func.func @kernel(%arg0: i32, %arg1: i32, %arg2: memref<24x256xf32, #tpu.memory_space<vmem>>, %arg3: memref<256x64xf32, #tpu.memory_space<vmem>>, %arg4: memref<1x64xf32, #tpu.memory_space<vmem>>, %arg5: memref<24x64xf32, #tpu.memory_space<vmem>>, %arg6: memref<24x64xf32, #tpu.memory_space<vmem>>) attributes {dimension_semantics = [#tpu.dimension_semantics<parallel>, #tpu.dimension_semantics<parallel>], iteration_bounds = array<i64: 1, 1>, scalar_prefetch = 0 : i64, scratch_operands = 0 : i64, tpu.core_type = #tpu.core_type<tc>, window_params = [{transform_indices = @transform_0, window_bounds = array<i64: 24, 256>}, {transform_indices = @transform_1, window_bounds = array<i64: 256, 64>}, {transform_indices = @transform_2, window_bounds = array<i64: 1, 64>}, {transform_indices = @transform_3, window_bounds = array<i64: 24, 64>}, {transform_indices = @transform_4, window_bounds = array<i64: 24, 64>}]} {
    %c0 = arith.constant 0 : index
    %c0_0 = arith.constant 0 : index
    %0 = vector.load %arg2[%c0, %c0_0] : memref<24x256xf32, #tpu.memory_space<vmem>>, vector<24x256xf32>
    %1 = arith.mulf %0, %0 : vector<24x256xf32>
    %2 = arith.mulf %0, %1 : vector<24x256xf32>
    %cst = arith.constant 4.471500e-02 : f32
    %3 = vector.broadcast %cst : f32 to vector<24x256xf32>
    %4 = arith.mulf %3, %2 : vector<24x256xf32>
    %5 = arith.addf %0, %4 : vector<24x256xf32>
    %cst_1 = arith.constant 0.797884583 : f32
    %6 = vector.broadcast %cst_1 : f32 to vector<24x256xf32>
    %7 = arith.mulf %6, %5 : vector<24x256xf32>
    %8 = math.tanh %7 : vector<24x256xf32>
    %cst_2 = arith.constant 1.000000e+00 : f32
    %9 = vector.broadcast %cst_2 : f32 to vector<24x256xf32>
    %10 = arith.addf %9, %8 : vector<24x256xf32>
    %cst_3 = arith.constant 5.000000e-01 : f32
    %11 = vector.broadcast %cst_3 : f32 to vector<24x256xf32>
    %12 = arith.mulf %11, %10 : vector<24x256xf32>
    %13 = arith.mulf %0, %12 : vector<24x256xf32>
    %14 = arith.truncf %13 : vector<24x256xf32> to vector<24x256xbf16>
    %c0_4 = arith.constant 0 : index
    %c0_5 = arith.constant 0 : index
    %15 = vector.load %arg3[%c0_4, %c0_5] : memref<256x64xf32, #tpu.memory_space<vmem>>, vector<256x64xf32>
    %16 = arith.truncf %15 : vector<256x64xf32> to vector<256x64xbf16>
    %cst_6 = arith.constant dense<0.000000e+00> : vector<24x64xf32>
    %17 = tpu.matmul %14, %16, %cst_6 {dimension_numbers = #tpu.dot_dimension_numbers<[1], [0], [0], [1], [0, 0, 1, 1], [], []>} : vector<24x256xbf16>, vector<256x64xbf16>, vector<24x64xf32> -> vector<24x64xf32>
    %c0_7 = arith.constant 0 : index
    %c0_8 = arith.constant 0 : index
    %18 = vector.load %arg4[%c0_7, %c0_8] : memref<1x64xf32, #tpu.memory_space<vmem>>, vector<1x64xf32>
    %19 = vector.broadcast %18 : vector<1x64xf32> to vector<24x64xf32>
    %20 = arith.addf %17, %19 : vector<24x64xf32>
    %c0_9 = arith.constant 0 : index
    %c0_10 = arith.constant 0 : index
    %21 = vector.load %arg5[%c0_9, %c0_10] : memref<24x64xf32, #tpu.memory_space<vmem>>, vector<24x64xf32>
    %22 = arith.addf %20, %21 : vector<24x64xf32>
    %c0_11 = arith.constant 0 : index
    %c0_12 = arith.constant 0 : index
    %23 = vector.load %arg6[%c0_11, %c0_12] : memref<24x64xf32, #tpu.memory_space<vmem>>, vector<24x64xf32>
    tpu.vector_store %arg6[%c0_11, %c0_12], %22 {strides = array<i32>} : memref<24x64xf32, #tpu.memory_space<vmem>>, vector<24x64xf32>,
    return
  }
  func.func @transform_0(%arg0: i32, %arg1: i32) -> (i32, i32) {
    %c0_i32 = arith.constant 0 : i32
    %c0_i32_0 = arith.constant 0 : i32
    return %arg0, %c0_i32 : i32, i32
  }
  func.func @transform_1(%arg0: i32, %arg1: i32) -> (i32, i32) {
    %c0_i32 = arith.constant 0 : i32
    %c0_i32_0 = arith.constant 0 : i32
    return %c0_i32, %arg1 : i32, i32
  }
  func.func @transform_2(%arg0: i32, %arg1: i32) -> (i32, i32) {
    %c0_i32 = arith.constant 0 : i32
    %c0_i32_0 = arith.constant 0 : i32
    return %c0_i32, %arg1 : i32, i32
  }
  func.func @transform_3(%arg0: i32, %arg1: i32) -> (i32, i32) {
    %c0_i32 = arith.constant 0 : i32
    return %arg0, %arg1 : i32, i32
  }
  func.func @transform_4(%arg0: i32, %arg1: i32) -> (i32, i32) {
    %c0_i32 = arith.constant 0 : i32
    return %arg0, %arg1 : i32, i32
  }
}

module attributes {stable_mosaic.version = 11 : i64} {
  func.func @kernel(%arg0: i32, %arg1: i32, %arg2: memref<24x64xf32, #tpu.memory_space<vmem>>, %arg3: memref<64x32xf32, #tpu.memory_space<vmem>>, %arg4: memref<1x32xf32, #tpu.memory_space<vmem>>, %arg5: memref<1x64xf32, #tpu.memory_space<vmem>>, %arg6: memref<1x64xf32, #tpu.memory_space<vmem>>, %arg7: memref<24x32xf32, #tpu.memory_space<vmem>>) attributes {dimension_semantics = [#tpu.dimension_semantics<parallel>, #tpu.dimension_semantics<parallel>], iteration_bounds = array<i64: 1, 1>, scalar_prefetch = 0 : i64, scratch_operands = 0 : i64, tpu.core_type = #tpu.core_type<tc>, window_params = [{transform_indices = @transform_0, window_bounds = array<i64: 24, 64>}, {transform_indices = @transform_1, window_bounds = array<i64: 64, 32>}, {transform_indices = @transform_2, window_bounds = array<i64: 1, 32>}, {pipeline_mode = #tpu.pipeline_mode<synchronous>, transform_indices = @transform_3, window_bounds = array<i64: 1, 64>}, {pipeline_mode = #tpu.pipeline_mode<synchronous>, transform_indices = @transform_4, window_bounds = array<i64: 1, 64>}, {transform_indices = @transform_5, window_bounds = array<i64: 24, 32>}]} {
    %c0 = arith.constant 0 : index
    %c0_0 = arith.constant 0 : index
    %0 = vector.load %arg2[%c0, %c0_0] : memref<24x64xf32, #tpu.memory_space<vmem>>, vector<24x64xf32>
    %cst = arith.constant dense<0.000000e+00> : vector<24xf32>
    %1 = vector.multi_reduction <add>, %0, %cst [1] : vector<24x64xf32> to vector<24xf32>
    %2 = vector.shape_cast %1 : vector<24xf32> to vector<24x1xf32>
    %cst_1 = arith.constant 6.400000e+01 : f32
    %3 = vector.broadcast %cst_1 : f32 to vector<24x1xf32>
    %4 = arith.divf %2, %3 : vector<24x1xf32>
    %5 = vector.broadcast %4 : vector<24x1xf32> to vector<24x64xf32>
    %6 = arith.subf %0, %5 : vector<24x64xf32>
    %7 = arith.mulf %6, %6 : vector<24x64xf32>
    %cst_2 = arith.constant dense<0.000000e+00> : vector<24xf32>
    %8 = vector.multi_reduction <add>, %7, %cst_2 [1] : vector<24x64xf32> to vector<24xf32>
    %9 = vector.shape_cast %8 : vector<24xf32> to vector<24x1xf32>
    %cst_3 = arith.constant 6.400000e+01 : f32
    %10 = vector.broadcast %cst_3 : f32 to vector<24x1xf32>
    %11 = arith.divf %9, %10 : vector<24x1xf32>
    %12 = vector.broadcast %4 : vector<24x1xf32> to vector<24x64xf32>
    %13 = arith.subf %0, %12 : vector<24x64xf32>
    %cst_4 = arith.constant 9.99999997E-7 : f32
    %14 = vector.broadcast %cst_4 : f32 to vector<24x1xf32>
    %15 = arith.addf %11, %14 : vector<24x1xf32>
    %16 = math.rsqrt %15 : vector<24x1xf32>
    %17 = vector.broadcast %16 : vector<24x1xf32> to vector<24x64xf32>
    %18 = arith.mulf %13, %17 : vector<24x64xf32>
    %c0_5 = arith.constant 0 : index
    %c0_6 = arith.constant 0 : index
    %19 = vector.load %arg5[%c0_5, %c0_6] : memref<1x64xf32, #tpu.memory_space<vmem>>, vector<1x64xf32>
    %20 = vector.broadcast %19 : vector<1x64xf32> to vector<24x64xf32>
    %21 = arith.mulf %18, %20 : vector<24x64xf32>
    %c0_7 = arith.constant 0 : index
    %c0_8 = arith.constant 0 : index
    %22 = vector.load %arg6[%c0_7, %c0_8] : memref<1x64xf32, #tpu.memory_space<vmem>>, vector<1x64xf32>
    %23 = vector.broadcast %22 : vector<1x64xf32> to vector<24x64xf32>
    %24 = arith.addf %21, %23 : vector<24x64xf32>
    %25 = arith.truncf %24 : vector<24x64xf32> to vector<24x64xbf16>
    %c0_9 = arith.constant 0 : index
    %c0_10 = arith.constant 0 : index
    %26 = vector.load %arg3[%c0_9, %c0_10] : memref<64x32xf32, #tpu.memory_space<vmem>>, vector<64x32xf32>
    %27 = arith.truncf %26 : vector<64x32xf32> to vector<64x32xbf16>
    %cst_11 = arith.constant dense<0.000000e+00> : vector<24x32xf32>
    %28 = tpu.matmul %25, %27, %cst_11 {dimension_numbers = #tpu.dot_dimension_numbers<[1], [0], [0], [1], [0, 0, 1, 1], [], []>} : vector<24x64xbf16>, vector<64x32xbf16>, vector<24x32xf32> -> vector<24x32xf32>
    %c0_12 = arith.constant 0 : index
    %c0_13 = arith.constant 0 : index
    %29 = vector.load %arg4[%c0_12, %c0_13] : memref<1x32xf32, #tpu.memory_space<vmem>>, vector<1x32xf32>
    %30 = vector.broadcast %29 : vector<1x32xf32> to vector<24x32xf32>
    %31 = arith.addf %28, %30 : vector<24x32xf32>
    %c0_14 = arith.constant 0 : index
    %c0_15 = arith.constant 0 : index
    %32 = vector.load %arg7[%c0_14, %c0_15] : memref<24x32xf32, #tpu.memory_space<vmem>>, vector<24x32xf32>
    tpu.vector_store %arg7[%c0_14, %c0_15], %31 {strides = array<i32>} : memref<24x32xf32, #tpu.memory_space<vmem>>, vector<24x32xf32>,
    return
  }
  func.func @transform_0(%arg0: i32, %arg1: i32) -> (i32, i32) {
    %c0_i32 = arith.constant 0 : i32
    %c0_i32_0 = arith.constant 0 : i32
    return %arg0, %c0_i32 : i32, i32
  }
  func.func @transform_1(%arg0: i32, %arg1: i32) -> (i32, i32) {
    %c0_i32 = arith.constant 0 : i32
    %c0_i32_0 = arith.constant 0 : i32
    return %c0_i32, %arg1 : i32, i32
  }
  func.func @transform_2(%arg0: i32, %arg1: i32) -> (i32, i32) {
    %c0_i32 = arith.constant 0 : i32
    %c0_i32_0 = arith.constant 0 : i32
    return %c0_i32, %arg1 : i32, i32
  }
  func.func @transform_3(%arg0: i32, %arg1: i32) -> (i32, i32) {
    %c0_i32 = arith.constant 0 : i32
    %c0_i32_0 = arith.constant 0 : i32
    %c0_i32_1 = arith.constant 0 : i32
    return %c0_i32, %c0_i32_0 : i32, i32
  }
  func.func @transform_4(%arg0: i32, %arg1: i32) -> (i32, i32) {
    %c0_i32 = arith.constant 0 : i32
    %c0_i32_0 = arith.constant 0 : i32
    %c0_i32_1 = arith.constant 0 : i32
    return %c0_i32, %c0_i32_0 : i32, i32
  }
  func.func @transform_5(%arg0: i32, %arg1: i32) -> (i32, i32) {
    %c0_i32 = arith.constant 0 : i32
    return %arg0, %arg1 : i32, i32
  }
}

module attributes {stable_mosaic.version = 11 : i64} {
  func.func @kernel(%arg0: i32, %arg1: i32, %arg2: memref<24x32xf32, #tpu.memory_space<vmem>>, %arg3: memref<32x32xf32, #tpu.memory_space<vmem>>, %arg4: memref<1x32xf32, #tpu.memory_space<vmem>>, %arg5: memref<1x32xf32, #tpu.memory_space<vmem>>, %arg6: memref<1x32xf32, #tpu.memory_space<vmem>>, %arg7: memref<24x32xf32, #tpu.memory_space<vmem>>) attributes {dimension_semantics = [#tpu.dimension_semantics<parallel>, #tpu.dimension_semantics<parallel>], iteration_bounds = array<i64: 1, 1>, scalar_prefetch = 0 : i64, scratch_operands = 0 : i64, tpu.core_type = #tpu.core_type<tc>, window_params = [{transform_indices = @transform_0, window_bounds = array<i64: 24, 32>}, {transform_indices = @transform_1, window_bounds = array<i64: 32, 32>}, {transform_indices = @transform_2, window_bounds = array<i64: 1, 32>}, {pipeline_mode = #tpu.pipeline_mode<synchronous>, transform_indices = @transform_3, window_bounds = array<i64: 1, 32>}, {pipeline_mode = #tpu.pipeline_mode<synchronous>, transform_indices = @transform_4, window_bounds = array<i64: 1, 32>}, {transform_indices = @transform_5, window_bounds = array<i64: 24, 32>}]} {
    %c0 = arith.constant 0 : index
    %c0_0 = arith.constant 0 : index
    %0 = vector.load %arg2[%c0, %c0_0] : memref<24x32xf32, #tpu.memory_space<vmem>>, vector<24x32xf32>
    %cst = arith.constant dense<0.000000e+00> : vector<24xf32>
    %1 = vector.multi_reduction <add>, %0, %cst [1] : vector<24x32xf32> to vector<24xf32>
    %2 = vector.shape_cast %1 : vector<24xf32> to vector<24x1xf32>
    %cst_1 = arith.constant 3.200000e+01 : f32
    %3 = vector.broadcast %cst_1 : f32 to vector<24x1xf32>
    %4 = arith.divf %2, %3 : vector<24x1xf32>
    %5 = vector.broadcast %4 : vector<24x1xf32> to vector<24x32xf32>
    %6 = arith.subf %0, %5 : vector<24x32xf32>
    %7 = arith.mulf %6, %6 : vector<24x32xf32>
    %cst_2 = arith.constant dense<0.000000e+00> : vector<24xf32>
    %8 = vector.multi_reduction <add>, %7, %cst_2 [1] : vector<24x32xf32> to vector<24xf32>
    %9 = vector.shape_cast %8 : vector<24xf32> to vector<24x1xf32>
    %cst_3 = arith.constant 3.200000e+01 : f32
    %10 = vector.broadcast %cst_3 : f32 to vector<24x1xf32>
    %11 = arith.divf %9, %10 : vector<24x1xf32>
    %12 = vector.broadcast %4 : vector<24x1xf32> to vector<24x32xf32>
    %13 = arith.subf %0, %12 : vector<24x32xf32>
    %cst_4 = arith.constant 9.99999997E-7 : f32
    %14 = vector.broadcast %cst_4 : f32 to vector<24x1xf32>
    %15 = arith.addf %11, %14 : vector<24x1xf32>
    %16 = math.rsqrt %15 : vector<24x1xf32>
    %17 = vector.broadcast %16 : vector<24x1xf32> to vector<24x32xf32>
    %18 = arith.mulf %13, %17 : vector<24x32xf32>
    %c0_5 = arith.constant 0 : index
    %c0_6 = arith.constant 0 : index
    %19 = vector.load %arg5[%c0_5, %c0_6] : memref<1x32xf32, #tpu.memory_space<vmem>>, vector<1x32xf32>
    %20 = vector.broadcast %19 : vector<1x32xf32> to vector<24x32xf32>
    %21 = arith.mulf %18, %20 : vector<24x32xf32>
    %c0_7 = arith.constant 0 : index
    %c0_8 = arith.constant 0 : index
    %22 = vector.load %arg6[%c0_7, %c0_8] : memref<1x32xf32, #tpu.memory_space<vmem>>, vector<1x32xf32>
    %23 = vector.broadcast %22 : vector<1x32xf32> to vector<24x32xf32>
    %24 = arith.addf %21, %23 : vector<24x32xf32>
    %25 = arith.mulf %24, %24 : vector<24x32xf32>
    %26 = arith.mulf %24, %25 : vector<24x32xf32>
    %cst_9 = arith.constant 4.471500e-02 : f32
    %27 = vector.broadcast %cst_9 : f32 to vector<24x32xf32>
    %28 = arith.mulf %27, %26 : vector<24x32xf32>
    %29 = arith.addf %24, %28 : vector<24x32xf32>
    %cst_10 = arith.constant 0.797884583 : f32
    %30 = vector.broadcast %cst_10 : f32 to vector<24x32xf32>
    %31 = arith.mulf %30, %29 : vector<24x32xf32>
    %32 = math.tanh %31 : vector<24x32xf32>
    %cst_11 = arith.constant 1.000000e+00 : f32
    %33 = vector.broadcast %cst_11 : f32 to vector<24x32xf32>
    %34 = arith.addf %33, %32 : vector<24x32xf32>
    %cst_12 = arith.constant 5.000000e-01 : f32
    %35 = vector.broadcast %cst_12 : f32 to vector<24x32xf32>
    %36 = arith.mulf %35, %34 : vector<24x32xf32>
    %37 = arith.mulf %24, %36 : vector<24x32xf32>
    %38 = arith.truncf %37 : vector<24x32xf32> to vector<24x32xbf16>
    %c0_13 = arith.constant 0 : index
    %c0_14 = arith.constant 0 : index
    %39 = vector.load %arg3[%c0_13, %c0_14] : memref<32x32xf32, #tpu.memory_space<vmem>>, vector<32x32xf32>
    %40 = arith.truncf %39 : vector<32x32xf32> to vector<32x32xbf16>
    %cst_15 = arith.constant dense<0.000000e+00> : vector<24x32xf32>
    %41 = tpu.matmul %38, %40, %cst_15 {dimension_numbers = #tpu.dot_dimension_numbers<[1], [0], [0], [1], [0, 0, 1, 1], [], []>} : vector<24x32xbf16>, vector<32x32xbf16>, vector<24x32xf32> -> vector<24x32xf32>
    %c0_16 = arith.constant 0 : index
    %c0_17 = arith.constant 0 : index
    %42 = vector.load %arg4[%c0_16, %c0_17] : memref<1x32xf32, #tpu.memory_space<vmem>>, vector<1x32xf32>
    %43 = vector.broadcast %42 : vector<1x32xf32> to vector<24x32xf32>
    %44 = arith.addf %41, %43 : vector<24x32xf32>
    %c0_18 = arith.constant 0 : index
    %c0_19 = arith.constant 0 : index
    %45 = vector.load %arg7[%c0_18, %c0_19] : memref<24x32xf32, #tpu.memory_space<vmem>>, vector<24x32xf32>
    tpu.vector_store %arg7[%c0_18, %c0_19], %44 {strides = array<i32>} : memref<24x32xf32, #tpu.memory_space<vmem>>, vector<24x32xf32>,
    return
  }
  func.func @transform_0(%arg0: i32, %arg1: i32) -> (i32, i32) {
    %c0_i32 = arith.constant 0 : i32
    %c0_i32_0 = arith.constant 0 : i32
    return %arg0, %c0_i32 : i32, i32
  }
  func.func @transform_1(%arg0: i32, %arg1: i32) -> (i32, i32) {
    %c0_i32 = arith.constant 0 : i32
    %c0_i32_0 = arith.constant 0 : i32
    return %c0_i32, %arg1 : i32, i32
  }
  func.func @transform_2(%arg0: i32, %arg1: i32) -> (i32, i32) {
    %c0_i32 = arith.constant 0 : i32
    %c0_i32_0 = arith.constant 0 : i32
    return %c0_i32, %arg1 : i32, i32
  }
  func.func @transform_3(%arg0: i32, %arg1: i32) -> (i32, i32) {
    %c0_i32 = arith.constant 0 : i32
    %c0_i32_0 = arith.constant 0 : i32
    %c0_i32_1 = arith.constant 0 : i32
    return %c0_i32, %c0_i32_0 : i32, i32
  }
  func.func @transform_4(%arg0: i32, %arg1: i32) -> (i32, i32) {
    %c0_i32 = arith.constant 0 : i32
    %c0_i32_0 = arith.constant 0 : i32
    %c0_i32_1 = arith.constant 0 : i32
    return %c0_i32, %c0_i32_0 : i32, i32
  }
  func.func @transform_5(%arg0: i32, %arg1: i32) -> (i32, i32) {
    %c0_i32 = arith.constant 0 : i32
    return %arg0, %arg1 : i32, i32
  }
}

module attributes {stable_mosaic.version = 11 : i64} {
  func.func @kernel(%arg0: i32, %arg1: memref<1x17x1x4x8xf32, #tpu.memory_space<vmem>>, %arg2: memref<1x17x1x4x8xf32, #tpu.memory_space<vmem>>, %arg3: memref<1x17x1x4x8xf32, #tpu.memory_space<vmem>>, %arg4: memref<1x17x32xf32, #tpu.memory_space<vmem>>) attributes {dimension_semantics = [#tpu.dimension_semantics<parallel>], iteration_bounds = array<i64: 2>, scalar_prefetch = 0 : i64, scratch_operands = 0 : i64, tpu.core_type = #tpu.core_type<tc>, window_params = [{transform_indices = @transform_0, window_bounds = array<i64: 1, 17, 1, 4, 8>}, {transform_indices = @transform_1, window_bounds = array<i64: 1, 17, 1, 4, 8>}, {transform_indices = @transform_2, window_bounds = array<i64: 1, 17, 1, 4, 8>}, {transform_indices = @transform_3, window_bounds = array<i64: 1, 17, 32>}]} {
    %c0 = arith.constant 0 : index
    %c0_0 = arith.constant 0 : index
    %c0_1 = arith.constant 0 : index
    %c0_2 = arith.constant 0 : index
    %c0_3 = arith.constant 0 : index
    %0 = vector.load %arg1[%c0, %c0_0, %c0_1, %c0_2, %c0_3] : memref<1x17x1x4x8xf32, #tpu.memory_space<vmem>>, vector<1x17x1x4x8xf32>
    %1 = vector.shape_cast %0 : vector<1x17x1x4x8xf32> to vector<17x4x8xf32>
    %c0_4 = arith.constant 0 : index
    %c0_5 = arith.constant 0 : index
    %c0_6 = arith.constant 0 : index
    %c0_7 = arith.constant 0 : index
    %c0_8 = arith.constant 0 : index
    %2 = vector.load %arg2[%c0_4, %c0_5, %c0_6, %c0_7, %c0_8] : memref<1x17x1x4x8xf32, #tpu.memory_space<vmem>>, vector<1x17x1x4x8xf32>
    %3 = vector.shape_cast %2 : vector<1x17x1x4x8xf32> to vector<17x4x8xf32>
    %c0_9 = arith.constant 0 : index
    %c0_10 = arith.constant 0 : index
    %c0_11 = arith.constant 0 : index
    %c0_12 = arith.constant 0 : index
    %c0_13 = arith.constant 0 : index
    %4 = vector.load %arg3[%c0_9, %c0_10, %c0_11, %c0_12, %c0_13] : memref<1x17x1x4x8xf32, #tpu.memory_space<vmem>>, vector<1x17x1x4x8xf32>
    %5 = vector.shape_cast %4 : vector<1x17x1x4x8xf32> to vector<17x4x8xf32>
    %6 = vector.extract_strided_slice %1 {offsets = [0, 0, 0], sizes = [17, 1, 8], strides = [1, 1, 1]} : vector<17x4x8xf32> to vector<17x1x8xf32>
    %7 = vector.shape_cast %6 : vector<17x1x8xf32> to vector<17x8xf32>
    %cst = arith.constant 0.353553385 : f32
    %8 = vector.broadcast %cst : f32 to vector<17x8xf32>
    %9 = arith.mulf %7, %8 : vector<17x8xf32>
    %10 = arith.truncf %9 : vector<17x8xf32> to vector<17x8xbf16>
    %11 = vector.extract_strided_slice %3 {offsets = [0, 0, 0], sizes = [17, 1, 8], strides = [1, 1, 1]} : vector<17x4x8xf32> to vector<17x1x8xf32>
    %12 = vector.shape_cast %11 : vector<17x1x8xf32> to vector<17x8xf32>
    %13 = arith.truncf %12 : vector<17x8xf32> to vector<17x8xbf16>
    %14 = vector.extract_strided_slice %5 {offsets = [0, 0, 0], sizes = [17, 1, 8], strides = [1, 1, 1]} : vector<17x4x8xf32> to vector<17x1x8xf32>
    %15 = vector.shape_cast %14 : vector<17x1x8xf32> to vector<17x8xf32>
    %16 = arith.truncf %15 : vector<17x8xf32> to vector<17x8xbf16>
    %cst_14 = arith.constant dense<0.000000e+00> : vector<17x17xf32>
    %17 = tpu.matmul %10, %13, %cst_14 {dimension_numbers = #tpu.dot_dimension_numbers<[1], [1], [0], [0], [0, 0, 1, 0], [], []>} : vector<17x8xbf16>, vector<17x8xbf16>, vector<17x17xf32> -> vector<17x17xf32>
    %cst_15 = arith.constant dense<0xFF800000> : vector<17xf32>
    %18 = vector.multi_reduction <maximumf>, %17, %cst_15 [1] : vector<17x17xf32> to vector<17xf32>
    %19 = vector.shape_cast %18 : vector<17xf32> to vector<17x1xf32>
    %20 = vector.broadcast %19 : vector<17x1xf32> to vector<17x17xf32>
    %21 = arith.subf %17, %20 : vector<17x17xf32>
    %22 = math.exp %21 : vector<17x17xf32>
    %cst_16 = arith.constant dense<0.000000e+00> : vector<17xf32>
    %23 = vector.multi_reduction <add>, %22, %cst_16 [1] : vector<17x17xf32> to vector<17xf32>
    %24 = vector.shape_cast %23 : vector<17xf32> to vector<17x1xf32>
    %25 = tpu.reciprocal %24 {approx = true} : vector<17x1xf32> -> vector<17x1xf32>
    %26 = vector.broadcast %25 : vector<17x1xf32> to vector<17x17xf32>
    %27 = arith.mulf %22, %26 : vector<17x17xf32>
    %28 = arith.truncf %27 : vector<17x17xf32> to vector<17x17xbf16>
    %cst_17 = arith.constant dense<0.000000e+00> : vector<17x8xf32>
    %29 = tpu.matmul %28, %16, %cst_17 {dimension_numbers = #tpu.dot_dimension_numbers<[1], [0], [0], [1], [0, 0, 1, 1], [], []>} : vector<17x17xbf16>, vector<17x8xbf16>, vector<17x8xf32> -> vector<17x8xf32>
    %30 = vector.extract_strided_slice %1 {offsets = [0, 1, 0], sizes = [17, 1, 8], strides = [1, 1, 1]} : vector<17x4x8xf32> to vector<17x1x8xf32>
    %31 = vector.shape_cast %30 : vector<17x1x8xf32> to vector<17x8xf32>
    %cst_18 = arith.constant 0.353553385 : f32
    %32 = vector.broadcast %cst_18 : f32 to vector<17x8xf32>
    %33 = arith.mulf %31, %32 : vector<17x8xf32>
    %34 = arith.truncf %33 : vector<17x8xf32> to vector<17x8xbf16>
    %35 = vector.extract_strided_slice %3 {offsets = [0, 1, 0], sizes = [17, 1, 8], strides = [1, 1, 1]} : vector<17x4x8xf32> to vector<17x1x8xf32>
    %36 = vector.shape_cast %35 : vector<17x1x8xf32> to vector<17x8xf32>
    %37 = arith.truncf %36 : vector<17x8xf32> to vector<17x8xbf16>
    %38 = vector.extract_strided_slice %5 {offsets = [0, 1, 0], sizes = [17, 1, 8], strides = [1, 1, 1]} : vector<17x4x8xf32> to vector<17x1x8xf32>
    %39 = vector.shape_cast %38 : vector<17x1x8xf32> to vector<17x8xf32>
    %40 = arith.truncf %39 : vector<17x8xf32> to vector<17x8xbf16>
    %cst_19 = arith.constant dense<0.000000e+00> : vector<17x17xf32>
    %41 = tpu.matmul %34, %37, %cst_19 {dimension_numbers = #tpu.dot_dimension_numbers<[1], [1], [0], [0], [0, 0, 1, 0], [], []>} : vector<17x8xbf16>, vector<17x8xbf16>, vector<17x17xf32> -> vector<17x17xf32>
    %cst_20 = arith.constant dense<0xFF800000> : vector<17xf32>
    %42 = vector.multi_reduction <maximumf>, %41, %cst_20 [1] : vector<17x17xf32> to vector<17xf32>
    %43 = vector.shape_cast %42 : vector<17xf32> to vector<17x1xf32>
    %44 = vector.broadcast %43 : vector<17x1xf32> to vector<17x17xf32>
    %45 = arith.subf %41, %44 : vector<17x17xf32>
    %46 = math.exp %45 : vector<17x17xf32>
    %cst_21 = arith.constant dense<0.000000e+00> : vector<17xf32>
    %47 = vector.multi_reduction <add>, %46, %cst_21 [1] : vector<17x17xf32> to vector<17xf32>
    %48 = vector.shape_cast %47 : vector<17xf32> to vector<17x1xf32>
    %49 = tpu.reciprocal %48 {approx = true} : vector<17x1xf32> -> vector<17x1xf32>
    %50 = vector.broadcast %49 : vector<17x1xf32> to vector<17x17xf32>
    %51 = arith.mulf %46, %50 : vector<17x17xf32>
    %52 = arith.truncf %51 : vector<17x17xf32> to vector<17x17xbf16>
    %cst_22 = arith.constant dense<0.000000e+00> : vector<17x8xf32>
    %53 = tpu.matmul %52, %40, %cst_22 {dimension_numbers = #tpu.dot_dimension_numbers<[1], [0], [0], [1], [0, 0, 1, 1], [], []>} : vector<17x17xbf16>, vector<17x8xbf16>, vector<17x8xf32> -> vector<17x8xf32>
    %54 = vector.extract_strided_slice %1 {offsets = [0, 2, 0], sizes = [17, 1, 8], strides = [1, 1, 1]} : vector<17x4x8xf32> to vector<17x1x8xf32>
    %55 = vector.shape_cast %54 : vector<17x1x8xf32> to vector<17x8xf32>
    %cst_23 = arith.constant 0.353553385 : f32
    %56 = vector.broadcast %cst_23 : f32 to vector<17x8xf32>
    %57 = arith.mulf %55, %56 : vector<17x8xf32>
    %58 = arith.truncf %57 : vector<17x8xf32> to vector<17x8xbf16>
    %59 = vector.extract_strided_slice %3 {offsets = [0, 2, 0], sizes = [17, 1, 8], strides = [1, 1, 1]} : vector<17x4x8xf32> to vector<17x1x8xf32>
    %60 = vector.shape_cast %59 : vector<17x1x8xf32> to vector<17x8xf32>
    %61 = arith.truncf %60 : vector<17x8xf32> to vector<17x8xbf16>
    %62 = vector.extract_strided_slice %5 {offsets = [0, 2, 0], sizes = [17, 1, 8], strides = [1, 1, 1]} : vector<17x4x8xf32> to vector<17x1x8xf32>
    %63 = vector.shape_cast %62 : vector<17x1x8xf32> to vector<17x8xf32>
    %64 = arith.truncf %63 : vector<17x8xf32> to vector<17x8xbf16>
    %cst_24 = arith.constant dense<0.000000e+00> : vector<17x17xf32>
    %65 = tpu.matmul %58, %61, %cst_24 {dimension_numbers = #tpu.dot_dimension_numbers<[1], [1], [0], [0], [0, 0, 1, 0], [], []>} : vector<17x8xbf16>, vector<17x8xbf16>, vector<17x17xf32> -> vector<17x17xf32>
    %cst_25 = arith.constant dense<0xFF800000> : vector<17xf32>
    %66 = vector.multi_reduction <maximumf>, %65, %cst_25 [1] : vector<17x17xf32> to vector<17xf32>
    %67 = vector.shape_cast %66 : vector<17xf32> to vector<17x1xf32>
    %68 = vector.broadcast %67 : vector<17x1xf32> to vector<17x17xf32>
    %69 = arith.subf %65, %68 : vector<17x17xf32>
    %70 = math.exp %69 : vector<17x17xf32>
    %cst_26 = arith.constant dense<0.000000e+00> : vector<17xf32>
    %71 = vector.multi_reduction <add>, %70, %cst_26 [1] : vector<17x17xf32> to vector<17xf32>
    %72 = vector.shape_cast %71 : vector<17xf32> to vector<17x1xf32>
    %73 = tpu.reciprocal %72 {approx = true} : vector<17x1xf32> -> vector<17x1xf32>
    %74 = vector.broadcast %73 : vector<17x1xf32> to vector<17x17xf32>
    %75 = arith.mulf %70, %74 : vector<17x17xf32>
    %76 = arith.truncf %75 : vector<17x17xf32> to vector<17x17xbf16>
    %cst_27 = arith.constant dense<0.000000e+00> : vector<17x8xf32>
    %77 = tpu.matmul %76, %64, %cst_27 {dimension_numbers = #tpu.dot_dimension_numbers<[1], [0], [0], [1], [0, 0, 1, 1], [], []>} : vector<17x17xbf16>, vector<17x8xbf16>, vector<17x8xf32> -> vector<17x8xf32>
    %78 = vector.extract_strided_slice %1 {offsets = [0, 3, 0], sizes = [17, 1, 8], strides = [1, 1, 1]} : vector<17x4x8xf32> to vector<17x1x8xf32>
    %79 = vector.shape_cast %78 : vector<17x1x8xf32> to vector<17x8xf32>
    %cst_28 = arith.constant 0.353553385 : f32
    %80 = vector.broadcast %cst_28 : f32 to vector<17x8xf32>
    %81 = arith.mulf %79, %80 : vector<17x8xf32>
    %82 = arith.truncf %81 : vector<17x8xf32> to vector<17x8xbf16>
    %83 = vector.extract_strided_slice %3 {offsets = [0, 3, 0], sizes = [17, 1, 8], strides = [1, 1, 1]} : vector<17x4x8xf32> to vector<17x1x8xf32>
    %84 = vector.shape_cast %83 : vector<17x1x8xf32> to vector<17x8xf32>
    %85 = arith.truncf %84 : vector<17x8xf32> to vector<17x8xbf16>
    %86 = vector.extract_strided_slice %5 {offsets = [0, 3, 0], sizes = [17, 1, 8], strides = [1, 1, 1]} : vector<17x4x8xf32> to vector<17x1x8xf32>
    %87 = vector.shape_cast %86 : vector<17x1x8xf32> to vector<17x8xf32>
    %88 = arith.truncf %87 : vector<17x8xf32> to vector<17x8xbf16>
    %cst_29 = arith.constant dense<0.000000e+00> : vector<17x17xf32>
    %89 = tpu.matmul %82, %85, %cst_29 {dimension_numbers = #tpu.dot_dimension_numbers<[1], [1], [0], [0], [0, 0, 1, 0], [], []>} : vector<17x8xbf16>, vector<17x8xbf16>, vector<17x17xf32> -> vector<17x17xf32>
    %cst_30 = arith.constant dense<0xFF800000> : vector<17xf32>
    %90 = vector.multi_reduction <maximumf>, %89, %cst_30 [1] : vector<17x17xf32> to vector<17xf32>
    %91 = vector.shape_cast %90 : vector<17xf32> to vector<17x1xf32>
    %92 = vector.broadcast %91 : vector<17x1xf32> to vector<17x17xf32>
    %93 = arith.subf %89, %92 : vector<17x17xf32>
    %94 = math.exp %93 : vector<17x17xf32>
    %cst_31 = arith.constant dense<0.000000e+00> : vector<17xf32>
    %95 = vector.multi_reduction <add>, %94, %cst_31 [1] : vector<17x17xf32> to vector<17xf32>
    %96 = vector.shape_cast %95 : vector<17xf32> to vector<17x1xf32>
    %97 = tpu.reciprocal %96 {approx = true} : vector<17x1xf32> -> vector<17x1xf32>
    %98 = vector.broadcast %97 : vector<17x1xf32> to vector<17x17xf32>
    %99 = arith.mulf %94, %98 : vector<17x17xf32>
    %100 = arith.truncf %99 : vector<17x17xf32> to vector<17x17xbf16>
    %cst_32 = arith.constant dense<0.000000e+00> : vector<17x8xf32>
    %101 = tpu.matmul %100, %88, %cst_32 {dimension_numbers = #tpu.dot_dimension_numbers<[1], [0], [0], [1], [0, 0, 1, 1], [], []>} : vector<17x17xbf16>, vector<17x8xbf16>, vector<17x8xf32> -> vector<17x8xf32>
    %102 = tpu.concatenate %29, %53, %77, %101 in 1 : vector<17x8xf32>, vector<17x8xf32>, vector<17x8xf32>, vector<17x8xf32> -> vector<17x32xf32>
    %c0_33 = arith.constant 0 : index
    %c0_34 = arith.constant 0 : index
    %c0_35 = arith.constant 0 : index
    %103 = vector.load %arg4[%c0_33, %c0_34, %c0_35] : memref<1x17x32xf32, #tpu.memory_space<vmem>>, vector<1x17x32xf32>
    %104 = vector.shape_cast %103 : vector<1x17x32xf32> to vector<17x32xf32>
    %105 = vector.shape_cast %102 : vector<17x32xf32> to vector<1x17x32xf32>
    tpu.vector_store %arg4[%c0_33, %c0_34, %c0_35], %105 {strides = array<i32>} : memref<1x17x32xf32, #tpu.memory_space<vmem>>, vector<1x17x32xf32>,
    return
  }
  func.func @transform_0(%arg0: i32) -> (i32, i32, i32, i32, i32) {
    %c0_i32 = arith.constant 0 : i32
    %c0_i32_0 = arith.constant 0 : i32
    %c0_i32_1 = arith.constant 0 : i32
    %c0_i32_2 = arith.constant 0 : i32
    %c0_i32_3 = arith.constant 0 : i32
    return %arg0, %c0_i32, %c0_i32_0, %c0_i32_1, %c0_i32_2 : i32, i32, i32, i32, i32
  }
  func.func @transform_1(%arg0: i32) -> (i32, i32, i32, i32, i32) {
    %c0_i32 = arith.constant 0 : i32
    %c1_i32 = arith.constant 1 : i32
    %c0_i32_0 = arith.constant 0 : i32
    %c0_i32_1 = arith.constant 0 : i32
    %c0_i32_2 = arith.constant 0 : i32
    return %arg0, %c0_i32, %c1_i32, %c0_i32_0, %c0_i32_1 : i32, i32, i32, i32, i32
  }
  func.func @transform_2(%arg0: i32) -> (i32, i32, i32, i32, i32) {
    %c0_i32 = arith.constant 0 : i32
    %c2_i32 = arith.constant 2 : i32
    %c0_i32_0 = arith.constant 0 : i32
    %c0_i32_1 = arith.constant 0 : i32
    %c0_i32_2 = arith.constant 0 : i32
    return %arg0, %c0_i32, %c2_i32, %c0_i32_0, %c0_i32_1 : i32, i32, i32, i32, i32
  }
  func.func @transform_3(%arg0: i32) -> (i32, i32, i32) {
    %c0_i32 = arith.constant 0 : i32
    %c0_i32_0 = arith.constant 0 : i32
    %c0_i32_1 = arith.constant 0 : i32
    return %arg0, %c0_i32, %c0_i32_0 : i32, i32, i32
  }
}

module attributes {stable_mosaic.version = 11 : i64} {
  func.func @kernel(%arg0: i32, %arg1: i32, %arg2: memref<40x32xf32, #tpu.memory_space<vmem>>, %arg3: memref<32x96xf32, #tpu.memory_space<vmem>>, %arg4: memref<1x96xf32, #tpu.memory_space<vmem>>, %arg5: memref<1x32xf32, #tpu.memory_space<vmem>>, %arg6: memref<1x32xf32, #tpu.memory_space<vmem>>, %arg7: memref<40x96xf32, #tpu.memory_space<vmem>>) attributes {dimension_semantics = [#tpu.dimension_semantics<parallel>, #tpu.dimension_semantics<parallel>], iteration_bounds = array<i64: 1, 1>, scalar_prefetch = 0 : i64, scratch_operands = 0 : i64, tpu.core_type = #tpu.core_type<tc>, window_params = [{transform_indices = @transform_0, window_bounds = array<i64: 40, 32>}, {transform_indices = @transform_1, window_bounds = array<i64: 32, 96>}, {transform_indices = @transform_2, window_bounds = array<i64: 1, 96>}, {pipeline_mode = #tpu.pipeline_mode<synchronous>, transform_indices = @transform_3, window_bounds = array<i64: 1, 32>}, {pipeline_mode = #tpu.pipeline_mode<synchronous>, transform_indices = @transform_4, window_bounds = array<i64: 1, 32>}, {transform_indices = @transform_5, window_bounds = array<i64: 40, 96>}]} {
    %c0 = arith.constant 0 : index
    %c0_0 = arith.constant 0 : index
    %0 = vector.load %arg2[%c0, %c0_0] : memref<40x32xf32, #tpu.memory_space<vmem>>, vector<40x32xf32>
    %cst = arith.constant dense<0.000000e+00> : vector<40xf32>
    %1 = vector.multi_reduction <add>, %0, %cst [1] : vector<40x32xf32> to vector<40xf32>
    %2 = vector.shape_cast %1 : vector<40xf32> to vector<40x1xf32>
    %cst_1 = arith.constant 3.200000e+01 : f32
    %3 = vector.broadcast %cst_1 : f32 to vector<40x1xf32>
    %4 = arith.divf %2, %3 : vector<40x1xf32>
    %5 = vector.broadcast %4 : vector<40x1xf32> to vector<40x32xf32>
    %6 = arith.subf %0, %5 : vector<40x32xf32>
    %7 = arith.mulf %6, %6 : vector<40x32xf32>
    %cst_2 = arith.constant dense<0.000000e+00> : vector<40xf32>
    %8 = vector.multi_reduction <add>, %7, %cst_2 [1] : vector<40x32xf32> to vector<40xf32>
    %9 = vector.shape_cast %8 : vector<40xf32> to vector<40x1xf32>
    %cst_3 = arith.constant 3.200000e+01 : f32
    %10 = vector.broadcast %cst_3 : f32 to vector<40x1xf32>
    %11 = arith.divf %9, %10 : vector<40x1xf32>
    %12 = vector.broadcast %4 : vector<40x1xf32> to vector<40x32xf32>
    %13 = arith.subf %0, %12 : vector<40x32xf32>
    %cst_4 = arith.constant 9.99999997E-7 : f32
    %14 = vector.broadcast %cst_4 : f32 to vector<40x1xf32>
    %15 = arith.addf %11, %14 : vector<40x1xf32>
    %16 = math.rsqrt %15 : vector<40x1xf32>
    %17 = vector.broadcast %16 : vector<40x1xf32> to vector<40x32xf32>
    %18 = arith.mulf %13, %17 : vector<40x32xf32>
    %c0_5 = arith.constant 0 : index
    %c0_6 = arith.constant 0 : index
    %19 = vector.load %arg5[%c0_5, %c0_6] : memref<1x32xf32, #tpu.memory_space<vmem>>, vector<1x32xf32>
    %20 = vector.broadcast %19 : vector<1x32xf32> to vector<40x32xf32>
    %21 = arith.mulf %18, %20 : vector<40x32xf32>
    %c0_7 = arith.constant 0 : index
    %c0_8 = arith.constant 0 : index
    %22 = vector.load %arg6[%c0_7, %c0_8] : memref<1x32xf32, #tpu.memory_space<vmem>>, vector<1x32xf32>
    %23 = vector.broadcast %22 : vector<1x32xf32> to vector<40x32xf32>
    %24 = arith.addf %21, %23 : vector<40x32xf32>
    %25 = arith.truncf %24 : vector<40x32xf32> to vector<40x32xbf16>
    %c0_9 = arith.constant 0 : index
    %c0_10 = arith.constant 0 : index
    %26 = vector.load %arg3[%c0_9, %c0_10] : memref<32x96xf32, #tpu.memory_space<vmem>>, vector<32x96xf32>
    %27 = arith.truncf %26 : vector<32x96xf32> to vector<32x96xbf16>
    %cst_11 = arith.constant dense<0.000000e+00> : vector<40x96xf32>
    %28 = tpu.matmul %25, %27, %cst_11 {dimension_numbers = #tpu.dot_dimension_numbers<[1], [0], [0], [1], [0, 0, 1, 1], [], []>} : vector<40x32xbf16>, vector<32x96xbf16>, vector<40x96xf32> -> vector<40x96xf32>
    %c0_12 = arith.constant 0 : index
    %c0_13 = arith.constant 0 : index
    %29 = vector.load %arg4[%c0_12, %c0_13] : memref<1x96xf32, #tpu.memory_space<vmem>>, vector<1x96xf32>
    %30 = vector.broadcast %29 : vector<1x96xf32> to vector<40x96xf32>
    %31 = arith.addf %28, %30 : vector<40x96xf32>
    %c0_14 = arith.constant 0 : index
    %c0_15 = arith.constant 0 : index
    %32 = vector.load %arg7[%c0_14, %c0_15] : memref<40x96xf32, #tpu.memory_space<vmem>>, vector<40x96xf32>
    tpu.vector_store %arg7[%c0_14, %c0_15], %31 {strides = array<i32>} : memref<40x96xf32, #tpu.memory_space<vmem>>, vector<40x96xf32>,
    return
  }
  func.func @transform_0(%arg0: i32, %arg1: i32) -> (i32, i32) {
    %c0_i32 = arith.constant 0 : i32
    %c0_i32_0 = arith.constant 0 : i32
    return %arg0, %c0_i32 : i32, i32
  }
  func.func @transform_1(%arg0: i32, %arg1: i32) -> (i32, i32) {
    %c0_i32 = arith.constant 0 : i32
    %c0_i32_0 = arith.constant 0 : i32
    return %c0_i32, %arg1 : i32, i32
  }
  func.func @transform_2(%arg0: i32, %arg1: i32) -> (i32, i32) {
    %c0_i32 = arith.constant 0 : i32
    %c0_i32_0 = arith.constant 0 : i32
    return %c0_i32, %arg1 : i32, i32
  }
  func.func @transform_3(%arg0: i32, %arg1: i32) -> (i32, i32) {
    %c0_i32 = arith.constant 0 : i32
    %c0_i32_0 = arith.constant 0 : i32
    %c0_i32_1 = arith.constant 0 : i32
    return %c0_i32, %c0_i32_0 : i32, i32
  }
  func.func @transform_4(%arg0: i32, %arg1: i32) -> (i32, i32) {
    %c0_i32 = arith.constant 0 : i32
    %c0_i32_0 = arith.constant 0 : i32
    %c0_i32_1 = arith.constant 0 : i32
    return %c0_i32, %c0_i32_0 : i32, i32
  }
  func.func @transform_5(%arg0: i32, %arg1: i32) -> (i32, i32) {
    %c0_i32 = arith.constant 0 : i32
    return %arg0, %arg1 : i32, i32
  }
}

module attributes {stable_mosaic.version = 11 : i64} {
  func.func @kernel(%arg0: i32, %arg1: i32, %arg2: memref<40x32xf32, #tpu.memory_space<vmem>>, %arg3: memref<32x32xf32, #tpu.memory_space<vmem>>, %arg4: memref<1x32xf32, #tpu.memory_space<vmem>>, %arg5: memref<40x32xf32, #tpu.memory_space<vmem>>, %arg6: memref<40x32xf32, #tpu.memory_space<vmem>>) attributes {dimension_semantics = [#tpu.dimension_semantics<parallel>, #tpu.dimension_semantics<parallel>], iteration_bounds = array<i64: 1, 1>, scalar_prefetch = 0 : i64, scratch_operands = 0 : i64, tpu.core_type = #tpu.core_type<tc>, window_params = [{transform_indices = @transform_0, window_bounds = array<i64: 40, 32>}, {transform_indices = @transform_1, window_bounds = array<i64: 32, 32>}, {transform_indices = @transform_2, window_bounds = array<i64: 1, 32>}, {transform_indices = @transform_3, window_bounds = array<i64: 40, 32>}, {transform_indices = @transform_4, window_bounds = array<i64: 40, 32>}]} {
    %c0 = arith.constant 0 : index
    %c0_0 = arith.constant 0 : index
    %0 = vector.load %arg2[%c0, %c0_0] : memref<40x32xf32, #tpu.memory_space<vmem>>, vector<40x32xf32>
    %1 = arith.truncf %0 : vector<40x32xf32> to vector<40x32xbf16>
    %c0_1 = arith.constant 0 : index
    %c0_2 = arith.constant 0 : index
    %2 = vector.load %arg3[%c0_1, %c0_2] : memref<32x32xf32, #tpu.memory_space<vmem>>, vector<32x32xf32>
    %3 = arith.truncf %2 : vector<32x32xf32> to vector<32x32xbf16>
    %cst = arith.constant dense<0.000000e+00> : vector<40x32xf32>
    %4 = tpu.matmul %1, %3, %cst {dimension_numbers = #tpu.dot_dimension_numbers<[1], [0], [0], [1], [0, 0, 1, 1], [], []>} : vector<40x32xbf16>, vector<32x32xbf16>, vector<40x32xf32> -> vector<40x32xf32>
    %c0_3 = arith.constant 0 : index
    %c0_4 = arith.constant 0 : index
    %5 = vector.load %arg4[%c0_3, %c0_4] : memref<1x32xf32, #tpu.memory_space<vmem>>, vector<1x32xf32>
    %6 = vector.broadcast %5 : vector<1x32xf32> to vector<40x32xf32>
    %7 = arith.addf %4, %6 : vector<40x32xf32>
    %c0_5 = arith.constant 0 : index
    %c0_6 = arith.constant 0 : index
    %8 = vector.load %arg5[%c0_5, %c0_6] : memref<40x32xf32, #tpu.memory_space<vmem>>, vector<40x32xf32>
    %9 = arith.addf %7, %8 : vector<40x32xf32>
    %c0_7 = arith.constant 0 : index
    %c0_8 = arith.constant 0 : index
    %10 = vector.load %arg6[%c0_7, %c0_8] : memref<40x32xf32, #tpu.memory_space<vmem>>, vector<40x32xf32>
    tpu.vector_store %arg6[%c0_7, %c0_8], %9 {strides = array<i32>} : memref<40x32xf32, #tpu.memory_space<vmem>>, vector<40x32xf32>,
    return
  }
  func.func @transform_0(%arg0: i32, %arg1: i32) -> (i32, i32) {
    %c0_i32 = arith.constant 0 : i32
    %c0_i32_0 = arith.constant 0 : i32
    return %arg0, %c0_i32 : i32, i32
  }
  func.func @transform_1(%arg0: i32, %arg1: i32) -> (i32, i32) {
    %c0_i32 = arith.constant 0 : i32
    %c0_i32_0 = arith.constant 0 : i32
    return %c0_i32, %arg1 : i32, i32
  }
  func.func @transform_2(%arg0: i32, %arg1: i32) -> (i32, i32) {
    %c0_i32 = arith.constant 0 : i32
    %c0_i32_0 = arith.constant 0 : i32
    return %c0_i32, %arg1 : i32, i32
  }
  func.func @transform_3(%arg0: i32, %arg1: i32) -> (i32, i32) {
    %c0_i32 = arith.constant 0 : i32
    return %arg0, %arg1 : i32, i32
  }
  func.func @transform_4(%arg0: i32, %arg1: i32) -> (i32, i32) {
    %c0_i32 = arith.constant 0 : i32
    return %arg0, %arg1 : i32, i32
  }
}

module attributes {stable_mosaic.version = 11 : i64} {
  func.func @kernel(%arg0: i32, %arg1: i32, %arg2: memref<40x128xf32, #tpu.memory_space<vmem>>, %arg3: memref<128x32xf32, #tpu.memory_space<vmem>>, %arg4: memref<1x32xf32, #tpu.memory_space<vmem>>, %arg5: memref<40x32xf32, #tpu.memory_space<vmem>>, %arg6: memref<40x32xf32, #tpu.memory_space<vmem>>) attributes {dimension_semantics = [#tpu.dimension_semantics<parallel>, #tpu.dimension_semantics<parallel>], iteration_bounds = array<i64: 1, 1>, scalar_prefetch = 0 : i64, scratch_operands = 0 : i64, tpu.core_type = #tpu.core_type<tc>, window_params = [{transform_indices = @transform_0, window_bounds = array<i64: 40, 128>}, {transform_indices = @transform_1, window_bounds = array<i64: 128, 32>}, {transform_indices = @transform_2, window_bounds = array<i64: 1, 32>}, {transform_indices = @transform_3, window_bounds = array<i64: 40, 32>}, {transform_indices = @transform_4, window_bounds = array<i64: 40, 32>}]} {
    %c0 = arith.constant 0 : index
    %c0_0 = arith.constant 0 : index
    %0 = vector.load %arg2[%c0, %c0_0] : memref<40x128xf32, #tpu.memory_space<vmem>>, vector<40x128xf32>
    %1 = arith.mulf %0, %0 : vector<40x128xf32>
    %2 = arith.mulf %0, %1 : vector<40x128xf32>
    %cst = arith.constant 4.471500e-02 : f32
    %3 = vector.broadcast %cst : f32 to vector<40x128xf32>
    %4 = arith.mulf %3, %2 : vector<40x128xf32>
    %5 = arith.addf %0, %4 : vector<40x128xf32>
    %cst_1 = arith.constant 0.797884583 : f32
    %6 = vector.broadcast %cst_1 : f32 to vector<40x128xf32>
    %7 = arith.mulf %6, %5 : vector<40x128xf32>
    %8 = math.tanh %7 : vector<40x128xf32>
    %cst_2 = arith.constant 1.000000e+00 : f32
    %9 = vector.broadcast %cst_2 : f32 to vector<40x128xf32>
    %10 = arith.addf %9, %8 : vector<40x128xf32>
    %cst_3 = arith.constant 5.000000e-01 : f32
    %11 = vector.broadcast %cst_3 : f32 to vector<40x128xf32>
    %12 = arith.mulf %11, %10 : vector<40x128xf32>
    %13 = arith.mulf %0, %12 : vector<40x128xf32>
    %14 = arith.truncf %13 : vector<40x128xf32> to vector<40x128xbf16>
    %c0_4 = arith.constant 0 : index
    %c0_5 = arith.constant 0 : index
    %15 = vector.load %arg3[%c0_4, %c0_5] : memref<128x32xf32, #tpu.memory_space<vmem>>, vector<128x32xf32>
    %16 = arith.truncf %15 : vector<128x32xf32> to vector<128x32xbf16>
    %cst_6 = arith.constant dense<0.000000e+00> : vector<40x32xf32>
    %17 = tpu.matmul %14, %16, %cst_6 {dimension_numbers = #tpu.dot_dimension_numbers<[1], [0], [0], [1], [0, 0, 1, 1], [], []>} : vector<40x128xbf16>, vector<128x32xbf16>, vector<40x32xf32> -> vector<40x32xf32>
    %c0_7 = arith.constant 0 : index
    %c0_8 = arith.constant 0 : index
    %18 = vector.load %arg4[%c0_7, %c0_8] : memref<1x32xf32, #tpu.memory_space<vmem>>, vector<1x32xf32>
    %19 = vector.broadcast %18 : vector<1x32xf32> to vector<40x32xf32>
    %20 = arith.addf %17, %19 : vector<40x32xf32>
    %c0_9 = arith.constant 0 : index
    %c0_10 = arith.constant 0 : index
    %21 = vector.load %arg5[%c0_9, %c0_10] : memref<40x32xf32, #tpu.memory_space<vmem>>, vector<40x32xf32>
    %22 = arith.addf %20, %21 : vector<40x32xf32>
    %c0_11 = arith.constant 0 : index
    %c0_12 = arith.constant 0 : index
    %23 = vector.load %arg6[%c0_11, %c0_12] : memref<40x32xf32, #tpu.memory_space<vmem>>, vector<40x32xf32>
    tpu.vector_store %arg6[%c0_11, %c0_12], %22 {strides = array<i32>} : memref<40x32xf32, #tpu.memory_space<vmem>>, vector<40x32xf32>,
    return
  }
  func.func @transform_0(%arg0: i32, %arg1: i32) -> (i32, i32) {
    %c0_i32 = arith.constant 0 : i32
    %c0_i32_0 = arith.constant 0 : i32
    return %arg0, %c0_i32 : i32, i32
  }
  func.func @transform_1(%arg0: i32, %arg1: i32) -> (i32, i32) {
    %c0_i32 = arith.constant 0 : i32
    %c0_i32_0 = arith.constant 0 : i32
    return %c0_i32, %arg1 : i32, i32
  }
  func.func @transform_2(%arg0: i32, %arg1: i32) -> (i32, i32) {
    %c0_i32 = arith.constant 0 : i32
    %c0_i32_0 = arith.constant 0 : i32
    return %c0_i32, %arg1 : i32, i32
  }
  func.func @transform_3(%arg0: i32, %arg1: i32) -> (i32, i32) {
    %c0_i32 = arith.constant 0 : i32
    return %arg0, %arg1 : i32, i32
  }
  func.func @transform_4(%arg0: i32, %arg1: i32) -> (i32, i32) {
    %c0_i32 = arith.constant 0 : i32
    return %arg0, %arg1 : i32, i32
  }
}

module attributes {stable_mosaic.version = 11 : i64} {
  func.func @kernel(%arg0: i32, %arg1: i32, %arg2: memref<40x32xf32, #tpu.memory_space<vmem>>, %arg3: memref<32x128xf32, #tpu.memory_space<vmem>>, %arg4: memref<1x128xf32, #tpu.memory_space<vmem>>, %arg5: memref<1x32xf32, #tpu.memory_space<vmem>>, %arg6: memref<1x32xf32, #tpu.memory_space<vmem>>, %arg7: memref<40x128xf32, #tpu.memory_space<vmem>>) attributes {dimension_semantics = [#tpu.dimension_semantics<parallel>, #tpu.dimension_semantics<parallel>], iteration_bounds = array<i64: 1, 1>, scalar_prefetch = 0 : i64, scratch_operands = 0 : i64, tpu.core_type = #tpu.core_type<tc>, window_params = [{transform_indices = @transform_0, window_bounds = array<i64: 40, 32>}, {transform_indices = @transform_1, window_bounds = array<i64: 32, 128>}, {transform_indices = @transform_2, window_bounds = array<i64: 1, 128>}, {pipeline_mode = #tpu.pipeline_mode<synchronous>, transform_indices = @transform_3, window_bounds = array<i64: 1, 32>}, {pipeline_mode = #tpu.pipeline_mode<synchronous>, transform_indices = @transform_4, window_bounds = array<i64: 1, 32>}, {transform_indices = @transform_5, window_bounds = array<i64: 40, 128>}]} {
    %c0 = arith.constant 0 : index
    %c0_0 = arith.constant 0 : index
    %0 = vector.load %arg2[%c0, %c0_0] : memref<40x32xf32, #tpu.memory_space<vmem>>, vector<40x32xf32>
    %cst = arith.constant dense<0.000000e+00> : vector<40xf32>
    %1 = vector.multi_reduction <add>, %0, %cst [1] : vector<40x32xf32> to vector<40xf32>
    %2 = vector.shape_cast %1 : vector<40xf32> to vector<40x1xf32>
    %cst_1 = arith.constant 3.200000e+01 : f32
    %3 = vector.broadcast %cst_1 : f32 to vector<40x1xf32>
    %4 = arith.divf %2, %3 : vector<40x1xf32>
    %5 = vector.broadcast %4 : vector<40x1xf32> to vector<40x32xf32>
    %6 = arith.subf %0, %5 : vector<40x32xf32>
    %7 = arith.mulf %6, %6 : vector<40x32xf32>
    %cst_2 = arith.constant dense<0.000000e+00> : vector<40xf32>
    %8 = vector.multi_reduction <add>, %7, %cst_2 [1] : vector<40x32xf32> to vector<40xf32>
    %9 = vector.shape_cast %8 : vector<40xf32> to vector<40x1xf32>
    %cst_3 = arith.constant 3.200000e+01 : f32
    %10 = vector.broadcast %cst_3 : f32 to vector<40x1xf32>
    %11 = arith.divf %9, %10 : vector<40x1xf32>
    %12 = vector.broadcast %4 : vector<40x1xf32> to vector<40x32xf32>
    %13 = arith.subf %0, %12 : vector<40x32xf32>
    %cst_4 = arith.constant 9.99999997E-7 : f32
    %14 = vector.broadcast %cst_4 : f32 to vector<40x1xf32>
    %15 = arith.addf %11, %14 : vector<40x1xf32>
    %16 = math.rsqrt %15 : vector<40x1xf32>
    %17 = vector.broadcast %16 : vector<40x1xf32> to vector<40x32xf32>
    %18 = arith.mulf %13, %17 : vector<40x32xf32>
    %c0_5 = arith.constant 0 : index
    %c0_6 = arith.constant 0 : index
    %19 = vector.load %arg5[%c0_5, %c0_6] : memref<1x32xf32, #tpu.memory_space<vmem>>, vector<1x32xf32>
    %20 = vector.broadcast %19 : vector<1x32xf32> to vector<40x32xf32>
    %21 = arith.mulf %18, %20 : vector<40x32xf32>
    %c0_7 = arith.constant 0 : index
    %c0_8 = arith.constant 0 : index
    %22 = vector.load %arg6[%c0_7, %c0_8] : memref<1x32xf32, #tpu.memory_space<vmem>>, vector<1x32xf32>
    %23 = vector.broadcast %22 : vector<1x32xf32> to vector<40x32xf32>
    %24 = arith.addf %21, %23 : vector<40x32xf32>
    %25 = arith.truncf %24 : vector<40x32xf32> to vector<40x32xbf16>
    %c0_9 = arith.constant 0 : index
    %c0_10 = arith.constant 0 : index
    %26 = vector.load %arg3[%c0_9, %c0_10] : memref<32x128xf32, #tpu.memory_space<vmem>>, vector<32x128xf32>
    %27 = arith.truncf %26 : vector<32x128xf32> to vector<32x128xbf16>
    %cst_11 = arith.constant dense<0.000000e+00> : vector<40x128xf32>
    %28 = tpu.matmul %25, %27, %cst_11 {dimension_numbers = #tpu.dot_dimension_numbers<[1], [0], [0], [1], [0, 0, 1, 1], [], []>} : vector<40x32xbf16>, vector<32x128xbf16>, vector<40x128xf32> -> vector<40x128xf32>
    %c0_12 = arith.constant 0 : index
    %c0_13 = arith.constant 0 : index
    %29 = vector.load %arg4[%c0_12, %c0_13] : memref<1x128xf32, #tpu.memory_space<vmem>>, vector<1x128xf32>
    %30 = vector.broadcast %29 : vector<1x128xf32> to vector<40x128xf32>
    %31 = arith.addf %28, %30 : vector<40x128xf32>
    %c0_14 = arith.constant 0 : index
    %c0_15 = arith.constant 0 : index
    %32 = vector.load %arg7[%c0_14, %c0_15] : memref<40x128xf32, #tpu.memory_space<vmem>>, vector<40x128xf32>
    tpu.vector_store %arg7[%c0_14, %c0_15], %31 {strides = array<i32>} : memref<40x128xf32, #tpu.memory_space<vmem>>, vector<40x128xf32>,
    return
  }
  func.func @transform_0(%arg0: i32, %arg1: i32) -> (i32, i32) {
    %c0_i32 = arith.constant 0 : i32
    %c0_i32_0 = arith.constant 0 : i32
    return %arg0, %c0_i32 : i32, i32
  }
  func.func @transform_1(%arg0: i32, %arg1: i32) -> (i32, i32) {
    %c0_i32 = arith.constant 0 : i32
    %c0_i32_0 = arith.constant 0 : i32
    return %c0_i32, %arg1 : i32, i32
  }
  func.func @transform_2(%arg0: i32, %arg1: i32) -> (i32, i32) {
    %c0_i32 = arith.constant 0 : i32
    %c0_i32_0 = arith.constant 0 : i32
    return %c0_i32, %arg1 : i32, i32
  }
  func.func @transform_3(%arg0: i32, %arg1: i32) -> (i32, i32) {
    %c0_i32 = arith.constant 0 : i32
    %c0_i32_0 = arith.constant 0 : i32
    %c0_i32_1 = arith.constant 0 : i32
    return %c0_i32, %c0_i32_0 : i32, i32
  }
  func.func @transform_4(%arg0: i32, %arg1: i32) -> (i32, i32) {
    %c0_i32 = arith.constant 0 : i32
    %c0_i32_0 = arith.constant 0 : i32
    %c0_i32_1 = arith.constant 0 : i32
    return %c0_i32, %c0_i32_0 : i32, i32
  }
  func.func @transform_5(%arg0: i32, %arg1: i32) -> (i32, i32) {
    %c0_i32 = arith.constant 0 : i32
    return %arg0, %arg1 : i32, i32
  }
}

module attributes {stable_mosaic.version = 11 : i64} {
  func.func @kernel(%arg0: i32, %arg1: i32, %arg2: memref<40x32xf32, #tpu.memory_space<vmem>>, %arg3: memref<32x192xf32, #tpu.memory_space<vmem>>, %arg4: memref<1x192xf32, #tpu.memory_space<vmem>>, %arg5: memref<1x32xf32, #tpu.memory_space<vmem>>, %arg6: memref<1x32xf32, #tpu.memory_space<vmem>>, %arg7: memref<40x192xf32, #tpu.memory_space<vmem>>) attributes {dimension_semantics = [#tpu.dimension_semantics<parallel>, #tpu.dimension_semantics<parallel>], iteration_bounds = array<i64: 1, 1>, scalar_prefetch = 0 : i64, scratch_operands = 0 : i64, tpu.core_type = #tpu.core_type<tc>, window_params = [{transform_indices = @transform_0, window_bounds = array<i64: 40, 32>}, {transform_indices = @transform_1, window_bounds = array<i64: 32, 192>}, {transform_indices = @transform_2, window_bounds = array<i64: 1, 192>}, {pipeline_mode = #tpu.pipeline_mode<synchronous>, transform_indices = @transform_3, window_bounds = array<i64: 1, 32>}, {pipeline_mode = #tpu.pipeline_mode<synchronous>, transform_indices = @transform_4, window_bounds = array<i64: 1, 32>}, {transform_indices = @transform_5, window_bounds = array<i64: 40, 192>}]} {
    %c0 = arith.constant 0 : index
    %c0_0 = arith.constant 0 : index
    %0 = vector.load %arg2[%c0, %c0_0] : memref<40x32xf32, #tpu.memory_space<vmem>>, vector<40x32xf32>
    %cst = arith.constant dense<0.000000e+00> : vector<40xf32>
    %1 = vector.multi_reduction <add>, %0, %cst [1] : vector<40x32xf32> to vector<40xf32>
    %2 = vector.shape_cast %1 : vector<40xf32> to vector<40x1xf32>
    %cst_1 = arith.constant 3.200000e+01 : f32
    %3 = vector.broadcast %cst_1 : f32 to vector<40x1xf32>
    %4 = arith.divf %2, %3 : vector<40x1xf32>
    %5 = vector.broadcast %4 : vector<40x1xf32> to vector<40x32xf32>
    %6 = arith.subf %0, %5 : vector<40x32xf32>
    %7 = arith.mulf %6, %6 : vector<40x32xf32>
    %cst_2 = arith.constant dense<0.000000e+00> : vector<40xf32>
    %8 = vector.multi_reduction <add>, %7, %cst_2 [1] : vector<40x32xf32> to vector<40xf32>
    %9 = vector.shape_cast %8 : vector<40xf32> to vector<40x1xf32>
    %cst_3 = arith.constant 3.200000e+01 : f32
    %10 = vector.broadcast %cst_3 : f32 to vector<40x1xf32>
    %11 = arith.divf %9, %10 : vector<40x1xf32>
    %12 = vector.broadcast %4 : vector<40x1xf32> to vector<40x32xf32>
    %13 = arith.subf %0, %12 : vector<40x32xf32>
    %cst_4 = arith.constant 9.99999997E-7 : f32
    %14 = vector.broadcast %cst_4 : f32 to vector<40x1xf32>
    %15 = arith.addf %11, %14 : vector<40x1xf32>
    %16 = math.rsqrt %15 : vector<40x1xf32>
    %17 = vector.broadcast %16 : vector<40x1xf32> to vector<40x32xf32>
    %18 = arith.mulf %13, %17 : vector<40x32xf32>
    %c0_5 = arith.constant 0 : index
    %c0_6 = arith.constant 0 : index
    %19 = vector.load %arg5[%c0_5, %c0_6] : memref<1x32xf32, #tpu.memory_space<vmem>>, vector<1x32xf32>
    %20 = vector.broadcast %19 : vector<1x32xf32> to vector<40x32xf32>
    %21 = arith.mulf %18, %20 : vector<40x32xf32>
    %c0_7 = arith.constant 0 : index
    %c0_8 = arith.constant 0 : index
    %22 = vector.load %arg6[%c0_7, %c0_8] : memref<1x32xf32, #tpu.memory_space<vmem>>, vector<1x32xf32>
    %23 = vector.broadcast %22 : vector<1x32xf32> to vector<40x32xf32>
    %24 = arith.addf %21, %23 : vector<40x32xf32>
    %25 = arith.truncf %24 : vector<40x32xf32> to vector<40x32xbf16>
    %c0_9 = arith.constant 0 : index
    %c0_10 = arith.constant 0 : index
    %26 = vector.load %arg3[%c0_9, %c0_10] : memref<32x192xf32, #tpu.memory_space<vmem>>, vector<32x192xf32>
    %27 = arith.truncf %26 : vector<32x192xf32> to vector<32x192xbf16>
    %cst_11 = arith.constant dense<0.000000e+00> : vector<40x192xf32>
    %28 = tpu.matmul %25, %27, %cst_11 {dimension_numbers = #tpu.dot_dimension_numbers<[1], [0], [0], [1], [0, 0, 1, 1], [], []>} : vector<40x32xbf16>, vector<32x192xbf16>, vector<40x192xf32> -> vector<40x192xf32>
    %c0_12 = arith.constant 0 : index
    %c0_13 = arith.constant 0 : index
    %29 = vector.load %arg4[%c0_12, %c0_13] : memref<1x192xf32, #tpu.memory_space<vmem>>, vector<1x192xf32>
    %30 = vector.broadcast %29 : vector<1x192xf32> to vector<40x192xf32>
    %31 = arith.addf %28, %30 : vector<40x192xf32>
    %c0_14 = arith.constant 0 : index
    %c0_15 = arith.constant 0 : index
    %32 = vector.load %arg7[%c0_14, %c0_15] : memref<40x192xf32, #tpu.memory_space<vmem>>, vector<40x192xf32>
    tpu.vector_store %arg7[%c0_14, %c0_15], %31 {strides = array<i32>} : memref<40x192xf32, #tpu.memory_space<vmem>>, vector<40x192xf32>,
    return
  }
  func.func @transform_0(%arg0: i32, %arg1: i32) -> (i32, i32) {
    %c0_i32 = arith.constant 0 : i32
    %c0_i32_0 = arith.constant 0 : i32
    return %arg0, %c0_i32 : i32, i32
  }
  func.func @transform_1(%arg0: i32, %arg1: i32) -> (i32, i32) {
    %c0_i32 = arith.constant 0 : i32
    %c0_i32_0 = arith.constant 0 : i32
    return %c0_i32, %arg1 : i32, i32
  }
  func.func @transform_2(%arg0: i32, %arg1: i32) -> (i32, i32) {
    %c0_i32 = arith.constant 0 : i32
    %c0_i32_0 = arith.constant 0 : i32
    return %c0_i32, %arg1 : i32, i32
  }
  func.func @transform_3(%arg0: i32, %arg1: i32) -> (i32, i32) {
    %c0_i32 = arith.constant 0 : i32
    %c0_i32_0 = arith.constant 0 : i32
    %c0_i32_1 = arith.constant 0 : i32
    return %c0_i32, %c0_i32_0 : i32, i32
  }
  func.func @transform_4(%arg0: i32, %arg1: i32) -> (i32, i32) {
    %c0_i32 = arith.constant 0 : i32
    %c0_i32_0 = arith.constant 0 : i32
    %c0_i32_1 = arith.constant 0 : i32
    return %c0_i32, %c0_i32_0 : i32, i32
  }
  func.func @transform_5(%arg0: i32, %arg1: i32) -> (i32, i32) {
    %c0_i32 = arith.constant 0 : i32
    return %arg0, %arg1 : i32, i32
  }
}

module attributes {stable_mosaic.version = 11 : i64} {
  func.func @_recon_loss_kernel(%arg0: i32, %arg1: memref<32x192xf32, #tpu.memory_space<vmem>>, %arg2: memref<32x192xf32, #tpu.memory_space<vmem>>, %arg3: memref<32x1xf32, #tpu.memory_space<vmem>>, %arg4: memref<1x1xf32, #tpu.memory_space<vmem>>, %arg5: memref<1x1xf32, #tpu.memory_space<vmem>>) attributes {dimension_semantics = [#tpu.dimension_semantics<arbitrary>], iteration_bounds = array<i64: 1>, scalar_prefetch = 0 : i64, scratch_operands = 0 : i64, tpu.core_type = #tpu.core_type<tc>, window_params = [{transform_indices = @transform_0, window_bounds = array<i64: 32, 192>}, {transform_indices = @transform_1, window_bounds = array<i64: 32, 192>}, {transform_indices = @transform_2, window_bounds = array<i64: 32, 1>}, {pipeline_mode = #tpu.pipeline_mode<synchronous>, transform_indices = @transform_3, window_bounds = array<i64: 1, 1>}, {pipeline_mode = #tpu.pipeline_mode<synchronous>, transform_indices = @transform_4, window_bounds = array<i64: 1, 1>}]} {
    %c0_i32 = arith.constant 0 : i32
    %0 = arith.cmpi eq, %arg0, %c0_i32 : i32
    %1 = arith.extui %0 : i1 to i32
    %c0_i32_0 = arith.constant 0 : i32
    %2 = arith.cmpi ne, %1, %c0_i32_0 : i32
    scf.if %2 {
      %cst_17 = arith.constant 0.000000e+00 : f32
      %29 = vector.broadcast %cst_17 : f32 to vector<1x1xf32>
      %c0_18 = arith.constant 0 : index
      %c0_19 = arith.constant 0 : index
      %30 = vector.load %arg4[%c0_18, %c0_19] : memref<1x1xf32, #tpu.memory_space<vmem>>, vector<1x1xf32>
      tpu.vector_store %arg4[%c0_18, %c0_19], %29 {strides = array<i32>} : memref<1x1xf32, #tpu.memory_space<vmem>>, vector<1x1xf32>,
      %cst_20 = arith.constant 0.000000e+00 : f32
      %31 = vector.broadcast %cst_20 : f32 to vector<1x1xf32>
      %c0_21 = arith.constant 0 : index
      %c0_22 = arith.constant 0 : index
      %32 = vector.load %arg5[%c0_21, %c0_22] : memref<1x1xf32, #tpu.memory_space<vmem>>, vector<1x1xf32>
      tpu.vector_store %arg5[%c0_21, %c0_22], %31 {strides = array<i32>} : memref<1x1xf32, #tpu.memory_space<vmem>>, vector<1x1xf32>,
    } else {
    }
    %c0 = arith.constant 0 : index
    %c0_1 = arith.constant 0 : index
    %3 = vector.load %arg1[%c0, %c0_1] : memref<32x192xf32, #tpu.memory_space<vmem>>, vector<32x192xf32>
    %c0_2 = arith.constant 0 : index
    %c0_3 = arith.constant 0 : index
    %4 = vector.load %arg2[%c0_2, %c0_3] : memref<32x192xf32, #tpu.memory_space<vmem>>, vector<32x192xf32>
    %5 = arith.subf %3, %4 : vector<32x192xf32>
    %c0_4 = arith.constant 0 : index
    %c0_5 = arith.constant 0 : index
    %6 = vector.load %arg3[%c0_4, %c0_5] : memref<32x1xf32, #tpu.memory_space<vmem>>, vector<32x1xf32>
    %7 = arith.mulf %5, %5 : vector<32x192xf32>
    %cst = arith.constant dense<0.000000e+00> : vector<32xf32>
    %8 = vector.multi_reduction <add>, %7, %cst [1] : vector<32x192xf32> to vector<32xf32>
    %9 = vector.shape_cast %8 : vector<32xf32> to vector<32x1xf32>
    %cst_6 = arith.constant 1.920000e+02 : f32
    %10 = vector.broadcast %cst_6 : f32 to vector<32x1xf32>
    %11 = arith.divf %9, %10 : vector<32x1xf32>
    %c0_7 = arith.constant 0 : index
    %c0_8 = arith.constant 0 : index
    %12 = vector.load %arg4[%c0_7, %c0_8] : memref<1x1xf32, #tpu.memory_space<vmem>>, vector<1x1xf32>
    %13 = arith.mulf %11, %6 : vector<32x1xf32>
    %14 = vector.shape_cast %13 : vector<32x1xf32> to vector<1x32x1xf32>
    %cst_9 = arith.constant dense<0.000000e+00> : vector<1xf32>
    %15 = vector.multi_reduction <add>, %14, %cst_9 [1, 2] : vector<1x32x1xf32> to vector<1xf32>
    %16 = vector.shape_cast %15 : vector<1xf32> to vector<1x1x1xf32>
    %17 = vector.extract %16[0, 0, 0] : f32 from vector<1x1x1xf32>
    %18 = vector.broadcast %17 : f32 to vector<1x1xf32>
    %19 = arith.addf %12, %18 : vector<1x1xf32>
    %c0_10 = arith.constant 0 : index
    %c0_11 = arith.constant 0 : index
    %20 = vector.load %arg4[%c0_10, %c0_11] : memref<1x1xf32, #tpu.memory_space<vmem>>, vector<1x1xf32>
    tpu.vector_store %arg4[%c0_10, %c0_11], %19 {strides = array<i32>} : memref<1x1xf32, #tpu.memory_space<vmem>>, vector<1x1xf32>,
    %c0_12 = arith.constant 0 : index
    %c0_13 = arith.constant 0 : index
    %21 = vector.load %arg5[%c0_12, %c0_13] : memref<1x1xf32, #tpu.memory_space<vmem>>, vector<1x1xf32>
    %22 = vector.shape_cast %6 : vector<32x1xf32> to vector<1x32x1xf32>
    %cst_14 = arith.constant dense<0.000000e+00> : vector<1xf32>
    %23 = vector.multi_reduction <add>, %22, %cst_14 [1, 2] : vector<1x32x1xf32> to vector<1xf32>
    %24 = vector.shape_cast %23 : vector<1xf32> to vector<1x1x1xf32>
    %25 = vector.extract %24[0, 0, 0] : f32 from vector<1x1x1xf32>
    %26 = vector.broadcast %25 : f32 to vector<1x1xf32>
    %27 = arith.addf %21, %26 : vector<1x1xf32>
    %c0_15 = arith.constant 0 : index
    %c0_16 = arith.constant 0 : index
    %28 = vector.load %arg5[%c0_15, %c0_16] : memref<1x1xf32, #tpu.memory_space<vmem>>, vector<1x1xf32>
    tpu.vector_store %arg5[%c0_15, %c0_16], %27 {strides = array<i32>} : memref<1x1xf32, #tpu.memory_space<vmem>>, vector<1x1xf32>,
    return
  }
  func.func @transform_0(%arg0: i32) -> (i32, i32) {
    %c0_i32 = arith.constant 0 : i32
    %c0_i32_0 = arith.constant 0 : i32
    return %arg0, %c0_i32 : i32, i32
  }
  func.func @transform_1(%arg0: i32) -> (i32, i32) {
    %c0_i32 = arith.constant 0 : i32
    %c0_i32_0 = arith.constant 0 : i32
    return %arg0, %c0_i32 : i32, i32
  }
  func.func @transform_2(%arg0: i32) -> (i32, i32) {
    %c0_i32 = arith.constant 0 : i32
    %c0_i32_0 = arith.constant 0 : i32
    return %arg0, %c0_i32 : i32, i32
  }
  func.func @transform_3(%arg0: i32) -> (i32, i32) {
    %c0_i32 = arith.constant 0 : i32
    %c0_i32_0 = arith.constant 0 : i32
    %c0_i32_1 = arith.constant 0 : i32
    return %c0_i32, %c0_i32_0 : i32, i32
  }
  func.func @transform_4(%arg0: i32) -> (i32, i32) {
    %c0_i32 = arith.constant 0 : i32
    %c0_i32_0 = arith.constant 0 : i32
    %c0_i32_1 = arith.constant 0 : i32
    return %c0_i32, %c0_i32_0 : i32, i32
  }
}

</mosaic_0001>

<bundles_post_ra>
// kernel: mrm_gen_forward.32
= control target key start
LH: loop header
LB: loop body
LE: loop exit
PB: predicated region body
PF: predicated region fallthrough
CT: control target
= control target key end

     0   :  { %v162_v0 = vmov 0   ;;  %vm70_vm0 = vcmask 523264   ;;  %s324_s1 = inlined_call_operand.vmem [shape: f32[192,64], index: 1, kind: input, shape index: {}]   ;;  %s325_s0 = inlined_call_operand.vmem [shape: f32[32,192], index: 0, kind: input, shape index: {}]   ;;  %s326_s2 = inlined_call_operand.vmem [shape: f32[1,64], index: 2, kind: input, shape index: {}]   ;;  %s327_s3 = inlined_call_operand.vmem [shape: f32[32,64], index: 3, kind: output, shape index: {}]  }
   0x1   :  { %77 = vmatprep.subr.bf16.mxu0 %v162_v0  ;;  %137 = vmatprep.subr.bf16.mxu1 %v162_v0  ;;  %v27_v1 = vld [vmem:[%s324_s1] sm:$0xff]  ;;  %v28_v2 = vld [vmem:[%s324_s1 + $0x8] sm:$0xff]  ;;  %v29_v3 = vld [vmem:[%s324_s1 + $0x10] sm:$0xff] }
   0x2   :  { %v51_v4 = vpack.c.bf16 %v28_v2, %v27_v1  ;;  %v30_v5 = vld [vmem:[%s324_s1 + $0x18] sm:$0xff]  ;;  %v31_v7 = vld [vmem:[%s324_s1 + $0x20] sm:$0xff]  ;;  %v32_v8 = vld [vmem:[%s324_s1 + $0x28] sm:$0xff] }
   0x3   :  { %v52_v6 = vpack.c.bf16 %v30_v5, %v29_v3  ;;  %v53_v9 = vpack.c.bf16 %v32_v8, %v31_v7  ;;  %v33_v10 = vld [vmem:[%s324_s1 + $0x30] sm:$0xff]  ;;  %v34_v11 = vld [vmem:[%s324_s1 + $0x38] sm:$0xff]  ;;  %v16_v12 = vld [vmem:[%s325_s0 + $0x8] sm:$0xff] }
   0x4   :  { %78 = vmatpush1.bf16.msra.mxu0 %v51_v4  ;;  %149 = vmatpush1.bf16.msra.mxu1 %v51_v4  ;;  %v18_v13 = vld [vmem:[%s325_s0 + $0x18] sm:$0xff]  ;;  %v20_v14 = vld [vmem:[%s325_s0 + $0x28] sm:$0xff]  ;;  %v54_v18 = vpack.c.bf16 %v34_v11, %v33_v10  ;;  %v35_v19 = vld [vmem:[%s324_s1 + $0x40] sm:$0xff] }
   0x5   :  { %79 = vmatprep.subr.bf16.mxu0 %v162_v0  ;;  %138 = vmatprep.subr.bf16.mxu1 %v162_v0  ;;  %v24_v15 = vpack.c.bf16 %v18_v13, %v16_v12  ;;  %v22_v16 = vld [vmem:[%s325_s0 + $0x38] sm:$0xff]  ;;  %v36_v20 = vld [vmem:[%s324_s1 + $0x48] sm:$0xff]  ;;  %v37_v22 = vld [vmem:[%s324_s1 + $0x50] sm:$0xff] }
   0x6   :  { %v26_v17 = vpack.c.bf16 %v22_v16, %v20_v14  ;;  %v55_v21 = vpack.c.bf16 %v36_v20, %v35_v19  ;;  %v38_v23 = vld [vmem:[%s324_s1 + $0x58] sm:$0xff]  ;;  %v39_v25 = vld [vmem:[%s324_s1 + $0x60] sm:$0xff]  ;;  %v40_v26 = vld [vmem:[%s324_s1 + $0x68] sm:$0xff] }
   0x7   :  { %135 = vmatprep.mubr.msk.bf16.mxu0 %vm70_vm0, %v24_v15  ;;  %v56_v24 = vpack.c.bf16 %v38_v23, %v37_v22  ;;  %v57_v27 = vpack.c.bf16 %v40_v26, %v39_v25  ;;  %v41_v28 = vld [vmem:[%s324_s1 + $0x70] sm:$0xff]  ;;  %v42_v29 = vld [vmem:[%s324_s1 + $0x78] sm:$0xff]  ;;  %v43_v31 = vld [vmem:[%s324_s1 + $0x80] sm:$0xff] }
   0x8   :  { %80 = vmatpush1.bf16.msra.mxu0 %v52_v6  ;;  %150 = vmatpush1.bf16.msra.mxu1 %v52_v6  ;;  %v58_v30 = vpack.c.bf16 %v42_v29, %v41_v28  ;;  %v44_v32 = vld [vmem:[%s324_s1 + $0x88] sm:$0xff]  ;;  %v45_v34 = vld [vmem:[%s324_s1 + $0x90] sm:$0xff]  ;;  %v46_v35 = vld [vmem:[%s324_s1 + $0x98] sm:$0xff] }
   0x9   :  { %81 = vmatprep.subr.bf16.mxu0 %v162_v0  ;;  %139 = vmatprep.subr.bf16.mxu1 %v162_v0  ;;  %v59_v33 = vpack.c.bf16 %v44_v32, %v43_v31  ;;  %v60_v36 = vpack.c.bf16 %v46_v35, %v45_v34  ;;  %v47_v37 = vld [vmem:[%s324_s1 + $0xa0] sm:$0xff]  ;;  %v48_v38 = vld [vmem:[%s324_s1 + $0xa8] sm:$0xff]  ;;  %v49_v40 = vld [vmem:[%s324_s1 + $0xb0] sm:$0xff] }
   0xa   :  { %136 = vmatprep.mubr.msk.bf16.mxu1 %vm70_vm0, %v26_v17  ;;  %v61_v39 = vpack.c.bf16 %v48_v38, %v47_v37  ;;  %v50_v41 = vld [vmem:[%s324_s1 + $0xb8] sm:$0xff]  ;;  %v15_v42 = vld [vmem:[%s325_s0] sm:$0xff]  ;;  %v17_v44 = vld [vmem:[%s325_s0 + $0x10] sm:$0xff] }
   0xb   :  { %v62_v43 = vpack.c.bf16 %v50_v41, %v49_v40  ;;  %v19_v45 = vld [vmem:[%s325_s0 + $0x20] sm:$0xff]  ;;  %v21_v46 = vld [vmem:[%s325_s0 + $0x30] sm:$0xff]  ;;  %v23_v47 = vpack.c.bf16 %v17_v44, %v15_v42 }
   0xc   :  { %82 = vmatpush1.bf16.msra.mxu0 %v53_v9  ;;  %151 = vmatpush1.bf16.msra.mxu1 %v53_v9  ;;  %v25_v48 = vpack.c.bf16 %v21_v46, %v19_v45  ;;  %v134_v49 = vld [vmem:[%s326_s2] ss:$0 sm:$0xff] }
   0xd   :  { %83 = vmatprep.subr.bf16.mxu0 %v162_v0  ;;  %140 = vmatprep.subr.bf16.mxu1 %v162_v0 }
  0x10   :  { %84 = vmatpush1.bf16.msra.mxu0 %v54_v18  ;;  %152 = vmatpush1.bf16.msra.mxu1 %v54_v18 }
  0x11   :  { %85 = vmatprep.subr.bf16.mxu0 %v162_v0  ;;  %141 = vmatprep.subr.bf16.mxu1 %v162_v0 }
  0x14   :  { %86 = vmatpush1.bf16.msra.mxu0 %v55_v21  ;;  %153 = vmatpush1.bf16.msra.mxu1 %v55_v21 }
  0x15   :  { %87 = vmatprep.subr.bf16.mxu0 %v162_v0  ;;  %142 = vmatprep.subr.bf16.mxu1 %v162_v0 }
  0x18   :  { %88 = vmatpush1.bf16.msra.mxu0 %v56_v24  ;;  %154 = vmatpush1.bf16.msra.mxu1 %v56_v24 }
  0x19   :  { %89 = vmatprep.subr.bf16.mxu0 %v162_v0  ;;  %143 = vmatprep.subr.bf16.mxu1 %v162_v0 }
  0x1c   :  { %90 = vmatpush1.bf16.msra.mxu0 %v57_v27  ;;  %155 = vmatpush1.bf16.msra.mxu1 %v57_v27 }
  0x1d   :  { %91 = vmatprep.subr.bf16.mxu0 %v162_v0  ;;  %144 = vmatprep.subr.bf16.mxu1 %v162_v0 }
  0x20   :  { %92 = vmatpush1.bf16.msra.mxu0 %v58_v30  ;;  %156 = vmatpush1.bf16.msra.mxu1 %v58_v30 }
  0x21   :  { %93 = vmatprep.subr.bf16.mxu0 %v162_v0  ;;  %145 = vmatprep.subr.bf16.mxu1 %v162_v0 }
  0x24   :  { %94 = vmatpush1.bf16.msra.mxu0 %v59_v33  ;;  %157 = vmatpush1.bf16.msra.mxu1 %v59_v33 }
  0x25   :  { %95 = vmatprep.subr.bf16.mxu0 %v162_v0  ;;  %146 = vmatprep.subr.bf16.mxu1 %v162_v0 }
  0x28   :  { %96 = vmatpush1.bf16.msra.mxu0 %v60_v36  ;;  %158 = vmatpush1.bf16.msra.mxu1 %v60_v36 }
  0x29   :  { %97 = vmatprep.subr.bf16.mxu0 %v162_v0  ;;  %147 = vmatprep.subr.bf16.mxu1 %v162_v0 }
  0x2c   :  { %98 = vmatpush1.bf16.msra.mxu0 %v61_v39  ;;  %159 = vmatpush1.bf16.msra.mxu1 %v61_v39 }
  0x2d   :  { %99 = vmatprep.subr.bf16.mxu0 %v162_v0  ;;  %148 = vmatprep.subr.bf16.mxu1 %v162_v0 }
  0x30   :  { %100 = vmatpush1.bf16.msra.mxu0 %v62_v43  ;;  %160 = vmatpush1.bf16.msra.mxu1 %v62_v43 }
  0x33   :  { %110 = vmatmul.mubr.bf16.vlgmr.msra.gmra.mrb[0].mxu0 %v23_v47  ;;  %118 = vmatmul.mubr.bf16.vlgmr.msra.gmra.mrb[0].mxu1 %v25_v48 }
 0x106   :  { %v111_v50 = vpop.f32.mrb[0].mxu0  ;;  %v119_v51 = vpop.f32.mrb[0].mxu1 }
 0x107   :  { %v112_v52 = vadd.f32 %v134_v49, %v111_v50  ;;  %v120_v53 = vadd.f32 %v134_v49, %v119_v51  ;;  %v113_v54 = vpop.f32.mrb[1].mxu0  ;;  %v121_v55 = vpop.f32.mrb[1].mxu1 }
 0x108   :  { %v114_v56 = vpop.f32.mrb[2].mxu0  ;;  %v122_v57 = vpop.f32.mrb[2].mxu1 }
 0x109   :  { %126 = vst.msk [vmem:[%s327_s3] sm:$0xff] %vm70_vm0, %v112_v52  ;;  %128 = vst.msk [vmem:[%s327_s3 + $0x10] sm:$0xff] %vm70_vm0, %v120_v53  ;;  %v115_v58 = vadd.f32 %v134_v49, %v114_v56  ;;  %v123_v59 = vadd.f32 %v134_v49, %v122_v57  ;;  %v116_v60 = vpop.f32.mrb[3].mxu0  ;;  %v124_v61 = vpop.f32.mrb[3].mxu1 }
 0x10b   :  { %127 = vst.msk [vmem:[%s327_s3 + $0x8] sm:$0xff] %vm70_vm0, %v115_v58  ;;  %129 = vst.msk [vmem:[%s327_s3 + $0x18] sm:$0xff] %vm70_vm0, %v123_v59 }

// kernel: mrm_gen_forward.33
= control target key start
LH: loop header
LB: loop body
LE: loop exit
PB: predicated region body
PF: predicated region fallthrough
CT: control target
= control target key end

     0   :  { %vm26_vm0 = vcmask 523264   ;;  %v264_v59 = vmov 0   ;;  %s440_s0 = inlined_call_operand.vmem [shape: f32[40,64], index: 0, kind: input, shape index: {}]   ;;  %s441_s1 = inlined_call_operand.vmem [shape: f32[64,192], index: 1, kind: input, shape index: {}]   ;;  %s442_s3 = inlined_call_operand.vmem [shape: f32[1,64], index: 3, kind: input, shape index: {}]   ;;  %s443_s4 = inlined_call_operand.vmem [shape: f32[1,64], index: 4, kind: input, shape index: {}]   ;;  %s444_s2 = inlined_call_operand.vmem [shape: f32[1,192], index: 2, kind: input, shape index: {}]   ;;  %s445_s5 = inlined_call_operand.vmem [shape: f32[40,192], index: 5, kind: output, shape index: {}]  }
   0x1   :  { %v23_v0 = vld [vmem:[%s440_s0 + $0x10] sm:$0xff]  ;;  %v24_v1 = vld [vmem:[%s440_s0 + $0x18] sm:$0xff]  ;;  %v21_v2 = vld [vmem:[%s440_s0] sm:$0xff]  ;;  %207 = vmatprep.mubr.bf16.mxu1 %v264_v59  ;;  %197 = vmatprep.mubr.bf16.mxu0 %v264_v59 }
   0x2   :  { %v33_v3 = vsel %vm26_vm0, %v23_v0, 0.0  ;;  %v27_v4 = vsel %vm26_vm0, %v21_v2, 0.0  ;;  %v22_v5 = vld [vmem:[%s440_s0 + $0x8] sm:$0xff]  ;;  %v36_v6 = vsel %vm26_vm0, %v24_v1, 0.0  ;;  %v25_v8 = vld [vmem:[%s440_s0 + $0x20] sm:$0xff]  ;;  %v123_v36 = vld [vmem:[%s441_s1 + $0x18] sm:$0xff] }
   0x3   :  { %34 = vadd.xlane.f32.xlu0 %v33_v3  ;;  %28 = vadd.xlane.f32.xlu1 %v27_v4  ;;  %v30_v7 = vsel %vm26_vm0, %v22_v5, 0.0  ;;  %v39_v9 = vsel %vm26_vm0, %v25_v8, 0.0  ;;  %v121_v35 = vld [vmem:[%s441_s1 + $0x8] sm:$0xff]  ;;  %v120_v38 = vld [vmem:[%s441_s1] sm:$0xff]  ;;  %v122_v39 = vld [vmem:[%s441_s1 + $0x10] sm:$0xff] }
   0x4   :  { %v137_v37 = vpack.c.bf16 %v123_v36, %v121_v35  ;;  %v136_v40 = vpack.c.bf16 %v122_v39, %v120_v38  ;;  %v125_v41 = vld [vmem:[%s441_s1 + $0x28] sm:$0xff]  ;;  %v127_v42 = vld [vmem:[%s441_s1 + $0x38] sm:$0xff]  ;;  %v124_v44 = vld [vmem:[%s441_s1 + $0x20] sm:$0xff] }
   0x5   :  { %v139_v43 = vpack.c.bf16 %v127_v42, %v125_v41  ;;  %v126_v45 = vld [vmem:[%s441_s1 + $0x30] sm:$0xff]  ;;  %v129_v47 = vld [vmem:[%s441_s1 + $0x48] sm:$0xff]  ;;  %v131_v48 = vld [vmem:[%s441_s1 + $0x58] sm:$0xff] }
   0x6   :  { %245 = vmatprep.subr.bf16.mxu1 %v137_v37  ;;  %165 = vmatprep.subr.bf16.mxu0 %v137_v37  ;;  %v138_v46 = vpack.c.bf16 %v126_v45, %v124_v44  ;;  %v141_v49 = vpack.c.bf16 %v131_v48, %v129_v47  ;;  %v128_v50 = vld [vmem:[%s441_s1 + $0x40] sm:$0xff]  ;;  %v130_v51 = vld [vmem:[%s441_s1 + $0x50] sm:$0xff]  ;;  %v133_v53 = vld [vmem:[%s441_s1 + $0x68] sm:$0xff] }
   0x7   :  { %37 = vadd.xlane.f32.xlu0 %v36_v6  ;;  %31 = vadd.xlane.f32.xlu1 %v30_v7  ;;  %v140_v52 = vpack.c.bf16 %v130_v51, %v128_v50  ;;  %v135_v54 = vld [vmem:[%s441_s1 + $0x78] sm:$0xff]  ;;  %v132_v56 = vld [vmem:[%s441_s1 + $0x60] sm:$0xff]  ;;  %v134_v57 = vld [vmem:[%s441_s1 + $0x70] sm:$0xff] }
   0x8   :  { %249 = vmatpush1.bf16.msra.mxu1 %v136_v40  ;;  %166 = vmatpush1.bf16.msra.mxu0 %v136_v40  ;;  %v143_v55 = vpack.c.bf16 %v135_v54, %v133_v53  ;;  %v142_v58 = vpack.c.bf16 %v134_v57, %v132_v56 }
   0x9   :  { %246 = vmatprep.subr.bf16.mxu1 %v139_v43  ;;  %167 = vmatprep.subr.bf16.mxu0 %v139_v43 }
   0xb   :  { %40 = vadd.xlane.f32.xlu0 %v39_v9 }
   0xc   :  { %250 = vmatpush1.bf16.msra.mxu1 %v138_v46  ;;  %168 = vmatpush1.bf16.msra.mxu0 %v138_v46 }
   0xd   :  { %247 = vmatprep.subr.bf16.mxu1 %v141_v49  ;;  %169 = vmatprep.subr.bf16.mxu0 %v141_v49 }
  0x10   :  { %251 = vmatpush1.bf16.msra.mxu1 %v140_v52  ;;  %170 = vmatpush1.bf16.msra.mxu0 %v140_v52 }
  0x11   :  { %248 = vmatprep.subr.bf16.mxu1 %v143_v55  ;;  %171 = vmatprep.subr.bf16.mxu0 %v143_v55 }
  0x14   :  { %252 = vmatpush1.bf16.msra.mxu1 %v142_v58  ;;  %172 = vmatpush1.bf16.msra.mxu0 %v142_v58 }
  0x90   :  { %v35_v10 = vpop.xlane.xlu0 %34  ;;  %v29_v11 = vpop.xlane.xlu1 %28 }
  0x91   :  { %v45_v12 = vmul.f32 0.015625, %v35_v10  ;;  %v43_v13 = vmul.f32 0.015625, %v29_v11 }
  0x93   :  { %v315_v14 = vsub.f32 %v23_v0, %v45_v12  ;;  %v317_v15 = vsub.f32 %v21_v2, %v43_v13  ;;  %v240_v13 = vld [vmem:[%s442_s3] ss:$0 sm:$0xff] }
  0x94   :  { %v38_v16 = vpop.xlane.xlu0 %37  ;;  %v32_v17 = vpop.xlane.xlu1 %31 }
  0x95   :  { %v46_v18 = vmul.f32 0.015625, %v38_v16  ;;  %v55_v19 = vmul.f32 %v315_v14, %v315_v14  ;;  %v44_v20 = vmul.f32 0.015625, %v32_v17  ;;  %v53_v21 = vmul.f32 %v317_v15, %v317_v15 }
  0x97   :  { %v323_v22 = vsub.f32 %v24_v1, %v46_v18  ;;  %v64_v23 = vsel %vm26_vm0, %v55_v19, 0.0  ;;  %v326_v24 = vsub.f32 %v22_v5, %v44_v20  ;;  %v58_v28 = vsel %vm26_vm0, %v53_v21, 0.0  ;;  %v241_v21 = vld [vmem:[%s443_s4] ss:$0 sm:$0xff] }
  0x98   :  { %v41_v25 = vpop.xlane.xlu0 %40  ;;  %65 = vadd.xlane.f32.xlu1 %v64_v23 }
  0x99   :  { %v47_v26 = vmul.f32 0.015625, %v41_v25  ;;  %v56_v27 = vmul.f32 %v323_v22, %v323_v22  ;;  %v54_v29 = vmul.f32 %v326_v24, %v326_v24 }
  0x9b   :  { %v333_v30 = vsub.f32 %v25_v8, %v47_v26  ;;  %v67_v31 = vsel %vm26_vm0, %v56_v27, 0.0  ;;  %v61_v33 = vsel %vm26_vm0, %v54_v29, 0.0 }
  0x9c   :  { %68 = vadd.xlane.f32.xlu0 %v67_v31  ;;  %59 = vadd.xlane.f32.xlu1 %v58_v28 }
  0x9d   :  { %v57_v32 = vmul.f32 %v333_v30, %v333_v30 }
  0x9f   :  { %v70_v34 = vsel %vm26_vm0, %v57_v32, 0.0 }
  0xa0   :  { %71 = vadd.xlane.f32.xlu1 %v70_v34  ;;  %62 = vadd.xlane.f32.xlu0 %v61_v33 }
 0x125   :  { %v66_v60 = vpop.xlane.xlu1 %65 }
 0x126   :  { %v75_v61 = vmul.f32 0.015625, %v66_v60 }
 0x128   :  { %v80_v62 = vadd.f32 1e-06, %v75_v61 }
 0x129   :  { %v69_v63 = vpop.xlane.xlu0 %68  ;;  %v60_v0 = vpop.xlane.xlu1 %59 }
 0x12a   :  { %254 = vrsqrt.f32 %v80_v62  ;;  %v76_v1 = vmul.f32 0.015625, %v69_v63  ;;  %v73_v2 = vmul.f32 0.015625, %v60_v0 }
 0x12c   :  { %v81_v3 = vadd.f32 1e-06, %v76_v1  ;;  %v78_v4 = vadd.f32 1e-06, %v73_v2 }
 0x12d   :  { %v63_v5 = vpop.xlane.xlu0 %62  ;;  %v72_v6 = vpop.xlane.xlu1 %71 }
 0x12e   :  { %256 = vrsqrt.f32 %v81_v3  ;;  %v74_v7 = vmul.f32 0.015625, %v63_v5  ;;  %v77_v8 = vmul.f32 0.015625, %v72_v6 }
 0x12f   :  { %258 = vrsqrt.f32 %v78_v4 }
 0x130   :  { %v79_v9 = vadd.f32 1e-06, %v74_v7  ;;  %v82_v10 = vadd.f32 1e-06, %v77_v8 }
 0x132   :  { %260 = vrsqrt.f32 %v79_v9 }
 0x133   :  { %262 = vrsqrt.f32 %v82_v10 }
 0x134   :  { %v255_v11 = vpop.eup %254 }
 0x135   :  { %v90_v12 = vmul.f32 %v255_v11, %v315_v14 }
 0x137   :  { %v102_v19 = vmul.f32 %v240_v13, %v90_v12 }
 0x138   :  { %v257_v16 = vpop.eup %256 }
 0x139   :  { %v259_v17 = vpop.eup %258  ;;  %v91_v18 = vmul.f32 %v257_v16, %v323_v22  ;;  %v114_v27 = vadd.f32 %v241_v21, %v102_v19 }
 0x13a   :  { %v88_v20 = vmul.f32 %v259_v17, %v317_v15 }
 0x13b   :  { %v103_v23 = vmul.f32 %v240_v13, %v91_v18 }
 0x13c   :  { %v261_v25 = vpop.eup %260  ;;  %v100_v29 = vmul.f32 %v240_v13, %v88_v20 }
 0x13d   :  { %v263_v26 = vpop.eup %262  ;;  %v89_v14 = vmul.f32 %v261_v25, %v326_v24  ;;  %v115_v28 = vadd.f32 %v241_v21, %v103_v23  ;;  %v146_v24 = vlaneseq }
 0x13e   :  { %v92_v31 = vmul.f32 %v263_v26, %v333_v30  ;;  %v112_v15 = vadd.f32 %v241_v21, %v100_v29  ;;  %v144_v30 = vld [vmem:[%s444_s2] sm:$0x3] }
 0x13f   :  { %v118_v32 = vpack.c.bf16 %v115_v28, %v114_v27  ;;  %v101_v33 = vmul.f32 %v240_v13, %v89_v14  ;;  %v147_v38 = vshrl.u32 %v146_v24, 7 }
 0x140   :  { %v104_v22 = vmul.f32 %v240_v13, %v92_v31 }
 0x141   :  { %243 = vmatmul.mubr.msk.bf16.vlgmr.msra.gmra.mrb[0].mxu1 %vm26_vm0, %v118_v32  ;;  %v113_v34 = vadd.f32 %v241_v21, %v101_v33  ;;  %v148_v39 = vsub.s32 0, %v147_v38  ;;  %v152_v40 = vsub.s32 1, %v147_v38 }
 0x142   :  { %217 = vmatprep.mubr.bf16.mxu1 %v264_v59  ;;  %v116_v36 = vadd.f32 %v241_v21, %v104_v22 }
 0x143   :  { %v117_v35 = vpack.c.bf16 %v113_v34, %v112_v15  ;;  %v149_v41 = vrot.slane %v144_v30, %v148_v39  ;;  %v153_v42 = vrot.slane %v144_v30, %v152_v40 }
 0x144   :  { %v119_v37 = vpack.c.bf16 %v116_v36, %v116_v36 }
 0x145   :  { %242 = vmatmul.mubr.msk.bf16.vlgmr.msra.gmra.mrb[0].mxu0 %vm26_vm0, %v117_v35 }
 0x149   :  { %244 = vmatmul.mubr.msk.bf16.gmra.mrb[4].mxu1 %vm26_vm0, %v119_v37 }
 0x214   :  { %v209_v43 = vpop.f32.mrb[0].mxu1 }
 0x215   :  { %v210_v44 = vadd.f32 %v209_v43, %v149_v41  ;;  %v211_v45 = vpop.f32.mrb[1].mxu1 }
 0x216   :  { %v212_v46 = vadd.f32 %v211_v45, %v153_v42  ;;  %v213_v47 = vpop.f32.mrb[2].mxu1 }
 0x217   :  { %230 = vst [vmem:[%s445_s5 + $0x20] sm:$0xff] %v210_v44  ;;  %v214_v48 = vadd.f32 %v213_v47, %v149_v41  ;;  %v215_v49 = vpop.f32.mrb[3].mxu1 }
 0x218   :  { %231 = vst.msk [vmem:[%s445_s5 + $0x28] sm:$0xff] %vm26_vm0, %v212_v46  ;;  %v216_v50 = vadd.f32 %v215_v49, %v153_v42  ;;  %v199_v51 = vpop.f32.mrb[0].mxu0 }
 0x219   :  { %232 = vst [vmem:[%s445_s5 + $0x30] sm:$0xff] %v214_v48  ;;  %v200_v52 = vadd.f32 %v199_v51, %v149_v41  ;;  %v201_v53 = vpop.f32.mrb[1].mxu0 }
 0x21a   :  { %233 = vst.msk [vmem:[%s445_s5 + $0x38] sm:$0xff] %vm26_vm0, %v216_v50  ;;  %v202_v54 = vadd.f32 %v201_v53, %v153_v42  ;;  %v203_v55 = vpop.f32.mrb[2].mxu0 }
 0x21b   :  { %226 = vst [vmem:[%s445_s5] sm:$0xff] %v200_v52  ;;  %v204_v56 = vadd.f32 %v203_v55, %v149_v41  ;;  %v205_v57 = vpop.f32.mrb[3].mxu0 }
 0x21c   :  { %227 = vst.msk [vmem:[%s445_s5 + $0x8] sm:$0xff] %vm26_vm0, %v202_v54  ;;  %v206_v58 = vadd.f32 %v205_v57, %v153_v42  ;;  %v219_v59 = vpop.f32.mrb[4].mxu1 }
 0x21d   :  { %228 = vst [vmem:[%s445_s5 + $0x10] sm:$0xff] %v204_v56  ;;  %v220_v60 = vadd.f32 %v219_v59, %v149_v41  ;;  %v221_v61 = vpop.f32.mrb[5].mxu1 }
 0x21e   :  { %229 = vst.msk [vmem:[%s445_s5 + $0x18] sm:$0xff] %vm26_vm0, %v206_v58  ;;  %v222_v62 = vadd.f32 %v221_v61, %v153_v42  ;;  %v223_v63 = vpop.f32.mrb[6].mxu1 }
 0x21f   :  { %234 = vst [vmem:[%s445_s5 + $0x40] sm:$0xff] %v220_v60  ;;  %v224_v0 = vpop.f32.mrb[7].mxu1 }
 0x220   :  { %235 = vst.msk [vmem:[%s445_s5 + $0x48] sm:$0xff] %vm26_vm0, %v222_v62 }

// kernel: mrm_gen_forward.35
= control target key start
LH: loop header
LB: loop body
LE: loop exit
PB: predicated region body
PF: predicated region fallthrough
CT: control target
= control target key end

     0   :  { %v171_v0 = vmov 0.0   ;;  %vm172_vm0 = vmmov 0   ;;  %vm45_vm1 = vcmask 523264   ;;  %s281_s1 = inlined_call_operand.vmem [shape: f32[64,64], index: 1, kind: input, shape index: {}]   ;;  %s282_s0 = inlined_call_operand.vmem [shape: f32[40,64], index: 0, kind: input, shape index: {}]   ;;  %s283_s2 = inlined_call_operand.vmem [shape: f32[1,64], index: 2, kind: input, shape index: {}]   ;;  %s284_s3 = inlined_call_operand.vmem [shape: f32[40,64], index: 3, kind: input, shape index: {}]   ;;  %s285_s4 = inlined_call_operand.vmem [shape: f32[40,64], index: 4, kind: output, shape index: {}]  }
   0x1   :  { %161 = vmatprep.subr.bf16.mxu1 %v171_v0  ;;  %v26_v1 = vld [vmem:[%s281_s1] sm:$0xff]  ;;  %v27_v2 = vld [vmem:[%s281_s1 + $0x8] sm:$0xff]  ;;  %141 = vmatprep.subr.bf16.mxu0 %v171_v0  ;;  %v28_v3 = vld [vmem:[%s281_s1 + $0x10] sm:$0xff] }
   0x2   :  { %v34_v4 = vpack.c.bf16 %v27_v2, %v26_v1  ;;  %v29_v5 = vld [vmem:[%s281_s1 + $0x18] sm:$0xff]  ;;  %153 = vmatprep.mubr.msk.bf16.mxu1 %vm172_vm0, %v171_v0  ;;  %149 = vmatprep.mubr.msk.bf16.mxu0 %vm172_vm0, %v171_v0  ;;  %v30_v7 = vld [vmem:[%s281_s1 + $0x20] sm:$0xff]  ;;  %v31_v8 = vld [vmem:[%s281_s1 + $0x28] sm:$0xff] }
   0x3   :  { %v35_v6 = vpack.c.bf16 %v29_v5, %v28_v3  ;;  %v36_v9 = vpack.c.bf16 %v31_v8, %v30_v7  ;;  %v32_v10 = vld [vmem:[%s281_s1 + $0x30] sm:$0xff]  ;;  %v33_v11 = vld [vmem:[%s281_s1 + $0x38] sm:$0xff]  ;;  %v18_v15 = vld [vmem:[%s282_s0] sm:$0xff] }
   0x4   :  { %165 = vmatpush3.bf16.msra.mxu1 %v34_v4  ;;  %142 = vmatpush3.bf16.msra.mxu0 %v34_v4  ;;  %v20_v12 = vld [vmem:[%s282_s0 + $0x10] sm:$0xff]  ;;  %v37_v13 = vpack.c.bf16 %v33_v11, %v32_v10  ;;  %v21_v14 = vld [vmem:[%s282_s0 + $0x18] sm:$0xff]  ;;  %v19_v16 = vld [vmem:[%s282_s0 + $0x8] sm:$0xff] }
   0x5   :  { %162 = vmatprep.subr.bf16.mxu1 %v171_v0  ;;  %143 = vmatprep.subr.bf16.mxu0 %v171_v0  ;;  %v24_v17 = vpack.c.bf16 %v21_v14, %v20_v12  ;;  %v23_v18 = vpack.c.bf16 %v19_v16, %v18_v15  ;;  %v22_v19 = vld [vmem:[%s282_s0 + $0x20] sm:$0xff]  ;;  %v113_v23 = vld [vmem:[%s284_s3 + $0x10] sm:$0xff]  ;;  %v114_v31 = vld [vmem:[%s284_s3 + $0x18] sm:$0xff] }
   0x6   :  { %v25_v20 = vpack.c.bf16 %v22_v19, %v22_v19  ;;  %v130_v21 = vld [vmem:[%s283_s2] ss:$0 sm:$0xff]  ;;  %v112_v33 = vld [vmem:[%s284_s3 + $0x8] sm:$0xff] }
   0x7   :  { %v111_v25 = vld [vmem:[%s284_s3] sm:$0xff] }
   0x8   :  { %166 = vmatpush3.bf16.msra.mxu1 %v35_v6  ;;  %144 = vmatpush3.bf16.msra.mxu0 %v35_v6  ;;  %v115_v43 = vld [vmem:[%s284_s3 + $0x20] sm:$0xff] }
   0x9   :  { %163 = vmatprep.subr.bf16.mxu1 %v171_v0  ;;  %145 = vmatprep.subr.bf16.mxu0 %v171_v0 }
   0xc   :  { %167 = vmatpush3.bf16.msra.mxu1 %v36_v9  ;;  %146 = vmatpush3.bf16.msra.mxu0 %v36_v9 }
   0xd   :  { %164 = vmatprep.subr.bf16.mxu1 %v171_v0  ;;  %147 = vmatprep.subr.bf16.mxu0 %v171_v0 }
  0x10   :  { %168 = vmatpush3.bf16.msra.mxu1 %v37_v13  ;;  %148 = vmatpush3.bf16.msra.mxu0 %v37_v13 }
  0x13   :  { %154 = vmatmul.mubr.msk.bf16.vlgmr.msra.gmra.mrb[0].mxu1 %vm45_vm1, %v24_v17  ;;  %150 = vmatmul.mubr.msk.bf16.vlgmr.msra.gmra.mrb[0].mxu0 %vm45_vm1, %v23_v18 }
  0x14   :  { %157 = vmatprep.mubr.msk.bf16.mxu1 %vm172_vm0, %v171_v0 }
  0x1b   :  { %158 = vmatmul.mubr.msk.bf16.gmra.mrb[4].mxu1 %vm45_vm1, %v25_v20 }
  0xe6   :  { %v97_v22 = vpop.f32.mrb[0].mxu1  ;;  %v89_v24 = vpop.f32.mrb[0].mxu0 }
  0xe7   :  { %v98_v26 = vadd.f32 %v130_v21, %v97_v22  ;;  %v155_v27 = vpop.f32.mrb[1].mxu1  ;;  %v90_v28 = vadd.f32 %v130_v21, %v89_v24  ;;  %v151_v29 = vpop.f32.mrb[1].mxu0 }
  0xe8   :  { %v100_v30 = vpop.f32.mrb[2].mxu1  ;;  %v92_v32 = vpop.f32.mrb[2].mxu0 }
  0xe9   :  { %v118_v34 = vadd.f32 %v113_v23, %v98_v26  ;;  %v101_v35 = vadd.f32 %v130_v21, %v100_v30  ;;  %v116_v36 = vadd.f32 %v111_v25, %v90_v28  ;;  %v156_v37 = vpop.f32.mrb[3].mxu1  ;;  %v93_v38 = vadd.f32 %v130_v21, %v92_v32  ;;  %v152_v39 = vpop.f32.mrb[3].mxu0 }
  0xeb   :  { %123 = vst.msk [vmem:[%s285_s4 + $0x10] sm:$0xff] %vm45_vm1, %v118_v34  ;;  %v119_v40 = vadd.f32 %v114_v31, %v101_v35  ;;  %121 = vst.msk [vmem:[%s285_s4] sm:$0xff] %vm45_vm1, %v116_v36  ;;  %v117_v41 = vadd.f32 %v112_v33, %v93_v38 }
  0xed   :  { %124 = vst.msk [vmem:[%s285_s4 + $0x18] sm:$0xff] %vm45_vm1, %v119_v40  ;;  %122 = vst.msk [vmem:[%s285_s4 + $0x8] sm:$0xff] %vm45_vm1, %v117_v41 }
  0xee   :  { %v105_v42 = vpop.f32.mrb[4].mxu1 }
  0xef   :  { %v106_v44 = vadd.f32 %v130_v21, %v105_v42  ;;  %v159_v45 = vpop.f32.mrb[5].mxu1 }
  0xf0   :  { %v108_v46 = vpop.f32.mrb[6].mxu1 }
  0xf1   :  { %v120_v47 = vadd.f32 %v115_v43, %v106_v44  ;;  %v160_v48 = vpop.f32.mrb[7].mxu1 }
  0xf3   :  { %125 = vst.msk [vmem:[%s285_s4 + $0x20] sm:$0xff] %vm45_vm1, %v120_v47 }

// kernel: mrm_gen_forward.36
= control target key start
LH: loop header
LB: loop body
LE: loop exit
PB: predicated region body
PF: predicated region fallthrough
CT: control target
= control target key end

     0   :  { %vm26_vm0 = vcmask 523264   ;;  %v264_v59 = vmov 0   ;;  %s435_s0 = inlined_call_operand.vmem [shape: f32[40,64], index: 0, kind: input, shape index: {}]   ;;  %s436_s1 = inlined_call_operand.vmem [shape: f32[64,256], index: 1, kind: input, shape index: {}]   ;;  %s437_s3 = inlined_call_operand.vmem [shape: f32[1,64], index: 3, kind: input, shape index: {}]   ;;  %s438_s4 = inlined_call_operand.vmem [shape: f32[1,64], index: 4, kind: input, shape index: {}]   ;;  %s439_s2 = inlined_call_operand.vmem [shape: f32[1,256], index: 2, kind: input, shape index: {}]   ;;  %s440_s5 = inlined_call_operand.vmem [shape: f32[40,256], index: 5, kind: output, shape index: {}]  }
   0x1   :  { %v23_v0 = vld [vmem:[%s435_s0 + $0x10] sm:$0xff]  ;;  %v24_v1 = vld [vmem:[%s435_s0 + $0x18] sm:$0xff]  ;;  %v21_v2 = vld [vmem:[%s435_s0] sm:$0xff]  ;;  %207 = vmatprep.mubr.bf16.mxu1 %v264_v59  ;;  %197 = vmatprep.mubr.bf16.mxu0 %v264_v59 }
   0x2   :  { %v33_v3 = vsel %vm26_vm0, %v23_v0, 0.0  ;;  %v27_v4 = vsel %vm26_vm0, %v21_v2, 0.0  ;;  %v22_v5 = vld [vmem:[%s435_s0 + $0x8] sm:$0xff]  ;;  %v36_v6 = vsel %vm26_vm0, %v24_v1, 0.0  ;;  %v25_v8 = vld [vmem:[%s435_s0 + $0x20] sm:$0xff]  ;;  %v123_v36 = vld [vmem:[%s436_s1 + $0x18] sm:$0xff] }
   0x3   :  { %34 = vadd.xlane.f32.xlu0 %v33_v3  ;;  %28 = vadd.xlane.f32.xlu1 %v27_v4  ;;  %v30_v7 = vsel %vm26_vm0, %v22_v5, 0.0  ;;  %v39_v9 = vsel %vm26_vm0, %v25_v8, 0.0  ;;  %v121_v35 = vld [vmem:[%s436_s1 + $0x8] sm:$0xff]  ;;  %v120_v38 = vld [vmem:[%s436_s1] sm:$0xff]  ;;  %v122_v39 = vld [vmem:[%s436_s1 + $0x10] sm:$0xff] }
   0x4   :  { %v137_v37 = vpack.c.bf16 %v123_v36, %v121_v35  ;;  %v136_v40 = vpack.c.bf16 %v122_v39, %v120_v38  ;;  %v125_v41 = vld [vmem:[%s436_s1 + $0x28] sm:$0xff]  ;;  %v127_v42 = vld [vmem:[%s436_s1 + $0x38] sm:$0xff]  ;;  %v124_v44 = vld [vmem:[%s436_s1 + $0x20] sm:$0xff] }
   0x5   :  { %v139_v43 = vpack.c.bf16 %v127_v42, %v125_v41  ;;  %v126_v45 = vld [vmem:[%s436_s1 + $0x30] sm:$0xff]  ;;  %v129_v47 = vld [vmem:[%s436_s1 + $0x48] sm:$0xff]  ;;  %v131_v48 = vld [vmem:[%s436_s1 + $0x58] sm:$0xff] }
   0x6   :  { %245 = vmatprep.subr.bf16.mxu1 %v137_v37  ;;  %165 = vmatprep.subr.bf16.mxu0 %v137_v37  ;;  %v138_v46 = vpack.c.bf16 %v126_v45, %v124_v44  ;;  %v141_v49 = vpack.c.bf16 %v131_v48, %v129_v47  ;;  %v128_v50 = vld [vmem:[%s436_s1 + $0x40] sm:$0xff]  ;;  %v130_v51 = vld [vmem:[%s436_s1 + $0x50] sm:$0xff]  ;;  %v133_v53 = vld [vmem:[%s436_s1 + $0x68] sm:$0xff] }
   0x7   :  { %37 = vadd.xlane.f32.xlu0 %v36_v6  ;;  %31 = vadd.xlane.f32.xlu1 %v30_v7  ;;  %v140_v52 = vpack.c.bf16 %v130_v51, %v128_v50  ;;  %v135_v54 = vld [vmem:[%s436_s1 + $0x78] sm:$0xff]  ;;  %v132_v56 = vld [vmem:[%s436_s1 + $0x60] sm:$0xff]  ;;  %v134_v57 = vld [vmem:[%s436_s1 + $0x70] sm:$0xff] }
   0x8   :  { %249 = vmatpush1.bf16.msra.mxu1 %v136_v40  ;;  %166 = vmatpush1.bf16.msra.mxu0 %v136_v40  ;;  %v143_v55 = vpack.c.bf16 %v135_v54, %v133_v53  ;;  %v142_v58 = vpack.c.bf16 %v134_v57, %v132_v56 }
   0x9   :  { %246 = vmatprep.subr.bf16.mxu1 %v139_v43  ;;  %167 = vmatprep.subr.bf16.mxu0 %v139_v43 }
   0xb   :  { %40 = vadd.xlane.f32.xlu0 %v39_v9 }
   0xc   :  { %250 = vmatpush1.bf16.msra.mxu1 %v138_v46  ;;  %168 = vmatpush1.bf16.msra.mxu0 %v138_v46 }
   0xd   :  { %247 = vmatprep.subr.bf16.mxu1 %v141_v49  ;;  %169 = vmatprep.subr.bf16.mxu0 %v141_v49 }
  0x10   :  { %251 = vmatpush1.bf16.msra.mxu1 %v140_v52  ;;  %170 = vmatpush1.bf16.msra.mxu0 %v140_v52 }
  0x11   :  { %248 = vmatprep.subr.bf16.mxu1 %v143_v55  ;;  %171 = vmatprep.subr.bf16.mxu0 %v143_v55 }
  0x14   :  { %252 = vmatpush1.bf16.msra.mxu1 %v142_v58  ;;  %172 = vmatpush1.bf16.msra.mxu0 %v142_v58 }
  0x90   :  { %v35_v10 = vpop.xlane.xlu0 %34  ;;  %v29_v11 = vpop.xlane.xlu1 %28 }
  0x91   :  { %v45_v12 = vmul.f32 0.015625, %v35_v10  ;;  %v43_v13 = vmul.f32 0.015625, %v29_v11 }
  0x93   :  { %v315_v14 = vsub.f32 %v23_v0, %v45_v12  ;;  %v317_v15 = vsub.f32 %v21_v2, %v43_v13  ;;  %v240_v13 = vld [vmem:[%s437_s3] ss:$0 sm:$0xff] }
  0x94   :  { %v38_v16 = vpop.xlane.xlu0 %37  ;;  %v32_v17 = vpop.xlane.xlu1 %31 }
  0x95   :  { %v46_v18 = vmul.f32 0.015625, %v38_v16  ;;  %v55_v19 = vmul.f32 %v315_v14, %v315_v14  ;;  %v44_v20 = vmul.f32 0.015625, %v32_v17  ;;  %v53_v21 = vmul.f32 %v317_v15, %v317_v15 }
  0x97   :  { %v323_v22 = vsub.f32 %v24_v1, %v46_v18  ;;  %v64_v23 = vsel %vm26_vm0, %v55_v19, 0.0  ;;  %v326_v24 = vsub.f32 %v22_v5, %v44_v20  ;;  %v58_v28 = vsel %vm26_vm0, %v53_v21, 0.0  ;;  %v241_v21 = vld [vmem:[%s438_s4] ss:$0 sm:$0xff] }
  0x98   :  { %v41_v25 = vpop.xlane.xlu0 %40  ;;  %65 = vadd.xlane.f32.xlu1 %v64_v23 }
  0x99   :  { %v47_v26 = vmul.f32 0.015625, %v41_v25  ;;  %v56_v27 = vmul.f32 %v323_v22, %v323_v22  ;;  %v54_v29 = vmul.f32 %v326_v24, %v326_v24 }
  0x9b   :  { %v333_v30 = vsub.f32 %v25_v8, %v47_v26  ;;  %v67_v31 = vsel %vm26_vm0, %v56_v27, 0.0  ;;  %v61_v33 = vsel %vm26_vm0, %v54_v29, 0.0 }
  0x9c   :  { %68 = vadd.xlane.f32.xlu0 %v67_v31  ;;  %59 = vadd.xlane.f32.xlu1 %v58_v28 }
  0x9d   :  { %v57_v32 = vmul.f32 %v333_v30, %v333_v30 }
  0x9f   :  { %v70_v34 = vsel %vm26_vm0, %v57_v32, 0.0 }
  0xa0   :  { %71 = vadd.xlane.f32.xlu1 %v70_v34  ;;  %62 = vadd.xlane.f32.xlu0 %v61_v33 }
 0x125   :  { %v66_v60 = vpop.xlane.xlu1 %65 }
 0x126   :  { %v75_v61 = vmul.f32 0.015625, %v66_v60 }
 0x128   :  { %v80_v62 = vadd.f32 1e-06, %v75_v61 }
 0x129   :  { %v69_v63 = vpop.xlane.xlu0 %68  ;;  %v60_v0 = vpop.xlane.xlu1 %59 }
 0x12a   :  { %254 = vrsqrt.f32 %v80_v62  ;;  %v76_v1 = vmul.f32 0.015625, %v69_v63  ;;  %v73_v2 = vmul.f32 0.015625, %v60_v0 }
 0x12c   :  { %v81_v3 = vadd.f32 1e-06, %v76_v1  ;;  %v78_v4 = vadd.f32 1e-06, %v73_v2 }
 0x12d   :  { %v63_v5 = vpop.xlane.xlu0 %62  ;;  %v72_v6 = vpop.xlane.xlu1 %71 }
 0x12e   :  { %256 = vrsqrt.f32 %v81_v3  ;;  %v74_v7 = vmul.f32 0.015625, %v63_v5  ;;  %v77_v8 = vmul.f32 0.015625, %v72_v6 }
 0x12f   :  { %258 = vrsqrt.f32 %v78_v4 }
 0x130   :  { %v79_v9 = vadd.f32 1e-06, %v74_v7  ;;  %v82_v10 = vadd.f32 1e-06, %v77_v8 }
 0x132   :  { %260 = vrsqrt.f32 %v79_v9 }
 0x133   :  { %262 = vrsqrt.f32 %v82_v10 }
 0x134   :  { %v255_v11 = vpop.eup %254 }
 0x135   :  { %v90_v12 = vmul.f32 %v255_v11, %v315_v14 }
 0x137   :  { %v102_v19 = vmul.f32 %v240_v13, %v90_v12 }
 0x138   :  { %v257_v16 = vpop.eup %256 }
 0x139   :  { %v259_v17 = vpop.eup %258  ;;  %v91_v18 = vmul.f32 %v257_v16, %v323_v22  ;;  %v114_v27 = vadd.f32 %v241_v21, %v102_v19 }
 0x13a   :  { %v88_v20 = vmul.f32 %v259_v17, %v317_v15 }
 0x13b   :  { %v103_v23 = vmul.f32 %v240_v13, %v91_v18 }
 0x13c   :  { %v261_v25 = vpop.eup %260  ;;  %v100_v29 = vmul.f32 %v240_v13, %v88_v20 }
 0x13d   :  { %v263_v26 = vpop.eup %262  ;;  %v89_v14 = vmul.f32 %v261_v25, %v326_v24  ;;  %v115_v28 = vadd.f32 %v241_v21, %v103_v23  ;;  %v146_v24 = vlaneseq }
 0x13e   :  { %v92_v31 = vmul.f32 %v263_v26, %v333_v30  ;;  %v112_v15 = vadd.f32 %v241_v21, %v100_v29  ;;  %v144_v30 = vld [vmem:[%s439_s2] sm:$0x3] }
 0x13f   :  { %v118_v32 = vpack.c.bf16 %v115_v28, %v114_v27  ;;  %v101_v33 = vmul.f32 %v240_v13, %v89_v14  ;;  %v147_v38 = vshrl.u32 %v146_v24, 7 }
 0x140   :  { %v104_v22 = vmul.f32 %v240_v13, %v92_v31 }
 0x141   :  { %243 = vmatmul.mubr.msk.bf16.vlgmr.msra.gmra.mrb[0].mxu1 %vm26_vm0, %v118_v32  ;;  %v113_v34 = vadd.f32 %v241_v21, %v101_v33  ;;  %v148_v39 = vsub.s32 0, %v147_v38  ;;  %v152_v40 = vsub.s32 1, %v147_v38 }
 0x142   :  { %217 = vmatprep.mubr.bf16.mxu1 %v264_v59  ;;  %v116_v36 = vadd.f32 %v241_v21, %v104_v22 }
 0x143   :  { %v117_v35 = vpack.c.bf16 %v113_v34, %v112_v15  ;;  %v149_v41 = vrot.slane %v144_v30, %v148_v39  ;;  %v153_v42 = vrot.slane %v144_v30, %v152_v40 }
 0x144   :  { %v119_v37 = vpack.c.bf16 %v116_v36, %v116_v36 }
 0x145   :  { %242 = vmatmul.mubr.msk.bf16.vlgmr.msra.gmra.mrb[0].mxu0 %vm26_vm0, %v117_v35 }
 0x149   :  { %244 = vmatmul.mubr.msk.bf16.gmra.mrb[4].mxu1 %vm26_vm0, %v119_v37 }
 0x214   :  { %v209_v43 = vpop.f32.mrb[0].mxu1 }
 0x215   :  { %v210_v44 = vadd.f32 %v209_v43, %v149_v41  ;;  %v211_v45 = vpop.f32.mrb[1].mxu1 }
 0x216   :  { %v212_v46 = vadd.f32 %v211_v45, %v153_v42  ;;  %v213_v47 = vpop.f32.mrb[2].mxu1 }
 0x217   :  { %230 = vst [vmem:[%s440_s5 + $0x20] sm:$0xff] %v210_v44  ;;  %v214_v48 = vadd.f32 %v213_v47, %v149_v41  ;;  %v215_v49 = vpop.f32.mrb[3].mxu1 }
 0x218   :  { %231 = vst [vmem:[%s440_s5 + $0x28] sm:$0xff] %v212_v46  ;;  %v216_v50 = vadd.f32 %v215_v49, %v153_v42  ;;  %v199_v51 = vpop.f32.mrb[0].mxu0 }
 0x219   :  { %232 = vst [vmem:[%s440_s5 + $0x30] sm:$0xff] %v214_v48  ;;  %v200_v52 = vadd.f32 %v199_v51, %v149_v41  ;;  %v201_v53 = vpop.f32.mrb[1].mxu0 }
 0x21a   :  { %233 = vst [vmem:[%s440_s5 + $0x38] sm:$0xff] %v216_v50  ;;  %v202_v54 = vadd.f32 %v201_v53, %v153_v42  ;;  %v203_v55 = vpop.f32.mrb[2].mxu0 }
 0x21b   :  { %226 = vst [vmem:[%s440_s5] sm:$0xff] %v200_v52  ;;  %v204_v56 = vadd.f32 %v203_v55, %v149_v41  ;;  %v205_v57 = vpop.f32.mrb[3].mxu0 }
 0x21c   :  { %227 = vst [vmem:[%s440_s5 + $0x8] sm:$0xff] %v202_v54  ;;  %v206_v58 = vadd.f32 %v205_v57, %v153_v42  ;;  %v219_v59 = vpop.f32.mrb[4].mxu1 }
 0x21d   :  { %228 = vst [vmem:[%s440_s5 + $0x10] sm:$0xff] %v204_v56  ;;  %v220_v60 = vadd.f32 %v219_v59, %v149_v41  ;;  %v221_v61 = vpop.f32.mrb[5].mxu1 }
 0x21e   :  { %229 = vst [vmem:[%s440_s5 + $0x18] sm:$0xff] %v206_v58  ;;  %v222_v62 = vadd.f32 %v221_v61, %v153_v42  ;;  %v223_v63 = vpop.f32.mrb[6].mxu1 }
 0x21f   :  { %234 = vst [vmem:[%s440_s5 + $0x40] sm:$0xff] %v220_v60  ;;  %v224_v0 = vpop.f32.mrb[7].mxu1 }
 0x220   :  { %235 = vst [vmem:[%s440_s5 + $0x48] sm:$0xff] %v222_v62 }

// kernel: mrm_gen_forward.34
= control target key start
LH: loop header
LB: loop body
LE: loop exit
PB: predicated region body
PF: predicated region fallthrough
CT: control target
= control target key end

     0   :  { %s2201_s12 = smov 0   ;;  %s2203_s13 = smov 0   ;;  %s3066_s0 = inlined_call_operand.vmem [shape: f32[2,17,3,4,16], index: 0, kind: input, shape index: {}, may-alias: {0,1,2}]   ;;  %s3067_s1 = inlined_call_operand.vmem [shape: f32[2,17,3,4,16], index: 1, kind: input, shape index: {}, may-alias: {0,1,2}]   ;;  %s3068_s2 = inlined_call_operand.vmem [shape: f32[2,17,3,4,16], index: 2, kind: input, shape index: {}, may-alias: {0,1,2}]   ;;  %s3069_s3 = inlined_call_operand.vmem [shape: f32[2,17,64], index: 3, kind: output, shape index: {}]  }
   0x1   :  { %s2205_s14 = smov 0  }
   0x2 LB: > { %s1900_s15 = sadd.s32 4294967295, %s2175_s14   ;;  %s2218_s16 = sadd.s32 1, %s2175_s14   ;;  %s2175_s14 = sphi %s2205_s14, %s3160_s14   ;;  %s2171_s13 = sphi %s2203_s13, %s3159_s13   ;;  %s2167_s12 = sphi %s2201_s12, %s3158_s12  }
   0x3   : > { %s17_s17 = ssub.s32 %s2175_s14, %s2218_s16  ;;  %s20_s18 = sadd.s32 1, %s2171_s13 }
   0x4   : > { %p18_p0 = scmp.eq.s32.totalorder %s17_s17, 0  ;;  %p27_p1 = scmp.ne.s32.totalorder %s2171_s13, %s2167_s12 }
   0x5   : > { %p28_p2 = scmp.eq.s32.totalorder %s2175_s14, 0  ;;  %p1903_p4 = scmp.ge.s32.totalorder %s2175_s14, 2 }
   0x6   : > { %s2227_s19 = scalar_select %p18_p0, %s2171_s13, %s20_s18  }
   0x7   : > { %p2229_p3 = por %p28_p2, %p27_p1  ;;  %131 = sbr.rel (%p1903_p4) target bundleno = 62 (0x3e), region = 16 }
   0xe   : > { %134 = sbr.rel (!%p2229_p3) target bundleno = 30 (0x1e), region = 20  ;;  %s136_s21 = sand.u32 (%p2229_p3), 1, %s2171_s13  }
   0xf   : > { %s2072_s22 = smul.u32 (%p2229_p3), 204, %s2175_s14 }
  0x10   : > { %s2071_s23 = smul.u32 (%p2229_p3), 68, %s136_s21 }
  0x11   : > { %s2241_s26 = scalar_lea.vmem (%p2229_p3), %s3066_s0, %s2072_s22 }
  0x12   : > { %v157_v0 = vld [vmem:[%s2241_s26] sm:$0xf] (%p2229_p3)  ;;  %v159_v1 = vld [vmem:[%s2241_s26 + $0xc] sm:$0xf] (%p2229_p3)  ;;  %s2245_s27 = scalar_lea.vmem (%p2229_p3), [#allocation2], %s2071_s23 }
  0x13   : > { %158 = vst [vmem:[%s2245_s27] sm:$0xf] (%p2229_p3), %v157_v0  ;;  %160 = vst [vmem:[%s2245_s27 + $0x4] sm:$0xf] (%p2229_p3), %v159_v1  ;;  %v161_v2 = vld [vmem:[%s2241_s26 + $0x18] sm:$0xf] (%p2229_p3) }
  0x14   : > { %v163_v3 = vld [vmem:[%s2241_s26 + $0x24] sm:$0xf] (%p2229_p3)  ;;  %v165_v4 = vld [vmem:[%s2241_s26 + $0x30] sm:$0xf] (%p2229_p3)  ;;  %162 = vst [vmem:[%s2245_s27 + $0x8] sm:$0xf] (%p2229_p3), %v161_v2 }
  0x15   : > { %164 = vst [vmem:[%s2245_s27 + $0xc] sm:$0xf] %v163_v3  ;;  %166 = vst [vmem:[%s2245_s27 + $0x10] sm:$0xf] %v165_v4  ;;  %v167_v5 = vld [vmem:[%s2241_s26 + $0x3c] sm:$0xf] }
  0x16   : > { %v169_v6 = vld [vmem:[%s2241_s26 + $0x48] sm:$0xf]  ;;  %v171_v7 = vld [vmem:[%s2241_s26 + $0x54] sm:$0xf]  ;;  %168 = vst [vmem:[%s2245_s27 + $0x14] sm:$0xf] %v167_v5 }
  0x17   : > { %170 = vst [vmem:[%s2245_s27 + $0x18] sm:$0xf] %v169_v6  ;;  %172 = vst [vmem:[%s2245_s27 + $0x1c] sm:$0xf] %v171_v7  ;;  %v173_v8 = vld [vmem:[%s2241_s26 + $0x60] sm:$0xf] }
  0x18   : > { %v175_v9 = vld [vmem:[%s2241_s26 + $0x6c] sm:$0xf]  ;;  %v177_v10 = vld [vmem:[%s2241_s26 + $0x78] sm:$0xf]  ;;  %174 = vst [vmem:[%s2245_s27 + $0x20] sm:$0xf] %v173_v8 }
  0x19   : > { %176 = vst [vmem:[%s2245_s27 + $0x24] sm:$0xf] %v175_v9  ;;  %178 = vst [vmem:[%s2245_s27 + $0x28] sm:$0xf] %v177_v10  ;;  %v179_v11 = vld [vmem:[%s2241_s26 + $0x84] sm:$0xf] }
  0x1a   : > { %v181_v12 = vld [vmem:[%s2241_s26 + $0x90] sm:$0xf]  ;;  %v183_v13 = vld [vmem:[%s2241_s26 + $0x9c] sm:$0xf]  ;;  %180 = vst [vmem:[%s2245_s27 + $0x2c] sm:$0xf] %v179_v11 }
  0x1b   : > { %182 = vst [vmem:[%s2245_s27 + $0x30] sm:$0xf] %v181_v12  ;;  %184 = vst [vmem:[%s2245_s27 + $0x34] sm:$0xf] %v183_v13  ;;  %v185_v14 = vld [vmem:[%s2241_s26 + $0xa8] sm:$0xf] }
  0x1c   : > { %v187_v15 = vld [vmem:[%s2241_s26 + $0xb4] sm:$0xf]  ;;  %v189_v16 = vld [vmem:[%s2241_s26 + $0xc0] sm:$0xf]  ;;  %186 = vst [vmem:[%s2245_s27 + $0x38] sm:$0xf] %v185_v14 }
  0x1d   : > { %188 = vst [vmem:[%s2245_s27 + $0x3c] sm:$0xf] %v187_v15  ;;  %190 = vst [vmem:[%s2245_s27 + $0x40] sm:$0xf] %v189_v16 }
  0x1e PF: > { %247 = sbr.rel (!%p2229_p3) target bundleno = 46 (0x2e), region = 61  ;;  %s249_s28 = sand.u32 (%p2229_p3), 1, %s2171_s13  }
  0x1f   : > { %s1905_s29 = smul.u32 (%p2229_p3), 204, %s2175_s14 }
  0x20   : > { %s2073_s30 = smul.u32 (%p2229_p3), 68, %s249_s28 }
  0x21   : > { %s2286_s6 = scalar_lea.vmem (%p2229_p3), %s3067_s1, %s1905_s29 }
  0x22   : > { %v1906_v17 = vld [vmem:[%s2286_s6 + $0x4] sm:$0xf] (%p2229_p3)  ;;  %v1907_v18 = vld [vmem:[%s2286_s6 + $0x10] sm:$0xf] (%p2229_p3)  ;;  %s2290_s7 = scalar_lea.vmem (%p2229_p3), [#allocation3], %s2073_s30 }
  0x23   : > { %272 = vst [vmem:[%s2290_s7] sm:$0xf] (%p2229_p3), %v1906_v17  ;;  %274 = vst [vmem:[%s2290_s7 + $0x4] sm:$0xf] (%p2229_p3), %v1907_v18  ;;  %v1908_v19 = vld [vmem:[%s2286_s6 + $0x1c] sm:$0xf] (%p2229_p3) }
  0x24   : > { %v1909_v20 = vld [vmem:[%s2286_s6 + $0x28] sm:$0xf] (%p2229_p3)  ;;  %v1910_v21 = vld [vmem:[%s2286_s6 + $0x34] sm:$0xf] (%p2229_p3)  ;;  %276 = vst [vmem:[%s2290_s7 + $0x8] sm:$0xf] (%p2229_p3), %v1908_v19 }
  0x25   : > { %278 = vst [vmem:[%s2290_s7 + $0xc] sm:$0xf] %v1909_v20  ;;  %280 = vst [vmem:[%s2290_s7 + $0x10] sm:$0xf] %v1910_v21  ;;  %v1911_v22 = vld [vmem:[%s2286_s6 + $0x40] sm:$0xf] }
  0x26   : > { %v1912_v23 = vld [vmem:[%s2286_s6 + $0x4c] sm:$0xf]  ;;  %v1913_v24 = vld [vmem:[%s2286_s6 + $0x58] sm:$0xf]  ;;  %282 = vst [vmem:[%s2290_s7 + $0x14] sm:$0xf] %v1911_v22 }
  0x27   : > { %284 = vst [vmem:[%s2290_s7 + $0x18] sm:$0xf] %v1912_v23  ;;  %286 = vst [vmem:[%s2290_s7 + $0x1c] sm:$0xf] %v1913_v24  ;;  %v1914_v25 = vld [vmem:[%s2286_s6 + $0x64] sm:$0xf] }
  0x28   : > { %v1915_v26 = vld [vmem:[%s2286_s6 + $0x70] sm:$0xf]  ;;  %v1916_v27 = vld [vmem:[%s2286_s6 + $0x7c] sm:$0xf]  ;;  %288 = vst [vmem:[%s2290_s7 + $0x20] sm:$0xf] %v1914_v25 }
  0x29   : > { %290 = vst [vmem:[%s2290_s7 + $0x24] sm:$0xf] %v1915_v26  ;;  %292 = vst [vmem:[%s2290_s7 + $0x28] sm:$0xf] %v1916_v27  ;;  %v1917_v28 = vld [vmem:[%s2286_s6 + $0x88] sm:$0xf] }
  0x2a   : > { %v1918_v29 = vld [vmem:[%s2286_s6 + $0x94] sm:$0xf]  ;;  %v1919_v30 = vld [vmem:[%s2286_s6 + $0xa0] sm:$0xf]  ;;  %294 = vst [vmem:[%s2290_s7 + $0x2c] sm:$0xf] %v1917_v28 }
  0x2b   : > { %296 = vst [vmem:[%s2290_s7 + $0x30] sm:$0xf] %v1918_v29  ;;  %298 = vst [vmem:[%s2290_s7 + $0x34] sm:$0xf] %v1919_v30  ;;  %v1920_v31 = vld [vmem:[%s2286_s6 + $0xac] sm:$0xf] }
  0x2c   : > { %v1921_v32 = vld [vmem:[%s2286_s6 + $0xb8] sm:$0xf]  ;;  %v1922_v33 = vld [vmem:[%s2286_s6 + $0xc4] sm:$0xf]  ;;  %300 = vst [vmem:[%s2290_s7 + $0x38] sm:$0xf] %v1920_v31 }
  0x2d   : > { %302 = vst [vmem:[%s2290_s7 + $0x3c] sm:$0xf] %v1921_v32  ;;  %304 = vst [vmem:[%s2290_s7 + $0x40] sm:$0xf] %v1922_v33 }
  0x2e PF: > { %361 = sbr.rel (!%p2229_p3) target bundleno = 62 (0x3e), region = 102  ;;  %s363_s8 = sand.u32 (%p2229_p3), 1, %s2171_s13  }
  0x2f   : > { %s1923_s9 = smul.u32 (%p2229_p3), 204, %s2175_s14 }
  0x30   : > { %s2074_s10 = smul.u32 (%p2229_p3), 68, %s363_s8 }
  0x31   : > { %s2331_s18 = scalar_lea.vmem (%p2229_p3), %s3068_s2, %s1923_s9 }
  0x32   : > { %v1924_v34 = vld [vmem:[%s2331_s18 + $0x8] sm:$0xf] (%p2229_p3)  ;;  %v1925_v35 = vld [vmem:[%s2331_s18 + $0x14] sm:$0xf] (%p2229_p3)  ;;  %s2335_s20 = scalar_lea.vmem (%p2229_p3), [#allocation4], %s2074_s10 }
  0x33   : > { %386 = vst [vmem:[%s2335_s20] sm:$0xf] (%p2229_p3), %v1924_v34  ;;  %388 = vst [vmem:[%s2335_s20 + $0x4] sm:$0xf] (%p2229_p3), %v1925_v35  ;;  %v1926_v36 = vld [vmem:[%s2331_s18 + $0x20] sm:$0xf] (%p2229_p3) }
  0x34   : > { %v1927_v37 = vld [vmem:[%s2331_s18 + $0x2c] sm:$0xf] (%p2229_p3)  ;;  %v1928_v38 = vld [vmem:[%s2331_s18 + $0x38] sm:$0xf] (%p2229_p3)  ;;  %390 = vst [vmem:[%s2335_s20 + $0x8] sm:$0xf] (%p2229_p3), %v1926_v36 }
  0x35   : > { %392 = vst [vmem:[%s2335_s20 + $0xc] sm:$0xf] %v1927_v37  ;;  %394 = vst [vmem:[%s2335_s20 + $0x10] sm:$0xf] %v1928_v38  ;;  %v1929_v39 = vld [vmem:[%s2331_s18 + $0x44] sm:$0xf] }
  0x36   : > { %v1930_v40 = vld [vmem:[%s2331_s18 + $0x50] sm:$0xf]  ;;  %v1931_v41 = vld [vmem:[%s2331_s18 + $0x5c] sm:$0xf]  ;;  %396 = vst [vmem:[%s2335_s20 + $0x14] sm:$0xf] %v1929_v39 }
  0x37   : > { %398 = vst [vmem:[%s2335_s20 + $0x18] sm:$0xf] %v1930_v40  ;;  %400 = vst [vmem:[%s2335_s20 + $0x1c] sm:$0xf] %v1931_v41  ;;  %v1932_v42 = vld [vmem:[%s2331_s18 + $0x68] sm:$0xf] }
  0x38   : > { %v1933_v43 = vld [vmem:[%s2331_s18 + $0x74] sm:$0xf]  ;;  %v1934_v44 = vld [vmem:[%s2331_s18 + $0x80] sm:$0xf]  ;;  %402 = vst [vmem:[%s2335_s20 + $0x20] sm:$0xf] %v1932_v42 }
  0x39   : > { %404 = vst [vmem:[%s2335_s20 + $0x24] sm:$0xf] %v1933_v43  ;;  %406 = vst [vmem:[%s2335_s20 + $0x28] sm:$0xf] %v1934_v44  ;;  %v1935_v45 = vld [vmem:[%s2331_s18 + $0x8c] sm:$0xf] }
  0x3a   : > { %v1936_v46 = vld [vmem:[%s2331_s18 + $0x98] sm:$0xf]  ;;  %v1937_v47 = vld [vmem:[%s2331_s18 + $0xa4] sm:$0xf]  ;;  %408 = vst [vmem:[%s2335_s20 + $0x2c] sm:$0xf] %v1935_v45 }
  0x3b   : > { %410 = vst [vmem:[%s2335_s20 + $0x30] sm:$0xf] %v1936_v46  ;;  %412 = vst [vmem:[%s2335_s20 + $0x34] sm:$0xf] %v1937_v47  ;;  %v1938_v48 = vld [vmem:[%s2331_s18 + $0xb0] sm:$0xf] }
  0x3c   : > { %v1939_v49 = vld [vmem:[%s2331_s18 + $0xbc] sm:$0xf]  ;;  %v1940_v50 = vld [vmem:[%s2331_s18 + $0xc8] sm:$0xf]  ;;  %414 = vst [vmem:[%s2335_s20 + $0x38] sm:$0xf] %v1938_v48 }
  0x3d   : > { %416 = vst [vmem:[%s2335_s20 + $0x3c] sm:$0xf] %v1939_v49  ;;  %418 = vst [vmem:[%s2335_s20 + $0x40] sm:$0xf] %v1940_v50 }
  0x3e PF: > { %p1941_p5 = scmp.ge.s32.totalorder %s2175_s14, 1  ;;  %p474_p6 = scmp.lt.s32.totalorder %s2175_s14, 3 }
  0x40   : > { %p475_p7 = pnand %p1941_p5, %p474_p6 }
  0x42   : > { %478 = sbr.rel (%p475_p7) target bundleno = 2636 (0xa4c), region = 143 }
  0x49   : > { %s481_s21 = sand.u32 1, %s2167_s12   ;;  %vm686_vm0 = vcmask 1041409   ;;  %vm689_vm1 = vcmask 1042434   ;;  %vm692_vm2 = vcmask 1043459   ;;  %vm695_vm3 = vcmask 1044484   ;;  %s2178_s25 = smov 16  }
  0x4a   : > { %s2372_s22 = smul.u32 68, %s481_s21  ;;  %vm698_vm4 = vcmask 1045509   ;;  %vm701_vm5 = vcmask 1046534   ;;  %vm704_vm6 = vcmask 1047559   ;;  %vm786_vm7 = vcmask 130048   ;;  %s2179_s26 = smov 32  }
  0x4b   : > { %vm854_vm8 = vcmask 131072   ;;  %vm847_vm9 = vcmask 138240   ;;  %vm955_vm10 = vcmask 1040384   ;;  %s2180_s27 = smov 48   ;;  %p526_p8 = scmp.lt.s32.totalorder %s1900_s15, 1  ;;  %vm1790_vm11 = vcmask 392192  }
  0x4c   : > { %s2375_s23 = scalar_lea.vmem [#allocation3], %s2372_s22  ;;  %s2431_s12 = scalar_lea.vmem [#allocation2], %s2372_s22  ;;  %vm1786_vm12 = vcmask 261120   ;;  %vm1794_vm13 = vcmask 523264   ;;  %vm1797_vm14 = vcmask 516096  }
  0x4d   : > { %v549_v51 = vld [vmem:[%s2375_s23] sm:$0xf]  ;;  %v550_v52 = vld [vmem:[%s2375_s23 + $0x4] sm:$0xf]  ;;  %v551_v53 = vld [vmem:[%s2375_s23 + $0x8] sm:$0xf] }
  0x4e   : > { %v552_v54 = vld [vmem:[%s2375_s23 + $0xc] sm:$0xf]  ;;  %v553_v55 = vld [vmem:[%s2375_s23 + $0x10] sm:$0xf]  ;;  %v554_v56 = vld [vmem:[%s2375_s23 + $0x14] sm:$0xf]  ;;  %v618_v57 = vpack.c.bf16 %v550_v52, %v550_v52  ;;  %v619_v58 = vpack.c.bf16 %v551_v53, %v551_v53  ;;  %v617_v3 = vpack.c.bf16 %v549_v51, %v549_v51 }
  0x4f   : > { %v555_v59 = vld [vmem:[%s2375_s23 + $0x18] sm:$0xf]  ;;  %v556_v60 = vld [vmem:[%s2375_s23 + $0x1c] sm:$0xf]  ;;  %v557_v61 = vld [vmem:[%s2375_s23 + $0x20] sm:$0xf]  ;;  %v620_v62 = vpack.c.bf16 %v552_v54, %v552_v54  ;;  %v621_v63 = vpack.c.bf16 %v553_v55, %v553_v55  ;;  %v622_v4 = vpack.c.bf16 %v554_v56, %v554_v56 }
  0x50   : > { %v558_v0 = vld [vmem:[%s2375_s23 + $0x24] sm:$0xf]  ;;  %v559_v1 = vld [vmem:[%s2375_s23 + $0x28] sm:$0xf]  ;;  %v560_v2 = vld [vmem:[%s2375_s23 + $0x2c] sm:$0xf]  ;;  %v623_v5 = vpack.c.bf16 %v555_v59, %v555_v59  ;;  %v624_v6 = vpack.c.bf16 %v556_v60, %v556_v60  ;;  %v625_v10 = vpack.c.bf16 %v557_v61, %v557_v61  ;;  %v2393_v17 = vunpack.c.l.b16 %v618_v57 }
  0x51   : > { %v561_v7 = vld [vmem:[%s2375_s23 + $0x30] sm:$0xf]  ;;  %v562_v8 = vld [vmem:[%s2375_s23 + $0x34] sm:$0xf]  ;;  %v563_v9 = vld [vmem:[%s2375_s23 + $0x38] sm:$0xf]  ;;  %v626_v11 = vpack.c.bf16 %v558_v0, %v558_v0  ;;  %v627_v12 = vpack.c.bf16 %v559_v1, %v559_v1  ;;  %v628_v13 = vpack.c.bf16 %v560_v2, %v560_v2  ;;  %v2395_v18 = vunpack.c.l.b16 %v619_v58 }
  0x52   : > { %v564_v14 = vld [vmem:[%s2375_s23 + $0x3c] sm:$0xf]  ;;  %v629_v15 = vpack.c.bf16 %v561_v7, %v561_v7  ;;  %v630_v16 = vpack.c.bf16 %v562_v8, %v562_v8  ;;  %v631_v19 = vpack.c.bf16 %v563_v9, %v563_v9  ;;  %v2397_v21 = vunpack.c.l.b16 %v620_v62  ;;  %v565_v39 = vld [vmem:[%s2375_s23 + $0x40] sm:$0xf]  ;;  %v532_v40 = vld [vmem:[%s2431_s12] sm:$0xf] }
  0x53   : > { %v632_v20 = vpack.c.bf16 %v564_v14, %v564_v14  ;;  %v2399_v22 = vunpack.c.l.b16 %v621_v63  ;;  %v2401_v23 = vunpack.c.l.b16 %v617_v3  ;;  %v2403_v24 = vunpack.c.l.b16 %v622_v4  ;;  %v533_v45 = vld [vmem:[%s2431_s12 + $0x4] sm:$0xf]  ;;  %v534_v46 = vld [vmem:[%s2431_s12 + $0x8] sm:$0xf]  ;;  %v535_v51 = vld [vmem:[%s2431_s12 + $0xc] sm:$0xf] }
  0x54   : > { %v2405_v25 = vunpack.c.l.b16 %v623_v5  ;;  %v2407_v26 = vunpack.c.l.b16 %v626_v11  ;;  %v2409_v27 = vunpack.c.l.b16 %v624_v6  ;;  %v2411_v28 = vunpack.c.l.b16 %v627_v12  ;;  %v536_v56 = vld [vmem:[%s2431_s12 + $0x10] sm:$0xf]  ;;  %v537_v57 = vld [vmem:[%s2431_s12 + $0x14] sm:$0xf]  ;;  %v538_v58 = vld [vmem:[%s2431_s12 + $0x18] sm:$0xf] }
  0x55   : > { %v2413_v29 = vunpack.c.l.b16 %v628_v13  ;;  %v2415_v30 = vunpack.c.l.b16 %v629_v15  ;;  %v2417_v31 = vunpack.c.l.b16 %v625_v10  ;;  %v2419_v32 = vunpack.c.l.b16 %v630_v16  ;;  %v539_v63 = vld [vmem:[%s2431_s12 + $0x1c] sm:$0xf]  ;;  %v540_v0 = vld [vmem:[%s2431_s12 + $0x20] sm:$0xf]  ;;  %v541_v4 = vld [vmem:[%s2431_s12 + $0x24] sm:$0xf] }
  0x56   : > { %v756_v33 = vrot.slane %v2393_v17, 7  ;;  %v758_v34 = vrot.slane %v2395_v18, 6  ;;  %v2423_v35 = vunpack.c.l.b16 %v631_v19  ;;  %v2425_v36 = vunpack.c.l.b16 %v632_v20  ;;  %v542_v5 = vld [vmem:[%s2431_s12 + $0x28] sm:$0xf]  ;;  %v543_v9 = vld [vmem:[%s2431_s12 + $0x2c] sm:$0xf] }
  0x57   : > { %v760_v37 = vrot.slane %v2397_v21, 5  ;;  %v762_v38 = vrot.slane %v2399_v22, 4  ;;  %v764_v42 = vrot.slane %v2403_v24, 3  ;;  %v770_v43 = vrot.slane %v2407_v26, 7  ;;  %v544_v10 = vld [vmem:[%s2431_s12 + $0x30] sm:$0xf] }
  0x58   : > { %v757_v41 = vsel %vm686_vm0, %v756_v33, %v2401_v23  ;;  %v772_v44 = vrot.slane %v2411_v28, 6  ;;  %v766_v48 = vrot.slane %v2405_v25, 2  ;;  %v774_v49 = vrot.slane %v2413_v29, 5  ;;  %v545_v16 = vld [vmem:[%s2431_s12 + $0x34] sm:$0xf]  ;;  %s2567_s24 = scalar_lea.vmem [#allocation4], %s2372_s22 }
  0x59   : > { %v759_v47 = vsel %vm689_vm1, %v758_v34, %v757_v41  ;;  %v776_v50 = vrot.slane %v2415_v30, 4  ;;  %v768_v53 = vrot.slane %v2409_v27, 1  ;;  %v771_v54 = vsel %vm686_vm0, %v770_v43, %v2417_v31  ;;  %v546_v19 = vld [vmem:[%s2431_s12 + $0x38] sm:$0xf]  ;;  %v547_v34 = vld [vmem:[%s2431_s12 + $0x3c] sm:$0xf] }
  0x5a   : > { %v761_v52 = vsel %vm692_vm2, %v760_v37, %v759_v47  ;;  %v778_v55 = vrot.slane %v2419_v32, 3  ;;  %v773_v60 = vsel %vm689_vm1, %v772_v44, %v771_v54  ;;  %v780_v61 = vrot.slane %v2423_v35, 2  ;;  %s3162_s15 = smov (!%p526_p8, %s1900_s15), 1 }
  0x5b   : > { %v763_v59 = vsel %vm695_vm3, %v762_v38, %v761_v52  ;;  %v2457_v62 = vpack.c.bf16 %v565_v39, %v565_v39  ;;  %v775_v2 = vsel %vm692_vm2, %v774_v49, %v773_v60  ;;  %v782_v3 = vrot.slane %v2425_v36, 1  ;;  %s2076_s28 = smul.u32 24, %s3162_s15 }
  0x5c   : > { %v765_v1 = vsel %vm698_vm4, %v764_v42, %v763_v59  ;;  %v583_v6 = vmul.f32 0.25, %v532_v40  ;;  %v777_v8 = vsel %vm695_vm3, %v776_v50, %v775_v2  ;;  %v584_v11 = vmul.f32 0.25, %v533_v45 }
  0x5d   : > { %v767_v7 = vsel %vm701_vm5, %v766_v48, %v765_v1  ;;  %v585_v12 = vmul.f32 0.25, %v534_v46  ;;  %v779_v14 = vsel %vm698_vm4, %v778_v55, %v777_v8  ;;  %v797_v15 = vsel %vm786_vm7, %v2457_v62, 0  ;;  %s530_s4 = scalar_lea.vmem %s3069_s3, %s2076_s28 }
  0x5e   : > { %v769_v13 = vsel %vm704_vm6, %v768_v53, %v767_v7  ;;  %v586_v20 = vmul.f32 0.25, %v535_v51  ;;  %v781_v33 = vsel %vm701_vm5, %v780_v61, %v779_v14  ;;  %v587_v37 = vmul.f32 0.25, %v536_v56 }
  0x5f   : > { %v588_v38 = vmul.f32 0.25, %v537_v57  ;;  %v589_v39 = vmul.f32 0.25, %v538_v58  ;;  %v783_v40 = vsel %vm704_vm6, %v782_v3, %v781_v33  ;;  %v590_v41 = vmul.f32 0.25, %v539_v63 }
  0x60   : > { %v591_v42 = vmul.f32 0.25, %v540_v0  ;;  %v592_v43 = vmul.f32 0.25, %v541_v4  ;;  %v784_v44 = vpack.c.b16 %v783_v40, %v769_v13  ;;  %v593_v45 = vmul.f32 0.25, %v542_v5 }
  0x61   : > { %v594_v46 = vmul.f32 0.25, %v543_v9  ;;  %v595_v47 = vmul.f32 0.25, %v544_v10  ;;  %v596_v48 = vmul.f32 0.25, %v545_v16  ;;  %v597_v49 = vmul.f32 0.25, %v546_v19 }
  0x62   : > { %v598_v50 = vmul.f32 0.25, %v547_v34  ;;  %v601_v52 = vpack.c.bf16 %v584_v11, %v584_v11  ;;  %2063 = vmatprep.subr.msk.bf16.mxu0 %vm786_vm7, %v784_v44  ;;  %v794_v51 = vsel %vm786_vm7, %v784_v44, 0  ;;  %v602_v53 = vpack.c.bf16 %v585_v12, %v585_v12 }
  0x63   : > { %v603_v54 = vpack.c.bf16 %v586_v20, %v586_v20  ;;  %v604_v55 = vpack.c.bf16 %v587_v37, %v587_v37  ;;  %2000 = vmatpush3.bf16.xpose.msra.mxu0 %v794_v51  ;;  %v600_v56 = vpack.c.bf16 %v583_v6, %v583_v6  ;;  %v605_v57 = vpack.c.bf16 %v588_v38, %v588_v38 }
  0x64   : > { %v606_v58 = vpack.c.bf16 %v589_v39, %v589_v39  ;;  %v607_v59 = vpack.c.bf16 %v590_v41, %v590_v41  ;;  %2064 = vmatprep.subr.msk.bf16.mxu0 %vm786_vm7, %v2457_v62  ;;  %v609_v60 = vpack.c.bf16 %v592_v43, %v592_v43  ;;  %v610_v61 = vpack.c.bf16 %v593_v45, %v593_v45 }
  0x65   : > { %v611_v63 = vpack.c.bf16 %v594_v46, %v594_v46  ;;  %v612_v0 = vpack.c.bf16 %v595_v47, %v595_v47  ;;  %v608_v1 = vpack.c.bf16 %v591_v42, %v591_v42  ;;  %v613_v2 = vpack.c.bf16 %v596_v48, %v596_v48 }
  0x66   : > { %v614_v3 = vpack.c.bf16 %v597_v49, %v597_v49  ;;  %v615_v4 = vpack.c.bf16 %v598_v50, %v598_v50  ;;  %v2483_v5 = vunpack.c.l.b16 %v601_v52  ;;  %v2485_v7 = vunpack.c.l.b16 %v602_v53  ;;  %v548_v50 = vld [vmem:[%s2431_s12 + $0x40] sm:$0xf] }
  0x67   : > { %v2487_v8 = vunpack.c.l.b16 %v603_v54  ;;  %v2489_v6 = vunpack.c.l.b16 %v604_v55  ;;  %v2491_v9 = vunpack.c.l.b16 %v600_v56  ;;  %v2493_v10 = vunpack.c.l.b16 %v605_v57 }
  0x68   : > { %v2495_v11 = vunpack.c.l.b16 %v606_v58  ;;  %v2497_v12 = vunpack.c.l.b16 %v607_v59  ;;  %v2499_v13 = vunpack.c.l.b16 %v609_v60  ;;  %v2501_v14 = vunpack.c.l.b16 %v610_v61 }
  0x69   : > { %v2503_v16 = vunpack.c.l.b16 %v611_v63  ;;  %v2505_v19 = vunpack.c.l.b16 %v612_v0  ;;  %v2507_v20 = vunpack.c.l.b16 %v608_v1  ;;  %v2509_v33 = vunpack.c.l.b16 %v613_v2 }
  0x6a   : > { %3101 = vst [vmem:[#allocation5_spill] sm:$0xff] %v2497_v12  ;;  %v2511_v34 = vunpack.c.l.b16 %v614_v3  ;;  %v685_v37 = vrot.slane %v2483_v5, 7  ;;  %v2514_v38 = vunpack.c.l.b16 %v615_v4  ;;  %v688_v39 = vrot.slane %v2485_v7, 6 }
  0x6b   : > { %3102 = vst [vmem:[#allocation6_spill] sm:$0xff] %v2503_v16  ;;  %v691_v40 = vrot.slane %v2487_v8, 5  ;;  %v694_v41 = vrot.slane %v2489_v6, 4  ;;  %2002 = vmatpush3.bf16.xpose.msra.mxu0 %v797_v15  ;;  %v697_v43 = vrot.slane %v2493_v10, 3  ;;  %v700_v44 = vrot.slane %v2495_v11, 2 }
  0x6c   : > { %3103 = vst [vmem:[#allocation7_spill] sm:$0xff] %v2514_v38  ;;  %v687_v42 = vsel %vm686_vm0, %v685_v37, %v2491_v9  ;;  %v706_v45 = vrot.slane %v2499_v13, 7  ;;  %v708_v47 = vrot.slane %v2501_v14, 6  ;;  %v710_v48 = vrot.slane %v2503_v16, 5 }
  0x6d   : > { %v690_v46 = vsel %vm689_vm1, %v688_v39, %v687_v42  ;;  %v712_v49 = vrot.slane %v2505_v19, 4  ;;  %v703_v52 = vrot.slane %v2497_v12, 1  ;;  %v714_v53 = vrot.slane %v2509_v33, 3 }
  0x6e   : > { %v693_v15 = vsel %vm692_vm2, %v691_v40, %v690_v46  ;;  %v707_v51 = vsel %vm686_vm0, %v706_v45, %v2507_v20  ;;  %v716_v56 = vrot.slane %v2511_v34, 2  ;;  %v718_v59 = vrot.slane %v2514_v38, 1 }
  0x6f   : > { %v696_v54 = vsel %vm695_vm3, %v694_v41, %v693_v15  ;;  %v709_v55 = vsel %vm689_vm1, %v708_v47, %v707_v51  ;;  %v599_v60 = vmul.f32 0.25, %v548_v50 }
  0x70   : > { %v699_v57 = vsel %vm698_vm4, %v697_v43, %v696_v54  ;;  %v711_v58 = vsel %vm692_vm2, %v710_v48, %v709_v55 }
  0x71   : > { %v702_v61 = vsel %vm701_vm5, %v700_v44, %v699_v57  ;;  %v713_v63 = vsel %vm695_vm3, %v712_v49, %v711_v58  ;;  %v2546_v4 = vpack.c.bf16 %v599_v60, %v599_v60  ;;  %v567_v60 = vld [vmem:[%s2567_s24 + $0x4] sm:$0xf] }
  0x72   : > { %v705_v0 = vsel %vm704_vm6, %v703_v52, %v702_v61  ;;  %v715_v1 = vsel %vm698_vm4, %v714_v53, %v713_v63  ;;  %v575_v61 = vld [vmem:[%s2567_s24 + $0x24] sm:$0xf]  ;;  %v568_v63 = vld [vmem:[%s2567_s24 + $0x8] sm:$0xf] }
  0x73   : > { %v717_v2 = vsel %vm701_vm5, %v716_v56, %v715_v1  ;;  %3104 = vst [vmem:[#allocation8_spill] sm:$0xff] %v2546_v4  ;;  %v635_v1 = vpack.c.bf16 %v567_v60, %v567_v60 }
  0x74   : > { %v719_v3 = vsel %vm704_vm6, %v718_v59, %v717_v2  ;;  %v566_v2 = vld [vmem:[%s2567_s24] sm:$0xf] }
  0x75   : > { %v720_v37 = vpack.c.b16 %v719_v3, %v705_v0  ;;  %v576_v0 = vld [vmem:[%s2567_s24 + $0x28] sm:$0xf]  ;;  %v569_v3 = vld [vmem:[%s2567_s24 + $0xc] sm:$0xf] }
  0x77   : > { %2003 = vmatprep.mubr.msk.bf16.mxu0 %vm786_vm7, %v720_v37  ;;  %v574_v37 = vld [vmem:[%s2567_s24 + $0x20] sm:$0xf] }
  0x78   : > { %2004 = vmatmul.mubr.msk.bf16.vlgmr.msra.gmra.mrb[0].mxu0 %vm786_vm7, %v2546_v4 }
 0x14b   : > { %v2005_v39 = vpop.f32.mrb[0].mxu0 }
 0x14c   : > { %v833_v40 = vpop.f32.mrb[1].mxu0  ;;  %v855_v41 = vsel %vm854_vm8, %v2005_v39, -inf }
 0x14d   : > { %856 = vmax.xlane.f32.xlu1 %v855_v41  ;;  %v2006_v42 = vpop.f32.mrb[2].mxu0  ;;  %v848_v43 = vsel %vm847_vm9, %v833_v40, -inf  ;;  %v644_v41 = vpack.c.bf16 %v576_v0, %v576_v0  ;;  %v573_v0 = vld [vmem:[%s2567_s24 + $0x1c] sm:$0xf] }
 0x14e   : > { %849 = vmax.xlane.f32.xlu0 %v848_v43  ;;  %v836_v44 = vpop.f32.mrb[3].mxu0  ;;  %v570_v42 = vld [vmem:[%s2567_s24 + $0x10] sm:$0xf]  ;;  %v577_v43 = vld [vmem:[%s2567_s24 + $0x2c] sm:$0xf] }
 0x14f   : > { %v851_v45 = vsel %vm847_vm9, %v836_v44, -inf }
 0x152   : > { %852 = vmax.xlane.f32.xlu0 %v851_v45  ;;  %v634_v45 = vpack.c.bf16 %v566_v2, %v566_v2  ;;  %v581_v2 = vld [vmem:[%s2567_s24 + $0x3c] sm:$0xf] }
 0x1da   : > { %v857_v46 = vpop.xlane.xlu1 %856 }
 0x1db   : > { %v860_v47 = vsub.f32 %v2005_v39, %v857_v46  ;;  %v850_v48 = vpop.xlane.xlu0 %849  ;;  %v636_v39 = vpack.c.bf16 %v568_v63, %v568_v63  ;;  %v637_v46 = vpack.c.bf16 %v569_v3, %v569_v3 }
 0x1dc   : > { %v858_v49 = vsub.f32 %v833_v40, %v850_v48  ;;  %v643_v40 = vpack.c.bf16 %v575_v61, %v575_v61  ;;  %v2579_v48 = vunpack.c.l.b16 %v635_v1  ;;  %v2587_v61 = vunpack.c.l.b16 %v634_v45 }
 0x1dd   : > { %v865_v50 = vmul.f32 1.442695, %v860_v47  ;;  %v642_v47 = vpack.c.bf16 %v574_v37, %v574_v37  ;;  %v2589_v63 = vunpack.c.l.b16 %v637_v46  ;;  %v2603_v45 = vunpack.c.l.b16 %v644_v41 }
 0x1de   : > { %v861_v15 = vmul.f32 1.442695, %v858_v49  ;;  %3105 = vst [vmem:[#allocation9_spill] sm:$0xff] %v2579_v48  ;;  %v571_v49 = vld [vmem:[%s2567_s24 + $0x14] sm:$0xf] }
 0x1df   : > { %v853_v52 = vpop.xlane.xlu0 %852  ;;  %3107 = vst [vmem:[#allocation11_spill] sm:$0xff] %v2589_v63  ;;  %v2595_v4 = vunpack.c.l.b16 %v642_v47  ;;  %3112 = vst [vmem:[#allocation16_spill] sm:$0xff] %v2603_v45 }
 0x1e0   : > { %2105 = vpow2.f32 %v861_v15  ;;  %v859_v51 = vsub.f32 %v836_v44, %v853_v52  ;;  %v578_v44 = vld [vmem:[%s2567_s24 + $0x30] sm:$0xf]  ;;  %v638_v15 = vpack.c.bf16 %v570_v42, %v570_v42  ;;  %v645_v52 = vpack.c.bf16 %v577_v43, %v577_v43 }
 0x1e1   : > { %2107 = vpow2.f32 %v865_v50  ;;  %v579_v50 = vld [vmem:[%s2567_s24 + $0x34] sm:$0xf]  ;;  %v641_v42 = vpack.c.bf16 %v573_v0, %v573_v0  ;;  %v649_v43 = vpack.c.bf16 %v581_v2, %v581_v2  ;;  %v922_v0 = vrot.slane %v2589_v63, 5 }
 0x1e2   : > { %v863_v53 = vmul.f32 1.442695, %v859_v51  ;;  %v646_v51 = vpack.c.bf16 %v578_v44, %v578_v44  ;;  %v647_v60 = vpack.c.bf16 %v579_v50, %v579_v50  ;;  %v2593_v37 = vunpack.c.l.b16 %v638_v15 }
 0x1e3   : > { %v2599_v44 = vunpack.c.l.b16 %v643_v40  ;;  %v2605_v46 = vunpack.c.l.b16 %v645_v52 }
 0x1e4   : > { %2109 = vpow2.f32 %v863_v53  ;;  %v2583_v53 = vunpack.c.l.b16 %v636_v39  ;;  %3108 = vst [vmem:[#allocation12_spill] sm:$0xff] %v2593_v37  ;;  %v2607_v50 = vunpack.c.l.b16 %v646_v51  ;;  %v2611_v15 = vunpack.c.l.b16 %v647_v60 }
 0x1e5   : > { %3110 = vst [vmem:[#allocation14_spill] sm:$0xff] %v2599_v44  ;;  %3113 = vst [vmem:[#allocation17_spill] sm:$0xff] %v2605_v46  ;;  %v924_v41 = vrot.slane %v2593_v37, 4  ;;  %v932_v2 = vrot.slane %v2599_v44, 7 }
 0x1e6   : > { %3106 = vst [vmem:[#allocation10_spill] sm:$0xff] %v2583_v53  ;;  %3114 = vst [vmem:[#allocation18_spill] sm:$0xff] %v2607_v50  ;;  %v920_v40 = vrot.slane %v2583_v53, 6 }
 0x1e7   : > { %3116 = vst [vmem:[#allocation20_spill] sm:$0xff] %v2611_v15 }
 0x1ea   : > { %v2554_v54 = vpop.eup %2105 }
 0x1eb   : > { %v867_v55 = vsel %vm847_vm9, %v2554_v54, 0.0  ;;  %v2558_v56 = vpop.eup %2107 }
 0x1ec   : > { %868 = vadd.xlane.f32.xlu1 %v867_v55  ;;  %v873_v58 = vsel %vm854_vm8, %v2558_v56, 0.0  ;;  %v572_v55 = vld [vmem:[%s2567_s24 + $0x18] sm:$0xf] }
 0x1ed   : > { %v640_v3 = vpack.c.bf16 %v572_v55, %v572_v55  ;;  %v2609_v55 = vunpack.c.l.b16 %v641_v42  ;;  %v936_v42 = vrot.slane %v2605_v46, 5 }
 0x1ee   : > { %v2560_v57 = vpop.eup %2109 }
 0x1ef   : > { %v870_v59 = vsel %vm847_vm9, %v2560_v57, 0.0  ;;  %3115 = vst [vmem:[#allocation19_spill] sm:$0xff] %v2609_v55  ;;  %v930_v60 = vrot.slane %v2609_v55, 1 }
 0x1f0   : > { %874 = vadd.xlane.f32.xlu1 %v873_v58  ;;  %871 = vadd.xlane.f32.xlu0 %v870_v59  ;;  %v580_v58 = vld [vmem:[%s2567_s24 + $0x38] sm:$0xf]  ;;  %v639_v59 = vpack.c.bf16 %v571_v49, %v571_v49  ;;  %v2601_v49 = vunpack.c.l.b16 %v640_v3 }
 0x1f1   : > { %v648_v1 = vpack.c.bf16 %v580_v58, %v580_v58  ;;  %v2615_v58 = vunpack.c.l.b16 %v649_v43  ;;  %v938_v43 = vrot.slane %v2607_v50, 4 }
 0x1f2   : > { %v2597_v39 = vunpack.c.l.b16 %v639_v59  ;;  %3111 = vst [vmem:[#allocation15_spill] sm:$0xff] %v2601_v49  ;;  %v918_v59 = vrot.slane %v2579_v48, 7  ;;  %v928_v51 = vrot.slane %v2601_v49, 2  ;;  %v940_v49 = vrot.slane %v2611_v15, 3  ;;  %v582_v48 = vld [vmem:[%s2567_s24 + $0x40] sm:$0xf] }
 0x1f3   : > { %v2613_v47 = vunpack.c.l.b16 %v648_v1  ;;  %v934_v1 = vrot.slane %v2603_v45, 6  ;;  %v2177_v15 = vmov 0  }
 0x1f4   : > { %3109 = vst [vmem:[#allocation13_spill] sm:$0xff] %v2597_v39  ;;  %v926_v52 = vrot.slane %v2597_v39, 3  ;;  %v919_v3 = vsel %vm686_vm0, %v918_v59, %v2587_v61  ;;  %v933_v39 = vsel %vm686_vm0, %v932_v2, %v2595_v4  ;;  %v944_v59 = vrot.slane %v2615_v58, 1 }
 0x1f5   : > { %3117 = vst [vmem:[#allocation21_spill] sm:$0xff] %v2613_v47  ;;  %v921_v37 = vsel %vm689_vm1, %v920_v40, %v919_v3  ;;  %v942_v55 = vrot.slane %v2613_v47, 2  ;;  %v935_v63 = vsel %vm689_vm1, %v934_v1, %v933_v39  ;;  %v2641_v40 = vpack.c.bf16 %v582_v48, %v582_v48 }
 0x1f6   : > { %v923_v44 = vsel %vm692_vm2, %v922_v0, %v921_v37  ;;  %v937_v50 = vsel %vm692_vm2, %v936_v42, %v935_v63  ;;  %v2645_v47 = vsel %vm955_vm10, 65535, %v2177_v15  ;;  %v1054_v48 = vrot.slane %v2417_v31, 1 }
 0x1f7   : > { %v925_v46 = vsel %vm695_vm3, %v924_v41, %v923_v44  ;;  %v939_v3 = vsel %vm695_vm3, %v938_v43, %v937_v50  ;;  %v1040_v44 = vrot.slane %v2401_v23, 1  ;;  %v1042_v50 = vrot.slane %v2395_v18, 7 }
 0x1f8   : > { %v927_v2 = vsel %vm698_vm4, %v926_v52, %v925_v46  ;;  %v941_v39 = vsel %vm698_vm4, %v940_v49, %v939_v3  ;;  %v959_v46 = vand.u32 %v2645_v47, %v2641_v40  ;;  %v1056_v15 = vrot.slane %v2411_v28, 7 }
 0x1f9   : > { %v929_v37 = vsel %vm701_vm5, %v928_v51, %v927_v2  ;;  %v943_v1 = vsel %vm701_vm5, %v942_v55, %v941_v39  ;;  %v1041_v49 = vsel %vm686_vm0, %v2393_v17, %v1040_v44  ;;  %v1044_v52 = vrot.slane %v2397_v21, 6 }
 0x1fa   : > { %v931_v0 = vsel %vm704_vm6, %v930_v60, %v929_v37  ;;  %v945_v63 = vsel %vm704_vm6, %v944_v59, %v943_v1  ;;  %v1055_v55 = vsel %vm686_vm0, %v2407_v26, %v1054_v48  ;;  %v1043_v51 = vsel %vm689_vm1, %v1042_v50, %v1041_v49 }
 0x1fb   : > { %v946_v41 = vpack.c.b16 %v945_v63, %v931_v0  ;;  %v1046_v60 = vrot.slane %v2399_v22, 5  ;;  %v1057_v42 = vsel %vm689_vm1, %v1056_v15, %v1055_v55  ;;  %v1058_v43 = vrot.slane %v2413_v29, 6 }
 0x1fc   : > { %v1045_v59 = vsel %vm692_vm2, %v1044_v52, %v1043_v51  ;;  %v1048_v2 = vrot.slane %v2403_v24, 4  ;;  %v1060_v3 = vrot.slane %v2415_v30, 5  ;;  %v1062_v37 = vrot.slane %v2419_v32, 4 }
 0x1fd   : > { %2007 = vmatprep.subr.bf16.mxu1 %v946_v41  ;;  %v1047_v39 = vsel %vm695_vm3, %v1046_v60, %v1045_v59  ;;  %v1050_v0 = vrot.slane %v2405_v25, 3  ;;  %v1059_v1 = vsel %vm692_vm2, %v1058_v43, %v1057_v42  ;;  %v1064_v44 = vrot.slane %v2423_v35, 3 }
 0x1fe   : > { %2008 = vmatpush3.bf16.msra.mxu1 %v946_v41  ;;  %v1049_v48 = vsel %vm698_vm4, %v1048_v2, %v1047_v39  ;;  %v1052_v63 = vrot.slane %v2409_v27, 2  ;;  %v1061_v50 = vsel %vm695_vm3, %v1060_v3, %v1059_v1  ;;  %v1066_v15 = vrot.slane %v2425_v36, 2 }
 0x1ff   : > { %2009 = vmatprep.subr.bf16.mxu1 %v959_v46  ;;  %v1051_v49 = vsel %vm701_vm5, %v1050_v0, %v1049_v48  ;;  %v1063_v41 = vsel %vm698_vm4, %v1062_v37, %v1061_v50  ;;  %v1009_v42 = vrot.slane %v2491_v9, 1  ;;  %v1023_v43 = vrot.slane %v2507_v20, 1 }
 0x200   : > { %v1053_v52 = vsel %vm704_vm6, %v1052_v63, %v1051_v49  ;;  %v1065_v55 = vsel %vm701_vm5, %v1064_v44, %v1063_v41  ;;  %v1011_v59 = vrot.slane %v2485_v7, 7  ;;  %v1025_v2 = vrot.slane %v2501_v14, 7 }
 0x201   : > { %v1067_v51 = vsel %vm704_vm6, %v1066_v15, %v1065_v55  ;;  %v1010_v3 = vsel %vm686_vm0, %v2483_v5, %v1009_v42  ;;  %v1024_v37 = vsel %vm686_vm0, %v2499_v13, %v1023_v43  ;;  %v1013_v39 = vrot.slane %v2487_v8, 6 }
 0x202   : > { %2010 = vmatpush3.bf16.msra.mxu1 %v959_v46  ;;  %v1069_v60 = vpack.c.b16 %v1067_v51, %v1053_v52  ;;  %v1027_v0 = vrot.slane %v2503_v16, 6  ;;  %v1012_v1 = vsel %vm689_vm1, %v1011_v59, %v1010_v3  ;;  %v1026_v44 = vsel %vm689_vm1, %v1025_v2, %v1024_v37 }
 0x203   : > { %v1015_v48 = vrot.slane %v2489_v6, 5  ;;  %v1029_v63 = vrot.slane %v2505_v19, 5  ;;  %v1014_v49 = vsel %vm692_vm2, %v1013_v39, %v1012_v1  ;;  %v1017_v52 = vrot.slane %v2493_v10, 4 }
 0x204   : > { %2065 = vmatprep.subr.msk.bf16.mxu1 %vm786_vm7, %v1069_v60  ;;  %v1028_v41 = vsel %vm692_vm2, %v1027_v0, %v1026_v44  ;;  %v1031_v55 = vrot.slane %v2509_v33, 4  ;;  %v1019_v43 = vrot.slane %v2495_v11, 3  ;;  %v1033_v59 = vrot.slane %v2511_v34, 3 }
 0x205   : > { %v1016_v51 = vsel %vm695_vm3, %v1015_v48, %v1014_v49  ;;  %v1030_v42 = vsel %vm695_vm3, %v1029_v63, %v1028_v41  ;;  %v2710_v37 = vunpack.c.l.b16 %v2457_v62  ;;  %v1035_v39 = vrot.slane %v2514_v38, 2 }
 0x206   : > { %v1018_v2 = vsel %vm698_vm4, %v1017_v52, %v1016_v51  ;;  %v1032_v3 = vsel %vm698_vm4, %v1031_v55, %v1030_v42 }
 0x207   : > { %v1020_v0 = vsel %vm701_vm5, %v1019_v43, %v1018_v2  ;;  %v1034_v1 = vsel %vm701_vm5, %v1033_v59, %v1032_v3  ;;  %v1078_v43 = vsel %vm786_vm7, %v1069_v60, 0 }
 0x208   : > { %v1036_v62 = vsel %vm704_vm6, %v1035_v39, %v1034_v1 }
 0x279   : > { %v869_v46 = vpop.xlane.xlu1 %868 }
 0x27a   : > { %2111 = vrcp.f32 %v869_v46  ;;  %v1021_v46 = vrot.slane %v2497_v12, 2 }
 0x27c   : > { %v1022_v49 = vsel %vm704_vm6, %v1021_v46, %v1020_v0 }
 0x27d   : > { %v875_v50 = vpop.xlane.xlu1 %874  ;;  %v872_v15 = vpop.xlane.xlu0 %871  ;;  %v1038_v42 = vpack.c.b16 %v1036_v62, %v1022_v49 }
 0x27e   : > { %2113 = vrcp.f32 %v875_v50 }
 0x27f   : > { %2115 = vrcp.f32 %v872_v15  ;;  %v1068_v15 = vrot.slane %v2710_v37, 1 }
 0x281   : > { %v1070_v59 = vpack.c.b16 %v1068_v15, %v1068_v15 }
 0x284   : > { %v2112_v44 = vpop.eup %2111 }
 0x285   : > { %v879_v41 = vmul.f32 %v2112_v44, %v2554_v54  ;;  %v1081_v54 = vsel %vm786_vm7, %v1070_v59, 0 }
 0x288   : > { %v2114_v48 = vpop.eup %2113 }
 0x289   : > { %v2116_v63 = vpop.eup %2115  ;;  %v881_v50 = vmul.f32 %v2114_v48, %v2558_v56  ;;  %v3118_v56 = vld [vmem:[#allocation8_spill] sm:$0xff] }
 0x28a   : > { %v880_v52 = vmul.f32 %v2116_v63, %v2560_v57  ;;  %v2728_v2 = vunpack.c.l.b16 %v3118_v56 }
 0x28b   : > { %v883_v55 = vpack.c.bf16 %v881_v50, %v881_v50 }
 0x28c   : > { %v882_v51 = vpack.c.bf16 %v880_v52, %v879_v41  ;;  %v1037_v57 = vrot.slane %v2728_v2, 1 }
 0x28e   : > { %2011 = vmatprep.mubr.msk.bf16.mxu1 %vm847_vm9, %v882_v51  ;;  %v1039_v3 = vpack.c.b16 %v1037_v57, %v1037_v57 }
 0x28f   : > { %2012 = vmatmul.mubr.msk.bf16.vlgmr.msra.gmra.mrb[0].mxu1 %vm847_vm9, %v883_v55 }
 0x290   : > { %2016 = vmatpush3.bf16.xpose.msra.mxu1 %v1078_v43  ;;  %2019 = vmatprep.mubr.msk.bf16.mxu1 %vm786_vm7, %v1038_v42 }
 0x291   : > { %2066 = vmatprep.subr.msk.bf16.mxu1 %vm786_vm7, %v1070_v59 }
 0x298   : > { %2018 = vmatpush3.bf16.xpose.msra.mxu1 %v1081_v54 }
 0x29f   : > { %2020 = vmatmul.mubr.msk.bf16.vlgmr.msra.gmra.mrb[4].mxu1 %vm786_vm7, %v1039_v3 }
 0x362   : > { %v2733_v60 = vpop.f32.mrb[0].mxu1 }
 0x363   : > { %3119 = vst [vmem:[#allocation8_spill] sm:$0xff] %v2733_v60  ;;  %v2735_v46 = vpop.f32.mrb[1].mxu1 }
 0x364   : > { %3120 = vst [vmem:[#allocation22_spill] sm:$0xff] %v2735_v46  ;;  %v2014_v39 = vpop.f32.mrb[2].mxu1  ;;  %v3128_v46 = vld [vmem:[#allocation13_spill] sm:$0xff] }
 0x365   : > { %v2737_v0 = vpop.f32.mrb[3].mxu1 }
 0x366   : > { %3121 = vst [vmem:[#allocation23_spill] sm:$0xff] %v2737_v0 }
 0x372   : > { %v2021_v1 = vpop.f32.mrb[4].mxu1 }
 0x373   : > { %v1117_v44 = vpop.f32.mrb[5].mxu1  ;;  %v1137_v49 = vsel %vm854_vm8, %v2021_v1, -inf }
 0x374   : > { %v2022_v48 = vpop.f32.mrb[6].mxu1  ;;  %v1131_v63 = vsel %vm847_vm9, %v1117_v44, -inf }
 0x375   : > { %1132 = vmax.xlane.f32.xlu0 %v1131_v63  ;;  %v1120_v50 = vpop.f32.mrb[7].mxu1  ;;  %v1166_v48 = vrot.slane %v2587_v61, 1  ;;  %v1180_v63 = vrot.slane %v2595_v4, 1 }
 0x376   : > { %v1134_v15 = vsel %vm847_vm9, %v1120_v50, -inf }
 0x377   : > { %1135 = vmax.xlane.f32.xlu1 %v1134_v15  ;;  %v1168_v15 = vrot.slane %v2583_v53, 7  ;;  %v3129_v53 = vld [vmem:[#allocation20_spill] sm:$0xff] }
 0x379   : > { %1138 = vmax.xlane.f32.xlu0 %v1137_v49  ;;  %v1182_v49 = vrot.slane %v2603_v45, 7  ;;  %v1174_v45 = vrot.slane %v3128_v46, 4 }
 0x402   : > { %v1133_v62 = vpop.xlane.xlu0 %1132 }
 0x403   : > { %v1140_v41 = vsub.f32 %v1117_v44, %v1133_v62  ;;  %v3122_v62 = vld [vmem:[#allocation9_spill] sm:$0xff] }
 0x404   : > { %v1136_v52 = vpop.xlane.xlu1 %1135 }
 0x405   : > { %v1143_v55 = vmul.f32 1.442695, %v1140_v41  ;;  %v1141_v51 = vsub.f32 %v1120_v50, %v1136_v52  ;;  %v2757_v50 = vunpack.c.l.b16 %v2641_v40  ;;  %v1167_v41 = vsel %vm686_vm0, %v3122_v62, %v1166_v48  ;;  %v3123_v52 = vld [vmem:[#allocation11_spill] sm:$0xff] }
 0x406   : > { %v1139_v42 = vpop.xlane.xlu0 %1138 }
 0x407   : > { %2117 = vpow2.f32 %v1143_v55  ;;  %v1145_v43 = vmul.f32 1.442695, %v1141_v51  ;;  %v1142_v59 = vsub.f32 %v2021_v1, %v1139_v42  ;;  %v1170_v55 = vrot.slane %v3123_v52, 6  ;;  %v3124_v51 = vld [vmem:[#allocation14_spill] sm:$0xff] }
 0x408   : > { %v1181_v42 = vsel %vm686_vm0, %v3124_v51, %v1180_v63  ;;  %v1188_v52 = vrot.slane %v3129_v53, 4  ;;  %v3130_v51 = vld [vmem:[#allocation15_spill] sm:$0xff] }
 0x409   : > { %2119 = vpow2.f32 %v1145_v43  ;;  %v1147_v56 = vmul.f32 1.442695, %v1142_v59  ;;  %v3125_v43 = vld [vmem:[#allocation17_spill] sm:$0xff]  ;;  %v1183_v40 = vsel %vm689_vm1, %v1182_v49, %v1181_v42  ;;  %v3132_v42 = vld [vmem:[#allocation19_spill] sm:$0xff] }
 0x40a   : > { %v1184_v59 = vrot.slane %v3125_v43, 6  ;;  %v1176_v43 = vrot.slane %v3130_v51, 3 }
 0x40b   : > { %2121 = vpow2.f32 %v1147_v56  ;;  %v1169_v56 = vsel %vm689_vm1, %v1168_v15, %v1167_v41  ;;  %v3131_v41 = vld [vmem:[#allocation21_spill] sm:$0xff] }
 0x40c   : > { %v1171_v0 = vsel %vm692_vm2, %v1170_v55, %v1169_v56  ;;  %v1185_v48 = vsel %vm692_vm2, %v1184_v59, %v1183_v40  ;;  %v1192_v56 = vrot.slane %v2615_v58, 2 }
 0x411   : > { %v2742_v54 = vpop.eup %2117 }
 0x412   : > { %v1149_v57 = vsel %vm847_vm9, %v2742_v54, 0.0 }
 0x413   : > { %v2746_v3 = vpop.eup %2119  ;;  %1150 = vadd.xlane.f32.xlu1 %v1149_v57  ;;  %v3126_v57 = vld [vmem:[#allocation12_spill] sm:$0xff] }
 0x414   : > { %v1152_v39 = vsel %vm847_vm9, %v2746_v3, 0.0 }
 0x415   : > { %v2750_v44 = vpop.eup %2121  ;;  %1153 = vadd.xlane.f32.xlu0 %v1152_v39  ;;  %v1172_v39 = vrot.slane %v3126_v57, 5  ;;  %v1190_v57 = vrot.slane %v3131_v41, 3 }
 0x416   : > { %v1155_v1 = vsel %vm854_vm8, %v2750_v44, 0.0 }
 0x417   : > { %1156 = vadd.xlane.f32.xlu1 %v1155_v1  ;;  %v3127_v1 = vld [vmem:[#allocation18_spill] sm:$0xff]  ;;  %v1173_v63 = vsel %vm695_vm3, %v1172_v39, %v1171_v0 }
 0x418   : > { %v1186_v60 = vrot.slane %v3127_v1, 5  ;;  %v1175_v49 = vsel %vm698_vm4, %v1174_v45, %v1173_v63  ;;  %v1178_v1 = vrot.slane %v3132_v42, 2  ;;  %v1287_v63 = vrot.slane %v2393_v17, 1 }
 0x419   : > { %v1177_v59 = vsel %vm701_vm5, %v1176_v43, %v1175_v49  ;;  %v1300_v43 = vrot.slane %v2417_v31, 2  ;;  %v1304_v49 = vrot.slane %v2413_v29, 7 }
 0x41a   : > { %v1187_v15 = vsel %vm695_vm3, %v1186_v60, %v1185_v48  ;;  %v1179_v0 = vsel %vm704_vm6, %v1178_v1, %v1177_v59  ;;  %v1194_v60 = vrot.slane %v2757_v50, 1  ;;  %v1306_v59 = vrot.slane %v2415_v30, 6 }
 0x41b   : > { %v1189_v55 = vsel %vm698_vm4, %v1188_v52, %v1187_v15  ;;  %v1286_v52 = vrot.slane %v2401_v23, 2  ;;  %v1290_v15 = vrot.slane %v2397_v21, 7 }
 0x41c   : > { %v1191_v40 = vsel %vm701_vm5, %v1190_v57, %v1189_v55  ;;  %v1196_v48 = vpack.c.b16 %v1194_v60, %v1194_v60  ;;  %v1301_v57 = vrot.slane %v2407_v26, 1  ;;  %v1292_v55 = vrot.slane %v2399_v22, 6 }
 0x41d   : > { %v1193_v39 = vsel %vm704_vm6, %v1192_v56, %v1191_v40  ;;  %v1288_v1 = vsel %vm686_vm0, %v1287_v63, %v1286_v52  ;;  %v1308_v60 = vrot.slane %v2419_v32, 5  ;;  %v1310_v63 = vrot.slane %v2423_v35, 4 }
 0x41e   : > { %v1195_v51 = vpack.c.b16 %v1193_v39, %v1179_v0  ;;  %v1205_v45 = vand.u32 %v1196_v48, %v2645_v47  ;;  %v1302_v56 = vsel %vm686_vm0, %v1301_v57, %v1300_v43  ;;  %v1294_v0 = vrot.slane %v2403_v24, 5 }
 0x41f   : > { %v1303_v39 = vsel %vm689_vm1, %v2411_v28, %v1302_v56  ;;  %v1298_v57 = vrot.slane %v2409_v27, 3 }
 0x420   : > { %2023 = vmatprep.subr.bf16.mxu0 %v1195_v51  ;;  %v1305_v52 = vsel %vm692_vm2, %v1304_v49, %v1303_v39 }
 0x421   : > { %2024 = vmatpush3.bf16.msra.mxu0 %v1195_v51  ;;  %v1289_v51 = vsel %vm689_vm1, %v2395_v18, %v1288_v1  ;;  %v1307_v1 = vsel %vm695_vm3, %v1306_v59, %v1305_v52  ;;  %v1269_v59 = vrot.slane %v2507_v20, 2  ;;  %v1270_v52 = vrot.slane %v2499_v13, 1 }
 0x422   : > { %2025 = vmatprep.subr.bf16.mxu0 %v1205_v45  ;;  %v1291_v40 = vsel %vm692_vm2, %v1290_v15, %v1289_v51  ;;  %v1312_v15 = vrot.slane %v2425_v36, 3  ;;  %v1309_v56 = vsel %vm698_vm4, %v1308_v60, %v1307_v1 }
 0x423   : > { %v1293_v48 = vsel %vm695_vm3, %v1292_v55, %v1291_v40  ;;  %v1311_v40 = vsel %vm701_vm5, %v1310_v63, %v1309_v56  ;;  %v1271_v60 = vsel %vm686_vm0, %v1270_v52, %v1269_v59  ;;  %v1273_v63 = vrot.slane %v2503_v16, 7 }
 0x424   : > { %v1295_v43 = vsel %vm698_vm4, %v1294_v0, %v1293_v48  ;;  %v1313_v49 = vsel %vm704_vm6, %v1312_v15, %v1311_v40  ;;  %v1255_v0 = vrot.slane %v2491_v9, 2  ;;  %v1256_v48 = vrot.slane %v2483_v5, 1 }
 0x425   : > { %2026 = vmatpush3.bf16.msra.mxu0 %v1205_v45  ;;  %v1296_v45 = vrot.slane %v2405_v25, 4  ;;  %v1272_v1 = vsel %vm689_vm1, %v2501_v14, %v1271_v60  ;;  %v1275_v56 = vrot.slane %v2505_v19, 6  ;;  %v1277_v59 = vrot.slane %v2509_v33, 5 }
 0x426   : > { %v1265_v60 = vrot.slane %v2495_v11, 4 }
 0x427   : > { %v1297_v51 = vsel %vm701_vm5, %v1296_v45, %v1295_v43  ;;  %v1257_v45 = vsel %vm686_vm0, %v1256_v48, %v1255_v0  ;;  %v1259_v43 = vrot.slane %v2487_v8, 7  ;;  %v1263_v48 = vrot.slane %v2493_v10, 5 }
 0x428   : > { %v1299_v55 = vsel %vm704_vm6, %v1298_v57, %v1297_v51  ;;  %v1258_v57 = vsel %vm689_vm1, %v2485_v7, %v1257_v45  ;;  %v1261_v51 = vrot.slane %v2489_v6, 6 }
 0x429   : > { %v1315_v39 = vpack.c.b16 %v1313_v49, %v1299_v55  ;;  %v1260_v40 = vsel %vm692_vm2, %v1259_v43, %v1258_v57  ;;  %v1274_v49 = vsel %vm692_vm2, %v1273_v63, %v1272_v1  ;;  %v1267_v63 = vrot.slane %v2497_v12, 3 }
 0x42a   : > { %v1262_v52 = vsel %vm695_vm3, %v1261_v51, %v1260_v40  ;;  %v1276_v45 = vsel %vm695_vm3, %v1275_v56, %v1274_v49  ;;  %v1281_v57 = vrot.slane %v2514_v38, 3  ;;  %v1314_v56 = vrot.slane %v2710_v37, 2 }
 0x42b   : > { %2067 = vmatprep.subr.msk.bf16.mxu0 %vm786_vm7, %v1315_v39  ;;  %v1264_v16 = vsel %vm698_vm4, %v1263_v48, %v1262_v52  ;;  %v1278_v43 = vsel %vm698_vm4, %v1277_v59, %v1276_v45 }
 0x4a0   : > { %v1151_v15 = vpop.xlane.xlu1 %1150 }
 0x4a1   : > { %2123 = vrcp.f32 %v1151_v15  ;;  %v1279_v15 = vrot.slane %v2511_v34, 4 }
 0x4a2   : > { %v1154_v55 = vpop.xlane.xlu0 %1153 }
 0x4a3   : > { %2125 = vrcp.f32 %v1154_v55  ;;  %v1266_v55 = vsel %vm701_vm5, %v1265_v60, %v1264_v16  ;;  %v1324_v60 = vsel %vm786_vm7, %v1315_v39, 0 }
 0x4a4   : > { %v1157_v0 = vpop.xlane.xlu1 %1156  ;;  %v1268_v48 = vsel %vm704_vm6, %v1267_v63, %v1266_v55 }
 0x4a5   : > { %2127 = vrcp.f32 %v1157_v0  ;;  %v1280_v0 = vsel %vm701_vm5, %v1279_v15, %v1278_v43  ;;  %v1316_v15 = vpack.c.b16 %v1314_v56, %v1314_v56 }
 0x4a6   : > { %v1282_v59 = vsel %vm704_vm6, %v1281_v57, %v1280_v0 }
 0x4a7   : > { %v1284_v12 = vpack.c.b16 %v1282_v59, %v1268_v48 }
 0x4ab   : > { %v2124_v1 = vpop.eup %2123 }
 0x4ac   : > { %v1161_v40 = vmul.f32 %v2124_v1, %v2742_v54  ;;  %v1327_v54 = vsel %vm786_vm7, %v1316_v15, 0 }
 0x4ad   : > { %v2126_v51 = vpop.eup %2125 }
 0x4ae   : > { %v1162_v49 = vmul.f32 %v2126_v51, %v2746_v3  ;;  %v1283_v3 = vrot.slane %v2728_v2, 2 }
 0x4af   : > { %v2128_v52 = vpop.eup %2127 }
 0x4b0   : > { %v1163_v45 = vmul.f32 %v2128_v52, %v2750_v44  ;;  %v1164_v38 = vpack.c.bf16 %v1162_v49, %v1161_v40  ;;  %v1285_v44 = vpack.c.b16 %v1283_v3, %v1283_v3 }
 0x4b2   : > { %2027 = vmatprep.mubr.msk.bf16.mxu0 %vm847_vm9, %v1164_v38  ;;  %v1165_v16 = vpack.c.bf16 %v1163_v45, %v1163_v45 }
 0x4b4   : > { %2028 = vmatmul.mubr.msk.bf16.vlgmr.msra.gmra.mrb[4].mxu0 %vm847_vm9, %v1165_v16 }
 0x4b5   : > { %2032 = vmatpush3.bf16.xpose.msra.mxu0 %v1324_v60  ;;  %2035 = vmatprep.mubr.msk.bf16.mxu0 %vm786_vm7, %v1284_v12 }
 0x4b6   : > { %2068 = vmatprep.subr.msk.bf16.mxu0 %vm786_vm7, %v1316_v15 }
 0x4bd   : > { %2034 = vmatpush3.bf16.xpose.msra.mxu0 %v1327_v54 }
 0x4c4   : > { %2036 = vmatmul.mubr.msk.bf16.vlgmr.msra.gmra.mrb[8].mxu0 %vm786_vm7, %v1285_v44 }
 0x587   : > { %v2862_v38 = vpop.f32.mrb[4].mxu0 }
 0x588   : > { %3133 = vst [vmem:[#allocation9_spill] sm:$0xff] %v2862_v38  ;;  %v2864_v43 = vpop.f32.mrb[5].mxu0  ;;  %v3142_v38 = vld [vmem:[#allocation18_spill] sm:$0xff] }
 0x589   : > { %3134 = vst [vmem:[#allocation13_spill] sm:$0xff] %v2864_v43  ;;  %v2030_v39 = vpop.f32.mrb[6].mxu0  ;;  %v1432_v43 = vrot.slane %v3142_v38, 6  ;;  %v1424_v38 = vrot.slane %v3132_v42, 3 }
 0x58a   : > { %v2866_v63 = vpop.f32.mrb[7].mxu0 }
 0x58b   : > { %3135 = vst [vmem:[#allocation20_spill] sm:$0xff] %v2866_v63 }
 0x597   : > { %v2037_v57 = vpop.f32.mrb[8].mxu0 }
 0x598   : > { %v1363_v1 = vpop.f32.mrb[9].mxu0  ;;  %v1383_v56 = vsel %vm854_vm8, %v2037_v57, -inf }
 0x599   : > { %v2038_v12 = vpop.f32.mrb[10].mxu0  ;;  %v1377_v55 = vsel %vm847_vm9, %v1363_v1, -inf }
 0x59a   : > { %1378 = vmax.xlane.f32.xlu0 %v1377_v55  ;;  %v1366_v0 = vpop.f32.mrb[11].mxu0  ;;  %v1412_v12 = vrot.slane %v2587_v61, 2  ;;  %v1413_v55 = vrot.slane %v3122_v62, 1 }
 0x59b   : > { %v1380_v51 = vsel %vm847_vm9, %v1366_v0, -inf }
 0x59c   : > { %1381 = vmax.xlane.f32.xlu1 %v1380_v51  ;;  %v3136_v51 = vld [vmem:[#allocation14_spill] sm:$0xff] }
 0x59e   : > { %1384 = vmax.xlane.f32.xlu0 %v1383_v56  ;;  %v1427_v56 = vrot.slane %v3136_v51, 1 }
 0x627   : > { %v1379_v40 = vpop.xlane.xlu0 %1378 }
 0x628   : > { %v1386_v49 = vsub.f32 %v1363_v1, %v1379_v40  ;;  %v1414_v40 = vsel %vm686_vm0, %v1413_v55, %v1412_v12  ;;  %v1420_v12 = vrot.slane %v3128_v46, 5 }
 0x629   : > { %v1382_v48 = vpop.xlane.xlu1 %1381 }
 0x62a   : > { %v1389_v59 = vmul.f32 1.442695, %v1386_v49  ;;  %v1387_v52 = vsub.f32 %v1366_v0, %v1382_v48  ;;  %v1426_v0 = vrot.slane %v2595_v4, 2  ;;  %v3137_v49 = vld [vmem:[#allocation11_spill] sm:$0xff] }
 0x62b   : > { %v1385_v45 = vpop.xlane.xlu0 %1384  ;;  %v1416_v48 = vrot.slane %v3137_v49, 7 }
 0x62c   : > { %2129 = vpow2.f32 %v1389_v59  ;;  %v1391_v16 = vmul.f32 1.442695, %v1387_v52  ;;  %v1388_v60 = vsub.f32 %v2037_v57, %v1385_v45  ;;  %v1428_v59 = vsel %vm686_vm0, %v1427_v56, %v1426_v0  ;;  %v3138_v52 = vld [vmem:[#allocation17_spill] sm:$0xff] }
 0x62d   : > { %v1430_v45 = vrot.slane %v3138_v52, 7  ;;  %v1434_v0 = vrot.slane %v3129_v53, 5  ;;  %v3143_v52 = vld [vmem:[#allocation15_spill] sm:$0xff] }
 0x62e   : > { %2131 = vpow2.f32 %v1391_v16  ;;  %v1393_v15 = vmul.f32 1.442695, %v1388_v60  ;;  %v3139_v16 = vld [vmem:[#allocation10_spill] sm:$0xff]  ;;  %v1422_v49 = vrot.slane %v3143_v52, 4 }
 0x62f   : > { %v1415_v60 = vsel %vm689_vm1, %v3139_v16, %v1414_v40 }
 0x630   : > { %2133 = vpow2.f32 %v1393_v15  ;;  %v3140_v15 = vld [vmem:[#allocation12_spill] sm:$0xff]  ;;  %v1417_v63 = vsel %vm692_vm2, %v1416_v48, %v1415_v60  ;;  %v1438_v60 = vrot.slane %v2615_v58, 3 }
 0x636   : > { %v2871_v54 = vpop.eup %2129 }
 0x637   : > { %v1395_v3 = vsel %vm847_vm9, %v2871_v54, 0.0 }
 0x638   : > { %v2875_v44 = vpop.eup %2131  ;;  %1396 = vadd.xlane.f32.xlu1 %v1395_v3  ;;  %v1418_v3 = vrot.slane %v3140_v15, 6  ;;  %v1436_v15 = vrot.slane %v3131_v41, 4 }
 0x639   : > { %v1398_v39 = vsel %vm847_vm9, %v2875_v44, 0.0 }
 0x63a   : > { %v2879_v1 = vpop.eup %2133  ;;  %1399 = vadd.xlane.f32.xlu0 %v1398_v39  ;;  %v3141_v39 = vld [vmem:[#allocation16_spill] sm:$0xff]  ;;  %v1419_v56 = vsel %vm695_vm3, %v1418_v3, %v1417_v63 }
 0x63b   : > { %v1401_v57 = vsel %vm854_vm8, %v2879_v1, 0.0 }
 0x63c   : > { %1402 = vadd.xlane.f32.xlu1 %v1401_v57  ;;  %v1429_v57 = vsel %vm689_vm1, %v3141_v39, %v1428_v59  ;;  %v1421_v59 = vsel %vm698_vm4, %v1420_v12, %v1419_v56  ;;  %v1533_v56 = vrot.slane %v2393_v17, 2  ;;  %v1552_v17 = vrot.slane %v2415_v30, 7 }
 0x63d   : > { %v1431_v55 = vsel %vm692_vm2, %v1430_v45, %v1429_v57  ;;  %v1423_v45 = vsel %vm701_vm5, %v1422_v49, %v1421_v59  ;;  %v1546_v49 = vrot.slane %v2417_v31, 3 }
 0x63e   : > { %v1433_v40 = vsel %vm695_vm3, %v1432_v43, %v1431_v55  ;;  %v1425_v63 = vsel %vm704_vm6, %v1424_v38, %v1423_v45  ;;  %v1440_v43 = vrot.slane %v2757_v50, 2  ;;  %v1547_v38 = vrot.slane %v2407_v26, 2 }
 0x63f   : > { %v1435_v48 = vsel %vm698_vm4, %v1434_v0, %v1433_v40  ;;  %v1532_v0 = vrot.slane %v2401_v23, 3  ;;  %v1549_v40 = vrot.slane %v2411_v28, 1  ;;  %v1554_v28 = vrot.slane %v2419_v32, 6 }
 0x640   : > { %v1437_v57 = vsel %vm701_vm5, %v1436_v15, %v1435_v48  ;;  %v1442_v55 = vpack.c.b16 %v1440_v43, %v1440_v43  ;;  %v1535_v15 = vrot.slane %v2395_v18, 1  ;;  %v1538_v48 = vrot.slane %v2399_v22, 7 }
 0x641   : > { %v1439_v3 = vsel %vm704_vm6, %v1438_v60, %v1437_v57  ;;  %v1534_v59 = vsel %vm686_vm0, %v1533_v56, %v1532_v0  ;;  %v1548_v23 = vsel %vm686_vm0, %v1547_v38, %v1546_v49  ;;  %v1540_v18 = vrot.slane %v2403_v24, 6 }
 0x642   : > { %v1441_v52 = vpack.c.b16 %v1439_v3, %v1425_v63  ;;  %v1451_v12 = vand.u32 %v1442_v55, %v2645_v47  ;;  %v1550_v26 = vsel %vm689_vm1, %v1549_v40, %v1548_v23  ;;  %v1542_v45 = vrot.slane %v2405_v25, 5 }
 0x643   : > { %v1551_v22 = vsel %vm692_vm2, %v2413_v29, %v1550_v26  ;;  %v1556_v57 = vrot.slane %v2423_v35, 5  ;;  %v1544_v63 = vrot.slane %v2409_v27, 4  ;;  %v1558_v24 = vrot.slane %v2425_v36, 4  ;;  %v3145_v26 = vld [vmem:[#allocation5_spill] sm:$0xff] }
 0x644   : > { %2039 = vmatprep.subr.bf16.mxu1 %v1441_v52  ;;  %v1501_v35 = vrot.slane %v2491_v9, 3  ;;  %v1502_v27 = vrot.slane %v2483_v5, 2  ;;  %v1516_v36 = vrot.slane %v2499_v13, 2  ;;  %v1504_v0 = vrot.slane %v2485_v7, 1  ;;  %v3144_v13 = vld [vmem:[#allocation6_spill] sm:$0xff] }
 0x645   : > { %2040 = vmatpush3.bf16.msra.mxu1 %v1441_v52  ;;  %v1536_v52 = vsel %vm689_vm1, %v1535_v15, %v1534_v59  ;;  %v1518_v56 = vrot.slane %v2501_v14, 1  ;;  %v1507_v5 = vrot.slane %v2489_v6, 7  ;;  %v1521_v9 = vrot.slane %v2505_v19, 7 }
 0x646   : > { %2041 = vmatprep.subr.bf16.mxu1 %v1451_v12  ;;  %v1537_v31 = vsel %vm692_vm2, %v2397_v21, %v1536_v52  ;;  %v1553_v21 = vsel %vm695_vm3, %v1552_v17, %v1551_v22  ;;  %v1503_v49 = vsel %vm686_vm0, %v1502_v27, %v1501_v35  ;;  %v1523_v23 = vrot.slane %v2509_v33, 6 }
 0x647   : > { %v1539_v60 = vsel %vm695_vm3, %v1538_v48, %v1537_v31  ;;  %v1555_v32 = vsel %vm698_vm4, %v1554_v28, %v1553_v21  ;;  %v1505_v38 = vsel %vm689_vm1, %v1504_v0, %v1503_v49  ;;  %v1509_v48 = vrot.slane %v2493_v10, 6 }
 0x648   : > { %v1541_v30 = vsel %vm698_vm4, %v1540_v18, %v1539_v60  ;;  %v1557_v25 = vsel %vm701_vm5, %v1556_v57, %v1555_v32  ;;  %v1506_v7 = vsel %vm692_vm2, %v2487_v8, %v1505_v38  ;;  %v1511_v19 = vrot.slane %v2495_v11, 5  ;;  %v3146_v60 = vld [vmem:[#allocation7_spill] sm:$0xff] }
 0x649   : > { %2042 = vmatpush3.bf16.msra.mxu1 %v1451_v12  ;;  %v1543_v3 = vsel %vm701_vm5, %v1542_v45, %v1541_v30  ;;  %v1559_v29 = vsel %vm704_vm6, %v1558_v24, %v1557_v25  ;;  %v1515_v12 = vrot.slane %v2507_v20, 3  ;;  %v1508_v17 = vsel %vm695_vm3, %v1507_v5, %v1506_v7 }
 0x64a   : > { %v1545_v43 = vsel %vm704_vm6, %v1544_v63, %v1543_v3  ;;  %v1525_v31 = vrot.slane %v2511_v34, 5  ;;  %v1510_v8 = vsel %vm698_vm4, %v1509_v48, %v1508_v17  ;;  %v1513_v28 = vrot.slane %v3145_v26, 4 }
 0x64b   : > { %v1561_v55 = vpack.c.b16 %v1559_v29, %v1545_v43  ;;  %v1517_v15 = vsel %vm686_vm0, %v1516_v36, %v1515_v12  ;;  %v1527_v45 = vrot.slane %v3146_v60, 4  ;;  %v1512_v33 = vsel %vm701_vm5, %v1511_v19, %v1510_v8 }
 0x64c   : > { %v1519_v40 = vsel %vm689_vm1, %v1518_v56, %v1517_v15  ;;  %v1560_v30 = vrot.slane %v2710_v37, 3  ;;  %v1514_v63 = vsel %vm704_vm6, %v1513_v28, %v1512_v33  ;;  %v1658_v8 = vrot.slane %v2587_v61, 3 }
 0x64d   : > { %2069 = vmatprep.subr.msk.bf16.mxu1 %vm786_vm7, %v1561_v55  ;;  %v1520_v14 = vsel %vm692_vm2, %v3144_v13, %v1519_v40  ;;  %v1570_v29 = vsel %vm786_vm7, %v1561_v55, 0  ;;  %v1672_v26 = vrot.slane %v2595_v4, 3  ;;  %v1673_v28 = vrot.slane %v3136_v51, 2 }
 0x64e   : > { %v1522_v6 = vsel %vm695_vm3, %v1521_v9, %v1520_v14  ;;  %v1562_v35 = vpack.c.b16 %v1560_v30, %v1560_v30  ;;  %v1661_v60 = vrot.slane %v3139_v16, 1  ;;  %v1666_v51 = vrot.slane %v3128_v46, 6  ;;  %v3150_v16 = vld [vmem:[#allocation17_spill] sm:$0xff] }
 0x64f   : > { %v1524_v18 = vsel %vm698_vm4, %v1523_v23, %v1522_v6  ;;  %v1674_v33 = vsel %vm686_vm0, %v1673_v28, %v1672_v26  ;;  %v1684_v46 = vrot.slane %v2615_v58, 4 }
 0x650   : > { %v1526_v22 = vsel %vm701_vm5, %v1525_v31, %v1524_v18  ;;  %v1573_v37 = vsel %vm786_vm7, %v1562_v35, 0  ;;  %v1659_v18 = vrot.slane %v3122_v62, 2 }
 0x651   : > { %v1528_v21 = vsel %vm704_vm6, %v1527_v45, %v1526_v22  ;;  %v1675_v45 = vrot.slane %v3141_v39, 1 }
 0x652   : > { %v1530_v43 = vpack.c.b16 %v1528_v21, %v1514_v63  ;;  %v1680_v63 = vrot.slane %v3129_v53, 6 }
 0x653   : > { %v1676_v61 = vsel %vm689_vm1, %v1675_v45, %v1674_v33 }
 0x654   : > { %v1677_v39 = vsel %vm692_vm2, %v3150_v16, %v1676_v61 }
 0x6c5   : > { %v1397_v59 = vpop.xlane.xlu1 %1396 }
 0x6c6   : > { %2135 = vrcp.f32 %v1397_v59 }
 0x6c7   : > { %v1400_v20 = vpop.xlane.xlu0 %1399 }
 0x6c8   : > { %2137 = vrcp.f32 %v1400_v20 }
 0x6c9   : > { %v1403_v52 = vpop.xlane.xlu1 %1402 }
 0x6ca   : > { %2139 = vrcp.f32 %v1403_v52 }
 0x6d0   : > { %v2136_v10 = vpop.eup %2135 }
 0x6d1   : > { %v1407_v11 = vmul.f32 %v2136_v10, %v2871_v54  ;;  %v1529_v54 = vrot.slane %v2728_v2, 3  ;;  %v1660_v10 = vsel %vm686_vm0, %v1659_v18, %v1658_v8 }
 0x6d2   : > { %v2138_v57 = vpop.eup %2137  ;;  %v1662_v22 = vsel %vm689_vm1, %v1661_v60, %v1660_v10  ;;  %v3157_v10 = vld [vmem:[#allocation8_spill] sm:$0xff] }
 0x6d3   : > { %v1408_v34 = vmul.f32 %v2138_v57, %v2875_v44  ;;  %v1531_v44 = vpack.c.b16 %v1529_v54, %v1529_v54  ;;  %v3147_v57 = vld [vmem:[#allocation12_spill] sm:$0xff] }
 0x6d4   : > { %v2140_v24 = vpop.eup %2139  ;;  %v1664_v30 = vrot.slane %v3147_v57, 7 }
 0x6d5   : > { %v1409_v3 = vmul.f32 %v2140_v24, %v2879_v1  ;;  %v1410_v32 = vpack.c.bf16 %v1408_v34, %v1407_v11  ;;  %v3148_v11 = vld [vmem:[#allocation18_spill] sm:$0xff]  ;;  %v3149_v34 = vld [vmem:[#allocation11_spill] sm:$0xff] }
 0x6d6   : > { %v1678_v62 = vrot.slane %v3148_v11, 7  ;;  %v1663_v4 = vsel %vm692_vm2, %v3149_v34, %v1662_v22  ;;  %v3151_v24 = vld [vmem:[#allocation15_spill] sm:$0xff] }
 0x6d7   : > { %2043 = vmatprep.mubr.msk.bf16.mxu1 %vm847_vm9, %v1410_v32  ;;  %v1411_v25 = vpack.c.bf16 %v1409_v3, %v1409_v3  ;;  %v1665_v21 = vsel %vm695_vm3, %v1664_v30, %v1663_v4  ;;  %v1668_v3 = vrot.slane %v3151_v24, 5 }
 0x6d8   : > { %v1679_v32 = vsel %vm695_vm3, %v1678_v62, %v1677_v39 }
 0x6d9   : > { %2044 = vmatmul.mubr.msk.bf16.vlgmr.msra.gmra.mrb[8].mxu1 %vm847_vm9, %v1411_v25  ;;  %v1667_v25 = vsel %vm698_vm4, %v1666_v51, %v1665_v21 }
 0x6da   : > { %2048 = vmatpush3.bf16.xpose.msra.mxu1 %v1570_v29  ;;  %2051 = vmatprep.mubr.msk.bf16.mxu1 %vm786_vm7, %v1530_v43  ;;  %v1682_v43 = vrot.slane %v3131_v41, 5  ;;  %v1670_v29 = vrot.slane %v3132_v42, 4  ;;  %v1669_v53 = vsel %vm701_vm5, %v1668_v3, %v1667_v25  ;;  %v3154_v42 = vld [vmem:[#allocation9_spill] sm:$0xff] }
 0x6db   : > { %2070 = vmatprep.subr.msk.bf16.mxu1 %vm786_vm7, %v1562_v35  ;;  %v1681_v35 = vsel %vm698_vm4, %v1680_v63, %v1679_v32 }
 0x6dc   : > { %v1683_v54 = vsel %vm701_vm5, %v1682_v43, %v1681_v35 }
 0x6e2   : > { %2050 = vmatpush3.bf16.xpose.msra.mxu1 %v1573_v37  ;;  %v3152_v37 = vld [vmem:[#allocation20_spill] sm:$0xff] }
 0x6e9   : > { %2052 = vmatmul.mubr.msk.bf16.vlgmr.msra.gmra.mrb[12].mxu1 %vm786_vm7, %v1531_v44  ;;  %v1671_v44 = vsel %vm704_vm6, %v1670_v29, %v1669_v53 }
 0x7ac   : > { %v2988_v1 = vpop.f32.mrb[8].mxu1 }
 0x7ad   : > { %v2990_v27 = vpop.f32.mrb[9].mxu1 }
 0x7ae   : > { %v2046_v55 = vpop.f32.mrb[10].mxu1 }
 0x7af   : > { %v2992_v12 = vpop.f32.mrb[11].mxu1  ;;  %v1685_v55 = vsel %vm704_vm6, %v1684_v46, %v1683_v54 }
 0x7b0   : > { %v1687_v41 = vpack.c.b16 %v1685_v55, %v1671_v44 }
 0x7b2   : > { %2055 = vmatprep.subr.bf16.mxu0 %v1687_v41 }
 0x7b3   : > { %2056 = vmatpush3.bf16.msra.mxu0 %v1687_v41 }
 0x7bc   : > { %v2053_v36 = vpop.f32.mrb[12].mxu1 }
 0x7bd   : > { %v1609_v0 = vpop.f32.mrb[13].mxu1  ;;  %v1629_v38 = vsel %vm854_vm8, %v2053_v36, -inf }
 0x7be   : > { %v2054_v56 = vpop.f32.mrb[14].mxu1  ;;  %v1623_v49 = vsel %vm847_vm9, %v1609_v0, -inf }
 0x7bf   : > { %1624 = vmax.xlane.f32.xlu0 %v1623_v49  ;;  %v1612_v15 = vpop.f32.mrb[15].mxu1 }
 0x7c0   : > { %v1626_v2 = vsel %vm847_vm9, %v1612_v15, -inf }
 0x7c1   : > { %1627 = vmax.xlane.f32.xlu1 %v1626_v2 }
 0x7c3   : > { %1630 = vmax.xlane.f32.xlu0 %v1629_v38 }
 0x84c   : > { %v1625_v40 = vpop.xlane.xlu0 %1624 }
 0x84d   : > { %v1632_v59 = vsub.f32 %v1609_v0, %v1625_v40  ;;  %v3153_v0 = vld [vmem:[#allocation13_spill] sm:$0xff] }
 0x84e   : > { %v1628_v5 = vpop.xlane.xlu1 %1627 }
 0x84f   : > { %v1635_v9 = vmul.f32 1.442695, %v1632_v59  ;;  %v1633_v20 = vsub.f32 %v1612_v15, %v1628_v5 }
 0x850   : > { %v1631_v7 = vpop.xlane.xlu0 %1630 }
 0x851   : > { %2141 = vpow2.f32 %v1635_v9  ;;  %v1637_v13 = vmul.f32 1.442695, %v1633_v20  ;;  %v1634_v14 = vsub.f32 %v2053_v36, %v1631_v7  ;;  %v1686_v36 = vrot.slane %v2757_v50, 3 }
 0x853   : > { %2143 = vpow2.f32 %v1637_v13  ;;  %v1639_v52 = vmul.f32 1.442695, %v1634_v14  ;;  %v1688_v58 = vpack.c.b16 %v1686_v36, %v1686_v36 }
 0x855   : > { %2145 = vpow2.f32 %v1639_v52  ;;  %v1697_v56 = vand.u32 %v1688_v58, %v2645_v47 }
 0x857   : > { %2057 = vmatprep.subr.bf16.mxu0 %v1697_v56 }
 0x858   : > { %2058 = vmatpush3.bf16.msra.mxu0 %v1697_v56 }
 0x85b   : > { %v2142_v48 = vpop.eup %2141 }
 0x85c   : > { %v1641_v23 = vsel %vm847_vm9, %v2142_v48, 0.0 }
 0x85d   : > { %v2144_v17 = vpop.eup %2143  ;;  %1642 = vadd.xlane.f32.xlu1 %v1641_v23 }
 0x85e   : > { %v1644_v6 = vsel %vm847_vm9, %v2144_v17, 0.0 }
 0x85f   : > { %v2146_v19 = vpop.eup %2145  ;;  %1645 = vadd.xlane.f32.xlu0 %v1644_v6  ;;  %v3155_v6 = vld [vmem:[#allocation22_spill] sm:$0xff] }
 0x860   : > { %v1647_v31 = vsel %vm854_vm8, %v2146_v19, 0.0 }
 0x861   : > { %1648 = vadd.xlane.f32.xlu1 %v1647_v31  ;;  %v3156_v31 = vld [vmem:[#allocation23_spill] sm:$0xff] }
 0x872   : > { %1752 = vrot.lane.b32.xlu1 %v3152_v37, %s2178_s25 }
 0x875   : > { %1750 = vrot.lane.b32.xlu0 %v3153_v0, %s2178_s25 }
 0x876   : > { %1754 = vrot.lane.b32.xlu1 %v3154_v42, %s2178_s25 }
 0x879   : > { %1764 = vrot.lane.b32.xlu0 %v2992_v12, %s2179_s26 }
 0x87a   : > { %1762 = vrot.lane.b32.xlu1 %v2990_v27, %s2179_s26 }
 0x87e   : > { %1766 = vrot.lane.b32.xlu1 %v2988_v1, %s2179_s26 }
 0x8ea   : > { %v1643_v49 = vpop.xlane.xlu1 %1642 }
 0x8eb   : > { %2147 = vrcp.f32 %v1643_v49 }
 0x8ec   : > { %v1646_v50 = vpop.xlane.xlu0 %1645 }
 0x8ed   : > { %2149 = vrcp.f32 %v1646_v50 }
 0x8ee   : > { %v1649_v15 = vpop.xlane.xlu1 %1648 }
 0x8ef   : > { %2151 = vrcp.f32 %v1649_v15 }
 0x8f0   : > { %v1751_v52 = vpop.permute.xlu0 %1750 }
 0x8f2   : > { %v1753_v13 = vpop.permute.xlu1 %1752 }
 0x8f3   : > { %v1784_v8 = vsel %vm786_vm7, %v3156_v31, %v1753_v13 }
 0x8f4   : > { %v1765_v23 = vpop.permute.xlu0 %1764 }
 0x8f5   : > { %v2148_v2 = vpop.eup %2147  ;;  %v1788_v60 = vsel %vm1786_vm12, %v1784_v8, %v1765_v23 }
 0x8f6   : > { %v1653_v40 = vmul.f32 %v2148_v2, %v2142_v48  ;;  %v1755_v14 = vpop.permute.xlu1 %1754 }
 0x8f7   : > { %v2150_v38 = vpop.eup %2149  ;;  %v1785_v33 = vsel %vm786_vm7, %v3157_v10, %v1755_v14 }
 0x8f8   : > { %v1654_v59 = vmul.f32 %v2150_v38, %v2144_v17 }
 0x8f9   : > { %v2152_v47 = vpop.eup %2151 }
 0x8fa   : > { %v1655_v5 = vmul.f32 %v2152_v47, %v2146_v19  ;;  %v1656_v12 = vpack.c.bf16 %v1654_v59, %v1653_v40  ;;  %v1763_v48 = vpop.permute.xlu1 %1762  ;;  %v1783_v19 = vsel %vm786_vm7, %v3155_v6, %v1751_v52 }
 0x8fb   : > { %v1787_v18 = vsel %vm1786_vm12, %v1783_v19, %v1763_v48 }
 0x8fc   : > { %2059 = vmatprep.mubr.msk.bf16.mxu0 %vm847_vm9, %v1656_v12  ;;  %v1657_v27 = vpack.c.bf16 %v1655_v5, %v1655_v5 }
 0x8fe   : > { %2060 = vmatmul.mubr.msk.bf16.vlgmr.msra.gmra.mrb[12].mxu0 %vm847_vm9, %v1657_v27  ;;  %v1767_v17 = vpop.permute.xlu1 %1766 }
 0x8ff   : > { %v1789_v57 = vsel %vm1786_vm12, %v1785_v33, %v1767_v17 }
 0x9d1   : > { %v2061_v1 = vpop.f32.mrb[12].mxu0 }
 0x9d2   : > { %v1733_v9 = vpop.f32.mrb[13].mxu0 }
 0x9d3   : > { %1774 = vrot.lane.b32.xlu0 %v1733_v9, %s2180_s27  ;;  %v2062_v20 = vpop.f32.mrb[14].mxu0 }
 0x9d4   : > { %v1736_v7 = vpop.f32.mrb[15].mxu0 }
 0x9d5   : > { %1776 = vrot.lane.b32.xlu1 %v1736_v7, %s2180_s27 }
 0x9d7   : > { %1778 = vrot.lane.b32.xlu0 %v2061_v1, %s2180_s27 }
 0xa45   : > { %v1775_v26 = vpop.permute.xlu0 %1774 }
 0xa46   : > { %v1791_v28 = vsel %vm1790_vm11, %v1787_v18, %v1775_v26 }
 0xa47   : > { %1795 = vst.msk [vmem:[%s530_s4] sm:$0xff] %vm1794_vm13, %v1791_v28  ;;  %v1777_v45 = vpop.permute.xlu1 %1776 }
 0xa48   : > { %v1792_v22 = vsel %vm1790_vm11, %v1788_v60, %v1777_v45 }
 0xa49   : > { %1796 = vst.msk [vmem:[%s530_s4 + $0x8] sm:$0xff] %vm1794_vm13, %v1792_v22  ;;  %v1779_v30 = vpop.permute.xlu0 %1778 }
 0xa4a   : > { %v1793_v61 = vsel %vm1790_vm11, %v1789_v57, %v1779_v30 }
 0xa4b   : > { %1798 = vst.msk [vmem:[%s530_s4 + $0x10] sm:$0x1] %vm1797_vm14, %v1793_v61 }
 0xa4c PF: > { %p10_p9 = scmp.ge.s32.totalorder %s2218_s16, 4   ;;  %s3158_s12 = smov %s2171_s13 }
 0xa4d   : > { %s3159_s13 = smov %s2227_s19  ;;  %s3160_s14 = smov %s2218_s16 }
 0xa4e   :  { %12 = sbr.rel (!%p10_p9) target bundleno = 2 (0x2), region = 206 }

// kernel: mrm_gen_forward.37
= control target key start
LH: loop header
LB: loop body
LE: loop exit
PB: predicated region body
PF: predicated region fallthrough
CT: control target
= control target key end

     0   :  { %vm245_vm0 = vcmask 523264   ;;  %s589_s1 = inlined_call_operand.vmem [shape: f32[256,64], index: 1, kind: input, shape index: {}]   ;;  %s590_s0 = inlined_call_operand.vmem [shape: f32[40,256], index: 0, kind: input, shape index: {}]   ;;  %s591_s2 = inlined_call_operand.vmem [shape: f32[1,64], index: 2, kind: input, shape index: {}]   ;;  %s592_s3 = inlined_call_operand.vmem [shape: f32[40,64], index: 3, kind: input, shape index: {}]   ;;  %s593_s4 = inlined_call_operand.vmem [shape: f32[40,64], index: 4, kind: output, shape index: {}]  }
   0x1   :  { %v140_v0 = vld [vmem:[%s589_s1 + $0x80] sm:$0xff]  ;;  %v141_v1 = vld [vmem:[%s589_s1 + $0x88] sm:$0xff]  ;;  %v142_v5 = vld [vmem:[%s589_s1 + $0x90] sm:$0xff] }
   0x2   :  { %v124_v2 = vld [vmem:[%s589_s1] sm:$0xff]  ;;  %v164_v3 = vpack.c.bf16 %v141_v1, %v140_v0  ;;  %v125_v4 = vld [vmem:[%s589_s1 + $0x8] sm:$0xff]  ;;  %v143_v6 = vld [vmem:[%s589_s1 + $0x98] sm:$0xff] }
   0x3   :  { %v156_v7 = vpack.c.bf16 %v125_v4, %v124_v2  ;;  %v165_v8 = vpack.c.bf16 %v143_v6, %v142_v5  ;;  %v126_v9 = vld [vmem:[%s589_s1 + $0x10] sm:$0xff]  ;;  %v127_v10 = vld [vmem:[%s589_s1 + $0x18] sm:$0xff]  ;;  %v144_v11 = vld [vmem:[%s589_s1 + $0xa0] sm:$0xff] }
   0x4   :  { %290 = vmatprep.subr.bf16.mxu1 %v164_v3  ;;  %256 = vmatprep.subr.bf16.mxu0 %v164_v3  ;;  %v145_v12 = vld [vmem:[%s589_s1 + $0xa8] sm:$0xff]  ;;  %v157_v13 = vpack.c.bf16 %v127_v10, %v126_v9  ;;  %v128_v14 = vld [vmem:[%s589_s1 + $0x20] sm:$0xff]  ;;  %v146_v17 = vld [vmem:[%s589_s1 + $0xb0] sm:$0xff] }
   0x5   :  { %298 = vmatpush3.bf16.msra.mxu1 %v156_v7  ;;  %257 = vmatpush3.bf16.msra.mxu0 %v156_v7  ;;  %v129_v15 = vld [vmem:[%s589_s1 + $0x28] sm:$0xff]  ;;  %v166_v16 = vpack.c.bf16 %v145_v12, %v144_v11  ;;  %v147_v18 = vld [vmem:[%s589_s1 + $0xb8] sm:$0xff]  ;;  %v130_v19 = vld [vmem:[%s589_s1 + $0x30] sm:$0xff] }
   0x6   :  { %291 = vmatprep.subr.bf16.mxu1 %v165_v8  ;;  %258 = vmatprep.subr.bf16.mxu0 %v165_v8  ;;  %v131_v20 = vld [vmem:[%s589_s1 + $0x38] sm:$0xff]  ;;  %v148_v21 = vld [vmem:[%s589_s1 + $0xc0] sm:$0xff]  ;;  %v149_v22 = vld [vmem:[%s589_s1 + $0xc8] sm:$0xff]  ;;  %v158_v26 = vpack.c.bf16 %v129_v15, %v128_v14  ;;  %v167_v30 = vpack.c.bf16 %v147_v18, %v146_v17 }
   0x7   :  { %v132_v23 = vld [vmem:[%s589_s1 + $0x40] sm:$0xff]  ;;  %v133_v24 = vld [vmem:[%s589_s1 + $0x48] sm:$0xff]  ;;  %v150_v25 = vld [vmem:[%s589_s1 + $0xd0] sm:$0xff]  ;;  %v159_v31 = vpack.c.bf16 %v131_v20, %v130_v19  ;;  %v168_v32 = vpack.c.bf16 %v149_v22, %v148_v21 }
   0x8   :  { %v151_v27 = vld [vmem:[%s589_s1 + $0xd8] sm:$0xff]  ;;  %v134_v28 = vld [vmem:[%s589_s1 + $0x50] sm:$0xff]  ;;  %v426_v33 = vld [vmem:[%s590_s0 + $0x28] sm:$0xff]  ;;  %v160_v34 = vpack.c.bf16 %v133_v24, %v132_v23 }
   0x9   :  { %299 = vmatpush3.bf16.msra.mxu1 %v157_v13  ;;  %259 = vmatpush3.bf16.msra.mxu0 %v157_v13  ;;  %v135_v29 = vld [vmem:[%s589_s1 + $0x58] sm:$0xff]  ;;  %v169_v35 = vpack.c.bf16 %v151_v27, %v150_v25  ;;  %v33_v38 = vmul.f32 %v426_v33, %v426_v33  ;;  %v440_v39 = vld [vmem:[%s590_s0 + $0x20] sm:$0xff]  ;;  %v445_v40 = vld [vmem:[%s590_s0 + $0x30] sm:$0xff] }
   0xa   :  { %292 = vmatprep.subr.bf16.mxu1 %v166_v16  ;;  %260 = vmatprep.subr.bf16.mxu0 %v166_v16  ;;  %v428_v36 = vpack.c.bf16 %v135_v29, %v134_v28  ;;  %v433_v37 = vld [vmem:[%s590_s0 + $0x38] sm:$0xff]  ;;  %v32_v42 = vmul.f32 %v440_v39, %v440_v39  ;;  %v34_v43 = vmul.f32 %v445_v40, %v445_v40  ;;  %v456_v44 = vld [vmem:[%s590_s0 + $0x8] sm:$0xff]  ;;  %v466_v46 = vld [vmem:[%s590_s0] sm:$0xff] }
   0xb   :  { %v35_v41 = vmul.f32 %v433_v37, %v433_v37  ;;  %v461_v45 = vld [vmem:[%s590_s0 + $0x18] sm:$0xff]  ;;  %v43_v47 = vmul.f32 %v33_v38, %v426_v33  ;;  %v29_v48 = vmul.f32 %v456_v44, %v456_v44  ;;  %v476_v50 = vld [vmem:[%s590_s0 + $0x10] sm:$0xff]  ;;  %v28_v54 = vmul.f32 %v466_v46, %v466_v46  ;;  %v152_v63 = vld [vmem:[%s589_s1 + $0xe0] sm:$0xff] }
   0xc   :  { %v31_v49 = vmul.f32 %v461_v45, %v461_v45  ;;  %v42_v52 = vmul.f32 %v32_v42, %v440_v39  ;;  %v44_v53 = vmul.f32 %v34_v43, %v445_v40  ;;  %v30_v58 = vmul.f32 %v476_v50, %v476_v50  ;;  %v153_v4 = vld [vmem:[%s589_s1 + $0xe8] sm:$0xff]  ;;  %v136_v5 = vld [vmem:[%s589_s1 + $0x60] sm:$0xff]  ;;  %v154_v24 = vld [vmem:[%s589_s1 + $0xf0] sm:$0xff] }
   0xd   :  { %300 = vmatpush3.bf16.msra.mxu1 %v158_v26  ;;  %261 = vmatpush3.bf16.msra.mxu0 %v158_v26  ;;  %v45_v51 = vmul.f32 %v35_v41, %v433_v37  ;;  %v53_v55 = vmul.f32 0.044715, %v43_v47  ;;  %v39_v56 = vmul.f32 %v29_v48, %v456_v44  ;;  %v38_v62 = vmul.f32 %v28_v54, %v466_v46  ;;  %v137_v6 = vld [vmem:[%s589_s1 + $0x68] sm:$0xff]  ;;  %v515_v16 = vld [vmem:[%s590_s0 + $0x40] sm:$0xff]  ;;  %v155_v25 = vld [vmem:[%s589_s1 + $0xf8] sm:$0xff] }
   0xe   :  { %293 = vmatprep.subr.bf16.mxu1 %v167_v30  ;;  %262 = vmatprep.subr.bf16.mxu0 %v167_v30  ;;  %v41_v57 = vmul.f32 %v31_v49, %v461_v45  ;;  %v52_v60 = vmul.f32 0.044715, %v42_v52  ;;  %v54_v61 = vmul.f32 0.044715, %v44_v53  ;;  %v40_v3 = vmul.f32 %v30_v58, %v476_v50  ;;  %v510_v15 = vld [vmem:[%s590_s0 + $0x48] sm:$0xff]  ;;  %v138_v38 = vld [vmem:[%s589_s1 + $0x70] sm:$0xff] }
   0xf   :  { %v55_v59 = vmul.f32 0.044715, %v45_v51  ;;  %v63_v0 = vadd.f32 %v53_v55, %v426_v33  ;;  %v49_v1 = vmul.f32 0.044715, %v39_v56  ;;  %v48_v10 = vmul.f32 0.044715, %v38_v62 }
  0x10   :  { %v51_v2 = vmul.f32 0.044715, %v41_v57  ;;  %v62_v8 = vadd.f32 %v52_v60, %v440_v39  ;;  %v64_v9 = vadd.f32 %v54_v61, %v445_v40  ;;  %v50_v14 = vmul.f32 0.044715, %v40_v3  ;;  %v139_v41 = vld [vmem:[%s589_s1 + $0x78] sm:$0xff] }
  0x11   :  { %301 = vmatpush3.bf16.msra.mxu1 %v159_v31  ;;  %263 = vmatpush3.bf16.msra.mxu0 %v159_v31  ;;  %v65_v7 = vadd.f32 %v55_v59, %v433_v37  ;;  %v73_v11 = vmul.f32 0.7978846, %v63_v0  ;;  %v59_v12 = vadd.f32 %v49_v1, %v456_v44  ;;  %v58_v20 = vadd.f32 %v48_v10, %v466_v46 }
  0x12   :  { %294 = vmatprep.subr.bf16.mxu1 %v168_v32  ;;  %264 = vmatprep.subr.bf16.mxu0 %v168_v32  ;;  %v61_v13 = vadd.f32 %v51_v2, %v461_v45  ;;  %v72_v18 = vmul.f32 0.7978846, %v62_v8  ;;  %v74_v19 = vmul.f32 0.7978846, %v64_v9  ;;  %v170_v21 = vpack.c.bf16 %v153_v4, %v152_v63 }
  0x13   :  { %v75_v17 = vmul.f32 0.7978846, %v65_v7  ;;  %306 = vtanh.f32 %v73_v11  ;;  %v69_v22 = vmul.f32 0.7978846, %v59_v12  ;;  %v60_v23 = vadd.f32 %v50_v14, %v476_v50 }
  0x14   :  { %v71_v26 = vmul.f32 0.7978846, %v61_v13  ;;  %v37_v27 = vmul.f32 %v510_v15, %v510_v15  ;;  %v36_v28 = vmul.f32 %v515_v16, %v515_v16  ;;  %v162_v29 = vpack.c.bf16 %v137_v6, %v136_v5 }
  0x15   :  { %302 = vmatpush3.bf16.msra.mxu1 %v160_v34  ;;  %265 = vmatpush3.bf16.msra.mxu0 %v160_v34  ;;  %308 = vtanh.f32 %v75_v17  ;;  %v68_v30 = vmul.f32 0.7978846, %v58_v20  ;;  %v70_v31 = vmul.f32 0.7978846, %v60_v23  ;;  %v163_v43 = vpack.c.bf16 %v139_v41, %v138_v38  ;;  %v238_v41 = vld [vmem:[%s592_s3 + $0x18] sm:$0xff] }
  0x16   :  { %295 = vmatprep.subr.bf16.mxu1 %v169_v35  ;;  %266 = vmatprep.subr.bf16.mxu0 %v169_v35  ;;  %310 = vtanh.f32 %v72_v18  ;;  %v47_v32 = vmul.f32 %v37_v27, %v510_v15  ;;  %v46_v34 = vmul.f32 %v36_v28, %v515_v16  ;;  %v171_v35 = vpack.c.bf16 %v155_v25, %v154_v24 }
  0x17   :  { %312 = vtanh.f32 %v74_v19 }
  0x18   :  { %314 = vtanh.f32 %v69_v22  ;;  %v56_v42 = vmul.f32 0.044715, %v46_v34  ;;  %v237_v34 = vld [vmem:[%s592_s3 + $0x10] sm:$0xff] }
  0x19   :  { %303 = vmatpush3.bf16.msra.mxu1 %v428_v36  ;;  %267 = vmatpush3.bf16.msra.mxu0 %v428_v36  ;;  %316 = vtanh.f32 %v71_v26  ;;  %v57_v36 = vmul.f32 0.044715, %v47_v32 }
  0x1a   :  { %296 = vmatprep.subr.bf16.mxu1 %v170_v21  ;;  %268 = vmatprep.subr.bf16.mxu0 %v170_v21  ;;  %318 = vtanh.f32 %v68_v30  ;;  %v66_v48 = vadd.f32 %v56_v42, %v515_v16 }
  0x1b   :  { %320 = vtanh.f32 %v70_v31  ;;  %v67_v47 = vadd.f32 %v57_v36, %v510_v15 }
  0x1c   :  { %v76_v51 = vmul.f32 0.7978846, %v66_v48 }
  0x1d   :  { %304 = vmatpush3.bf16.msra.mxu1 %v162_v29  ;;  %269 = vmatpush3.bf16.msra.mxu0 %v162_v29  ;;  %v77_v49 = vmul.f32 0.7978846, %v67_v47  ;;  %v307_v52 = vpop.eup %306 }
  0x1e   :  { %297 = vmatprep.subr.bf16.mxu1 %v171_v35  ;;  %270 = vmatprep.subr.bf16.mxu0 %v171_v35  ;;  %v93_v54 = vadd.f32 1.0, %v307_v52 }
  0x1f   :  { %v309_v53 = vpop.eup %308  ;;  %322 = vtanh.f32 %v77_v49  ;;  %v235_v49 = vld [vmem:[%s592_s3] sm:$0xff] }
  0x20   :  { %v311_v55 = vpop.eup %310  ;;  %v95_v56 = vadd.f32 1.0, %v309_v53  ;;  %324 = vtanh.f32 %v76_v51  ;;  %v103_v58 = vmul.f32 0.5, %v93_v54 }
  0x21   :  { %305 = vmatpush3.bf16.msra.mxu1 %v163_v43  ;;  %271 = vmatpush3.bf16.msra.mxu0 %v163_v43  ;;  %v313_v57 = vpop.eup %312  ;;  %v92_v59 = vadd.f32 1.0, %v311_v55  ;;  %v236_v55 = vld [vmem:[%s592_s3 + $0x8] sm:$0xff] }
  0x22   :  { %v315_v60 = vpop.eup %314  ;;  %v105_v61 = vmul.f32 0.5, %v95_v56  ;;  %v94_v62 = vadd.f32 1.0, %v313_v57  ;;  %v113_v0 = vmul.f32 %v103_v58, %v426_v33 }
  0x23   :  { %v317_v63 = vpop.eup %316  ;;  %v102_v1 = vmul.f32 0.5, %v92_v59  ;;  %v89_v2 = vadd.f32 1.0, %v315_v60 }
  0x24   :  { %v319_v3 = vpop.eup %318  ;;  %v115_v4 = vmul.f32 %v105_v61, %v433_v37  ;;  %v104_v5 = vmul.f32 0.5, %v94_v62  ;;  %v91_v6 = vadd.f32 1.0, %v317_v63  ;;  %v239_v63 = vld [vmem:[%s592_s3 + $0x20] sm:$0xff] }
  0x25   :  { %v321_v7 = vpop.eup %320  ;;  %v112_v8 = vmul.f32 %v102_v1, %v440_v39  ;;  %v99_v9 = vmul.f32 0.5, %v89_v2  ;;  %v88_v10 = vadd.f32 1.0, %v319_v3 }
  0x26   :  { %v121_v11 = vpack.c.bf16 %v115_v4, %v113_v0  ;;  %v114_v12 = vmul.f32 %v104_v5, %v445_v40  ;;  %v101_v13 = vmul.f32 0.5, %v91_v6  ;;  %v90_v14 = vadd.f32 1.0, %v321_v7 }
  0x27   :  { %v109_v17 = vmul.f32 %v99_v9, %v456_v44  ;;  %v98_v33 = vmul.f32 0.5, %v88_v10 }
  0x28   :  { %219 = vmatprep.mubr.bf16.mxu1 %v121_v11  ;;  %v120_v18 = vpack.c.bf16 %v114_v12, %v112_v8  ;;  %v111_v19 = vmul.f32 %v101_v13, %v461_v45  ;;  %v100_v37 = vmul.f32 0.5, %v90_v14 }
  0x29   :  { %v323_v20 = vpop.eup %322  ;;  %v108_v21 = vmul.f32 %v98_v33, %v466_v46 }
  0x2a   :  { %v325_v22 = vpop.eup %324  ;;  %220 = vmatmul.mubr.bf16.vlgmr.msra.gmra.mrb[0].mxu1 %v120_v18  ;;  %v119_v39 = vpack.c.bf16 %v111_v19, %v109_v17  ;;  %v110_v23 = vmul.f32 %v100_v37, %v476_v50  ;;  %v97_v24 = vadd.f32 1.0, %v323_v20  ;;  %v255_v50 = vld [vmem:[%s591_s2] ss:$0 sm:$0xff] }
  0x2b   :  { %v96_v40 = vadd.f32 1.0, %v325_v22 }
  0x2c   :  { %211 = vmatprep.mubr.bf16.mxu0 %v119_v39  ;;  %v118_v25 = vpack.c.bf16 %v110_v23, %v108_v21  ;;  %v107_v26 = vmul.f32 0.5, %v97_v24 }
  0x2d   :  { %v106_v44 = vmul.f32 0.5, %v96_v40 }
  0x2e   :  { %212 = vmatmul.mubr.bf16.vlgmr.msra.gmra.mrb[0].mxu0 %v118_v25  ;;  %v117_v27 = vmul.f32 %v107_v26, %v510_v15 }
  0x2f   :  { %v116_v45 = vmul.f32 %v106_v44, %v515_v16 }
  0x30   :  { %v123_v28 = vpack.c.bf16 %v117_v27, %v117_v27 }
  0x31   :  { %v122_v29 = vpack.c.bf16 %v116_v45, %v116_v45 }
  0x32   :  { %227 = vmatprep.mubr.bf16.mxu1 %v123_v28 }
  0x33   :  { %228 = vmatmul.mubr.bf16.gmra.mrb[4].mxu1 %v122_v29 }
  0xfd   :  { %v278_v46 = vpop.f32.mrb[0].mxu1 }
  0xfe   :  { %v279_v30 = vpop.f32.mrb[1].mxu1 }
  0xff   :  { %v280_v31 = vadd.f32 %v279_v30, %v278_v46  ;;  %v281_v32 = vpop.f32.mrb[2].mxu1 }
 0x100   :  { %v282_v35 = vpop.f32.mrb[3].mxu1 }
 0x101   :  { %v222_v15 = vadd.f32 %v280_v31, %v255_v50  ;;  %v272_v38 = vpop.f32.mrb[0].mxu0  ;;  %v283_v16 = vadd.f32 %v282_v35, %v281_v32 }
 0x102   :  { %v273_v36 = vpop.f32.mrb[1].mxu0 }
 0x103   :  { %v242_v42 = vadd.f32 %v237_v34, %v222_v15  ;;  %v225_v43 = vadd.f32 %v283_v16, %v255_v50  ;;  %v274_v47 = vadd.f32 %v273_v36, %v272_v38  ;;  %v275_v48 = vpop.f32.mrb[2].mxu0 }
 0x104   :  { %v276_v51 = vpop.f32.mrb[3].mxu0 }
 0x105   :  { %248 = vst.msk [vmem:[%s593_s4 + $0x10] sm:$0xff] %vm245_vm0, %v242_v42  ;;  %v243_v52 = vadd.f32 %v238_v41, %v225_v43  ;;  %v214_v53 = vadd.f32 %v274_v47, %v255_v50  ;;  %v277_v54 = vadd.f32 %v276_v51, %v275_v48 }
 0x106   :  { %v284_v56 = vpop.f32.mrb[4].mxu1 }
 0x107   :  { %249 = vst.msk [vmem:[%s593_s4 + $0x18] sm:$0xff] %vm245_vm0, %v243_v52  ;;  %v240_v57 = vadd.f32 %v235_v49, %v214_v53  ;;  %v217_v58 = vadd.f32 %v277_v54, %v255_v50  ;;  %v285_v59 = vpop.f32.mrb[5].mxu1 }
 0x108   :  { %v286_v60 = vadd.f32 %v285_v59, %v284_v56  ;;  %v287_v61 = vpop.f32.mrb[6].mxu1 }
 0x109   :  { %246 = vst.msk [vmem:[%s593_s4] sm:$0xff] %vm245_vm0, %v240_v57  ;;  %v241_v62 = vadd.f32 %v236_v55, %v217_v58  ;;  %v288_v0 = vpop.f32.mrb[7].mxu1 }
 0x10a   :  { %v230_v1 = vadd.f32 %v286_v60, %v255_v50 }
 0x10b   :  { %247 = vst.msk [vmem:[%s593_s4 + $0x8] sm:$0xff] %vm245_vm0, %v241_v62 }
 0x10c   :  { %v244_v2 = vadd.f32 %v239_v63, %v230_v1 }
 0x10e   :  { %250 = vst.msk [vmem:[%s593_s4 + $0x20] sm:$0xff] %vm245_vm0, %v244_v2 }

// kernel: mrm_gen_forward.43
= control target key start
LH: loop header
LB: loop body
LE: loop exit
PB: predicated region body
PF: predicated region fallthrough
CT: control target
= control target key end

     0   :  { %vm19_vm0 = vcmask 523264   ;;  %s202_s0 = inlined_call_operand.vmem [shape: f32[40,64], index: 0, kind: input, shape index: {}]   ;;  %s203_s1 = inlined_call_operand.vmem [shape: f32[1,64], index: 1, kind: input, shape index: {}]   ;;  %s204_s2 = inlined_call_operand.vmem [shape: f32[1,64], index: 2, kind: input, shape index: {}]   ;;  %s205_s3 = inlined_call_operand.vmem [shape: f32[40,64], index: 3, kind: output, shape index: {}]  }
   0x1   :  { %v14_v0 = vld [vmem:[%s202_s0] sm:$0xff]  ;;  %v16_v1 = vld [vmem:[%s202_s0 + $0x10] sm:$0xff]  ;;  %v15_v2 = vld [vmem:[%s202_s0 + $0x8] sm:$0xff] }
   0x2   :  { %v20_v3 = vsel %vm19_vm0, %v14_v0, 0.0  ;;  %v26_v4 = vsel %vm19_vm0, %v16_v1, 0.0  ;;  %v17_v5 = vld [vmem:[%s202_s0 + $0x18] sm:$0xff]  ;;  %v23_v6 = vsel %vm19_vm0, %v15_v2, 0.0  ;;  %v18_v8 = vld [vmem:[%s202_s0 + $0x20] sm:$0xff] }
   0x3   :  { %21 = vadd.xlane.f32.xlu0 %v20_v3  ;;  %27 = vadd.xlane.f32.xlu1 %v26_v4  ;;  %v29_v7 = vsel %vm19_vm0, %v17_v5, 0.0  ;;  %v32_v9 = vsel %vm19_vm0, %v18_v8, 0.0  ;;  %v119_v51 = vld [vmem:[%s203_s1] ss:$0 sm:$0xff] }
   0x4   :  { %v120_v53 = vld [vmem:[%s204_s2] ss:$0 sm:$0xff] }
   0x7   :  { %24 = vadd.xlane.f32.xlu0 %v23_v6  ;;  %30 = vadd.xlane.f32.xlu1 %v29_v7 }
   0xb   :  { %33 = vadd.xlane.f32.xlu0 %v32_v9 }
  0x90   :  { %v22_v10 = vpop.xlane.xlu0 %21  ;;  %v28_v11 = vpop.xlane.xlu1 %27 }
  0x91   :  { %v36_v12 = vmul.f32 0.015625, %v22_v10  ;;  %v38_v13 = vmul.f32 0.015625, %v28_v11 }
  0x93   :  { %v41_v14 = vsub.f32 %v14_v0, %v36_v12  ;;  %v43_v15 = vsub.f32 %v16_v1, %v38_v13 }
  0x94   :  { %v25_v16 = vpop.xlane.xlu0 %24  ;;  %v31_v17 = vpop.xlane.xlu1 %30 }
  0x95   :  { %v37_v18 = vmul.f32 0.015625, %v25_v16  ;;  %v39_v19 = vmul.f32 0.015625, %v31_v17  ;;  %v46_v20 = vmul.f32 %v41_v14, %v41_v14  ;;  %v48_v21 = vmul.f32 %v43_v15, %v43_v15 }
  0x97   :  { %v42_v22 = vsub.f32 %v15_v2, %v37_v18  ;;  %v44_v23 = vsub.f32 %v17_v5, %v39_v19  ;;  %v51_v24 = vsel %vm19_vm0, %v46_v20, 0.0  ;;  %v57_v27 = vsel %vm19_vm0, %v48_v21, 0.0 }
  0x98   :  { %52 = vadd.xlane.f32.xlu1 %v51_v24  ;;  %v34_v25 = vpop.xlane.xlu0 %33 }
  0x99   :  { %v40_v26 = vmul.f32 0.015625, %v34_v25  ;;  %v47_v28 = vmul.f32 %v42_v22, %v42_v22  ;;  %v49_v29 = vmul.f32 %v44_v23, %v44_v23 }
  0x9b   :  { %v45_v30 = vsub.f32 %v18_v8, %v40_v26  ;;  %v54_v31 = vsel %vm19_vm0, %v47_v28, 0.0  ;;  %v60_v32 = vsel %vm19_vm0, %v49_v29, 0.0 }
  0x9c   :  { %58 = vadd.xlane.f32.xlu1 %v57_v27  ;;  %55 = vadd.xlane.f32.xlu0 %v54_v31 }
  0x9d   :  { %v50_v33 = vmul.f32 %v45_v30, %v45_v30 }
  0x9f   :  { %v63_v34 = vsel %vm19_vm0, %v50_v33, 0.0 }
  0xa0   :  { %61 = vadd.xlane.f32.xlu0 %v60_v32  ;;  %64 = vadd.xlane.f32.xlu1 %v63_v34 }
 0x125   :  { %v53_v35 = vpop.xlane.xlu1 %52 }
 0x126   :  { %v66_v36 = vmul.f32 0.015625, %v53_v35 }
 0x128   :  { %v71_v37 = vadd.f32 1e-06, %v66_v36 }
 0x129   :  { %v59_v38 = vpop.xlane.xlu1 %58  ;;  %v56_v39 = vpop.xlane.xlu0 %55 }
 0x12a   :  { %121 = vrsqrt.f32 %v71_v37  ;;  %v68_v40 = vmul.f32 0.015625, %v59_v38  ;;  %v67_v41 = vmul.f32 0.015625, %v56_v39 }
 0x12c   :  { %v73_v42 = vadd.f32 1e-06, %v68_v40  ;;  %v72_v43 = vadd.f32 1e-06, %v67_v41 }
 0x12d   :  { %v65_v44 = vpop.xlane.xlu1 %64  ;;  %v62_v45 = vpop.xlane.xlu0 %61 }
 0x12e   :  { %123 = vrsqrt.f32 %v73_v42  ;;  %v70_v46 = vmul.f32 0.015625, %v65_v44  ;;  %v69_v47 = vmul.f32 0.015625, %v62_v45 }
 0x12f   :  { %125 = vrsqrt.f32 %v72_v43 }
 0x130   :  { %v75_v48 = vadd.f32 1e-06, %v70_v46  ;;  %v74_v49 = vadd.f32 1e-06, %v69_v47 }
 0x132   :  { %127 = vrsqrt.f32 %v75_v48 }
 0x133   :  { %129 = vrsqrt.f32 %v74_v49 }
 0x134   :  { %v122_v50 = vpop.eup %121 }
 0x135   :  { %v81_v52 = vmul.f32 %v122_v50, %v41_v14 }
 0x137   :  { %v93_v54 = vmul.f32 %v119_v51, %v81_v52 }
 0x138   :  { %v124_v55 = vpop.eup %123 }
 0x139   :  { %v126_v56 = vpop.eup %125  ;;  %v105_v57 = vadd.f32 %v120_v53, %v93_v54  ;;  %v83_v58 = vmul.f32 %v124_v55, %v43_v15 }
 0x13a   :  { %v82_v59 = vmul.f32 %v126_v56, %v42_v22 }
 0x13b   :  { %110 = vst.msk [vmem:[%s205_s3] sm:$0xff] %vm19_vm0, %v105_v57  ;;  %v95_v60 = vmul.f32 %v119_v51, %v83_v58 }
 0x13c   :  { %v128_v61 = vpop.eup %127  ;;  %v94_v62 = vmul.f32 %v119_v51, %v82_v59 }
 0x13d   :  { %v130_v63 = vpop.eup %129  ;;  %v107_v0 = vadd.f32 %v120_v53, %v95_v60  ;;  %v85_v1 = vmul.f32 %v128_v61, %v45_v30 }
 0x13e   :  { %v106_v2 = vadd.f32 %v120_v53, %v94_v62  ;;  %v84_v3 = vmul.f32 %v130_v63, %v44_v23 }
 0x13f   :  { %112 = vst.msk [vmem:[%s205_s3 + $0x10] sm:$0xff] %vm19_vm0, %v107_v0  ;;  %v97_v4 = vmul.f32 %v119_v51, %v85_v1 }
 0x140   :  { %111 = vst.msk [vmem:[%s205_s3 + $0x8] sm:$0xff] %vm19_vm0, %v106_v2  ;;  %v96_v5 = vmul.f32 %v119_v51, %v84_v3 }
 0x141   :  { %v109_v6 = vadd.f32 %v120_v53, %v97_v4 }
 0x142   :  { %v108_v7 = vadd.f32 %v120_v53, %v96_v5 }
 0x143   :  { %114 = vst.msk [vmem:[%s205_s3 + $0x20] sm:$0xff] %vm19_vm0, %v109_v6 }
 0x144   :  { %113 = vst.msk [vmem:[%s205_s3 + $0x18] sm:$0xff] %vm19_vm0, %v108_v7 }

// kernel: mrm_gen_forward.46
= control target key start
LH: loop header
LB: loop body
LE: loop exit
PB: predicated region body
PF: predicated region fallthrough
CT: control target
= control target key end

     0   :  { %vm42_vm0 = vcmask 523264   ;;  %s215_s1 = inlined_call_operand.vmem [shape: f32[64,64], index: 1, kind: input, shape index: {}]   ;;  %s216_s0 = inlined_call_operand.vmem [shape: f32[24,64], index: 0, kind: input, shape index: {}]   ;;  %s217_s2 = inlined_call_operand.vmem [shape: f32[1,64], index: 2, kind: input, shape index: {}]   ;;  %s218_s3 = inlined_call_operand.vmem [shape: f32[24,64], index: 3, kind: input, shape index: {}]   ;;  %s219_s4 = inlined_call_operand.vmem [shape: f32[24,64], index: 4, kind: output, shape index: {}]  }
   0x1   :  { %v23_v0 = vld [vmem:[%s215_s1] sm:$0xff]  ;;  %v24_v1 = vld [vmem:[%s215_s1 + $0x8] sm:$0xff]  ;;  %v25_v2 = vld [vmem:[%s215_s1 + $0x10] sm:$0xff] }
   0x2   :  { %v31_v3 = vpack.c.bf16 %v24_v1, %v23_v0  ;;  %v26_v4 = vld [vmem:[%s215_s1 + $0x18] sm:$0xff]  ;;  %v27_v6 = vld [vmem:[%s215_s1 + $0x20] sm:$0xff]  ;;  %v28_v7 = vld [vmem:[%s215_s1 + $0x28] sm:$0xff] }
   0x3   :  { %v32_v5 = vpack.c.bf16 %v26_v4, %v25_v2  ;;  %v18_v8 = vld [vmem:[%s216_s0] sm:$0xff]  ;;  %v19_v9 = vld [vmem:[%s216_s0 + $0x8] sm:$0xff]  ;;  %v33_v11 = vpack.c.bf16 %v28_v7, %v27_v6  ;;  %v29_v12 = vld [vmem:[%s215_s1 + $0x30] sm:$0xff] }
   0x4   :  { %119 = vmatprep.subr.bf16.mxu0 %v31_v3  ;;  %v21_v10 = vpack.c.bf16 %v19_v9, %v18_v8  ;;  %v30_v13 = vld [vmem:[%s215_s1 + $0x38] sm:$0xff]  ;;  %v20_v15 = vld [vmem:[%s216_s0 + $0x10] sm:$0xff]  ;;  %v110_v17 = vld [vmem:[%s217_s2] ss:$0 sm:$0xff] }
   0x5   :  { %120 = vmatpush3.bf16.msra.mxu0 %v31_v3  ;;  %v34_v14 = vpack.c.bf16 %v30_v13, %v29_v12  ;;  %v22_v16 = vpack.c.bf16 %v20_v15, %v20_v15  ;;  %v99_v19 = vld [vmem:[%s218_s3 + $0x10] sm:$0xff]  ;;  %v97_v22 = vld [vmem:[%s218_s3] sm:$0xff]  ;;  %v98_v27 = vld [vmem:[%s218_s3 + $0x8] sm:$0xff] }
   0x6   :  { %121 = vmatprep.subr.bf16.mxu0 %v32_v5  ;;  %127 = vmatprep.mubr.msk.bf16.mxu0 %vm42_vm0, %v21_v10 }
   0x9   :  { %122 = vmatpush3.bf16.msra.mxu0 %v32_v5 }
   0xa   :  { %123 = vmatprep.subr.bf16.mxu0 %v33_v11 }
   0xd   :  { %124 = vmatpush3.bf16.msra.mxu0 %v33_v11 }
   0xe   :  { %125 = vmatprep.subr.bf16.mxu0 %v34_v14 }
  0x11   :  { %126 = vmatpush3.bf16.msra.mxu0 %v34_v14 }
  0x14   :  { %128 = vmatmul.mubr.msk.bf16.vlgmr.msra.gmra.mrb[0].mxu0 %vm42_vm0, %v22_v16 }
  0xe7   :  { %v129_v18 = vpop.f32.mrb[0].mxu0 }
  0xe8   :  { %v92_v20 = vadd.f32 %v129_v18, %v110_v17  ;;  %v83_v21 = vpop.f32.mrb[1].mxu0 }
  0xe9   :  { %v84_v23 = vadd.f32 %v110_v17, %v83_v21  ;;  %v130_v24 = vpop.f32.mrb[2].mxu0 }
  0xea   :  { %v102_v25 = vadd.f32 %v99_v19, %v92_v20  ;;  %v86_v26 = vpop.f32.mrb[3].mxu0 }
  0xeb   :  { %v100_v28 = vadd.f32 %v97_v22, %v84_v23  ;;  %v87_v29 = vadd.f32 %v110_v17, %v86_v26 }
  0xec   :  { %105 = vst.msk [vmem:[%s219_s4 + $0x10] sm:$0xff] %vm42_vm0, %v102_v25 }
  0xed   :  { %103 = vst.msk [vmem:[%s219_s4] sm:$0xff] %vm42_vm0, %v100_v28  ;;  %v101_v30 = vadd.f32 %v98_v27, %v87_v29 }
  0xef   :  { %104 = vst.msk [vmem:[%s219_s4 + $0x8] sm:$0xff] %vm42_vm0, %v101_v30 }

// kernel: mrm_gen_forward.44
= control target key start
LH: loop header
LB: loop body
LE: loop exit
PB: predicated region body
PF: predicated region fallthrough
CT: control target
= control target key end

     0   :  { %vm24_vm0 = vcmask 523264   ;;  %v209_v45 = vmov 0   ;;  %s350_s0 = inlined_call_operand.vmem [shape: f32[24,64], index: 0, kind: input, shape index: {}]   ;;  %s351_s1 = inlined_call_operand.vmem [shape: f32[64,192], index: 1, kind: input, shape index: {}]   ;;  %s352_s3 = inlined_call_operand.vmem [shape: f32[1,64], index: 3, kind: input, shape index: {}]   ;;  %s353_s4 = inlined_call_operand.vmem [shape: f32[1,64], index: 4, kind: input, shape index: {}]   ;;  %s354_s2 = inlined_call_operand.vmem [shape: f32[1,192], index: 2, kind: input, shape index: {}]   ;;  %s355_s5 = inlined_call_operand.vmem [shape: f32[24,192], index: 5, kind: output, shape index: {}]  }
   0x1   :  { %v21_v0 = vld [vmem:[%s350_s0] sm:$0xff]  ;;  %v23_v1 = vld [vmem:[%s350_s0 + $0x10] sm:$0xff]  ;;  %v22_v2 = vld [vmem:[%s350_s0 + $0x8] sm:$0xff]  ;;  %161 = vmatprep.mubr.bf16.mxu0 %v209_v45  ;;  %171 = vmatprep.mubr.bf16.mxu1 %v209_v45 }
   0x2   :  { %v25_v3 = vsel %vm24_vm0, %v21_v0, 0.0  ;;  %v31_v4 = vsel %vm24_vm0, %v23_v1, 0.0  ;;  %v28_v5 = vsel %vm24_vm0, %v22_v2, 0.0  ;;  %v88_v21 = vld [vmem:[%s351_s1 + $0x8] sm:$0xff]  ;;  %v90_v22 = vld [vmem:[%s351_s1 + $0x18] sm:$0xff]  ;;  %v87_v24 = vld [vmem:[%s351_s1] sm:$0xff] }
   0x3   :  { %26 = vadd.xlane.f32.xlu0 %v25_v3  ;;  %32 = vadd.xlane.f32.xlu1 %v31_v4  ;;  %v104_v23 = vpack.c.bf16 %v90_v22, %v88_v21  ;;  %v89_v25 = vld [vmem:[%s351_s1 + $0x10] sm:$0xff]  ;;  %v92_v27 = vld [vmem:[%s351_s1 + $0x28] sm:$0xff]  ;;  %v94_v28 = vld [vmem:[%s351_s1 + $0x38] sm:$0xff] }
   0x4   :  { %v103_v26 = vpack.c.bf16 %v89_v25, %v87_v24  ;;  %v106_v29 = vpack.c.bf16 %v94_v28, %v92_v27  ;;  %v91_v30 = vld [vmem:[%s351_s1 + $0x20] sm:$0xff]  ;;  %v93_v31 = vld [vmem:[%s351_s1 + $0x30] sm:$0xff]  ;;  %v96_v33 = vld [vmem:[%s351_s1 + $0x48] sm:$0xff] }
   0x5   :  { %129 = vmatprep.subr.bf16.mxu0 %v104_v23  ;;  %194 = vmatprep.subr.bf16.mxu1 %v104_v23  ;;  %v105_v32 = vpack.c.bf16 %v93_v31, %v91_v30  ;;  %v98_v34 = vld [vmem:[%s351_s1 + $0x58] sm:$0xff]  ;;  %v95_v36 = vld [vmem:[%s351_s1 + $0x40] sm:$0xff]  ;;  %v97_v37 = vld [vmem:[%s351_s1 + $0x50] sm:$0xff] }
   0x6   :  { %130 = vmatpush1.bf16.msra.mxu0 %v103_v26  ;;  %198 = vmatpush1.bf16.msra.mxu1 %v103_v26  ;;  %v108_v35 = vpack.c.bf16 %v98_v34, %v96_v33  ;;  %v107_v38 = vpack.c.bf16 %v97_v37, %v95_v36  ;;  %v100_v39 = vld [vmem:[%s351_s1 + $0x68] sm:$0xff]  ;;  %v102_v40 = vld [vmem:[%s351_s1 + $0x78] sm:$0xff]  ;;  %v99_v41 = vld [vmem:[%s351_s1 + $0x60] sm:$0xff] }
   0x7   :  { %29 = vadd.xlane.f32.xlu0 %v28_v5  ;;  %131 = vmatprep.subr.bf16.mxu0 %v106_v29  ;;  %v110_v42 = vpack.c.bf16 %v102_v40, %v100_v39  ;;  %v101_v43 = vld [vmem:[%s351_s1 + $0x70] sm:$0xff]  ;;  %v190_v57 = vld [vmem:[%s352_s3] ss:$0 sm:$0xff] }
   0x8   :  { %195 = vmatprep.subr.bf16.mxu1 %v106_v29  ;;  %v109_v44 = vpack.c.bf16 %v101_v43, %v99_v41  ;;  %v191_v63 = vld [vmem:[%s353_s4] ss:$0 sm:$0xff] }
   0xa   :  { %132 = vmatpush1.bf16.msra.mxu0 %v105_v32  ;;  %199 = vmatpush1.bf16.msra.mxu1 %v105_v32 }
   0xb   :  { %133 = vmatprep.subr.bf16.mxu0 %v108_v35  ;;  %196 = vmatprep.subr.bf16.mxu1 %v108_v35 }
   0xe   :  { %134 = vmatpush1.bf16.msra.mxu0 %v107_v38  ;;  %200 = vmatpush1.bf16.msra.mxu1 %v107_v38 }
   0xf   :  { %135 = vmatprep.subr.bf16.mxu0 %v110_v42  ;;  %197 = vmatprep.subr.bf16.mxu1 %v110_v42 }
  0x12   :  { %136 = vmatpush1.bf16.msra.mxu0 %v109_v44  ;;  %201 = vmatpush1.bf16.msra.mxu1 %v109_v44 }
  0x90   :  { %v27_v6 = vpop.xlane.xlu0 %26  ;;  %v33_v7 = vpop.xlane.xlu1 %32 }
  0x91   :  { %v35_v8 = vmul.f32 0.015625, %v27_v6  ;;  %v37_v9 = vmul.f32 0.015625, %v33_v7  ;;  %v113_v7 = vlaneseq }
  0x93   :  { %v252_v10 = vsub.f32 %v21_v0, %v35_v8  ;;  %v254_v11 = vsub.f32 %v23_v1, %v37_v9  ;;  %v114_v8 = vshrl.u32 %v113_v7, 7 }
  0x94   :  { %v30_v12 = vpop.xlane.xlu0 %29 }
  0x95   :  { %v36_v13 = vmul.f32 0.015625, %v30_v12  ;;  %v41_v14 = vmul.f32 %v252_v10, %v252_v10  ;;  %v43_v15 = vmul.f32 %v254_v11, %v254_v11  ;;  %v115_v9 = vsub.s32 0, %v114_v8 }
  0x97   :  { %v260_v16 = vsub.f32 %v22_v2, %v36_v13  ;;  %v44_v17 = vsel %vm24_vm0, %v41_v14, 0.0  ;;  %v50_v18 = vsel %vm24_vm0, %v43_v15, 0.0 }
  0x98   :  { %45 = vadd.xlane.f32.xlu1 %v44_v17 }
  0x99   :  { %v42_v19 = vmul.f32 %v260_v16, %v260_v16 }
  0x9b   :  { %v47_v20 = vsel %vm24_vm0, %v42_v19, 0.0 }
  0x9c   :  { %51 = vadd.xlane.f32.xlu1 %v50_v18  ;;  %48 = vadd.xlane.f32.xlu0 %v47_v20 }
 0x125   :  { %v46_v46 = vpop.xlane.xlu1 %45 }
 0x126   :  { %v53_v47 = vmul.f32 0.015625, %v46_v46 }
 0x128   :  { %v56_v48 = vadd.f32 1e-06, %v53_v47 }
 0x129   :  { %v52_v49 = vpop.xlane.xlu1 %51  ;;  %v49_v50 = vpop.xlane.xlu0 %48 }
 0x12a   :  { %203 = vrsqrt.f32 %v56_v48  ;;  %v55_v51 = vmul.f32 0.015625, %v52_v49  ;;  %v54_v52 = vmul.f32 0.015625, %v49_v50 }
 0x12c   :  { %v58_v53 = vadd.f32 1e-06, %v55_v51  ;;  %v57_v54 = vadd.f32 1e-06, %v54_v52 }
 0x12e   :  { %205 = vrsqrt.f32 %v58_v53 }
 0x12f   :  { %207 = vrsqrt.f32 %v57_v54 }
 0x134   :  { %v204_v55 = vpop.eup %203 }
 0x135   :  { %v62_v56 = vmul.f32 %v204_v55, %v252_v10  ;;  %v111_v10 = vld [vmem:[%s354_s2] sm:$0x3] }
 0x136   :  { %v116_v12 = vrot.slane %v111_v10, %v115_v9 }
 0x137   :  { %v72_v62 = vmul.f32 %v190_v57, %v62_v56 }
 0x138   :  { %v206_v58 = vpop.eup %205 }
 0x139   :  { %v208_v59 = vpop.eup %207  ;;  %v64_v60 = vmul.f32 %v206_v58, %v254_v11  ;;  %v82_v3 = vadd.f32 %v191_v63, %v72_v62  ;;  %v119_v11 = vsub.s32 1, %v114_v8 }
 0x13a   :  { %v63_v61 = vmul.f32 %v208_v59, %v260_v16 }
 0x13b   :  { %v74_v0 = vmul.f32 %v190_v57, %v64_v60  ;;  %v120_v13 = vrot.slane %v111_v10, %v119_v11 }
 0x13c   :  { %v73_v1 = vmul.f32 %v190_v57, %v63_v61 }
 0x13d   :  { %v84_v2 = vadd.f32 %v191_v63, %v74_v0 }
 0x13e   :  { %v83_v4 = vadd.f32 %v191_v63, %v73_v1 }
 0x13f   :  { %v86_v5 = vpack.c.bf16 %v84_v2, %v84_v2 }
 0x140   :  { %v85_v6 = vpack.c.bf16 %v83_v4, %v82_v3 }
 0x141   :  { %193 = vmatmul.mubr.msk.bf16.vlgmr.msra.gmra.mrb[0].mxu1 %vm24_vm0, %v86_v5 }
 0x142   :  { %192 = vmatmul.mubr.msk.bf16.vlgmr.msra.gmra.mrb[0].mxu0 %vm24_vm0, %v85_v6 }
 0x214   :  { %v173_v14 = vpop.f32.mrb[0].mxu1 }
 0x215   :  { %v163_v15 = vpop.f32.mrb[0].mxu0  ;;  %v174_v16 = vadd.f32 %v173_v14, %v116_v12  ;;  %v175_v17 = vpop.f32.mrb[1].mxu1 }
 0x216   :  { %v164_v18 = vadd.f32 %v163_v15, %v116_v12  ;;  %v165_v19 = vpop.f32.mrb[1].mxu0  ;;  %v176_v20 = vadd.f32 %v175_v17, %v120_v13  ;;  %v177_v21 = vpop.f32.mrb[2].mxu1 }
 0x217   :  { %184 = vst [vmem:[%s355_s5 + $0x20] sm:$0xff] %v174_v16  ;;  %v166_v22 = vadd.f32 %v165_v19, %v120_v13  ;;  %v167_v23 = vpop.f32.mrb[2].mxu0  ;;  %v178_v24 = vpop.f32.mrb[3].mxu1 }
 0x218   :  { %180 = vst [vmem:[%s355_s5] sm:$0xff] %v164_v18  ;;  %185 = vst.msk [vmem:[%s355_s5 + $0x28] sm:$0xff] %vm24_vm0, %v176_v20  ;;  %v168_v25 = vadd.f32 %v167_v23, %v116_v12  ;;  %v169_v26 = vpop.f32.mrb[3].mxu0 }
 0x219   :  { %181 = vst.msk [vmem:[%s355_s5 + $0x8] sm:$0xff] %vm24_vm0, %v166_v22  ;;  %v170_v27 = vadd.f32 %v169_v26, %v120_v13 }
 0x21a   :  { %182 = vst [vmem:[%s355_s5 + $0x10] sm:$0xff] %v168_v25 }
 0x21b   :  { %183 = vst.msk [vmem:[%s355_s5 + $0x18] sm:$0xff] %vm24_vm0, %v170_v27 }

// kernel: mrm_gen_forward.45
= control target key start
LH: loop header
LB: loop body
LE: loop exit
PB: predicated region body
PF: predicated region fallthrough
CT: control target
= control target key end

     0   :  { %s1581_s12 = smov 0   ;;  %s1583_s13 = smov 0   ;;  %s2015_s0 = inlined_call_operand.vmem [shape: f32[2,9,3,4,16], index: 0, kind: input, shape index: {}, may-alias: {0,1,2}]   ;;  %s2016_s1 = inlined_call_operand.vmem [shape: f32[2,9,3,4,16], index: 1, kind: input, shape index: {}, may-alias: {0,1,2}]   ;;  %s2017_s2 = inlined_call_operand.vmem [shape: f32[2,9,3,4,16], index: 2, kind: input, shape index: {}, may-alias: {0,1,2}]   ;;  %s2018_s3 = inlined_call_operand.vmem [shape: f32[2,9,64], index: 3, kind: output, shape index: {}]  }
   0x1   :  { %s1585_s14 = smov 0  }
   0x2 LB: > { %s1361_s15 = sadd.s32 4294967295, %s1553_s14   ;;  %s1598_s16 = sadd.s32 1, %s1553_s14   ;;  %s1553_s14 = sphi %s1585_s14, %s2022_s14   ;;  %s1549_s13 = sphi %s1583_s13, %s2021_s13   ;;  %s1545_s12 = sphi %s1581_s12, %s2020_s12  }
   0x3   : > { %s17_s17 = ssub.s32 %s1553_s14, %s1598_s16  ;;  %s20_s18 = sadd.s32 1, %s1549_s13 }
   0x4   : > { %p18_p0 = scmp.eq.s32.totalorder %s17_s17, 0  ;;  %p27_p1 = scmp.ne.s32.totalorder %s1549_s13, %s1545_s12 }
   0x5   : > { %p28_p2 = scmp.eq.s32.totalorder %s1553_s14, 0  ;;  %p1364_p4 = scmp.ge.s32.totalorder %s1553_s14, 2 }
   0x6   : > { %s1607_s19 = scalar_select %p18_p0, %s1549_s13, %s20_s18  }
   0x7   : > { %p1609_p3 = por %p28_p2, %p27_p1  ;;  %131 = sbr.rel (%p1364_p4) target bundleno = 47 (0x2f), region = 16 }
   0xe   : > { %134 = sbr.rel (!%p1609_p3) target bundleno = 25 (0x19), region = 20  ;;  %s136_s21 = sand.u32 (%p1609_p3), 1, %s1549_s13  }
   0xf   : > { %s1465_s22 = smul.u32 (%p1609_p3), 108, %s1553_s14 }
  0x10   : > { %s1464_s23 = smul.u32 (%p1609_p3), 36, %s136_s21 }
  0x11   : > { %s141_s26 = scalar_lea.vmem (%p1609_p3), %s2015_s0, %s1465_s22 }
  0x12   : > { %v157_v0 = vld [vmem:[%s141_s26] sm:$0xf] (%p1609_p3)  ;;  %v159_v1 = vld [vmem:[%s141_s26 + $0xc] sm:$0xf] (%p1609_p3)  ;;  %s138_s27 = scalar_lea.vmem (%p1609_p3), [#allocation2], %s1464_s23 }
  0x13   : > { %158 = vst [vmem:[%s138_s27] sm:$0xf] (%p1609_p3), %v157_v0  ;;  %160 = vst [vmem:[%s138_s27 + $0x4] sm:$0xf] (%p1609_p3), %v159_v1  ;;  %v161_v2 = vld [vmem:[%s141_s26 + $0x18] sm:$0xf] (%p1609_p3) }
  0x14   : > { %v163_v3 = vld [vmem:[%s141_s26 + $0x24] sm:$0xf] (%p1609_p3)  ;;  %v165_v4 = vld [vmem:[%s141_s26 + $0x30] sm:$0xf] (%p1609_p3)  ;;  %162 = vst [vmem:[%s138_s27 + $0x8] sm:$0xf] (%p1609_p3), %v161_v2 }
  0x15   : > { %164 = vst [vmem:[%s138_s27 + $0xc] sm:$0xf] %v163_v3  ;;  %166 = vst [vmem:[%s138_s27 + $0x10] sm:$0xf] %v165_v4  ;;  %v167_v5 = vld [vmem:[%s141_s26 + $0x3c] sm:$0xf] }
  0x16   : > { %v169_v6 = vld [vmem:[%s141_s26 + $0x48] sm:$0xf]  ;;  %v171_v7 = vld [vmem:[%s141_s26 + $0x54] sm:$0xf]  ;;  %168 = vst [vmem:[%s138_s27 + $0x14] sm:$0xf] %v167_v5 }
  0x17   : > { %170 = vst [vmem:[%s138_s27 + $0x18] sm:$0xf] %v169_v6  ;;  %172 = vst [vmem:[%s138_s27 + $0x1c] sm:$0xf] %v171_v7  ;;  %v173_v8 = vld [vmem:[%s141_s26 + $0x60] sm:$0xf] }
  0x18   : > { %174 = vst [vmem:[%s138_s27 + $0x20] sm:$0xf] %v173_v8 }
  0x19 PF: > { %215 = sbr.rel (!%p1609_p3) target bundleno = 36 (0x24), region = 61  ;;  %s217_s28 = sand.u32 (%p1609_p3), 1, %s1549_s13  }
  0x1a   : > { %s1366_s29 = smul.u32 (%p1609_p3), 108, %s1553_s14 }
  0x1b   : > { %s1466_s30 = smul.u32 (%p1609_p3), 36, %s217_s28 }
  0x1c   : > { %s1289_s6 = scalar_lea.vmem (%p1609_p3), %s2016_s1, %s1366_s29 }
  0x1d   : > { %v1367_v9 = vld [vmem:[%s1289_s6 + $0x4] sm:$0xf] (%p1609_p3)  ;;  %v1368_v10 = vld [vmem:[%s1289_s6 + $0x10] sm:$0xf] (%p1609_p3)  ;;  %s219_s7 = scalar_lea.vmem (%p1609_p3), [#allocation3], %s1466_s30 }
  0x1e   : > { %240 = vst [vmem:[%s219_s7] sm:$0xf] (%p1609_p3), %v1367_v9  ;;  %242 = vst [vmem:[%s219_s7 + $0x4] sm:$0xf] (%p1609_p3), %v1368_v10  ;;  %v1369_v11 = vld [vmem:[%s1289_s6 + $0x1c] sm:$0xf] (%p1609_p3) }
  0x1f   : > { %v1370_v12 = vld [vmem:[%s1289_s6 + $0x28] sm:$0xf] (%p1609_p3)  ;;  %v1371_v13 = vld [vmem:[%s1289_s6 + $0x34] sm:$0xf] (%p1609_p3)  ;;  %244 = vst [vmem:[%s219_s7 + $0x8] sm:$0xf] (%p1609_p3), %v1369_v11 }
  0x20   : > { %246 = vst [vmem:[%s219_s7 + $0xc] sm:$0xf] %v1370_v12  ;;  %248 = vst [vmem:[%s219_s7 + $0x10] sm:$0xf] %v1371_v13  ;;  %v1372_v14 = vld [vmem:[%s1289_s6 + $0x40] sm:$0xf] }
  0x21   : > { %v1373_v15 = vld [vmem:[%s1289_s6 + $0x4c] sm:$0xf]  ;;  %v1374_v16 = vld [vmem:[%s1289_s6 + $0x58] sm:$0xf]  ;;  %250 = vst [vmem:[%s219_s7 + $0x14] sm:$0xf] %v1372_v14 }
  0x22   : > { %252 = vst [vmem:[%s219_s7 + $0x18] sm:$0xf] %v1373_v15  ;;  %254 = vst [vmem:[%s219_s7 + $0x1c] sm:$0xf] %v1374_v16  ;;  %v1375_v17 = vld [vmem:[%s1289_s6 + $0x64] sm:$0xf] }
  0x23   : > { %256 = vst [vmem:[%s219_s7 + $0x20] sm:$0xf] %v1375_v17 }
  0x24 PF: > { %297 = sbr.rel (!%p1609_p3) target bundleno = 47 (0x2f), region = 102  ;;  %s299_s8 = sand.u32 (%p1609_p3), 1, %s1549_s13  }
  0x25   : > { %s1376_s9 = smul.u32 (%p1609_p3), 108, %s1553_s14 }
  0x26   : > { %s1467_s10 = smul.u32 (%p1609_p3), 36, %s299_s8 }
  0x27   : > { %s1295_s18 = scalar_lea.vmem (%p1609_p3), %s2017_s2, %s1376_s9 }
  0x28   : > { %v1377_v18 = vld [vmem:[%s1295_s18 + $0x8] sm:$0xf] (%p1609_p3)  ;;  %v1378_v19 = vld [vmem:[%s1295_s18 + $0x14] sm:$0xf] (%p1609_p3)  ;;  %s301_s21 = scalar_lea.vmem (%p1609_p3), [#allocation4], %s1467_s10 }
  0x29   : > { %322 = vst [vmem:[%s301_s21] sm:$0xf] (%p1609_p3), %v1377_v18  ;;  %324 = vst [vmem:[%s301_s21 + $0x4] sm:$0xf] (%p1609_p3), %v1378_v19  ;;  %v1379_v20 = vld [vmem:[%s1295_s18 + $0x20] sm:$0xf] (%p1609_p3) }
  0x2a   : > { %v1380_v21 = vld [vmem:[%s1295_s18 + $0x2c] sm:$0xf] (%p1609_p3)  ;;  %v1381_v22 = vld [vmem:[%s1295_s18 + $0x38] sm:$0xf] (%p1609_p3)  ;;  %326 = vst [vmem:[%s301_s21 + $0x8] sm:$0xf] (%p1609_p3), %v1379_v20 }
  0x2b   : > { %328 = vst [vmem:[%s301_s21 + $0xc] sm:$0xf] %v1380_v21  ;;  %330 = vst [vmem:[%s301_s21 + $0x10] sm:$0xf] %v1381_v22  ;;  %v1382_v23 = vld [vmem:[%s1295_s18 + $0x44] sm:$0xf] }
  0x2c   : > { %v1383_v24 = vld [vmem:[%s1295_s18 + $0x50] sm:$0xf]  ;;  %v1384_v25 = vld [vmem:[%s1295_s18 + $0x5c] sm:$0xf]  ;;  %332 = vst [vmem:[%s301_s21 + $0x14] sm:$0xf] %v1382_v23 }
  0x2d   : > { %334 = vst [vmem:[%s301_s21 + $0x18] sm:$0xf] %v1383_v24  ;;  %336 = vst [vmem:[%s301_s21 + $0x1c] sm:$0xf] %v1384_v25  ;;  %v1385_v26 = vld [vmem:[%s1295_s18 + $0x68] sm:$0xf] }
  0x2e   : > { %338 = vst [vmem:[%s301_s21 + $0x20] sm:$0xf] %v1385_v26 }
  0x2f PF: > { %p1386_p5 = scmp.ge.s32.totalorder %s1553_s14, 1  ;;  %p378_p6 = scmp.lt.s32.totalorder %s1553_s14, 3 }
  0x31   : > { %p379_p7 = pnand %p1386_p5, %p378_p6 }
  0x32   : > { %s385_s20 = sand.u32 (!%p379_p7), 1, %s1545_s12   ;;  %v1555_v27 = vmov (!%p379_p7), 0.0   ;;  %vm518_vm0 = vcmask (!%p379_p7), 1041409   ;;  %vm521_vm1 = vcmask (!%p379_p7), 1042434   ;;  %vm524_vm2 = vcmask (!%p379_p7), 1043459   ;;  %s1558_s25 = smov (!%p379_p7), 16  }
  0x33   : > { %382 = sbr.rel (%p379_p7) target bundleno = 1499 (0x5db), region = 143  ;;  %1416 = vmatprep.subr.bf16.mxu0 (!%p379_p7), %v1555_v27  ;;  %1422 = vmatprep.subr.bf16.mxu1 (!%p379_p7), %v1555_v27  ;;  %vm1556_vm3 = vmmov (!%p379_p7), 0   ;;  %vm527_vm4 = vcmask (!%p379_p7), 1044484   ;;  %vm530_vm5 = vcmask (!%p379_p7), 1045509   ;;  %vm533_vm6 = vcmask (!%p379_p7), 1046534   ;;  %s1559_s26 = smov (!%p379_p7), 32  }
  0x34   : > { %s1639_s22 = smul.u32 (!%p379_p7), 36, %s385_s20  ;;  %1418 = vmatprep.mubr.msk.bf16.mxu0 (!%p379_p7), %vm1556_vm3, %v1555_v27  ;;  %1424 = vmatprep.mubr.msk.bf16.mxu1 (!%p379_p7), %vm1556_vm3, %v1555_v27  ;;  %vm536_vm7 = vcmask (!%p379_p7), 1047559   ;;  %vm572_vm8 = vcmask (!%p379_p7), 130048   ;;  %vm620_vm9 = vcmask (!%p379_p7), 72704   ;;  %vm624_vm10 = vcmask (!%p379_p7), 65536   ;;  %s1560_s27 = smov (!%p379_p7), 48  }
  0x35   : > { %vm681_vm11 = vcmask (!%p379_p7), 1043456   ;;  %vm682_vm12 = vcmask (!%p379_p7), 1044480   ;;  %p430_p8 = scmp.lt.s32.totalorder (!%p379_p7), %s1361_s15, 1  ;;  %vm1250_vm13 = vcmask (!%p379_p7), 261120   ;;  %vm1253_vm14 = vcmask (!%p379_p7), 392192  }
  0x36   : > { %s394_s23 = scalar_lea.vmem (!%p379_p7), [#allocation3], %s1639_s22  ;;  %s1658_s12 = scalar_lea.vmem (!%p379_p7), [#allocation2], %s1639_s22  ;;  %vm1256_vm15 = vcmask (!%p379_p7), 523264  }
  0x37   : > { %v445_v28 = vld [vmem:[%s394_s23] sm:$0xf] (!%p379_p7)  ;;  %v446_v29 = vld [vmem:[%s394_s23 + $0x4] sm:$0xf] (!%p379_p7)  ;;  %v447_v30 = vld [vmem:[%s394_s23 + $0x8] sm:$0xf] (!%p379_p7) }
  0x38   : > { %v448_v31 = vld [vmem:[%s394_s23 + $0xc] sm:$0xf] (!%p379_p7)  ;;  %v449_v32 = vld [vmem:[%s394_s23 + $0x10] sm:$0xf] (!%p379_p7)  ;;  %v450_v33 = vld [vmem:[%s394_s23 + $0x14] sm:$0xf] (!%p379_p7)  ;;  %v481_v34 = vpack.c.bf16 (!%p379_p7), %v445_v28, %v445_v28  ;;  %v482_v35 = vpack.c.bf16 (!%p379_p7), %v446_v29, %v446_v29  ;;  %v483_v36 = vpack.c.bf16 (!%p379_p7), %v447_v30, %v447_v30 }
  0x39   : > { %v451_v37 = vld [vmem:[%s394_s23 + $0x18] sm:$0xf] (!%p379_p7)  ;;  %v452_v38 = vld [vmem:[%s394_s23 + $0x1c] sm:$0xf] (!%p379_p7)  ;;  %v453_v39 = vld [vmem:[%s394_s23 + $0x20] sm:$0xf] (!%p379_p7)  ;;  %v484_v40 = vpack.c.bf16 (!%p379_p7), %v448_v31, %v448_v31  ;;  %v485_v41 = vpack.c.bf16 (!%p379_p7), %v449_v32, %v449_v32  ;;  %v486_v42 = vpack.c.bf16 (!%p379_p7), %v450_v33, %v450_v33 }
  0x3a   : > { %v487_v43 = vpack.c.bf16 %v451_v37, %v451_v37  ;;  %v488_v44 = vpack.c.bf16 %v452_v38, %v452_v38  ;;  %v489_v45 = vpack.c.bf16 %v453_v39, %v453_v39  ;;  %v1647_v46 = vunpack.c.l.b16 %v481_v34  ;;  %v436_v51 = vld [vmem:[%s1658_s12] sm:$0xf]  ;;  %v437_v52 = vld [vmem:[%s1658_s12 + $0x4] sm:$0xf]  ;;  %v438_v53 = vld [vmem:[%s1658_s12 + $0x8] sm:$0xf] }
  0x3b   : > { %v1649_v47 = vunpack.c.l.b16 %v482_v35  ;;  %v1651_v48 = vunpack.c.l.b16 %v483_v36  ;;  %v1653_v49 = vunpack.c.l.b16 %v484_v40  ;;  %v1655_v50 = vunpack.c.l.b16 %v485_v41  ;;  %v439_v57 = vld [vmem:[%s1658_s12 + $0xc] sm:$0xf]  ;;  %v440_v58 = vld [vmem:[%s1658_s12 + $0x10] sm:$0xf]  ;;  %v441_v59 = vld [vmem:[%s1658_s12 + $0x14] sm:$0xf] }
  0x3c   : > { %v1663_v54 = vunpack.c.l.b16 %v486_v42  ;;  %v1665_v55 = vunpack.c.l.b16 %v487_v43  ;;  %v1667_v56 = vunpack.c.l.b16 %v488_v44  ;;  %v1672_v60 = vunpack.c.l.b16 %v489_v45  ;;  %v442_v0 = vld [vmem:[%s1658_s12 + $0x18] sm:$0xf]  ;;  %v443_v4 = vld [vmem:[%s1658_s12 + $0x1c] sm:$0xf]  ;;  %v444_v16 = vld [vmem:[%s1658_s12 + $0x20] sm:$0xf] }
  0x3d   : > { %v557_v61 = vrot.slane %v1649_v47, 7  ;;  %v559_v62 = vrot.slane %v1651_v48, 6  ;;  %v561_v63 = vrot.slane %v1653_v49, 5  ;;  %v563_v1 = vrot.slane %v1655_v50, 4  ;;  %s401_s24 = scalar_lea.vmem [#allocation4], %s1639_s22  ;;  %s2024_s15 = smov (!%p430_p8, %s1361_s15), 1 }
  0x3e   : > { %v565_v2 = vrot.slane %v1663_v54, 3  ;;  %v567_v3 = vrot.slane %v1665_v55, 2  ;;  %v463_v5 = vmul.f32 0.25, %v436_v51  ;;  %v464_v7 = vmul.f32 0.25, %v437_v52  ;;  %s1399_s28 = sshll.u32 %s2024_s15, 4 }
  0x3f   : > { %v558_v6 = vsel %vm518_vm0, %v557_v61, %v1647_v46  ;;  %v465_v8 = vmul.f32 0.25, %v438_v53  ;;  %v466_v9 = vmul.f32 0.25, %v439_v57  ;;  %v467_v11 = vmul.f32 0.25, %v440_v58  ;;  %s434_s4 = scalar_lea.vmem %s2018_s3, %s1399_s28 }
  0x40   : > { %v560_v10 = vsel %vm521_vm1, %v559_v62, %v558_v6  ;;  %v468_v12 = vmul.f32 0.25, %v441_v59  ;;  %v469_v13 = vmul.f32 0.25, %v442_v0  ;;  %v569_v15 = vrot.slane %v1667_v56, 1 }
  0x41   : > { %v562_v14 = vsel %vm524_vm2, %v561_v63, %v560_v10  ;;  %v470_v17 = vmul.f32 0.25, %v443_v4  ;;  %v472_v18 = vpack.c.bf16 %v463_v5, %v463_v5  ;;  %v473_v20 = vpack.c.bf16 %v464_v7, %v464_v7 }
  0x42   : > { %v564_v19 = vsel %vm527_vm4, %v563_v1, %v562_v14  ;;  %v474_v21 = vpack.c.bf16 %v465_v8, %v465_v8  ;;  %v475_v22 = vpack.c.bf16 %v466_v9, %v466_v9  ;;  %v476_v24 = vpack.c.bf16 %v467_v11, %v467_v11 }
  0x43   : > { %v566_v23 = vsel %vm530_vm5, %v565_v2, %v564_v19  ;;  %v477_v25 = vpack.c.bf16 %v468_v12, %v468_v12  ;;  %v478_v26 = vpack.c.bf16 %v469_v13, %v469_v13  ;;  %v471_v29 = vmul.f32 0.25, %v444_v16 }
  0x44   : > { %v568_v28 = vsel %vm533_vm6, %v567_v3, %v566_v23  ;;  %v479_v30 = vpack.c.bf16 %v470_v17, %v470_v17  ;;  %v1691_v31 = vunpack.c.l.b16 %v472_v18  ;;  %v1694_v33 = vunpack.c.l.b16 %v473_v20  ;;  %v455_v20 = vld [vmem:[%s401_s24 + $0x4] sm:$0xf]  ;;  %v454_v23 = vld [vmem:[%s401_s24] sm:$0xf] }
  0x45   : > { %v570_v32 = vsel %vm536_vm7, %v569_v15, %v568_v28  ;;  %v1696_v34 = vunpack.c.l.b16 %v474_v21  ;;  %v1698_v35 = vunpack.c.l.b16 %v475_v22  ;;  %v1701_v37 = vunpack.c.l.b16 %v476_v24  ;;  %v456_v21 = vld [vmem:[%s401_s24 + $0x8] sm:$0xf]  ;;  %v457_v24 = vld [vmem:[%s401_s24 + $0xc] sm:$0xf] }
  0x46   : > { %v571_v36 = vpack.c.b16 %v1672_v60, %v570_v32  ;;  %v1703_v38 = vunpack.c.l.b16 %v477_v25  ;;  %v1705_v39 = vunpack.c.l.b16 %v478_v26  ;;  %v1707_v40 = vunpack.c.l.b16 %v479_v30  ;;  %v458_v26 = vld [vmem:[%s401_s24 + $0x10] sm:$0xf]  ;;  %v459_v32 = vld [vmem:[%s401_s24 + $0x14] sm:$0xf] }
  0x47   : > { %v517_v41 = vrot.slane %v1694_v33, 7  ;;  %v520_v42 = vrot.slane %v1696_v34, 6  ;;  %v480_v44 = vpack.c.bf16 %v471_v29, %v471_v29  ;;  %v523_v45 = vrot.slane %v1698_v35, 5 }
  0x48   : > { %v577_v43 = vsel %vm572_vm8, %v571_v36, 0  ;;  %v526_v51 = vrot.slane %v1701_v37, 4  ;;  %v529_v53 = vrot.slane %v1703_v38, 3  ;;  %v532_v58 = vrot.slane %v1705_v39, 2 }
  0x49   : > { %1417 = vmatpush3.bf16.xpose.msra.mxu0 %v577_v43  ;;  %v519_v52 = vsel %vm518_vm0, %v517_v41, %v1691_v31  ;;  %v535_v61 = vrot.slane %v1707_v40, 1  ;;  %v1722_v62 = vunpack.c.l.b16 %v480_v44  ;;  %v491_v22 = vpack.c.bf16 %v455_v20, %v455_v20 }
  0x4a   : > { %v522_v57 = vsel %vm521_vm1, %v520_v42, %v519_v52  ;;  %1434 = vmatprep.subr.bf16.mxu0 %v1555_v27  ;;  %v492_v25 = vpack.c.bf16 %v456_v21, %v456_v21  ;;  %v490_v28 = vpack.c.bf16 %v454_v23, %v454_v23  ;;  %v493_v29 = vpack.c.bf16 %v457_v24, %v457_v24  ;;  %v460_v42 = vld [vmem:[%s401_s24 + $0x18] sm:$0xf]  ;;  %v461_v52 = vld [vmem:[%s401_s24 + $0x1c] sm:$0xf] }
  0x4b   : > { %v525_v59 = vsel %vm524_vm2, %v523_v45, %v522_v57  ;;  %v1743_v30 = vunpack.c.l.b16 %v491_v22  ;;  %v494_v36 = vpack.c.bf16 %v458_v26, %v458_v26  ;;  %v495_v43 = vpack.c.bf16 %v459_v32, %v459_v32 }
  0x4c   : > { %v528_v63 = vsel %vm527_vm4, %v526_v51, %v525_v59  ;;  %v1745_v41 = vunpack.c.l.b16 %v492_v25  ;;  %v1747_v44 = vunpack.c.l.b16 %v490_v28  ;;  %v1749_v45 = vunpack.c.l.b16 %v493_v29 }
  0x4d   : > { %v531_v0 = vsel %vm530_vm5, %v529_v53, %v528_v63  ;;  %v663_v51 = vrot.slane %v1743_v30, 7  ;;  %v496_v53 = vpack.c.bf16 %v460_v42, %v460_v42  ;;  %v1752_v57 = vunpack.c.l.b16 %v494_v36 }
  0x4e   : > { %v534_v1 = vsel %vm533_vm6, %v532_v58, %v531_v0  ;;  %v665_v58 = vrot.slane %v1745_v41, 6  ;;  %v497_v59 = vpack.c.bf16 %v461_v52, %v461_v52  ;;  %v667_v0 = vrot.slane %v1749_v45, 5 }
  0x4f   : > { %v537_v2 = vsel %vm536_vm7, %v535_v61, %v534_v1  ;;  %v1755_v61 = vunpack.c.l.b16 %v495_v43  ;;  %v664_v63 = vsel %vm518_vm0, %v663_v51, %v1747_v44  ;;  %v1760_v1 = vunpack.c.l.b16 %v496_v53 }
  0x50   : > { %v538_v3 = vpack.c.b16 %v1722_v62, %v537_v2  ;;  %v666_v2 = vsel %vm521_vm1, %v665_v58, %v664_v63  ;;  %v745_v23 = vrot.slane %v1647_v46, 1  ;;  %v747_v24 = vrot.slane %v1651_v48, 7 }
  0x51   : > { %v749_v26 = vrot.slane %v1653_v49, 6  ;;  %v751_v29 = vrot.slane %v1655_v50, 5  ;;  %v753_v36 = vrot.slane %v1663_v54, 4  ;;  %v910_v43 = vrot.slane %v1647_v46, 2 }
  0x52   : > { %1419 = vmatmul.mubr.msk.bf16.vlgmr.msra.gmra.mrb[0].mxu0 %vm572_vm8, %v538_v3  ;;  %v669_v3 = vrot.slane %v1752_v57, 4  ;;  %v746_v25 = vsel %vm518_vm0, %v1649_v47, %v745_v23  ;;  %v911_v51 = vrot.slane %v1649_v47, 1  ;;  %v729_v52 = vrot.slane %v1691_v31, 1 }
  0x53   : > { %1436 = vmatprep.mubr.msk.bf16.mxu0 %vm1556_vm3, %v1555_v27  ;;  %v748_v28 = vsel %vm521_vm1, %v747_v24, %v746_v25  ;;  %v755_v53 = vrot.slane %v1665_v55, 3  ;;  %v731_v63 = vrot.slane %v1696_v34, 7  ;;  %v895_v23 = vrot.slane %v1694_v33, 1 }
  0x54   : > { %v750_v32 = vsel %vm524_vm2, %v749_v26, %v748_v28  ;;  %v737_v28 = vrot.slane %v1703_v38, 4 }
  0x55   : > { %v752_v42 = vsel %vm527_vm4, %v751_v29, %v750_v32 }
 0x125   : > { %v613_v4 = vpop.f32.mrb[0].mxu0 }
 0x126   : > { %v1420_v5 = vpop.f32.mrb[1].mxu0  ;;  %v621_v6 = vsel %vm620_vm9, %v613_v4, -inf }
 0x127   : > { %622 = vmax.xlane.f32.xlu0 %v621_v6  ;;  %v616_v7 = vpop.f32.mrb[2].mxu0  ;;  %v1764_v5 = vunpack.c.l.b16 %v497_v59  ;;  %v668_v6 = vsel %vm524_vm2, %v667_v0, %v666_v2  ;;  %v754_v59 = vsel %vm530_vm5, %v753_v36, %v752_v42  ;;  %v912_v0 = vsel %vm518_vm0, %v911_v51, %v910_v43 }
 0x128   : > { %v1421_v8 = vpop.f32.mrb[3].mxu0  ;;  %v625_v9 = vsel %vm624_vm10, %v616_v7, -inf  ;;  %v757_v2 = vrot.slane %v1667_v56, 2  ;;  %v920_v42 = vrot.slane %v1665_v55, 4 }
 0x12b   : > { %626 = vmax.xlane.f32.xlu0 %v625_v9  ;;  %v670_v9 = vsel %vm527_vm4, %v669_v3, %v668_v6  ;;  %v730_v3 = vsel %vm518_vm0, %v1694_v33, %v729_v52  ;;  %v914_v6 = vrot.slane %v1653_v49, 7 }
 0x1b4   : > { %v623_v10 = vpop.xlane.xlu0 %622 }
 0x1b5   : > { %v628_v11 = vsub.f32 %v613_v4, %v623_v10  ;;  %v462_v4 = vld [vmem:[%s401_s24 + $0x20] sm:$0xf]  ;;  %v673_v10 = vrot.slane %v1760_v1, 2 }
 0x1b6   : > { %v498_v8 = vpack.c.bf16 %v462_v4, %v462_v4  ;;  %v756_v4 = vsel %vm533_vm6, %v755_v53, %v754_v59  ;;  %v898_v53 = vrot.slane %v1698_v35, 7 }
 0x1b7   : > { %v630_v12 = vmul.f32 1.442695, %v628_v11 }
 0x1b8   : > { %v627_v13 = vpop.xlane.xlu0 %626 }
 0x1b9   : > { %1499 = vpow2.f32 %v630_v12  ;;  %v629_v14 = vsub.f32 %v616_v7, %v627_v13  ;;  %v671_v7 = vrot.slane %v1755_v61, 3  ;;  %v675_v12 = vrot.slane %v1764_v5, 1 }
 0x1ba   : > { %v1772_v13 = vunpack.c.l.b16 %v498_v8  ;;  %v733_v8 = vrot.slane %v1698_v35, 6 }
 0x1bb   : > { %v632_v15 = vmul.f32 1.442695, %v629_v14  ;;  %v672_v11 = vsel %vm530_vm5, %v671_v7, %v670_v9  ;;  %v913_v9 = vsel %vm521_vm1, %v1651_v48, %v912_v0  ;;  %v1081_v0 = vrot.slane %v1655_v50, 7 }
 0x1bc   : > { %v674_v14 = vsel %vm533_vm6, %v673_v10, %v672_v11  ;;  %v732_v10 = vsel %vm521_vm1, %v731_v63, %v730_v3  ;;  %v1075_v11 = vrot.slane %v1647_v46, 3  ;;  %v1078_v46 = vrot.slane %v1651_v48, 1 }
 0x1bd   : > { %1501 = vpow2.f32 %v632_v15  ;;  %v676_v15 = vsel %vm536_vm7, %v675_v12, %v674_v14  ;;  %v1076_v12 = vrot.slane %v1649_v47, 2  ;;  %v758_v14 = vsel %vm536_vm7, %v757_v2, %v756_v4 }
 0x1be   : > { %v677_v20 = vpack.c.b16 %v1772_v13, %v676_v15  ;;  %v759_v15 = vrot.slane %v1672_v60, 1  ;;  %v734_v24 = vsel %vm524_vm2, %v733_v8, %v732_v10  ;;  %v918_v47 = vrot.slane %v1663_v54, 5 }
 0x1bf   : > { %v1077_v25 = vsel %vm518_vm0, %v1076_v12, %v1075_v11  ;;  %v739_v48 = vrot.slane %v1705_v39, 3  ;;  %v922_v3 = vrot.slane %v1667_v56, 3  ;;  %v900_v11 = vrot.slane %v1701_v37, 6 }
 0x1c0   : > { %v760_v26 = vpack.c.b16 %v759_v15, %v758_v14  ;;  %v1079_v43 = vsel %vm521_vm1, %v1078_v46, %v1077_v25  ;;  %v741_v12 = vrot.slane %v1707_v40, 2  ;;  %v904_v46 = vrot.slane %v1705_v39, 4 }
 0x1c1   : > { %v1080_v4 = vsel %vm524_vm2, %v1653_v49, %v1079_v43  ;;  %v1083_v49 = vrot.slane %v1663_v54, 6  ;;  %v1085_v54 = vrot.slane %v1665_v55, 5 }
 0x1c3   : > { %v1734_v16 = vpop.eup %1499 }
 0x1c4   : > { %v634_v17 = vsel %vm620_vm9, %v1734_v16, 0.0 }
 0x1c5   : > { %635 = vadd.xlane.f32.xlu1 %v634_v17  ;;  %v1557_v17 = vmov 65535  }
 0x1c7   : > { %v1738_v18 = vpop.eup %1501 }
 0x1c8   : > { %v637_v19 = vsel %vm624_vm10, %v1738_v18, 0.0 }
 0x1c9   : > { %638 = vadd.xlane.f32.xlu1 %v637_v19  ;;  %v683_v19 = vsel %vm681_vm11, 4294967295, %v1557_v17  ;;  %v916_v17 = vrot.slane %v1655_v50, 6 }
 0x1ca   : > { %v1777_v21 = vsel %vm682_vm12, %v683_v19, 0  ;;  %v735_v19 = vrot.slane %v1701_v37, 5 }
 0x1cb   : > { %v686_v22 = vand.u32 %v1777_v21, %v677_v20  ;;  %v915_v20 = vsel %vm524_vm2, %v914_v6, %v913_v9  ;;  %v1059_v6 = vrot.slane %v1691_v31, 3 }
 0x1cc   : > { %v917_v29 = vsel %vm527_vm4, %v916_v17, %v915_v20  ;;  %v736_v32 = vsel %vm527_vm4, %v735_v19, %v734_v24  ;;  %v902_v17 = vrot.slane %v1703_v38, 5  ;;  %v743_v20 = vrot.slane %v1722_v62, 1 }
 0x1cd   : > { %1423 = vmatpush3.bf16.msra.mxu1 %v686_v22  ;;  %v894_v22 = vrot.slane %v1691_v31, 2  ;;  %v919_v52 = vsel %vm530_vm5, %v918_v47, %v917_v29  ;;  %v738_v59 = vsel %vm530_vm5, %v737_v28, %v736_v32  ;;  %v924_v31 = vrot.slane %v1672_v60, 2 }
 0x1ce   : > { %1428 = vmatprep.subr.bf16.mxu1 %v1555_v27  ;;  %v921_v10 = vsel %vm533_vm6, %v920_v42, %v919_v52  ;;  %v740_v50 = vsel %vm533_vm6, %v739_v48, %v738_v59  ;;  %v1065_v29 = vrot.slane %v1701_v37, 7  ;;  %v906_v32 = vrot.slane %v1707_v40, 3 }
 0x1cf   : > { %v896_v36 = vsel %vm518_vm0, %v895_v23, %v894_v22  ;;  %v908_v52 = vrot.slane %v1722_v62, 2  ;;  %v1071_v59 = vrot.slane %v1707_v40, 4 }
 0x1d0   : > { %v897_v63 = vsel %vm521_vm1, %v1696_v34, %v896_v36 }
 0x1d1   : > { %v899_v14 = vsel %vm524_vm2, %v898_v53, %v897_v63 }
 0x1d2   : > { %v901_v22 = vsel %vm527_vm4, %v900_v11, %v899_v14 }
 0x1d3   : > { %v903_v25 = vsel %vm530_vm5, %v902_v17, %v901_v22 }
 0x1d4   : > { %v905_v43 = vsel %vm533_vm6, %v904_v46, %v903_v25 }
 0x252   : > { %v636_v58 = vpop.xlane.xlu1 %635 }
 0x253   : > { %1503 = vrcp.f32 %v636_v58  ;;  %v765_v58 = vsel %vm572_vm8, %v760_v26, 0  ;;  %v1087_v26 = vrot.slane %v1667_v56, 4  ;;  %v1067_v56 = vrot.slane %v1703_v38, 6 }
 0x256   : > { %v639_v7 = vpop.xlane.xlu1 %638 }
 0x257   : > { %1505 = vrcp.f32 %v639_v7  ;;  %v1060_v7 = vrot.slane %v1694_v33, 2  ;;  %v1082_v33 = vsel %vm527_vm4, %v1081_v0, %v1080_v4 }
 0x258   : > { %v1084_v23 = vsel %vm530_vm5, %v1083_v49, %v1082_v33 }
 0x259   : > { %v1061_v19 = vsel %vm518_vm0, %v1060_v7, %v1059_v6  ;;  %v1086_v28 = vsel %vm533_vm6, %v1085_v54, %v1084_v23 }
 0x25a   : > { %v1088_v48 = vsel %vm536_vm7, %v1087_v26, %v1086_v28 }
 0x25d   : > { %v1504_v51 = vpop.eup %1503 }
 0x25e   : > { %v642_v8 = vmul.f32 %v1504_v51, %v1734_v16  ;;  %v1062_v16 = vrot.slane %v1696_v34, 1  ;;  %v742_v34 = vsel %vm536_vm7, %v741_v12, %v740_v50  ;;  %v1089_v51 = vrot.slane %v1672_v60, 3 }
 0x25f   : > { %v744_v55 = vpack.c.b16 %v743_v20, %v742_v34  ;;  %v1069_v60 = vrot.slane %v1705_v39, 5 }
 0x260   : > { %v1063_v47 = vsel %vm521_vm1, %v1062_v16, %v1061_v19  ;;  %v1090_v53 = vpack.c.b16 %v1089_v51, %v1088_v48 }
 0x261   : > { %v1506_v2 = vpop.eup %1505  ;;  %v1064_v36 = vsel %vm524_vm2, %v1698_v35, %v1063_v47  ;;  %v907_v35 = vsel %vm536_vm7, %v906_v32, %v905_v43 }
 0x262   : > { %v643_v9 = vmul.f32 %v1506_v2, %v1738_v18  ;;  %v923_v18 = vsel %vm536_vm7, %v922_v3, %v921_v10  ;;  %v1066_v37 = vsel %vm527_vm4, %v1065_v29, %v1064_v36  ;;  %v909_v38 = vpack.c.b16 %v908_v52, %v907_v35 }
 0x263   : > { %v925_v24 = vpack.c.b16 %v924_v31, %v923_v18  ;;  %v1095_v63 = vsel %vm572_vm8, %v1090_v53, 0  ;;  %v1073_v2 = vrot.slane %v1722_v62, 3 }
 0x264   : > { %v644_v15 = vpack.c.bf16 %v643_v9, %v642_v8 }
 0x265   : > { %v930_v42 = vsel %vm572_vm8, %v925_v24, 0 }
 0x266   : > { %1425 = vmatmul.mubr.msk.bf16.vlgmr.msra.gmra.mrb[0].mxu1 %vm620_vm9, %v644_v15 }
 0x267   : > { %1429 = vmatpush3.bf16.xpose.msra.mxu1 %v765_v58  ;;  %1430 = vmatprep.mubr.msk.bf16.mxu1 %vm1556_vm3, %v1555_v27  ;;  %v1068_v58 = vsel %vm530_vm5, %v1067_v56, %v1066_v37 }
 0x268   : > { %1440 = vmatprep.subr.bf16.mxu1 %v1555_v27  ;;  %v1070_v0 = vsel %vm533_vm6, %v1069_v60, %v1068_v58 }
 0x269   : > { %v1072_v3 = vsel %vm536_vm7, %v1071_v59, %v1070_v0 }
 0x26a   : > { %v1074_v39 = vpack.c.b16 %v1073_v2, %v1072_v3  ;;  %v831_v2 = vrot.slane %v1747_v44, 1 }
 0x26e   : > { %1431 = vmatmul.mubr.msk.bf16.vlgmr.msra.gmra.mrb[4].mxu1 %vm572_vm8, %v744_v55 }
 0x26f   : > { %1441 = vmatpush3.bf16.xpose.msra.mxu1 %v930_v42  ;;  %1442 = vmatprep.mubr.msk.bf16.mxu1 %vm1556_vm3, %v1555_v27 }
 0x270   : > { %1452 = vmatprep.subr.bf16.mxu1 %v1555_v27 }
 0x276   : > { %1443 = vmatmul.mubr.msk.bf16.vlgmr.msra.gmra.mrb[8].mxu1 %vm572_vm8, %v909_v38 }
 0x277   : > { %1453 = vmatpush3.bf16.xpose.msra.mxu1 %v1095_v63  ;;  %1454 = vmatprep.mubr.msk.bf16.mxu1 %vm1556_vm3, %v1555_v27 }
 0x27e   : > { %1455 = vmatmul.mubr.msk.bf16.vlgmr.msra.gmra.mrb[12].mxu1 %vm572_vm8, %v1074_v39  ;;  %v833_v39 = vrot.slane %v1745_v41, 7 }
 0x339   : > { %v1894_v4 = vpop.f32.mrb[0].mxu1 }
 0x33a   : > { %v1426_v40 = vpop.f32.mrb[1].mxu1 }
 0x33b   : > { %v1896_v6 = vpop.f32.mrb[2].mxu1 }
 0x33c   : > { %v1427_v7 = vpop.f32.mrb[3].mxu1 }
 0x33d   : > { %v832_v7 = vsel %vm518_vm0, %v1743_v30, %v831_v2  ;;  %v1173_v2 = vrot.slane %v1764_v5, 4 }
 0x341   : > { %v801_v8 = vpop.f32.mrb[4].mxu1 }
 0x342   : > { %v1432_v9 = vpop.f32.mrb[5].mxu1  ;;  %v808_v10 = vsel %vm620_vm9, %v801_v8, -inf }
 0x343   : > { %809 = vmax.xlane.f32.xlu0 %v808_v10  ;;  %v804_v62 = vpop.f32.mrb[6].mxu1  ;;  %v834_v9 = vsel %vm521_vm1, %v833_v39, %v832_v7  ;;  %v837_v10 = vrot.slane %v1752_v57, 5 }
 0x344   : > { %v1433_v11 = vpop.f32.mrb[7].mxu1  ;;  %v811_v50 = vsel %vm624_vm10, %v804_v62, -inf }
 0x345   : > { %812 = vmax.xlane.f32.xlu1 %v811_v50  ;;  %v839_v11 = vrot.slane %v1755_v61, 4 }
 0x349   : > { %v966_v12 = vpop.f32.mrb[8].mxu1 }
 0x34a   : > { %v1444_v14 = vpop.f32.mrb[9].mxu1  ;;  %v973_v49 = vsel %vm620_vm9, %v966_v12, -inf }
 0x34b   : > { %974 = vmax.xlane.f32.xlu0 %v973_v49  ;;  %v969_v15 = vpop.f32.mrb[10].mxu1  ;;  %v843_v49 = vrot.slane %v1764_v5, 2 }
 0x34c   : > { %v1445_v31 = vpop.f32.mrb[11].mxu1  ;;  %v976_v33 = vsel %vm624_vm10, %v969_v15, -inf }
 0x34d   : > { %977 = vmax.xlane.f32.xlu1 %v976_v33  ;;  %v845_v31 = vrot.slane %v1772_v13, 1 }
 0x351   : > { %v1131_v16 = vpop.f32.mrb[12].mxu1 }
 0x352   : > { %v1456_v18 = vpop.f32.mrb[13].mxu1  ;;  %v1138_v17 = vsel %vm620_vm9, %v1131_v16, -inf }
 0x353   : > { %1139 = vmax.xlane.f32.xlu0 %v1138_v17  ;;  %v1134_v19 = vpop.f32.mrb[14].mxu1  ;;  %v996_v17 = vrot.slane %v1747_v44, 2 }
 0x354   : > { %v1457_v20 = vpop.f32.mrb[15].mxu1  ;;  %v1141_v22 = vsel %vm624_vm10, %v1134_v19, -inf }
 0x355   : > { %1142 = vmax.xlane.f32.xlu1 %v1141_v22  ;;  %v1000_v22 = vrot.slane %v1749_v45, 7 }
 0x3d0   : > { %v810_v54 = vpop.xlane.xlu0 %809 }
 0x3d1   : > { %v814_v34 = vsub.f32 %v801_v8, %v810_v54  ;;  %v835_v8 = vrot.slane %v1749_v45, 6 }
 0x3d2   : > { %v813_v23 = vpop.xlane.xlu1 %812 }
 0x3d3   : > { %v816_v24 = vmul.f32 1.442695, %v814_v34  ;;  %v815_v46 = vsub.f32 %v804_v62, %v813_v23  ;;  %v836_v62 = vsel %vm524_vm2, %v835_v8, %v834_v9  ;;  %v1161_v34 = vrot.slane %v1747_v44, 3 }
 0x3d4   : > { %v838_v50 = vsel %vm527_vm4, %v837_v10, %v836_v62  ;;  %v1162_v23 = vrot.slane %v1743_v30, 2  ;;  %v1175_v9 = vrot.slane %v1772_v13, 3 }
 0x3d5   : > { %1507 = vpow2.f32 %v816_v24  ;;  %v818_v47 = vmul.f32 1.442695, %v815_v46  ;;  %v840_v14 = vsel %vm530_vm5, %v839_v11, %v838_v50  ;;  %v1002_v24 = vrot.slane %v1752_v57, 6 }
 0x3d7   : > { %1509 = vpow2.f32 %v818_v47  ;;  %v1164_v47 = vrot.slane %v1745_v41, 1 }
 0x3d8   : > { %v975_v25 = vpop.xlane.xlu0 %974 }
 0x3d9   : > { %v979_v26 = vsub.f32 %v966_v12, %v975_v25  ;;  %v841_v12 = vrot.slane %v1760_v1, 3  ;;  %v1004_v25 = vrot.slane %v1755_v61, 5 }
 0x3da   : > { %v978_v55 = vpop.xlane.xlu1 %977 }
 0x3db   : > { %v981_v28 = vmul.f32 1.442695, %v979_v26  ;;  %v980_v29 = vsub.f32 %v969_v15, %v978_v55  ;;  %v842_v15 = vsel %vm533_vm6, %v841_v12, %v840_v14  ;;  %v1163_v26 = vsel %vm518_vm0, %v1162_v23, %v1161_v34 }
 0x3dc   : > { %v844_v33 = vsel %vm536_vm7, %v843_v49, %v842_v15  ;;  %v1165_v44 = vsel %vm521_vm1, %v1164_v47, %v1163_v26 }
 0x3dd   : > { %1511 = vpow2.f32 %v981_v28  ;;  %v983_v32 = vmul.f32 1.442695, %v980_v29  ;;  %v1006_v29 = vrot.slane %v1760_v1, 4 }
 0x3df   : > { %v1904_v36 = vpop.eup %1507  ;;  %1513 = vpow2.f32 %v983_v32 }
 0x3e0   : > { %v1140_v42 = vpop.xlane.xlu0 %1139  ;;  %v820_v43 = vsel %vm620_vm9, %v1904_v36, 0.0 }
 0x3e1   : > { %v1908_v51 = vpop.eup %1509  ;;  %v1144_v48 = vsub.f32 %v1131_v16, %v1140_v42  ;;  %821 = vadd.xlane.f32.xlu0 %v820_v43  ;;  %v846_v16 = vpack.c.b16 %v845_v31, %v844_v33  ;;  %v1167_v42 = vrot.slane %v1752_v57, 7  ;;  %v1166_v43 = vsel %vm524_vm2, %v1749_v45, %v1165_v44 }
 0x3e2   : > { %v1143_v56 = vpop.xlane.xlu1 %1142  ;;  %v823_v52 = vsel %vm624_vm10, %v1908_v51, 0.0 }
 0x3e3   : > { %v1146_v37 = vmul.f32 1.442695, %v1144_v48  ;;  %v1145_v35 = vsub.f32 %v1134_v19, %v1143_v56  ;;  %824 = vadd.xlane.f32.xlu1 %v823_v52  ;;  %v851_v18 = vand.u32 %v846_v16, %v1777_v21  ;;  %v997_v19 = vrot.slane %v1743_v30, 1 }
 0x3e4   : > { %v1169_v56 = vrot.slane %v1755_v61, 6  ;;  %v1010_v52 = vrot.slane %v1772_v13, 2 }
 0x3e5   : > { %1515 = vpow2.f32 %v1146_v37  ;;  %v1148_v53 = vmul.f32 1.442695, %v1145_v35  ;;  %1435 = vmatpush3.bf16.msra.mxu0 %v851_v18  ;;  %v998_v20 = vsel %vm518_vm0, %v997_v19, %v996_v17  ;;  %v1168_v37 = vsel %vm527_vm4, %v1167_v42, %v1166_v43 }
 0x3e6   : > { %1446 = vmatprep.subr.bf16.mxu0 %v1555_v27  ;;  %v999_v54 = vsel %vm521_vm1, %v1745_v41, %v998_v20  ;;  %v1008_v41 = vrot.slane %v1764_v5, 3  ;;  %vm1258_vm0 = vcmask 516096  }
 0x3e7   : > { %v1912_v60 = vpop.eup %1511  ;;  %1517 = vpow2.f32 %v1148_v53  ;;  %v1001_v46 = vsel %vm524_vm2, %v1000_v22, %v999_v54 }
 0x3e8   : > { %v985_v58 = vsel %vm620_vm9, %v1912_v60, 0.0  ;;  %v1003_v55 = vsel %vm527_vm4, %v1002_v24, %v1001_v46 }
 0x3e9   : > { %v1916_v38 = vpop.eup %1513  ;;  %986 = vadd.xlane.f32.xlu0 %v985_v58  ;;  %v1005_v30 = vsel %vm530_vm5, %v1004_v25, %v1003_v55  ;;  %v1171_v58 = vrot.slane %v1760_v1, 5 }
 0x3ea   : > { %v988_v59 = vsel %vm624_vm10, %v1916_v38, 0.0  ;;  %v1007_v48 = vsel %vm533_vm6, %v1006_v29, %v1005_v30 }
 0x3eb   : > { %989 = vadd.xlane.f32.xlu1 %v988_v59  ;;  %v1009_v53 = vsel %vm536_vm7, %v1008_v41, %v1007_v48  ;;  %v1170_v59 = vsel %vm530_vm5, %v1169_v56, %v1168_v37 }
 0x3ec   : > { %v1011_v45 = vpack.c.b16 %v1010_v52, %v1009_v53  ;;  %v1172_v61 = vsel %vm533_vm6, %v1171_v58, %v1170_v59 }
 0x3ed   : > { %v1174_v62 = vsel %vm536_vm7, %v1173_v2, %v1172_v61 }
 0x3ee   : > { %v1016_v8 = vand.u32 %v1011_v45, %v1777_v21 }
 0x3ef   : > { %v1920_v63 = vpop.eup %1515 }
 0x3f0   : > { %v1150_v0 = vsel %vm620_vm9, %v1920_v63, 0.0 }
 0x3f1   : > { %v1925_v3 = vpop.eup %1517  ;;  %1151 = vadd.xlane.f32.xlu0 %v1150_v0 }
 0x3f2   : > { %v1153_v40 = vsel %vm624_vm10, %v1925_v3, 0.0 }
 0x3f3   : > { %1154 = vadd.xlane.f32.xlu1 %v1153_v40 }
 0x46e   : > { %v822_v28 = vpop.xlane.xlu0 %821 }
 0x46f   : > { %1519 = vrcp.f32 %v822_v28 }
 0x470   : > { %v825_v32 = vpop.xlane.xlu1 %824 }
 0x471   : > { %1521 = vrcp.f32 %v825_v32 }
 0x476   : > { %v987_v35 = vpop.xlane.xlu0 %986 }
 0x477   : > { %1523 = vrcp.f32 %v987_v35 }
 0x478   : > { %v990_v57 = vpop.xlane.xlu1 %989 }
 0x479   : > { %v1520_v0 = vpop.eup %1519  ;;  %1525 = vrcp.f32 %v990_v57 }
 0x47a   : > { %v828_v40 = vmul.f32 %v1520_v0, %v1904_v36  ;;  %v1176_v36 = vpack.c.b16 %v1175_v9, %v1174_v62 }
 0x47b   : > { %v1522_v39 = vpop.eup %1521 }
 0x47c   : > { %v829_v7 = vmul.f32 %v1522_v39, %v1908_v51  ;;  %v1181_v12 = vand.u32 %v1176_v36, %v1777_v21 }
 0x47e   : > { %v1152_v1 = vpop.xlane.xlu0 %1151  ;;  %v830_v10 = vpack.c.bf16 %v829_v7, %v828_v40 }
 0x47f   : > { %1527 = vrcp.f32 %v1152_v1 }
 0x480   : > { %1437 = vmatmul.mubr.msk.bf16.vlgmr.msra.gmra.mrb[4].mxu0 %vm620_vm9, %v830_v10  ;;  %v1155_v11 = vpop.xlane.xlu1 %1154 }
 0x481   : > { %v1524_v5 = vpop.eup %1523  ;;  %1447 = vmatpush3.bf16.msra.mxu0 %v1016_v8  ;;  %1529 = vrcp.f32 %v1155_v11  ;;  %1448 = vmatprep.mubr.msk.bf16.mxu0 %vm1556_vm3, %v1555_v27 }
 0x482   : > { %1458 = vmatprep.subr.bf16.mxu0 %v1555_v27  ;;  %v993_v13 = vmul.f32 %v1524_v5, %v1912_v60 }
 0x483   : > { %v1526_v51 = vpop.eup %1525 }
 0x484   : > { %v994_v50 = vmul.f32 %v1526_v51, %v1916_v38 }
 0x486   : > { %v995_v14 = vpack.c.bf16 %v994_v50, %v993_v13 }
 0x488   : > { %1449 = vmatmul.mubr.msk.bf16.vlgmr.msra.gmra.mrb[8].mxu0 %vm620_vm9, %v995_v14 }
 0x489   : > { %v1528_v49 = vpop.eup %1527  ;;  %1459 = vmatpush3.bf16.msra.mxu0 %v1181_v12  ;;  %1460 = vmatprep.mubr.msk.bf16.mxu0 %vm1556_vm3, %v1555_v27 }
 0x48a   : > { %v1158_v31 = vmul.f32 %v1528_v49, %v1920_v63 }
 0x48b   : > { %v1530_v15 = vpop.eup %1529 }
 0x48c   : > { %v1159_v33 = vmul.f32 %v1530_v15, %v1925_v3 }
 0x48e   : > { %v1160_v16 = vpack.c.bf16 %v1159_v33, %v1158_v31 }
 0x490   : > { %1461 = vmatmul.mubr.msk.bf16.vlgmr.msra.gmra.mrb[12].mxu0 %vm620_vm9, %v1160_v16 }
 0x553   : > { %v887_v60 = vpop.f32.mrb[4].mxu0 }
 0x554   : > { %1226 = vrot.lane.b32.xlu0 %v887_v60, %s1558_s25  ;;  %v1438_v21 = vpop.f32.mrb[5].mxu0 }
 0x555   : > { %v890_v38 = vpop.f32.mrb[6].mxu0 }
 0x556   : > { %1228 = vrot.lane.b32.xlu1 %v890_v38, %s1558_s25  ;;  %v1439_v18 = vpop.f32.mrb[7].mxu0 }
 0x55b   : > { %v1052_v17 = vpop.f32.mrb[8].mxu0 }
 0x55c   : > { %1234 = vrot.lane.b32.xlu1 %v1052_v17, %s1559_s26  ;;  %v1450_v27 = vpop.f32.mrb[9].mxu0 }
 0x55d   : > { %v1055_v19 = vpop.f32.mrb[10].mxu0 }
 0x55e   : > { %v1451_v63 = vpop.f32.mrb[11].mxu0 }
 0x560   : > { %1236 = vrot.lane.b32.xlu1 %v1055_v19, %s1559_s26 }
 0x563   : > { %v1217_v3 = vpop.f32.mrb[12].mxu0 }
 0x564   : > { %1242 = vrot.lane.b32.xlu0 %v1217_v3, %s1560_s27  ;;  %v1462_v20 = vpop.f32.mrb[13].mxu0 }
 0x565   : > { %v1220_v22 = vpop.f32.mrb[14].mxu0 }
 0x566   : > { %1244 = vrot.lane.b32.xlu1 %v1220_v22, %s1560_s27  ;;  %v1463_v54 = vpop.f32.mrb[15].mxu0 }
 0x5c6   : > { %v1227_v24 = vpop.permute.xlu0 %1226 }
 0x5c7   : > { %v1248_v47 = vsel %vm572_vm8, %v1894_v4, %v1227_v24 }
 0x5c8   : > { %v1229_v34 = vpop.permute.xlu1 %1228 }
 0x5c9   : > { %v1249_v55 = vsel %vm572_vm8, %v1896_v6, %v1229_v34 }
 0x5ce   : > { %v1235_v23 = vpop.permute.xlu1 %1234 }
 0x5cf   : > { %v1251_v25 = vsel %vm1250_vm13, %v1248_v47, %v1235_v23 }
 0x5d2   : > { %v1237_v46 = vpop.permute.xlu1 %1236 }
 0x5d3   : > { %v1252_v29 = vsel %vm1250_vm13, %v1249_v55, %v1237_v46 }
 0x5d6   : > { %v1243_v26 = vpop.permute.xlu0 %1242 }
 0x5d7   : > { %v1254_v28 = vsel %vm1253_vm14, %v1251_v25, %v1243_v26 }
 0x5d8   : > { %1257 = vst.msk [vmem:[%s434_s4] sm:$0xff] %vm1256_vm15, %v1254_v28  ;;  %v1245_v44 = vpop.permute.xlu1 %1244 }
 0x5d9   : > { %v1255_v32 = vsel %vm1253_vm14, %v1252_v29, %v1245_v44 }
 0x5da   : > { %1259 = vst.msk [vmem:[%s434_s4 + $0x8] sm:$0x1] %vm1258_vm0, %v1255_v32 }
 0x5db PF: > { %p10_p9 = scmp.ge.s32.totalorder %s1598_s16, 4   ;;  %s2020_s12 = smov %s1549_s13 }
 0x5dc   : > { %s2021_s13 = smov %s1607_s19  ;;  %s2022_s14 = smov %s1598_s16 }
 0x5dd   :  { %12 = sbr.rel (!%p10_p9) target bundleno = 2 (0x2), region = 206 }

// kernel: mrm_gen_forward.47
= control target key start
LH: loop header
LB: loop body
LE: loop exit
PB: predicated region body
PF: predicated region fallthrough
CT: control target
= control target key end

     0   :  { %vm24_vm0 = vcmask 523264   ;;  %v209_v45 = vmov 0   ;;  %s347_s0 = inlined_call_operand.vmem [shape: f32[24,64], index: 0, kind: input, shape index: {}]   ;;  %s348_s1 = inlined_call_operand.vmem [shape: f32[64,256], index: 1, kind: input, shape index: {}]   ;;  %s349_s3 = inlined_call_operand.vmem [shape: f32[1,64], index: 3, kind: input, shape index: {}]   ;;  %s350_s4 = inlined_call_operand.vmem [shape: f32[1,64], index: 4, kind: input, shape index: {}]   ;;  %s351_s2 = inlined_call_operand.vmem [shape: f32[1,256], index: 2, kind: input, shape index: {}]   ;;  %s352_s5 = inlined_call_operand.vmem [shape: f32[24,256], index: 5, kind: output, shape index: {}]  }
   0x1   :  { %v21_v0 = vld [vmem:[%s347_s0] sm:$0xff]  ;;  %v23_v1 = vld [vmem:[%s347_s0 + $0x10] sm:$0xff]  ;;  %v22_v2 = vld [vmem:[%s347_s0 + $0x8] sm:$0xff]  ;;  %161 = vmatprep.mubr.bf16.mxu0 %v209_v45  ;;  %171 = vmatprep.mubr.bf16.mxu1 %v209_v45 }
   0x2   :  { %v25_v3 = vsel %vm24_vm0, %v21_v0, 0.0  ;;  %v31_v4 = vsel %vm24_vm0, %v23_v1, 0.0  ;;  %v28_v5 = vsel %vm24_vm0, %v22_v2, 0.0  ;;  %v88_v21 = vld [vmem:[%s348_s1 + $0x8] sm:$0xff]  ;;  %v90_v22 = vld [vmem:[%s348_s1 + $0x18] sm:$0xff]  ;;  %v87_v24 = vld [vmem:[%s348_s1] sm:$0xff] }
   0x3   :  { %26 = vadd.xlane.f32.xlu0 %v25_v3  ;;  %32 = vadd.xlane.f32.xlu1 %v31_v4  ;;  %v104_v23 = vpack.c.bf16 %v90_v22, %v88_v21  ;;  %v89_v25 = vld [vmem:[%s348_s1 + $0x10] sm:$0xff]  ;;  %v92_v27 = vld [vmem:[%s348_s1 + $0x28] sm:$0xff]  ;;  %v94_v28 = vld [vmem:[%s348_s1 + $0x38] sm:$0xff] }
   0x4   :  { %v103_v26 = vpack.c.bf16 %v89_v25, %v87_v24  ;;  %v106_v29 = vpack.c.bf16 %v94_v28, %v92_v27  ;;  %v91_v30 = vld [vmem:[%s348_s1 + $0x20] sm:$0xff]  ;;  %v93_v31 = vld [vmem:[%s348_s1 + $0x30] sm:$0xff]  ;;  %v96_v33 = vld [vmem:[%s348_s1 + $0x48] sm:$0xff] }
   0x5   :  { %129 = vmatprep.subr.bf16.mxu0 %v104_v23  ;;  %194 = vmatprep.subr.bf16.mxu1 %v104_v23  ;;  %v105_v32 = vpack.c.bf16 %v93_v31, %v91_v30  ;;  %v98_v34 = vld [vmem:[%s348_s1 + $0x58] sm:$0xff]  ;;  %v95_v36 = vld [vmem:[%s348_s1 + $0x40] sm:$0xff]  ;;  %v97_v37 = vld [vmem:[%s348_s1 + $0x50] sm:$0xff] }
   0x6   :  { %130 = vmatpush1.bf16.msra.mxu0 %v103_v26  ;;  %198 = vmatpush1.bf16.msra.mxu1 %v103_v26  ;;  %v108_v35 = vpack.c.bf16 %v98_v34, %v96_v33  ;;  %v107_v38 = vpack.c.bf16 %v97_v37, %v95_v36  ;;  %v100_v39 = vld [vmem:[%s348_s1 + $0x68] sm:$0xff]  ;;  %v102_v40 = vld [vmem:[%s348_s1 + $0x78] sm:$0xff]  ;;  %v99_v41 = vld [vmem:[%s348_s1 + $0x60] sm:$0xff] }
   0x7   :  { %29 = vadd.xlane.f32.xlu0 %v28_v5  ;;  %131 = vmatprep.subr.bf16.mxu0 %v106_v29  ;;  %v110_v42 = vpack.c.bf16 %v102_v40, %v100_v39  ;;  %v101_v43 = vld [vmem:[%s348_s1 + $0x70] sm:$0xff]  ;;  %v190_v57 = vld [vmem:[%s349_s3] ss:$0 sm:$0xff] }
   0x8   :  { %195 = vmatprep.subr.bf16.mxu1 %v106_v29  ;;  %v109_v44 = vpack.c.bf16 %v101_v43, %v99_v41  ;;  %v191_v63 = vld [vmem:[%s350_s4] ss:$0 sm:$0xff] }
   0xa   :  { %132 = vmatpush1.bf16.msra.mxu0 %v105_v32  ;;  %199 = vmatpush1.bf16.msra.mxu1 %v105_v32 }
   0xb   :  { %133 = vmatprep.subr.bf16.mxu0 %v108_v35  ;;  %196 = vmatprep.subr.bf16.mxu1 %v108_v35 }
   0xe   :  { %134 = vmatpush1.bf16.msra.mxu0 %v107_v38  ;;  %200 = vmatpush1.bf16.msra.mxu1 %v107_v38 }
   0xf   :  { %135 = vmatprep.subr.bf16.mxu0 %v110_v42  ;;  %197 = vmatprep.subr.bf16.mxu1 %v110_v42 }
  0x12   :  { %136 = vmatpush1.bf16.msra.mxu0 %v109_v44  ;;  %201 = vmatpush1.bf16.msra.mxu1 %v109_v44 }
  0x90   :  { %v27_v6 = vpop.xlane.xlu0 %26  ;;  %v33_v7 = vpop.xlane.xlu1 %32 }
  0x91   :  { %v35_v8 = vmul.f32 0.015625, %v27_v6  ;;  %v37_v9 = vmul.f32 0.015625, %v33_v7  ;;  %v113_v7 = vlaneseq }
  0x93   :  { %v252_v10 = vsub.f32 %v21_v0, %v35_v8  ;;  %v254_v11 = vsub.f32 %v23_v1, %v37_v9  ;;  %v114_v8 = vshrl.u32 %v113_v7, 7 }
  0x94   :  { %v30_v12 = vpop.xlane.xlu0 %29 }
  0x95   :  { %v36_v13 = vmul.f32 0.015625, %v30_v12  ;;  %v41_v14 = vmul.f32 %v252_v10, %v252_v10  ;;  %v43_v15 = vmul.f32 %v254_v11, %v254_v11  ;;  %v115_v9 = vsub.s32 0, %v114_v8 }
  0x97   :  { %v260_v16 = vsub.f32 %v22_v2, %v36_v13  ;;  %v44_v17 = vsel %vm24_vm0, %v41_v14, 0.0  ;;  %v50_v18 = vsel %vm24_vm0, %v43_v15, 0.0 }
  0x98   :  { %45 = vadd.xlane.f32.xlu1 %v44_v17 }
  0x99   :  { %v42_v19 = vmul.f32 %v260_v16, %v260_v16 }
  0x9b   :  { %v47_v20 = vsel %vm24_vm0, %v42_v19, 0.0 }
  0x9c   :  { %51 = vadd.xlane.f32.xlu1 %v50_v18  ;;  %48 = vadd.xlane.f32.xlu0 %v47_v20 }
 0x125   :  { %v46_v46 = vpop.xlane.xlu1 %45 }
 0x126   :  { %v53_v47 = vmul.f32 0.015625, %v46_v46 }
 0x128   :  { %v56_v48 = vadd.f32 1e-06, %v53_v47 }
 0x129   :  { %v52_v49 = vpop.xlane.xlu1 %51  ;;  %v49_v50 = vpop.xlane.xlu0 %48 }
 0x12a   :  { %203 = vrsqrt.f32 %v56_v48  ;;  %v55_v51 = vmul.f32 0.015625, %v52_v49  ;;  %v54_v52 = vmul.f32 0.015625, %v49_v50 }
 0x12c   :  { %v58_v53 = vadd.f32 1e-06, %v55_v51  ;;  %v57_v54 = vadd.f32 1e-06, %v54_v52 }
 0x12e   :  { %205 = vrsqrt.f32 %v58_v53 }
 0x12f   :  { %207 = vrsqrt.f32 %v57_v54 }
 0x134   :  { %v204_v55 = vpop.eup %203 }
 0x135   :  { %v62_v56 = vmul.f32 %v204_v55, %v252_v10  ;;  %v111_v10 = vld [vmem:[%s351_s2] sm:$0x3] }
 0x136   :  { %v116_v12 = vrot.slane %v111_v10, %v115_v9 }
 0x137   :  { %v72_v62 = vmul.f32 %v190_v57, %v62_v56 }
 0x138   :  { %v206_v58 = vpop.eup %205 }
 0x139   :  { %v208_v59 = vpop.eup %207  ;;  %v64_v60 = vmul.f32 %v206_v58, %v254_v11  ;;  %v82_v3 = vadd.f32 %v191_v63, %v72_v62  ;;  %v119_v11 = vsub.s32 1, %v114_v8 }
 0x13a   :  { %v63_v61 = vmul.f32 %v208_v59, %v260_v16 }
 0x13b   :  { %v74_v0 = vmul.f32 %v190_v57, %v64_v60  ;;  %v120_v13 = vrot.slane %v111_v10, %v119_v11 }
 0x13c   :  { %v73_v1 = vmul.f32 %v190_v57, %v63_v61 }
 0x13d   :  { %v84_v2 = vadd.f32 %v191_v63, %v74_v0 }
 0x13e   :  { %v83_v4 = vadd.f32 %v191_v63, %v73_v1 }
 0x13f   :  { %v86_v5 = vpack.c.bf16 %v84_v2, %v84_v2 }
 0x140   :  { %v85_v6 = vpack.c.bf16 %v83_v4, %v82_v3 }
 0x141   :  { %193 = vmatmul.mubr.msk.bf16.vlgmr.msra.gmra.mrb[0].mxu1 %vm24_vm0, %v86_v5 }
 0x142   :  { %192 = vmatmul.mubr.msk.bf16.vlgmr.msra.gmra.mrb[0].mxu0 %vm24_vm0, %v85_v6 }
 0x214   :  { %v173_v14 = vpop.f32.mrb[0].mxu1 }
 0x215   :  { %v163_v15 = vpop.f32.mrb[0].mxu0  ;;  %v174_v16 = vadd.f32 %v173_v14, %v116_v12  ;;  %v175_v17 = vpop.f32.mrb[1].mxu1 }
 0x216   :  { %v164_v18 = vadd.f32 %v163_v15, %v116_v12  ;;  %v165_v19 = vpop.f32.mrb[1].mxu0  ;;  %v176_v20 = vadd.f32 %v175_v17, %v120_v13  ;;  %v177_v21 = vpop.f32.mrb[2].mxu1 }
 0x217   :  { %184 = vst [vmem:[%s352_s5 + $0x20] sm:$0xff] %v174_v16  ;;  %v166_v22 = vadd.f32 %v165_v19, %v120_v13  ;;  %v167_v23 = vpop.f32.mrb[2].mxu0  ;;  %v178_v24 = vpop.f32.mrb[3].mxu1 }
 0x218   :  { %180 = vst [vmem:[%s352_s5] sm:$0xff] %v164_v18  ;;  %185 = vst [vmem:[%s352_s5 + $0x28] sm:$0xff] %v176_v20  ;;  %v168_v25 = vadd.f32 %v167_v23, %v116_v12  ;;  %v169_v26 = vpop.f32.mrb[3].mxu0 }
 0x219   :  { %181 = vst [vmem:[%s352_s5 + $0x8] sm:$0xff] %v166_v22  ;;  %v170_v27 = vadd.f32 %v169_v26, %v120_v13 }
 0x21a   :  { %182 = vst [vmem:[%s352_s5 + $0x10] sm:$0xff] %v168_v25 }
 0x21b   :  { %183 = vst [vmem:[%s352_s5 + $0x18] sm:$0xff] %v170_v27 }

// kernel: mrm_gen_forward.48
= control target key start
LH: loop header
LB: loop body
LE: loop exit
PB: predicated region body
PF: predicated region fallthrough
CT: control target
= control target key end

     0   :  { %vm191_vm0 = vcmask 523264   ;;  %s458_s1 = inlined_call_operand.vmem [shape: f32[256,64], index: 1, kind: input, shape index: {}]   ;;  %s459_s0 = inlined_call_operand.vmem [shape: f32[24,256], index: 0, kind: input, shape index: {}]   ;;  %s460_s2 = inlined_call_operand.vmem [shape: f32[1,64], index: 2, kind: input, shape index: {}]   ;;  %s461_s3 = inlined_call_operand.vmem [shape: f32[24,64], index: 3, kind: input, shape index: {}]   ;;  %s462_s4 = inlined_call_operand.vmem [shape: f32[24,64], index: 4, kind: output, shape index: {}]  }
   0x1   :  { %v98_v0 = vld [vmem:[%s458_s1 + $0x80] sm:$0xff]  ;;  %v99_v1 = vld [vmem:[%s458_s1 + $0x88] sm:$0xff]  ;;  %v100_v5 = vld [vmem:[%s458_s1 + $0x90] sm:$0xff] }
   0x2   :  { %v82_v2 = vld [vmem:[%s458_s1] sm:$0xff]  ;;  %v122_v3 = vpack.c.bf16 %v99_v1, %v98_v0  ;;  %v83_v4 = vld [vmem:[%s458_s1 + $0x8] sm:$0xff]  ;;  %v101_v6 = vld [vmem:[%s458_s1 + $0x98] sm:$0xff] }
   0x3   :  { %v114_v7 = vpack.c.bf16 %v83_v4, %v82_v2  ;;  %v123_v8 = vpack.c.bf16 %v101_v6, %v100_v5  ;;  %v84_v9 = vld [vmem:[%s458_s1 + $0x10] sm:$0xff]  ;;  %v85_v10 = vld [vmem:[%s458_s1 + $0x18] sm:$0xff]  ;;  %v102_v11 = vld [vmem:[%s458_s1 + $0xa0] sm:$0xff] }
   0x4   :  { %200 = vmatprep.subr.bf16.mxu0 %v122_v3  ;;  %228 = vmatprep.subr.bf16.mxu1 %v122_v3  ;;  %v103_v12 = vld [vmem:[%s458_s1 + $0xa8] sm:$0xff]  ;;  %v115_v13 = vpack.c.bf16 %v85_v10, %v84_v9  ;;  %v86_v15 = vld [vmem:[%s458_s1 + $0x20] sm:$0xff]  ;;  %v104_v17 = vld [vmem:[%s458_s1 + $0xb0] sm:$0xff] }
   0x5   :  { %201 = vmatpush3.bf16.msra.mxu0 %v114_v7  ;;  %236 = vmatpush3.bf16.msra.mxu1 %v114_v7  ;;  %v124_v14 = vpack.c.bf16 %v103_v12, %v102_v11  ;;  %v87_v16 = vld [vmem:[%s458_s1 + $0x28] sm:$0xff]  ;;  %v105_v18 = vld [vmem:[%s458_s1 + $0xb8] sm:$0xff]  ;;  %v88_v19 = vld [vmem:[%s458_s1 + $0x30] sm:$0xff] }
   0x6   :  { %202 = vmatprep.subr.bf16.mxu0 %v123_v8  ;;  %229 = vmatprep.subr.bf16.mxu1 %v123_v8  ;;  %v116_v20 = vpack.c.bf16 %v87_v16, %v86_v15  ;;  %v89_v21 = vld [vmem:[%s458_s1 + $0x38] sm:$0xff]  ;;  %v106_v22 = vld [vmem:[%s458_s1 + $0xc0] sm:$0xff]  ;;  %v107_v23 = vld [vmem:[%s458_s1 + $0xc8] sm:$0xff]  ;;  %v125_v24 = vpack.c.bf16 %v105_v18, %v104_v17 }
   0x7   :  { %v338_v25 = vld [vmem:[%s459_s0 + $0x8] sm:$0xff]  ;;  %v117_v26 = vpack.c.bf16 %v89_v21, %v88_v19  ;;  %v126_v27 = vpack.c.bf16 %v107_v23, %v106_v22  ;;  %v343_v28 = vld [vmem:[%s459_s0 + $0x18] sm:$0xff]  ;;  %v355_v31 = vld [vmem:[%s459_s0] sm:$0xff] }
   0x8   :  { %v25_v29 = vmul.f32 %v338_v25, %v338_v25  ;;  %v350_v30 = vld [vmem:[%s459_s0 + $0x28] sm:$0xff]  ;;  %v27_v32 = vmul.f32 %v343_v28, %v343_v28  ;;  %v364_v34 = vld [vmem:[%s459_s0 + $0x10] sm:$0xff]  ;;  %v24_v35 = vmul.f32 %v355_v31, %v355_v31  ;;  %v371_v36 = vld [vmem:[%s459_s0 + $0x20] sm:$0xff] }
   0x9   :  { %203 = vmatpush3.bf16.msra.mxu0 %v115_v13  ;;  %237 = vmatpush3.bf16.msra.mxu1 %v115_v13  ;;  %v29_v33 = vmul.f32 %v350_v30, %v350_v30  ;;  %v90_v37 = vld [vmem:[%s458_s1 + $0x40] sm:$0xff]  ;;  %v91_v38 = vld [vmem:[%s458_s1 + $0x48] sm:$0xff]  ;;  %v26_v40 = vmul.f32 %v364_v34, %v364_v34  ;;  %v28_v41 = vmul.f32 %v371_v36, %v371_v36  ;;  %v108_v42 = vld [vmem:[%s458_s1 + $0xd0] sm:$0xff] }
   0xa   :  { %204 = vmatprep.subr.bf16.mxu0 %v124_v14  ;;  %230 = vmatprep.subr.bf16.mxu1 %v124_v14  ;;  %v31_v39 = vmul.f32 %v25_v29, %v338_v25  ;;  %v109_v43 = vld [vmem:[%s458_s1 + $0xd8] sm:$0xff]  ;;  %v33_v44 = vmul.f32 %v27_v32, %v343_v28  ;;  %v30_v46 = vmul.f32 %v24_v35, %v355_v31  ;;  %v92_v55 = vld [vmem:[%s458_s1 + $0x50] sm:$0xff]  ;;  %v110_v60 = vld [vmem:[%s458_s1 + $0xe0] sm:$0xff] }
   0xb   :  { %v35_v45 = vmul.f32 %v29_v33, %v350_v30  ;;  %v32_v48 = vmul.f32 %v26_v40, %v364_v34  ;;  %v34_v49 = vmul.f32 %v28_v41, %v371_v36  ;;  %v118_v50 = vpack.c.bf16 %v91_v38, %v90_v37  ;;  %v93_v56 = vld [vmem:[%s458_s1 + $0x58] sm:$0xff]  ;;  %v111_v61 = vld [vmem:[%s458_s1 + $0xe8] sm:$0xff]  ;;  %v94_v9 = vld [vmem:[%s458_s1 + $0x60] sm:$0xff] }
   0xc   :  { %v37_v47 = vmul.f32 0.044715, %v31_v39  ;;  %v39_v51 = vmul.f32 0.044715, %v33_v44  ;;  %v36_v53 = vmul.f32 0.044715, %v30_v46  ;;  %v127_v54 = vpack.c.bf16 %v109_v43, %v108_v42 }
   0xd   :  { %205 = vmatpush3.bf16.msra.mxu0 %v116_v20  ;;  %238 = vmatpush3.bf16.msra.mxu1 %v116_v20  ;;  %v41_v52 = vmul.f32 0.044715, %v35_v45  ;;  %v38_v58 = vmul.f32 0.044715, %v32_v48  ;;  %v40_v59 = vmul.f32 0.044715, %v34_v49  ;;  %v119_v4 = vpack.c.bf16 %v93_v56, %v92_v55 }
   0xe   :  { %206 = vmatprep.subr.bf16.mxu0 %v125_v24  ;;  %231 = vmatprep.subr.bf16.mxu1 %v125_v24  ;;  %v43_v57 = vadd.f32 %v37_v47, %v338_v25  ;;  %v45_v62 = vadd.f32 %v39_v51, %v343_v28  ;;  %v42_v0 = vadd.f32 %v36_v53, %v355_v31  ;;  %v95_v10 = vld [vmem:[%s458_s1 + $0x68] sm:$0xff]  ;;  %v112_v12 = vld [vmem:[%s458_s1 + $0xf0] sm:$0xff]  ;;  %v113_v13 = vld [vmem:[%s458_s1 + $0xf8] sm:$0xff] }
   0xf   :  { %v47_v63 = vadd.f32 %v41_v52, %v350_v30  ;;  %v44_v2 = vadd.f32 %v38_v58, %v364_v34  ;;  %v46_v3 = vadd.f32 %v40_v59, %v371_v36  ;;  %v128_v8 = vpack.c.bf16 %v111_v61, %v110_v60  ;;  %v96_v17 = vld [vmem:[%s458_s1 + $0x70] sm:$0xff]  ;;  %v97_v18 = vld [vmem:[%s458_s1 + $0x78] sm:$0xff] }
  0x10   :  { %v49_v1 = vmul.f32 0.7978846, %v43_v57  ;;  %v51_v5 = vmul.f32 0.7978846, %v45_v62  ;;  %v48_v7 = vmul.f32 0.7978846, %v42_v0  ;;  %v120_v15 = vpack.c.bf16 %v95_v10, %v94_v9 }
  0x11   :  { %207 = vmatpush3.bf16.msra.mxu0 %v117_v26  ;;  %239 = vmatpush3.bf16.msra.mxu1 %v117_v26  ;;  %v53_v6 = vmul.f32 0.7978846, %v47_v63  ;;  %v50_v11 = vmul.f32 0.7978846, %v44_v2  ;;  %v52_v14 = vmul.f32 0.7978846, %v46_v3  ;;  %v129_v16 = vpack.c.bf16 %v113_v13, %v112_v12 }
  0x12   :  { %208 = vmatprep.subr.bf16.mxu0 %v126_v27  ;;  %232 = vmatprep.subr.bf16.mxu1 %v126_v27  ;;  %244 = vtanh.f32 %v49_v1  ;;  %v121_v19 = vpack.c.bf16 %v97_v18, %v96_v17  ;;  %v187_v60 = vld [vmem:[%s461_s3 + $0x10] sm:$0xff]  ;;  %v186_v0 = vld [vmem:[%s461_s3 + $0x8] sm:$0xff] }
  0x13   :  { %246 = vtanh.f32 %v51_v5 }
  0x14   :  { %248 = vtanh.f32 %v53_v6 }
  0x15   :  { %209 = vmatpush3.bf16.msra.mxu0 %v118_v50  ;;  %240 = vmatpush3.bf16.msra.mxu1 %v118_v50  ;;  %250 = vtanh.f32 %v48_v7 }
  0x16   :  { %210 = vmatprep.subr.bf16.mxu0 %v127_v54  ;;  %233 = vmatprep.subr.bf16.mxu1 %v127_v54  ;;  %252 = vtanh.f32 %v50_v11 }
  0x17   :  { %254 = vtanh.f32 %v52_v14 }
  0x19   :  { %211 = vmatpush3.bf16.msra.mxu0 %v119_v4  ;;  %241 = vmatpush3.bf16.msra.mxu1 %v119_v4 }
  0x1a   :  { %212 = vmatprep.subr.bf16.mxu0 %v128_v8  ;;  %234 = vmatprep.subr.bf16.mxu1 %v128_v8 }
  0x1c   :  { %v245_v20 = vpop.eup %244 }
  0x1d   :  { %213 = vmatpush3.bf16.msra.mxu0 %v120_v15  ;;  %242 = vmatpush3.bf16.msra.mxu1 %v120_v15  ;;  %v247_v21 = vpop.eup %246  ;;  %v61_v22 = vadd.f32 1.0, %v245_v20 }
  0x1e   :  { %214 = vmatprep.subr.bf16.mxu0 %v129_v16  ;;  %235 = vmatprep.subr.bf16.mxu1 %v129_v16  ;;  %v249_v23 = vpop.eup %248  ;;  %v63_v24 = vadd.f32 1.0, %v247_v21 }
  0x1f   :  { %v251_v26 = vpop.eup %250  ;;  %v67_v27 = vmul.f32 0.5, %v61_v22  ;;  %v65_v29 = vadd.f32 1.0, %v249_v23 }
  0x20   :  { %v253_v32 = vpop.eup %252  ;;  %v69_v33 = vmul.f32 0.5, %v63_v24  ;;  %v60_v35 = vadd.f32 1.0, %v251_v26 }
  0x21   :  { %215 = vmatpush3.bf16.msra.mxu0 %v121_v19  ;;  %243 = vmatpush3.bf16.msra.mxu1 %v121_v19  ;;  %v255_v37 = vpop.eup %254  ;;  %v73_v38 = vmul.f32 %v67_v27, %v338_v25  ;;  %v71_v39 = vmul.f32 0.5, %v65_v29  ;;  %v62_v40 = vadd.f32 1.0, %v253_v32 }
  0x22   :  { %v75_v41 = vmul.f32 %v69_v33, %v343_v28  ;;  %v66_v42 = vmul.f32 0.5, %v60_v35  ;;  %v64_v43 = vadd.f32 1.0, %v255_v37 }
  0x23   :  { %v77_v44 = vmul.f32 %v71_v39, %v350_v30  ;;  %v68_v45 = vmul.f32 0.5, %v62_v40  ;;  %v199_v30 = vld [vmem:[%s460_s2] ss:$0 sm:$0xff] }
  0x24   :  { %v79_v46 = vpack.c.bf16 %v75_v41, %v73_v38  ;;  %v72_v47 = vmul.f32 %v66_v42, %v355_v31  ;;  %v70_v48 = vmul.f32 0.5, %v64_v43 }
  0x25   :  { %v81_v49 = vpack.c.bf16 %v77_v44, %v77_v44  ;;  %v74_v50 = vmul.f32 %v68_v45, %v364_v34  ;;  %v185_v34 = vld [vmem:[%s461_s3] sm:$0xff] }
  0x26   :  { %169 = vmatprep.mubr.bf16.mxu0 %v79_v46  ;;  %v76_v51 = vmul.f32 %v70_v48, %v371_v36 }
  0x27   :  { %177 = vmatprep.mubr.bf16.mxu1 %v81_v49  ;;  %v78_v25 = vpack.c.bf16 %v74_v50, %v72_v47 }
  0x28   :  { %v80_v52 = vpack.c.bf16 %v76_v51, %v76_v51 }
  0x29   :  { %170 = vmatmul.mubr.bf16.vlgmr.msra.gmra.mrb[0].mxu0 %v78_v25 }
  0x2a   :  { %178 = vmatmul.mubr.bf16.vlgmr.msra.gmra.mrb[0].mxu1 %v80_v52 }
  0xfc   :  { %v216_v28 = vpop.f32.mrb[0].mxu0 }
  0xfd   :  { %v222_v53 = vpop.f32.mrb[0].mxu1  ;;  %v217_v54 = vpop.f32.mrb[1].mxu0 }
  0xfe   :  { %v218_v31 = vadd.f32 %v217_v54, %v216_v28  ;;  %v223_v55 = vpop.f32.mrb[1].mxu1  ;;  %v219_v56 = vpop.f32.mrb[2].mxu0 }
  0xff   :  { %v224_v36 = vadd.f32 %v223_v55, %v222_v53  ;;  %v225_v57 = vpop.f32.mrb[2].mxu1  ;;  %v220_v58 = vpop.f32.mrb[3].mxu0 }
 0x100   :  { %v172_v59 = vadd.f32 %v218_v31, %v199_v30  ;;  %v221_v61 = vadd.f32 %v220_v58, %v219_v56  ;;  %v226_v62 = vpop.f32.mrb[3].mxu1 }
 0x101   :  { %v180_v63 = vadd.f32 %v224_v36, %v199_v30 }
 0x102   :  { %v188_v1 = vadd.f32 %v185_v34, %v172_v59  ;;  %v175_v2 = vadd.f32 %v221_v61, %v199_v30 }
 0x103   :  { %v190_v3 = vadd.f32 %v187_v60, %v180_v63 }
 0x104   :  { %192 = vst.msk [vmem:[%s462_s4] sm:$0xff] %vm191_vm0, %v188_v1  ;;  %v189_v4 = vadd.f32 %v186_v0, %v175_v2 }
 0x105   :  { %194 = vst.msk [vmem:[%s462_s4 + $0x10] sm:$0xff] %vm191_vm0, %v190_v3 }
 0x106   :  { %193 = vst.msk [vmem:[%s462_s4 + $0x8] sm:$0xff] %vm191_vm0, %v189_v4 }

// kernel: mrm_gen_forward.54
= control target key start
LH: loop header
LB: loop body
LE: loop exit
PB: predicated region body
PF: predicated region fallthrough
CT: control target
= control target key end

     0   :  { %vm24_vm0 = vcmask 523264   ;;  %vm160_vm1 = vcmask 261120   ;;  %s286_s0 = inlined_call_operand.vmem [shape: f32[24,64], index: 0, kind: input, shape index: {}]   ;;  %s287_s1 = inlined_call_operand.vmem [shape: f32[64,32], index: 1, kind: input, shape index: {}]   ;;  %s288_s3 = inlined_call_operand.vmem [shape: f32[1,64], index: 3, kind: input, shape index: {}]   ;;  %s289_s4 = inlined_call_operand.vmem [shape: f32[1,64], index: 4, kind: input, shape index: {}]   ;;  %s290_s2 = inlined_call_operand.vmem [shape: f32[1,32], index: 2, kind: input, shape index: {}]   ;;  %s291_s5 = inlined_call_operand.vmem [shape: f32[24,32], index: 5, kind: output, shape index: {}]  }
   0x1   :  { %v21_v0 = vld [vmem:[%s286_s0] sm:$0xff]  ;;  %v23_v1 = vld [vmem:[%s286_s0 + $0x10] sm:$0xff]  ;;  %v22_v2 = vld [vmem:[%s286_s0 + $0x8] sm:$0xff] }
   0x2   :  { %v25_v3 = vsel %vm24_vm0, %v21_v0, 0.0  ;;  %v31_v4 = vsel %vm24_vm0, %v23_v1, 0.0  ;;  %v28_v5 = vsel %vm24_vm0, %v22_v2, 0.0  ;;  %v87_v21 = vld [vmem:[%s287_s1] sm:$0xff]  ;;  %v88_v22 = vld [vmem:[%s287_s1 + $0x8] sm:$0xff]  ;;  %v89_v24 = vld [vmem:[%s287_s1 + $0x10] sm:$0xff] }
   0x3   :  { %26 = vadd.xlane.f32.xlu0 %v25_v3  ;;  %32 = vadd.xlane.f32.xlu1 %v31_v4  ;;  %v95_v23 = vpack.c.bf16 %v88_v22, %v87_v21  ;;  %v90_v25 = vld [vmem:[%s287_s1 + $0x18] sm:$0xff]  ;;  %v91_v27 = vld [vmem:[%s287_s1 + $0x20] sm:$0xff]  ;;  %v92_v28 = vld [vmem:[%s287_s1 + $0x28] sm:$0xff] }
   0x4   :  { %v96_v26 = vpack.c.bf16 %v90_v25, %v89_v24  ;;  %v97_v29 = vpack.c.bf16 %v92_v28, %v91_v27  ;;  %v93_v30 = vld [vmem:[%s287_s1 + $0x30] sm:$0xff]  ;;  %v94_v31 = vld [vmem:[%s287_s1 + $0x38] sm:$0xff]  ;;  %v168_v44 = vld [vmem:[%s288_s3] ss:$0 sm:$0xff] }
   0x5   :  { %179 = vmatprep.subr.bf16.mxu0 %v95_v23  ;;  %v98_v32 = vpack.c.bf16 %v94_v31, %v93_v30  ;;  %v169_v50 = vld [vmem:[%s289_s4] ss:$0 sm:$0xff] }
   0x6   :  { %180 = vmatpush3.bf16.msra.mxu0 %v95_v23  ;;  %v170_v58 = vld [vmem:[%s290_s2] ss:$0 sm:$0xff] }
   0x7   :  { %29 = vadd.xlane.f32.xlu0 %v28_v5  ;;  %181 = vmatprep.subr.bf16.mxu0 %v96_v26 }
   0xa   :  { %182 = vmatpush3.bf16.msra.mxu0 %v96_v26 }
   0xb   :  { %183 = vmatprep.subr.bf16.mxu0 %v97_v29 }
   0xe   :  { %184 = vmatpush3.bf16.msra.mxu0 %v97_v29 }
   0xf   :  { %185 = vmatprep.subr.bf16.mxu0 %v98_v32 }
  0x12   :  { %186 = vmatpush3.bf16.msra.mxu0 %v98_v32 }
  0x90   :  { %v27_v6 = vpop.xlane.xlu0 %26  ;;  %v33_v7 = vpop.xlane.xlu1 %32 }
  0x91   :  { %v35_v8 = vmul.f32 0.015625, %v27_v6  ;;  %v37_v9 = vmul.f32 0.015625, %v33_v7 }
  0x93   :  { %v38_v10 = vsub.f32 %v21_v0, %v35_v8  ;;  %v40_v11 = vsub.f32 %v23_v1, %v37_v9 }
  0x94   :  { %v30_v12 = vpop.xlane.xlu0 %29 }
  0x95   :  { %v36_v13 = vmul.f32 0.015625, %v30_v12  ;;  %v41_v14 = vmul.f32 %v38_v10, %v38_v10  ;;  %v43_v15 = vmul.f32 %v40_v11, %v40_v11 }
  0x97   :  { %v39_v16 = vsub.f32 %v22_v2, %v36_v13  ;;  %v44_v17 = vsel %vm24_vm0, %v41_v14, 0.0  ;;  %v50_v18 = vsel %vm24_vm0, %v43_v15, 0.0 }
  0x98   :  { %45 = vadd.xlane.f32.xlu1 %v44_v17 }
  0x99   :  { %v42_v19 = vmul.f32 %v39_v16, %v39_v16 }
  0x9b   :  { %v47_v20 = vsel %vm24_vm0, %v42_v19, 0.0 }
  0x9c   :  { %51 = vadd.xlane.f32.xlu1 %v50_v18  ;;  %48 = vadd.xlane.f32.xlu0 %v47_v20 }
 0x125   :  { %v46_v33 = vpop.xlane.xlu1 %45 }
 0x126   :  { %v53_v34 = vmul.f32 0.015625, %v46_v33 }
 0x128   :  { %v56_v35 = vadd.f32 1e-06, %v53_v34 }
 0x129   :  { %v52_v36 = vpop.xlane.xlu1 %51  ;;  %v49_v37 = vpop.xlane.xlu0 %48 }
 0x12a   :  { %191 = vrsqrt.f32 %v56_v35  ;;  %v55_v38 = vmul.f32 0.015625, %v52_v36  ;;  %v54_v39 = vmul.f32 0.015625, %v49_v37 }
 0x12c   :  { %v58_v40 = vadd.f32 1e-06, %v55_v38  ;;  %v57_v41 = vadd.f32 1e-06, %v54_v39 }
 0x12e   :  { %193 = vrsqrt.f32 %v58_v40 }
 0x12f   :  { %195 = vrsqrt.f32 %v57_v41 }
 0x134   :  { %v192_v42 = vpop.eup %191 }
 0x135   :  { %v62_v43 = vmul.f32 %v192_v42, %v38_v10 }
 0x137   :  { %v72_v49 = vmul.f32 %v168_v44, %v62_v43 }
 0x138   :  { %v194_v45 = vpop.eup %193 }
 0x139   :  { %v196_v46 = vpop.eup %195  ;;  %v64_v47 = vmul.f32 %v194_v45, %v40_v11  ;;  %v82_v54 = vadd.f32 %v169_v50, %v72_v49 }
 0x13a   :  { %v63_v48 = vmul.f32 %v196_v46, %v39_v16 }
 0x13b   :  { %v74_v51 = vmul.f32 %v168_v44, %v64_v47 }
 0x13c   :  { %v73_v52 = vmul.f32 %v168_v44, %v63_v48 }
 0x13d   :  { %v84_v53 = vadd.f32 %v169_v50, %v74_v51 }
 0x13e   :  { %v83_v55 = vadd.f32 %v169_v50, %v73_v52 }
 0x13f   :  { %v86_v56 = vpack.c.bf16 %v84_v53, %v84_v53 }
 0x140   :  { %v85_v57 = vpack.c.bf16 %v83_v55, %v82_v54 }
 0x142   :  { %187 = vmatprep.mubr.msk.bf16.mxu0 %vm24_vm0, %v85_v57 }
 0x143   :  { %188 = vmatmul.mubr.msk.bf16.vlgmr.msra.gmra.mrb[0].mxu0 %vm24_vm0, %v86_v56 }
 0x216   :  { %v189_v59 = vpop.f32.mrb[0].mxu0 }
 0x217   :  { %v155_v60 = vadd.f32 %v189_v59, %v170_v58  ;;  %v146_v61 = vpop.f32.mrb[1].mxu0 }
 0x218   :  { %v147_v62 = vadd.f32 %v170_v58, %v146_v61  ;;  %v190_v63 = vpop.f32.mrb[2].mxu0 }
 0x219   :  { %163 = vst.msk [vmem:[%s291_s5 + $0x10] sm:$0xff] %vm160_vm1, %v155_v60  ;;  %v149_v0 = vpop.f32.mrb[3].mxu0 }
 0x21a   :  { %161 = vst.msk [vmem:[%s291_s5] sm:$0xff] %vm160_vm1, %v147_v62  ;;  %v150_v1 = vadd.f32 %v170_v58, %v149_v0 }
 0x21c   :  { %162 = vst.msk [vmem:[%s291_s5 + $0x8] sm:$0xff] %vm160_vm1, %v150_v1 }

// kernel: mrm_gen_forward.55
= control target key start
LH: loop header
LB: loop body
LE: loop exit
PB: predicated region body
PF: predicated region fallthrough
CT: control target
= control target key end

     0   :  { %vm24_vm0 = vcmask 261120   ;;  %s297_s0 = inlined_call_operand.vmem [shape: f32[24,32], index: 0, kind: input, shape index: {}]   ;;  %s298_s1 = inlined_call_operand.vmem [shape: f32[32,32], index: 1, kind: input, shape index: {}]   ;;  %s299_s3 = inlined_call_operand.vmem [shape: f32[1,32], index: 3, kind: input, shape index: {}]   ;;  %s300_s4 = inlined_call_operand.vmem [shape: f32[1,32], index: 4, kind: input, shape index: {}]   ;;  %s301_s2 = inlined_call_operand.vmem [shape: f32[1,32], index: 2, kind: input, shape index: {}]   ;;  %s302_s5 = inlined_call_operand.vmem [shape: f32[24,32], index: 5, kind: output, shape index: {}]  }
   0x1   :  { %v21_v0 = vld [vmem:[%s297_s0] sm:$0xff]  ;;  %v23_v1 = vld [vmem:[%s297_s0 + $0x10] sm:$0xff]  ;;  %v22_v2 = vld [vmem:[%s297_s0 + $0x8] sm:$0xff] }
   0x2   :  { %v25_v3 = vsel %vm24_vm0, %v21_v0, 0.0  ;;  %v31_v4 = vsel %vm24_vm0, %v23_v1, 0.0  ;;  %v28_v5 = vsel %vm24_vm0, %v22_v2, 0.0  ;;  %v114_v21 = vld [vmem:[%s298_s1] sm:$0xff]  ;;  %v115_v22 = vld [vmem:[%s298_s1 + $0x8] sm:$0xff]  ;;  %v116_v23 = vld [vmem:[%s298_s1 + $0x10] sm:$0xff] }
   0x3   :  { %26 = vadd.xlane.f32.xlu0 %v25_v3  ;;  %32 = vadd.xlane.f32.xlu1 %v31_v4  ;;  %v118_v24 = vpack.c.bf16 %v115_v22, %v114_v21  ;;  %v117_v25 = vld [vmem:[%s298_s1 + $0x18] sm:$0xff]  ;;  %v188_v37 = vld [vmem:[%s299_s3] ss:$0 sm:$0xff] }
   0x4   :  { %v119_v26 = vpack.c.bf16 %v117_v25, %v116_v23  ;;  %v189_v39 = vld [vmem:[%s300_s4] ss:$0 sm:$0xff] }
   0x5   :  { %197 = vmatprep.subr.bf16.mxu0 %v118_v24 }
   0x6   :  { %198 = vmatpush3.bf16.msra.mxu0 %v118_v24 }
   0x7   :  { %29 = vadd.xlane.f32.xlu0 %v28_v5  ;;  %199 = vmatprep.subr.bf16.mxu0 %v119_v26 }
   0xa   :  { %200 = vmatpush3.bf16.msra.mxu0 %v119_v26 }
  0x90   :  { %v27_v6 = vpop.xlane.xlu0 %26  ;;  %v33_v7 = vpop.xlane.xlu1 %32 }
  0x91   :  { %v35_v8 = vmul.f32 0.03125, %v27_v6  ;;  %v37_v9 = vmul.f32 0.03125, %v33_v7 }
  0x93   :  { %v38_v10 = vsub.f32 %v21_v0, %v35_v8  ;;  %v40_v11 = vsub.f32 %v23_v1, %v37_v9 }
  0x94   :  { %v30_v12 = vpop.xlane.xlu0 %29 }
  0x95   :  { %v36_v13 = vmul.f32 0.03125, %v30_v12  ;;  %v41_v14 = vmul.f32 %v38_v10, %v38_v10  ;;  %v43_v15 = vmul.f32 %v40_v11, %v40_v11 }
  0x97   :  { %v39_v16 = vsub.f32 %v22_v2, %v36_v13  ;;  %v44_v17 = vsel %vm24_vm0, %v41_v14, 0.0  ;;  %v50_v18 = vsel %vm24_vm0, %v43_v15, 0.0  ;;  %v190_v15 = vld [vmem:[%s301_s2] ss:$0 sm:$0xff] }
  0x98   :  { %45 = vadd.xlane.f32.xlu1 %v44_v17 }
  0x99   :  { %v42_v19 = vmul.f32 %v39_v16, %v39_v16 }
  0x9b   :  { %v47_v20 = vsel %vm24_vm0, %v42_v19, 0.0 }
  0x9c   :  { %51 = vadd.xlane.f32.xlu1 %v50_v18  ;;  %48 = vadd.xlane.f32.xlu0 %v47_v20 }
 0x125   :  { %v46_v27 = vpop.xlane.xlu1 %45 }
 0x126   :  { %v53_v28 = vmul.f32 0.03125, %v46_v27 }
 0x128   :  { %v56_v29 = vadd.f32 1e-06, %v53_v28 }
 0x129   :  { %v52_v30 = vpop.xlane.xlu1 %51  ;;  %v49_v31 = vpop.xlane.xlu0 %48 }
 0x12a   :  { %205 = vrsqrt.f32 %v56_v29  ;;  %v55_v32 = vmul.f32 0.03125, %v52_v30  ;;  %v54_v33 = vmul.f32 0.03125, %v49_v31 }
 0x12c   :  { %v58_v34 = vadd.f32 1e-06, %v55_v32  ;;  %v57_v35 = vadd.f32 1e-06, %v54_v33 }
 0x12e   :  { %207 = vrsqrt.f32 %v58_v34 }
 0x12f   :  { %209 = vrsqrt.f32 %v57_v35 }
 0x134   :  { %v206_v36 = vpop.eup %205 }
 0x135   :  { %v62_v38 = vmul.f32 %v206_v36, %v38_v10 }
 0x137   :  { %v72_v40 = vmul.f32 %v188_v37, %v62_v38 }
 0x138   :  { %v208_v41 = vpop.eup %207 }
 0x139   :  { %v210_v42 = vpop.eup %209  ;;  %v64_v43 = vmul.f32 %v208_v41, %v40_v11  ;;  %v82_v44 = vadd.f32 %v189_v39, %v72_v40 }
 0x13a   :  { %v63_v45 = vmul.f32 %v210_v42, %v39_v16 }
 0x13b   :  { %v74_v46 = vmul.f32 %v188_v37, %v64_v43  ;;  %v85_v47 = vmul.f32 %v82_v44, %v82_v44 }
 0x13c   :  { %v73_v48 = vmul.f32 %v188_v37, %v63_v45 }
 0x13d   :  { %v88_v49 = vmul.f32 %v85_v47, %v82_v44  ;;  %v84_v50 = vadd.f32 %v189_v39, %v74_v46 }
 0x13e   :  { %v83_v51 = vadd.f32 %v189_v39, %v73_v48 }
 0x13f   :  { %v91_v52 = vmul.f32 0.044715, %v88_v49  ;;  %v87_v53 = vmul.f32 %v84_v50, %v84_v50 }
 0x140   :  { %v86_v54 = vmul.f32 %v83_v51, %v83_v51 }
 0x141   :  { %v94_v55 = vadd.f32 %v91_v52, %v82_v44  ;;  %v90_v56 = vmul.f32 %v87_v53, %v84_v50 }
 0x142   :  { %v89_v57 = vmul.f32 %v86_v54, %v83_v51 }
 0x143   :  { %v97_v58 = vmul.f32 0.7978846, %v94_v55  ;;  %v93_v59 = vmul.f32 0.044715, %v90_v56 }
 0x144   :  { %v92_v60 = vmul.f32 0.044715, %v89_v57 }
 0x145   :  { %211 = vtanh.f32 %v97_v58  ;;  %v96_v61 = vadd.f32 %v93_v59, %v84_v50 }
 0x146   :  { %v95_v62 = vadd.f32 %v92_v60, %v83_v51 }
 0x147   :  { %v99_v63 = vmul.f32 0.7978846, %v96_v61 }
 0x148   :  { %v98_v0 = vmul.f32 0.7978846, %v95_v62 }
 0x149   :  { %213 = vtanh.f32 %v99_v63 }
 0x14a   :  { %215 = vtanh.f32 %v98_v0 }
 0x14f   :  { %v212_v1 = vpop.eup %211 }
 0x150   :  { %v103_v2 = vadd.f32 1.0, %v212_v1 }
 0x152   :  { %v106_v7 = vmul.f32 0.5, %v103_v2 }
 0x153   :  { %v214_v3 = vpop.eup %213 }
 0x154   :  { %v216_v4 = vpop.eup %215  ;;  %v105_v5 = vadd.f32 1.0, %v214_v3  ;;  %v109_v11 = vmul.f32 %v106_v7, %v82_v44 }
 0x155   :  { %v104_v6 = vadd.f32 1.0, %v216_v4 }
 0x156   :  { %v108_v8 = vmul.f32 0.5, %v105_v5 }
 0x157   :  { %v107_v9 = vmul.f32 0.5, %v104_v6 }
 0x158   :  { %v111_v10 = vmul.f32 %v108_v8, %v84_v50 }
 0x159   :  { %v110_v12 = vmul.f32 %v107_v9, %v83_v51 }
 0x15a   :  { %v113_v13 = vpack.c.bf16 %v111_v10, %v111_v10 }
 0x15b   :  { %v112_v14 = vpack.c.bf16 %v110_v12, %v109_v11 }
 0x15d   :  { %201 = vmatprep.mubr.msk.bf16.mxu0 %vm24_vm0, %v112_v14 }
 0x15e   :  { %202 = vmatmul.mubr.msk.bf16.vlgmr.msra.gmra.mrb[0].mxu0 %vm24_vm0, %v113_v13 }
 0x231   :  { %v203_v16 = vpop.f32.mrb[0].mxu0 }
 0x232   :  { %v176_v17 = vadd.f32 %v203_v16, %v190_v15  ;;  %v167_v18 = vpop.f32.mrb[1].mxu0 }
 0x233   :  { %v168_v19 = vadd.f32 %v190_v15, %v167_v18  ;;  %v204_v20 = vpop.f32.mrb[2].mxu0 }
 0x234   :  { %183 = vst.msk [vmem:[%s302_s5 + $0x10] sm:$0xff] %vm24_vm0, %v176_v17  ;;  %v170_v21 = vpop.f32.mrb[3].mxu0 }
 0x235   :  { %181 = vst.msk [vmem:[%s302_s5] sm:$0xff] %vm24_vm0, %v168_v19  ;;  %v171_v22 = vadd.f32 %v190_v15, %v170_v21 }
 0x237   :  { %182 = vst.msk [vmem:[%s302_s5 + $0x8] sm:$0xff] %vm24_vm0, %v171_v22 }

// kernel: mrm_gen_forward.56
= control target key start
LH: loop header
LB: loop body
LE: loop exit
PB: predicated region body
PF: predicated region fallthrough
CT: control target
= control target key end

     0   :  { %vm26_vm0 = vcmask 261120   ;;  %v251_v38 = vmov 0.0   ;;  %vm252_vm1 = vmmov 0   ;;  %vm198_vm2 = vcmask 785408   ;;  %s380_s0 = inlined_call_operand.vmem [shape: f32[40,32], index: 0, kind: input, shape index: {}]   ;;  %s381_s1 = inlined_call_operand.vmem [shape: f32[32,96], index: 1, kind: input, shape index: {}]   ;;  %s382_s3 = inlined_call_operand.vmem [shape: f32[1,32], index: 3, kind: input, shape index: {}]   ;;  %s383_s4 = inlined_call_operand.vmem [shape: f32[1,32], index: 4, kind: input, shape index: {}]   ;;  %s384_s2 = inlined_call_operand.vmem [shape: f32[1,96], index: 2, kind: input, shape index: {}]   ;;  %s385_s5 = inlined_call_operand.vmem [shape: f32[40,96], index: 5, kind: output, shape index: {}]  }
   0x1   :  { %v23_v0 = vld [vmem:[%s380_s0 + $0x10] sm:$0xff]  ;;  %v24_v1 = vld [vmem:[%s380_s0 + $0x18] sm:$0xff]  ;;  %v21_v2 = vld [vmem:[%s380_s0] sm:$0xff]  ;;  %235 = vmatprep.subr.bf16.mxu1 %v251_v38  ;;  %219 = vmatprep.subr.bf16.mxu0 %v251_v38 }
   0x2   :  { %v33_v3 = vsel %vm26_vm0, %v23_v0, 0.0  ;;  %v27_v4 = vsel %vm26_vm0, %v21_v2, 0.0  ;;  %v22_v5 = vld [vmem:[%s380_s0 + $0x8] sm:$0xff]  ;;  %v36_v6 = vsel %vm26_vm0, %v24_v1, 0.0  ;;  %v25_v8 = vld [vmem:[%s380_s0 + $0x20] sm:$0xff]  ;;  %v122_v39 = vld [vmem:[%s381_s1 + $0x10] sm:$0xff]  ;;  %227 = vmatprep.mubr.msk.bf16.mxu1 %vm252_vm1, %v251_v38  ;;  %223 = vmatprep.mubr.msk.bf16.mxu0 %vm252_vm1, %v251_v38 }
   0x3   :  { %34 = vadd.xlane.f32.xlu0 %v33_v3  ;;  %28 = vadd.xlane.f32.xlu1 %v27_v4  ;;  %v30_v7 = vsel %vm26_vm0, %v22_v5, 0.0  ;;  %v39_v9 = vsel %vm26_vm0, %v25_v8, 0.0  ;;  %v120_v35 = vld [vmem:[%s381_s1] sm:$0xff]  ;;  %v121_v36 = vld [vmem:[%s381_s1 + $0x8] sm:$0xff]  ;;  %v123_v40 = vld [vmem:[%s381_s1 + $0x18] sm:$0xff] }
   0x4   :  { %v124_v37 = vpack.c.bf16 %v121_v36, %v120_v35  ;;  %v125_v41 = vpack.c.bf16 %v123_v40, %v122_v39  ;;  %v208_v59 = vld [vmem:[%s382_s3] ss:$0 sm:$0xff] }
   0x6   :  { %237 = vmatpush3.bf16.msra.mxu1 %v124_v37  ;;  %220 = vmatpush3.bf16.msra.mxu0 %v124_v37 }
   0x7   :  { %37 = vadd.xlane.f32.xlu0 %v36_v6  ;;  %31 = vadd.xlane.f32.xlu1 %v30_v7 }
   0x8   :  { %236 = vmatprep.subr.bf16.mxu1 %v251_v38  ;;  %221 = vmatprep.subr.bf16.mxu0 %v251_v38 }
   0xa   :  { %238 = vmatpush3.bf16.msra.mxu1 %v125_v41  ;;  %222 = vmatpush3.bf16.msra.mxu0 %v125_v41 }
   0xb   :  { %40 = vadd.xlane.f32.xlu0 %v39_v9 }
  0x90   :  { %v35_v10 = vpop.xlane.xlu0 %34  ;;  %v29_v11 = vpop.xlane.xlu1 %28 }
  0x91   :  { %v45_v12 = vmul.f32 0.03125, %v35_v10  ;;  %v43_v13 = vmul.f32 0.03125, %v29_v11 }
  0x93   :  { %v303_v14 = vsub.f32 %v23_v0, %v45_v12  ;;  %v305_v15 = vsub.f32 %v21_v2, %v43_v13 }
  0x94   :  { %v38_v16 = vpop.xlane.xlu0 %37  ;;  %v32_v17 = vpop.xlane.xlu1 %31 }
  0x95   :  { %v46_v18 = vmul.f32 0.03125, %v38_v16  ;;  %v55_v19 = vmul.f32 %v303_v14, %v303_v14  ;;  %v44_v20 = vmul.f32 0.03125, %v32_v17  ;;  %v53_v21 = vmul.f32 %v305_v15, %v305_v15 }
  0x97   :  { %v311_v22 = vsub.f32 %v24_v1, %v46_v18  ;;  %v64_v23 = vsel %vm26_vm0, %v55_v19, 0.0  ;;  %v314_v24 = vsub.f32 %v22_v5, %v44_v20  ;;  %v58_v28 = vsel %vm26_vm0, %v53_v21, 0.0  ;;  %v209_v1 = vld [vmem:[%s383_s4] ss:$0 sm:$0xff] }
  0x98   :  { %v41_v25 = vpop.xlane.xlu0 %40  ;;  %65 = vadd.xlane.f32.xlu1 %v64_v23  ;;  %v210_v18 = vld [vmem:[%s384_s2] ss:$0 sm:$0xff] }
  0x99   :  { %v47_v26 = vmul.f32 0.03125, %v41_v25  ;;  %v56_v27 = vmul.f32 %v311_v22, %v311_v22  ;;  %v54_v29 = vmul.f32 %v314_v24, %v314_v24 }
  0x9b   :  { %v321_v30 = vsub.f32 %v25_v8, %v47_v26  ;;  %v67_v31 = vsel %vm26_vm0, %v56_v27, 0.0  ;;  %v61_v33 = vsel %vm26_vm0, %v54_v29, 0.0 }
  0x9c   :  { %68 = vadd.xlane.f32.xlu0 %v67_v31  ;;  %59 = vadd.xlane.f32.xlu1 %v58_v28 }
  0x9d   :  { %v57_v32 = vmul.f32 %v321_v30, %v321_v30 }
  0x9f   :  { %v70_v34 = vsel %vm26_vm0, %v57_v32, 0.0 }
  0xa0   :  { %71 = vadd.xlane.f32.xlu1 %v70_v34  ;;  %62 = vadd.xlane.f32.xlu0 %v61_v33 }
 0x125   :  { %v66_v42 = vpop.xlane.xlu1 %65 }
 0x126   :  { %v75_v43 = vmul.f32 0.03125, %v66_v42 }
 0x128   :  { %v80_v44 = vadd.f32 1e-06, %v75_v43 }
 0x129   :  { %v69_v45 = vpop.xlane.xlu0 %68  ;;  %v60_v46 = vpop.xlane.xlu1 %59 }
 0x12a   :  { %241 = vrsqrt.f32 %v80_v44  ;;  %v76_v47 = vmul.f32 0.03125, %v69_v45  ;;  %v73_v48 = vmul.f32 0.03125, %v60_v46 }
 0x12c   :  { %v81_v49 = vadd.f32 1e-06, %v76_v47  ;;  %v78_v50 = vadd.f32 1e-06, %v73_v48 }
 0x12d   :  { %v63_v51 = vpop.xlane.xlu0 %62  ;;  %v72_v52 = vpop.xlane.xlu1 %71 }
 0x12e   :  { %243 = vrsqrt.f32 %v81_v49  ;;  %v74_v53 = vmul.f32 0.03125, %v63_v51  ;;  %v77_v54 = vmul.f32 0.03125, %v72_v52 }
 0x12f   :  { %245 = vrsqrt.f32 %v78_v50 }
 0x130   :  { %v79_v55 = vadd.f32 1e-06, %v74_v53  ;;  %v82_v56 = vadd.f32 1e-06, %v77_v54 }
 0x132   :  { %247 = vrsqrt.f32 %v79_v55 }
 0x133   :  { %249 = vrsqrt.f32 %v82_v56 }
 0x134   :  { %v242_v57 = vpop.eup %241 }
 0x135   :  { %v90_v58 = vmul.f32 %v242_v57, %v303_v14 }
 0x137   :  { %v102_v63 = vmul.f32 %v208_v59, %v90_v58 }
 0x138   :  { %v244_v60 = vpop.eup %243 }
 0x139   :  { %v246_v61 = vpop.eup %245  ;;  %v91_v62 = vmul.f32 %v244_v60, %v311_v22  ;;  %v114_v6 = vadd.f32 %v209_v1, %v102_v63 }
 0x13a   :  { %v88_v0 = vmul.f32 %v246_v61, %v305_v15 }
 0x13b   :  { %v103_v2 = vmul.f32 %v208_v59, %v91_v62 }
 0x13c   :  { %v248_v3 = vpop.eup %247  ;;  %v100_v8 = vmul.f32 %v208_v59, %v88_v0 }
 0x13d   :  { %v250_v4 = vpop.eup %249  ;;  %v89_v5 = vmul.f32 %v248_v3, %v314_v24  ;;  %v115_v7 = vadd.f32 %v209_v1, %v103_v2 }
 0x13e   :  { %v92_v9 = vmul.f32 %v250_v4, %v321_v30  ;;  %v112_v13 = vadd.f32 %v209_v1, %v100_v8 }
 0x13f   :  { %v118_v10 = vpack.c.bf16 %v115_v7, %v114_v6  ;;  %v101_v11 = vmul.f32 %v208_v59, %v89_v5 }
 0x140   :  { %v104_v12 = vmul.f32 %v208_v59, %v92_v9 }
 0x141   :  { %228 = vmatmul.mubr.msk.bf16.vlgmr.msra.gmra.mrb[0].mxu1 %vm26_vm0, %v118_v10  ;;  %v113_v14 = vadd.f32 %v209_v1, %v101_v11 }
 0x142   :  { %231 = vmatprep.mubr.msk.bf16.mxu1 %vm252_vm1, %v251_v38  ;;  %v116_v16 = vadd.f32 %v209_v1, %v104_v12 }
 0x143   :  { %v117_v15 = vpack.c.bf16 %v113_v14, %v112_v13 }
 0x144   :  { %v119_v17 = vpack.c.bf16 %v116_v16, %v116_v16 }
 0x145   :  { %224 = vmatmul.mubr.msk.bf16.vlgmr.msra.gmra.mrb[0].mxu0 %vm26_vm0, %v117_v15 }
 0x149   :  { %232 = vmatmul.mubr.msk.bf16.gmra.mrb[4].mxu1 %vm26_vm0, %v119_v17 }
 0x214   :  { %v184_v19 = vpop.f32.mrb[0].mxu1 }
 0x215   :  { %v185_v20 = vadd.f32 %v210_v18, %v184_v19  ;;  %v229_v21 = vpop.f32.mrb[1].mxu1 }
 0x216   :  { %v187_v22 = vpop.f32.mrb[2].mxu1 }
 0x217   :  { %201 = vst.msk [vmem:[%s385_s5 + $0x10] sm:$0xff] %vm198_vm2, %v185_v20  ;;  %v188_v23 = vadd.f32 %v210_v18, %v187_v22  ;;  %v230_v24 = vpop.f32.mrb[3].mxu1 }
 0x218   :  { %v176_v25 = vpop.f32.mrb[0].mxu0 }
 0x219   :  { %202 = vst.msk [vmem:[%s385_s5 + $0x18] sm:$0xff] %vm198_vm2, %v188_v23  ;;  %v177_v26 = vadd.f32 %v210_v18, %v176_v25  ;;  %v225_v27 = vpop.f32.mrb[1].mxu0 }
 0x21a   :  { %v179_v28 = vpop.f32.mrb[2].mxu0 }
 0x21b   :  { %199 = vst.msk [vmem:[%s385_s5] sm:$0xff] %vm198_vm2, %v177_v26  ;;  %v180_v29 = vadd.f32 %v210_v18, %v179_v28  ;;  %v226_v30 = vpop.f32.mrb[3].mxu0 }
 0x21c   :  { %v192_v31 = vpop.f32.mrb[4].mxu1 }
 0x21d   :  { %200 = vst.msk [vmem:[%s385_s5 + $0x8] sm:$0xff] %vm198_vm2, %v180_v29  ;;  %v193_v32 = vadd.f32 %v210_v18, %v192_v31  ;;  %v233_v33 = vpop.f32.mrb[5].mxu1 }
 0x21e   :  { %v195_v34 = vpop.f32.mrb[6].mxu1 }
 0x21f   :  { %203 = vst.msk [vmem:[%s385_s5 + $0x20] sm:$0xff] %vm198_vm2, %v193_v32  ;;  %v234_v35 = vpop.f32.mrb[7].mxu1 }

// kernel: mrm_gen_forward.58
= control target key start
LH: loop header
LB: loop body
LE: loop exit
PB: predicated region body
PF: predicated region fallthrough
CT: control target
= control target key end

     0   :  { %v155_v0 = vmov 0.0   ;;  %vm156_vm0 = vmmov 0   ;;  %vm39_vm1 = vcmask 261120   ;;  %s253_s1 = inlined_call_operand.vmem [shape: f32[32,32], index: 1, kind: input, shape index: {}]   ;;  %s254_s0 = inlined_call_operand.vmem [shape: f32[40,32], index: 0, kind: input, shape index: {}]   ;;  %s255_s2 = inlined_call_operand.vmem [shape: f32[1,32], index: 2, kind: input, shape index: {}]   ;;  %s256_s3 = inlined_call_operand.vmem [shape: f32[40,32], index: 3, kind: input, shape index: {}]   ;;  %s257_s4 = inlined_call_operand.vmem [shape: f32[40,32], index: 4, kind: output, shape index: {}]  }
   0x1   :  { %149 = vmatprep.subr.bf16.mxu1 %v155_v0  ;;  %v26_v1 = vld [vmem:[%s253_s1] sm:$0xff]  ;;  %v27_v2 = vld [vmem:[%s253_s1 + $0x8] sm:$0xff]  ;;  %133 = vmatprep.subr.bf16.mxu0 %v155_v0  ;;  %v28_v3 = vld [vmem:[%s253_s1 + $0x10] sm:$0xff] }
   0x2   :  { %v30_v4 = vpack.c.bf16 %v27_v2, %v26_v1  ;;  %v29_v5 = vld [vmem:[%s253_s1 + $0x18] sm:$0xff]  ;;  %141 = vmatprep.mubr.msk.bf16.mxu1 %vm156_vm0, %v155_v0  ;;  %137 = vmatprep.mubr.msk.bf16.mxu0 %vm156_vm0, %v155_v0  ;;  %v20_v6 = vld [vmem:[%s254_s0 + $0x10] sm:$0xff]  ;;  %v18_v9 = vld [vmem:[%s254_s0] sm:$0xff] }
   0x3   :  { %v31_v7 = vpack.c.bf16 %v29_v5, %v28_v3  ;;  %v21_v8 = vld [vmem:[%s254_s0 + $0x18] sm:$0xff]  ;;  %v19_v10 = vld [vmem:[%s254_s0 + $0x8] sm:$0xff]  ;;  %v22_v13 = vld [vmem:[%s254_s0 + $0x20] sm:$0xff] }
   0x4   :  { %151 = vmatpush3.bf16.msra.mxu1 %v30_v4  ;;  %134 = vmatpush3.bf16.msra.mxu0 %v30_v4  ;;  %v24_v11 = vpack.c.bf16 %v21_v8, %v20_v6  ;;  %v23_v12 = vpack.c.bf16 %v19_v10, %v18_v9  ;;  %v25_v14 = vpack.c.bf16 %v22_v13, %v22_v13  ;;  %v124_v15 = vld [vmem:[%s255_s2] ss:$0 sm:$0xff]  ;;  %v107_v17 = vld [vmem:[%s256_s3 + $0x10] sm:$0xff]  ;;  %v108_v25 = vld [vmem:[%s256_s3 + $0x18] sm:$0xff] }
   0x5   :  { %150 = vmatprep.subr.bf16.mxu1 %v155_v0  ;;  %135 = vmatprep.subr.bf16.mxu0 %v155_v0  ;;  %v105_v19 = vld [vmem:[%s256_s3] sm:$0xff]  ;;  %v106_v27 = vld [vmem:[%s256_s3 + $0x8] sm:$0xff] }
   0x6   :  { %v109_v37 = vld [vmem:[%s256_s3 + $0x20] sm:$0xff] }
   0x8   :  { %152 = vmatpush3.bf16.msra.mxu1 %v31_v7  ;;  %136 = vmatpush3.bf16.msra.mxu0 %v31_v7 }
   0xb   :  { %142 = vmatmul.mubr.msk.bf16.vlgmr.msra.gmra.mrb[0].mxu1 %vm39_vm1, %v24_v11  ;;  %138 = vmatmul.mubr.msk.bf16.vlgmr.msra.gmra.mrb[0].mxu0 %vm39_vm1, %v23_v12 }
   0xc   :  { %145 = vmatprep.mubr.msk.bf16.mxu1 %vm156_vm0, %v155_v0 }
  0x13   :  { %146 = vmatmul.mubr.msk.bf16.gmra.mrb[4].mxu1 %vm39_vm1, %v25_v14 }
  0xde   :  { %v91_v16 = vpop.f32.mrb[0].mxu1  ;;  %v83_v18 = vpop.f32.mrb[0].mxu0 }
  0xdf   :  { %v92_v20 = vadd.f32 %v124_v15, %v91_v16  ;;  %v143_v21 = vpop.f32.mrb[1].mxu1  ;;  %v84_v22 = vadd.f32 %v124_v15, %v83_v18  ;;  %v139_v23 = vpop.f32.mrb[1].mxu0 }
  0xe0   :  { %v94_v24 = vpop.f32.mrb[2].mxu1  ;;  %v86_v26 = vpop.f32.mrb[2].mxu0 }
  0xe1   :  { %v112_v28 = vadd.f32 %v107_v17, %v92_v20  ;;  %v95_v29 = vadd.f32 %v124_v15, %v94_v24  ;;  %v110_v30 = vadd.f32 %v105_v19, %v84_v22  ;;  %v144_v31 = vpop.f32.mrb[3].mxu1  ;;  %v87_v32 = vadd.f32 %v124_v15, %v86_v26  ;;  %v140_v33 = vpop.f32.mrb[3].mxu0 }
  0xe3   :  { %117 = vst.msk [vmem:[%s257_s4 + $0x10] sm:$0xff] %vm39_vm1, %v112_v28  ;;  %v113_v34 = vadd.f32 %v108_v25, %v95_v29  ;;  %115 = vst.msk [vmem:[%s257_s4] sm:$0xff] %vm39_vm1, %v110_v30  ;;  %v111_v35 = vadd.f32 %v106_v27, %v87_v32 }
  0xe5   :  { %118 = vst.msk [vmem:[%s257_s4 + $0x18] sm:$0xff] %vm39_vm1, %v113_v34  ;;  %116 = vst.msk [vmem:[%s257_s4 + $0x8] sm:$0xff] %vm39_vm1, %v111_v35 }
  0xe6   :  { %v99_v36 = vpop.f32.mrb[4].mxu1 }
  0xe7   :  { %v100_v38 = vadd.f32 %v124_v15, %v99_v36  ;;  %v147_v39 = vpop.f32.mrb[5].mxu1 }
  0xe8   :  { %v102_v40 = vpop.f32.mrb[6].mxu1 }
  0xe9   :  { %v114_v41 = vadd.f32 %v109_v37, %v100_v38  ;;  %v148_v42 = vpop.f32.mrb[7].mxu1 }
  0xeb   :  { %119 = vst.msk [vmem:[%s257_s4 + $0x20] sm:$0xff] %vm39_vm1, %v114_v41 }

// kernel: mrm_gen_forward.60
= control target key start
LH: loop header
LB: loop body
LE: loop exit
PB: predicated region body
PF: predicated region fallthrough
CT: control target
= control target key end

     0   :  { %v246_v0 = vmov 0.0   ;;  %vm247_vm0 = vmmov 0   ;;  %vm168_vm1 = vcmask 261120   ;;  %s431_s1 = inlined_call_operand.vmem [shape: f32[128,32], index: 1, kind: input, shape index: {}]   ;;  %s432_s0 = inlined_call_operand.vmem [shape: f32[40,128], index: 0, kind: input, shape index: {}]   ;;  %s433_s2 = inlined_call_operand.vmem [shape: f32[1,32], index: 2, kind: input, shape index: {}]   ;;  %s434_s3 = inlined_call_operand.vmem [shape: f32[40,32], index: 3, kind: input, shape index: {}]   ;;  %s435_s4 = inlined_call_operand.vmem [shape: f32[40,32], index: 4, kind: output, shape index: {}]  }
   0x1   :  { %218 = vmatprep.subr.bf16.mxu1 %v246_v0  ;;  %v71_v1 = vld [vmem:[%s431_s1] sm:$0xff]  ;;  %v72_v2 = vld [vmem:[%s431_s1 + $0x8] sm:$0xff]  ;;  %190 = vmatprep.subr.bf16.mxu0 %v246_v0  ;;  %v73_v3 = vld [vmem:[%s431_s1 + $0x10] sm:$0xff] }
   0x2   :  { %v87_v4 = vpack.c.bf16 %v72_v2, %v71_v1  ;;  %v74_v5 = vld [vmem:[%s431_s1 + $0x18] sm:$0xff]  ;;  %210 = vmatprep.mubr.msk.bf16.mxu1 %vm247_vm0, %v246_v0  ;;  %206 = vmatprep.mubr.msk.bf16.mxu0 %vm247_vm0, %v246_v0  ;;  %v75_v7 = vld [vmem:[%s431_s1 + $0x20] sm:$0xff]  ;;  %v76_v8 = vld [vmem:[%s431_s1 + $0x28] sm:$0xff] }
   0x3   :  { %v88_v6 = vpack.c.bf16 %v74_v5, %v73_v3  ;;  %v302_v9 = vld [vmem:[%s432_s0 + $0x10] sm:$0xff]  ;;  %v307_v10 = vld [vmem:[%s432_s0 + $0x18] sm:$0xff]  ;;  %v89_v11 = vpack.c.bf16 %v76_v8, %v75_v7  ;;  %v316_v14 = vld [vmem:[%s432_s0] sm:$0xff] }
   0x4   :  { %226 = vmatpush3.bf16.msra.mxu1 %v87_v4  ;;  %191 = vmatpush3.bf16.msra.mxu0 %v87_v4  ;;  %v25_v12 = vmul.f32 %v302_v9, %v302_v9  ;;  %v26_v13 = vmul.f32 %v307_v10, %v307_v10  ;;  %v321_v15 = vld [vmem:[%s432_s0 + $0x8] sm:$0xff]  ;;  %v326_v16 = vld [vmem:[%s432_s0 + $0x20] sm:$0xff]  ;;  %v23_v17 = vmul.f32 %v316_v14, %v316_v14  ;;  %v77_v20 = vld [vmem:[%s431_s1 + $0x30] sm:$0xff] }
   0x5   :  { %219 = vmatprep.subr.bf16.mxu1 %v246_v0  ;;  %192 = vmatprep.subr.bf16.mxu0 %v246_v0  ;;  %v24_v18 = vmul.f32 %v321_v15, %v321_v15  ;;  %v27_v19 = vmul.f32 %v326_v16, %v326_v16  ;;  %v78_v21 = vld [vmem:[%s431_s1 + $0x38] sm:$0xff]  ;;  %v79_v33 = vld [vmem:[%s431_s1 + $0x40] sm:$0xff]  ;;  %v80_v34 = vld [vmem:[%s431_s1 + $0x48] sm:$0xff] }
   0x6   :  { %v30_v22 = vmul.f32 %v25_v12, %v302_v9  ;;  %v31_v23 = vmul.f32 %v26_v13, %v307_v10  ;;  %v28_v24 = vmul.f32 %v23_v17, %v316_v14  ;;  %v90_v29 = vpack.c.bf16 %v78_v21, %v77_v20  ;;  %v81_v45 = vld [vmem:[%s431_s1 + $0x50] sm:$0xff]  ;;  %v82_v46 = vld [vmem:[%s431_s1 + $0x58] sm:$0xff]  ;;  %v83_v49 = vld [vmem:[%s431_s1 + $0x60] sm:$0xff] }
   0x7   :  { %v29_v25 = vmul.f32 %v24_v18, %v321_v15  ;;  %v32_v26 = vmul.f32 %v27_v19, %v326_v16  ;;  %v91_v42 = vpack.c.bf16 %v80_v34, %v79_v33  ;;  %v92_v48 = vpack.c.bf16 %v82_v46, %v81_v45  ;;  %v84_v50 = vld [vmem:[%s431_s1 + $0x68] sm:$0xff]  ;;  %v85_v52 = vld [vmem:[%s431_s1 + $0x70] sm:$0xff]  ;;  %v86_v53 = vld [vmem:[%s431_s1 + $0x78] sm:$0xff] }
   0x8   :  { %227 = vmatpush3.bf16.msra.mxu1 %v88_v6  ;;  %193 = vmatpush3.bf16.msra.mxu0 %v88_v6  ;;  %v35_v27 = vmul.f32 0.044715, %v30_v22  ;;  %v36_v28 = vmul.f32 0.044715, %v31_v23  ;;  %v33_v30 = vmul.f32 0.044715, %v28_v24  ;;  %v93_v51 = vpack.c.bf16 %v84_v50, %v83_v49 }
   0x9   :  { %220 = vmatprep.subr.bf16.mxu1 %v246_v0  ;;  %194 = vmatprep.subr.bf16.mxu0 %v246_v0  ;;  %v34_v31 = vmul.f32 0.044715, %v29_v25  ;;  %v37_v32 = vmul.f32 0.044715, %v32_v26  ;;  %v94_v56 = vpack.c.bf16 %v86_v53, %v85_v52  ;;  %v158_v22 = vld [vmem:[%s434_s3] sm:$0xff] }
   0xa   :  { %v40_v35 = vadd.f32 %v35_v27, %v302_v9  ;;  %v41_v36 = vadd.f32 %v36_v28, %v307_v10  ;;  %v38_v37 = vadd.f32 %v33_v30, %v316_v14 }
   0xb   :  { %v39_v38 = vadd.f32 %v34_v31, %v321_v15  ;;  %v42_v39 = vadd.f32 %v37_v32, %v326_v16 }
   0xc   :  { %228 = vmatpush3.bf16.msra.mxu1 %v89_v11  ;;  %195 = vmatpush3.bf16.msra.mxu0 %v89_v11  ;;  %v45_v40 = vmul.f32 0.7978846, %v40_v35  ;;  %v46_v41 = vmul.f32 0.7978846, %v41_v36  ;;  %v43_v43 = vmul.f32 0.7978846, %v38_v37 }
   0xd   :  { %221 = vmatprep.subr.bf16.mxu1 %v246_v0  ;;  %196 = vmatprep.subr.bf16.mxu0 %v246_v0  ;;  %v44_v44 = vmul.f32 0.7978846, %v39_v38  ;;  %v47_v47 = vmul.f32 0.7978846, %v42_v39  ;;  %v162_v36 = vld [vmem:[%s434_s3 + $0x20] sm:$0xff] }
   0xe   :  { %236 = vtanh.f32 %v45_v40 }
   0xf   :  { %238 = vtanh.f32 %v46_v41 }
  0x10   :  { %229 = vmatpush3.bf16.msra.mxu1 %v90_v29  ;;  %197 = vmatpush3.bf16.msra.mxu0 %v90_v29  ;;  %240 = vtanh.f32 %v43_v43  ;;  %v159_v29 = vld [vmem:[%s434_s3 + $0x8] sm:$0xff] }
  0x11   :  { %222 = vmatprep.subr.bf16.mxu1 %v246_v0  ;;  %198 = vmatprep.subr.bf16.mxu0 %v246_v0  ;;  %242 = vtanh.f32 %v44_v44 }
  0x12   :  { %244 = vtanh.f32 %v47_v47 }
  0x14   :  { %230 = vmatpush3.bf16.msra.mxu1 %v91_v42  ;;  %199 = vmatpush3.bf16.msra.mxu0 %v91_v42 }
  0x15   :  { %223 = vmatprep.subr.bf16.mxu1 %v246_v0  ;;  %200 = vmatprep.subr.bf16.mxu0 %v246_v0 }
  0x18   :  { %231 = vmatpush3.bf16.msra.mxu1 %v92_v48  ;;  %201 = vmatpush3.bf16.msra.mxu0 %v92_v48  ;;  %v237_v54 = vpop.eup %236 }
  0x19   :  { %224 = vmatprep.subr.bf16.mxu1 %v246_v0  ;;  %202 = vmatprep.subr.bf16.mxu0 %v246_v0  ;;  %v239_v55 = vpop.eup %238  ;;  %v55_v57 = vadd.f32 1.0, %v237_v54 }
  0x1a   :  { %v241_v58 = vpop.eup %240  ;;  %v56_v59 = vadd.f32 1.0, %v239_v55 }
  0x1b   :  { %v243_v60 = vpop.eup %242  ;;  %v60_v61 = vmul.f32 0.5, %v55_v57  ;;  %v53_v62 = vadd.f32 1.0, %v241_v58 }
  0x1c   :  { %232 = vmatpush3.bf16.msra.mxu1 %v93_v51  ;;  %203 = vmatpush3.bf16.msra.mxu0 %v93_v51  ;;  %v245_v63 = vpop.eup %244  ;;  %v61_v1 = vmul.f32 0.5, %v56_v59  ;;  %v54_v2 = vadd.f32 1.0, %v243_v60 }
  0x1d   :  { %225 = vmatprep.subr.bf16.mxu1 %v246_v0  ;;  %204 = vmatprep.subr.bf16.mxu0 %v246_v0  ;;  %v65_v3 = vmul.f32 %v60_v61, %v302_v9  ;;  %v58_v4 = vmul.f32 0.5, %v53_v62  ;;  %v57_v5 = vadd.f32 1.0, %v245_v63 }
  0x1e   :  { %v66_v6 = vmul.f32 %v61_v1, %v307_v10  ;;  %v59_v7 = vmul.f32 0.5, %v54_v2  ;;  %v178_v10 = vld [vmem:[%s433_s2] ss:$0 sm:$0xff] }
  0x1f   :  { %v63_v8 = vmul.f32 %v58_v4, %v316_v14  ;;  %v62_v11 = vmul.f32 0.5, %v57_v5  ;;  %v160_v14 = vld [vmem:[%s434_s3 + $0x10] sm:$0xff] }
  0x20   :  { %233 = vmatpush3.bf16.msra.mxu1 %v94_v56  ;;  %205 = vmatpush3.bf16.msra.mxu0 %v94_v56  ;;  %v69_v12 = vpack.c.bf16 %v66_v6, %v65_v3  ;;  %v64_v13 = vmul.f32 %v59_v7, %v321_v15 }
  0x21   :  { %v67_v18 = vmul.f32 %v62_v11, %v326_v16 }
  0x22   :  { %v68_v17 = vpack.c.bf16 %v64_v13, %v63_v8 }
  0x23   :  { %211 = vmatmul.mubr.bf16.vlgmr.msra.gmra.mrb[0].mxu1 %v69_v12  ;;  %v70_v9 = vpack.c.bf16 %v67_v18, %v67_v18 }
  0x24   :  { %214 = vmatprep.mubr.msk.bf16.mxu1 %vm247_vm0, %v246_v0  ;;  %207 = vmatmul.mubr.bf16.vlgmr.msra.gmra.mrb[0].mxu0 %v68_v17  ;;  %v161_v0 = vld [vmem:[%s434_s3 + $0x18] sm:$0xff] }
  0x2b   :  { %215 = vmatmul.mubr.bf16.gmra.mrb[4].mxu1 %v70_v9 }
  0xf6   :  { %v144_v19 = vpop.f32.mrb[0].mxu1 }
  0xf7   :  { %v145_v15 = vadd.f32 %v178_v10, %v144_v19  ;;  %v212_v20 = vpop.f32.mrb[1].mxu1  ;;  %v136_v16 = vpop.f32.mrb[0].mxu0 }
  0xf8   :  { %v147_v21 = vpop.f32.mrb[2].mxu1  ;;  %v137_v25 = vadd.f32 %v178_v10, %v136_v16  ;;  %v208_v27 = vpop.f32.mrb[1].mxu0 }
  0xf9   :  { %v165_v23 = vadd.f32 %v160_v14, %v145_v15  ;;  %v148_v24 = vadd.f32 %v178_v10, %v147_v21  ;;  %v213_v26 = vpop.f32.mrb[3].mxu1  ;;  %v139_v28 = vpop.f32.mrb[2].mxu0 }
  0xfa   :  { %v163_v31 = vadd.f32 %v158_v22, %v137_v25  ;;  %v140_v32 = vadd.f32 %v178_v10, %v139_v28  ;;  %v209_v33 = vpop.f32.mrb[3].mxu0 }
  0xfb   :  { %171 = vst.msk [vmem:[%s435_s4 + $0x10] sm:$0xff] %vm168_vm1, %v165_v23  ;;  %v166_v30 = vadd.f32 %v161_v0, %v148_v24 }
  0xfc   :  { %169 = vst.msk [vmem:[%s435_s4] sm:$0xff] %vm168_vm1, %v163_v31  ;;  %v164_v34 = vadd.f32 %v159_v29, %v140_v32 }
  0xfd   :  { %172 = vst.msk [vmem:[%s435_s4 + $0x18] sm:$0xff] %vm168_vm1, %v166_v30 }
  0xfe   :  { %v152_v35 = vpop.f32.mrb[4].mxu1  ;;  %170 = vst.msk [vmem:[%s435_s4 + $0x8] sm:$0xff] %vm168_vm1, %v164_v34 }
  0xff   :  { %v153_v37 = vadd.f32 %v178_v10, %v152_v35  ;;  %v216_v38 = vpop.f32.mrb[5].mxu1 }
 0x100   :  { %v155_v39 = vpop.f32.mrb[6].mxu1 }
 0x101   :  { %v167_v40 = vadd.f32 %v162_v36, %v153_v37  ;;  %v217_v41 = vpop.f32.mrb[7].mxu1 }
 0x103   :  { %173 = vst.msk [vmem:[%s435_s4 + $0x20] sm:$0xff] %vm168_vm1, %v167_v40 }

// kernel: mrm_gen_forward.59
= control target key start
LH: loop header
LB: loop body
LE: loop exit
PB: predicated region body
PF: predicated region fallthrough
CT: control target
= control target key end

     0   :  { %vm26_vm0 = vcmask 261120   ;;  %v250_v38 = vmov 0.0   ;;  %vm251_vm1 = vmmov 0   ;;  %s374_s0 = inlined_call_operand.vmem [shape: f32[40,32], index: 0, kind: input, shape index: {}]   ;;  %s375_s1 = inlined_call_operand.vmem [shape: f32[32,128], index: 1, kind: input, shape index: {}]   ;;  %s376_s3 = inlined_call_operand.vmem [shape: f32[1,32], index: 3, kind: input, shape index: {}]   ;;  %s377_s4 = inlined_call_operand.vmem [shape: f32[1,32], index: 4, kind: input, shape index: {}]   ;;  %s378_s2 = inlined_call_operand.vmem [shape: f32[1,128], index: 2, kind: input, shape index: {}]   ;;  %s379_s5 = inlined_call_operand.vmem [shape: f32[40,128], index: 5, kind: output, shape index: {}]  }
   0x1   :  { %v23_v0 = vld [vmem:[%s374_s0 + $0x10] sm:$0xff]  ;;  %v24_v1 = vld [vmem:[%s374_s0 + $0x18] sm:$0xff]  ;;  %v21_v2 = vld [vmem:[%s374_s0] sm:$0xff]  ;;  %234 = vmatprep.subr.bf16.mxu1 %v250_v38  ;;  %218 = vmatprep.subr.bf16.mxu0 %v250_v38 }
   0x2   :  { %v33_v3 = vsel %vm26_vm0, %v23_v0, 0.0  ;;  %v27_v4 = vsel %vm26_vm0, %v21_v2, 0.0  ;;  %v22_v5 = vld [vmem:[%s374_s0 + $0x8] sm:$0xff]  ;;  %v36_v6 = vsel %vm26_vm0, %v24_v1, 0.0  ;;  %v25_v8 = vld [vmem:[%s374_s0 + $0x20] sm:$0xff]  ;;  %v122_v39 = vld [vmem:[%s375_s1 + $0x10] sm:$0xff]  ;;  %226 = vmatprep.mubr.msk.bf16.mxu1 %vm251_vm1, %v250_v38  ;;  %222 = vmatprep.mubr.msk.bf16.mxu0 %vm251_vm1, %v250_v38 }
   0x3   :  { %34 = vadd.xlane.f32.xlu0 %v33_v3  ;;  %28 = vadd.xlane.f32.xlu1 %v27_v4  ;;  %v30_v7 = vsel %vm26_vm0, %v22_v5, 0.0  ;;  %v39_v9 = vsel %vm26_vm0, %v25_v8, 0.0  ;;  %v120_v35 = vld [vmem:[%s375_s1] sm:$0xff]  ;;  %v121_v36 = vld [vmem:[%s375_s1 + $0x8] sm:$0xff]  ;;  %v123_v40 = vld [vmem:[%s375_s1 + $0x18] sm:$0xff] }
   0x4   :  { %v124_v37 = vpack.c.bf16 %v121_v36, %v120_v35  ;;  %v125_v41 = vpack.c.bf16 %v123_v40, %v122_v39  ;;  %v207_v59 = vld [vmem:[%s376_s3] ss:$0 sm:$0xff] }
   0x6   :  { %236 = vmatpush3.bf16.msra.mxu1 %v124_v37  ;;  %219 = vmatpush3.bf16.msra.mxu0 %v124_v37 }
   0x7   :  { %37 = vadd.xlane.f32.xlu0 %v36_v6  ;;  %31 = vadd.xlane.f32.xlu1 %v30_v7 }
   0x8   :  { %235 = vmatprep.subr.bf16.mxu1 %v250_v38  ;;  %220 = vmatprep.subr.bf16.mxu0 %v250_v38 }
   0xa   :  { %237 = vmatpush3.bf16.msra.mxu1 %v125_v41  ;;  %221 = vmatpush3.bf16.msra.mxu0 %v125_v41 }
   0xb   :  { %40 = vadd.xlane.f32.xlu0 %v39_v9 }
  0x90   :  { %v35_v10 = vpop.xlane.xlu0 %34  ;;  %v29_v11 = vpop.xlane.xlu1 %28 }
  0x91   :  { %v45_v12 = vmul.f32 0.03125, %v35_v10  ;;  %v43_v13 = vmul.f32 0.03125, %v29_v11 }
  0x93   :  { %v302_v14 = vsub.f32 %v23_v0, %v45_v12  ;;  %v304_v15 = vsub.f32 %v21_v2, %v43_v13 }
  0x94   :  { %v38_v16 = vpop.xlane.xlu0 %37  ;;  %v32_v17 = vpop.xlane.xlu1 %31 }
  0x95   :  { %v46_v18 = vmul.f32 0.03125, %v38_v16  ;;  %v55_v19 = vmul.f32 %v302_v14, %v302_v14  ;;  %v44_v20 = vmul.f32 0.03125, %v32_v17  ;;  %v53_v21 = vmul.f32 %v304_v15, %v304_v15 }
  0x97   :  { %v310_v22 = vsub.f32 %v24_v1, %v46_v18  ;;  %v64_v23 = vsel %vm26_vm0, %v55_v19, 0.0  ;;  %v313_v24 = vsub.f32 %v22_v5, %v44_v20  ;;  %v58_v28 = vsel %vm26_vm0, %v53_v21, 0.0  ;;  %v208_v1 = vld [vmem:[%s377_s4] ss:$0 sm:$0xff] }
  0x98   :  { %v41_v25 = vpop.xlane.xlu0 %40  ;;  %65 = vadd.xlane.f32.xlu1 %v64_v23  ;;  %v209_v18 = vld [vmem:[%s378_s2] ss:$0 sm:$0xff] }
  0x99   :  { %v47_v26 = vmul.f32 0.03125, %v41_v25  ;;  %v56_v27 = vmul.f32 %v310_v22, %v310_v22  ;;  %v54_v29 = vmul.f32 %v313_v24, %v313_v24 }
  0x9b   :  { %v320_v30 = vsub.f32 %v25_v8, %v47_v26  ;;  %v67_v31 = vsel %vm26_vm0, %v56_v27, 0.0  ;;  %v61_v33 = vsel %vm26_vm0, %v54_v29, 0.0 }
  0x9c   :  { %68 = vadd.xlane.f32.xlu0 %v67_v31  ;;  %59 = vadd.xlane.f32.xlu1 %v58_v28 }
  0x9d   :  { %v57_v32 = vmul.f32 %v320_v30, %v320_v30 }
  0x9f   :  { %v70_v34 = vsel %vm26_vm0, %v57_v32, 0.0 }
  0xa0   :  { %71 = vadd.xlane.f32.xlu1 %v70_v34  ;;  %62 = vadd.xlane.f32.xlu0 %v61_v33 }
 0x125   :  { %v66_v42 = vpop.xlane.xlu1 %65 }
 0x126   :  { %v75_v43 = vmul.f32 0.03125, %v66_v42 }
 0x128   :  { %v80_v44 = vadd.f32 1e-06, %v75_v43 }
 0x129   :  { %v69_v45 = vpop.xlane.xlu0 %68  ;;  %v60_v46 = vpop.xlane.xlu1 %59 }
 0x12a   :  { %240 = vrsqrt.f32 %v80_v44  ;;  %v76_v47 = vmul.f32 0.03125, %v69_v45  ;;  %v73_v48 = vmul.f32 0.03125, %v60_v46 }
 0x12c   :  { %v81_v49 = vadd.f32 1e-06, %v76_v47  ;;  %v78_v50 = vadd.f32 1e-06, %v73_v48 }
 0x12d   :  { %v63_v51 = vpop.xlane.xlu0 %62  ;;  %v72_v52 = vpop.xlane.xlu1 %71 }
 0x12e   :  { %242 = vrsqrt.f32 %v81_v49  ;;  %v74_v53 = vmul.f32 0.03125, %v63_v51  ;;  %v77_v54 = vmul.f32 0.03125, %v72_v52 }
 0x12f   :  { %244 = vrsqrt.f32 %v78_v50 }
 0x130   :  { %v79_v55 = vadd.f32 1e-06, %v74_v53  ;;  %v82_v56 = vadd.f32 1e-06, %v77_v54 }
 0x132   :  { %246 = vrsqrt.f32 %v79_v55 }
 0x133   :  { %248 = vrsqrt.f32 %v82_v56 }
 0x134   :  { %v241_v57 = vpop.eup %240 }
 0x135   :  { %v90_v58 = vmul.f32 %v241_v57, %v302_v14 }
 0x137   :  { %v102_v63 = vmul.f32 %v207_v59, %v90_v58 }
 0x138   :  { %v243_v60 = vpop.eup %242 }
 0x139   :  { %v245_v61 = vpop.eup %244  ;;  %v91_v62 = vmul.f32 %v243_v60, %v310_v22  ;;  %v114_v6 = vadd.f32 %v208_v1, %v102_v63 }
 0x13a   :  { %v88_v0 = vmul.f32 %v245_v61, %v304_v15 }
 0x13b   :  { %v103_v2 = vmul.f32 %v207_v59, %v91_v62 }
 0x13c   :  { %v247_v3 = vpop.eup %246  ;;  %v100_v8 = vmul.f32 %v207_v59, %v88_v0 }
 0x13d   :  { %v249_v4 = vpop.eup %248  ;;  %v89_v5 = vmul.f32 %v247_v3, %v313_v24  ;;  %v115_v7 = vadd.f32 %v208_v1, %v103_v2 }
 0x13e   :  { %v92_v9 = vmul.f32 %v249_v4, %v320_v30  ;;  %v112_v13 = vadd.f32 %v208_v1, %v100_v8 }
 0x13f   :  { %v118_v10 = vpack.c.bf16 %v115_v7, %v114_v6  ;;  %v101_v11 = vmul.f32 %v207_v59, %v89_v5 }
 0x140   :  { %v104_v12 = vmul.f32 %v207_v59, %v92_v9 }
 0x141   :  { %227 = vmatmul.mubr.msk.bf16.vlgmr.msra.gmra.mrb[0].mxu1 %vm26_vm0, %v118_v10  ;;  %v113_v14 = vadd.f32 %v208_v1, %v101_v11 }
 0x142   :  { %230 = vmatprep.mubr.msk.bf16.mxu1 %vm251_vm1, %v250_v38  ;;  %v116_v16 = vadd.f32 %v208_v1, %v104_v12 }
 0x143   :  { %v117_v15 = vpack.c.bf16 %v113_v14, %v112_v13 }
 0x144   :  { %v119_v17 = vpack.c.bf16 %v116_v16, %v116_v16 }
 0x145   :  { %223 = vmatmul.mubr.msk.bf16.vlgmr.msra.gmra.mrb[0].mxu0 %vm26_vm0, %v117_v15 }
 0x149   :  { %231 = vmatmul.mubr.msk.bf16.gmra.mrb[4].mxu1 %vm26_vm0, %v119_v17 }
 0x214   :  { %v184_v19 = vpop.f32.mrb[0].mxu1 }
 0x215   :  { %v185_v20 = vadd.f32 %v209_v18, %v184_v19  ;;  %v228_v21 = vpop.f32.mrb[1].mxu1 }
 0x216   :  { %v187_v22 = vpop.f32.mrb[2].mxu1 }
 0x217   :  { %200 = vst [vmem:[%s379_s5 + $0x10] sm:$0xff] %v185_v20  ;;  %v188_v23 = vadd.f32 %v209_v18, %v187_v22  ;;  %v229_v24 = vpop.f32.mrb[3].mxu1 }
 0x218   :  { %v176_v25 = vpop.f32.mrb[0].mxu0 }
 0x219   :  { %201 = vst [vmem:[%s379_s5 + $0x18] sm:$0xff] %v188_v23  ;;  %v177_v26 = vadd.f32 %v209_v18, %v176_v25  ;;  %v224_v27 = vpop.f32.mrb[1].mxu0 }
 0x21a   :  { %v179_v28 = vpop.f32.mrb[2].mxu0 }
 0x21b   :  { %198 = vst [vmem:[%s379_s5] sm:$0xff] %v177_v26  ;;  %v180_v29 = vadd.f32 %v209_v18, %v179_v28  ;;  %v225_v30 = vpop.f32.mrb[3].mxu0 }
 0x21c   :  { %v192_v31 = vpop.f32.mrb[4].mxu1 }
 0x21d   :  { %199 = vst [vmem:[%s379_s5 + $0x8] sm:$0xff] %v180_v29  ;;  %v193_v32 = vadd.f32 %v209_v18, %v192_v31  ;;  %v232_v33 = vpop.f32.mrb[5].mxu1 }
 0x21e   :  { %v195_v34 = vpop.f32.mrb[6].mxu1 }
 0x21f   :  { %202 = vst [vmem:[%s379_s5 + $0x20] sm:$0xff] %v193_v32  ;;  %v233_v35 = vpop.f32.mrb[7].mxu1 }

// kernel: mrm_gen_forward.61
= control target key start
LH: loop header
LB: loop body
LE: loop exit
PB: predicated region body
PF: predicated region fallthrough
CT: control target
= control target key end

     0   :  { %vm26_vm0 = vcmask 261120   ;;  %v249_v47 = vmov 0   ;;  %vm215_vm1 = vcmask 523264   ;;  %s401_s0 = inlined_call_operand.vmem [shape: f32[40,32], index: 0, kind: input, shape index: {}]   ;;  %s402_s1 = inlined_call_operand.vmem [shape: f32[32,192], index: 1, kind: input, shape index: {}]   ;;  %s403_s3 = inlined_call_operand.vmem [shape: f32[1,32], index: 3, kind: input, shape index: {}]   ;;  %s404_s4 = inlined_call_operand.vmem [shape: f32[1,32], index: 4, kind: input, shape index: {}]   ;;  %s405_s2 = inlined_call_operand.vmem [shape: f32[1,192], index: 2, kind: input, shape index: {}]   ;;  %s406_s5 = inlined_call_operand.vmem [shape: f32[40,192], index: 5, kind: output, shape index: {}]  }
   0x1   :  { %v23_v0 = vld [vmem:[%s401_s0 + $0x10] sm:$0xff]  ;;  %v24_v1 = vld [vmem:[%s401_s0 + $0x18] sm:$0xff]  ;;  %v21_v2 = vld [vmem:[%s401_s0] sm:$0xff]  ;;  %195 = vmatprep.mubr.bf16.mxu1 %v249_v47  ;;  %185 = vmatprep.mubr.bf16.mxu0 %v249_v47 }
   0x2   :  { %v33_v3 = vsel %vm26_vm0, %v23_v0, 0.0  ;;  %v27_v4 = vsel %vm26_vm0, %v21_v2, 0.0  ;;  %v22_v5 = vld [vmem:[%s401_s0 + $0x8] sm:$0xff]  ;;  %v36_v6 = vsel %vm26_vm0, %v24_v1, 0.0  ;;  %v25_v8 = vld [vmem:[%s401_s0 + $0x20] sm:$0xff]  ;;  %v123_v36 = vld [vmem:[%s402_s1 + $0x18] sm:$0xff] }
   0x3   :  { %34 = vadd.xlane.f32.xlu0 %v33_v3  ;;  %28 = vadd.xlane.f32.xlu1 %v27_v4  ;;  %v30_v7 = vsel %vm26_vm0, %v22_v5, 0.0  ;;  %v39_v9 = vsel %vm26_vm0, %v25_v8, 0.0  ;;  %v121_v35 = vld [vmem:[%s402_s1 + $0x8] sm:$0xff]  ;;  %v120_v38 = vld [vmem:[%s402_s1] sm:$0xff]  ;;  %v122_v39 = vld [vmem:[%s402_s1 + $0x10] sm:$0xff] }
   0x4   :  { %v129_v37 = vpack.c.bf16 %v123_v36, %v121_v35  ;;  %v128_v40 = vpack.c.bf16 %v122_v39, %v120_v38  ;;  %v125_v41 = vld [vmem:[%s402_s1 + $0x28] sm:$0xff]  ;;  %v127_v42 = vld [vmem:[%s402_s1 + $0x38] sm:$0xff]  ;;  %v124_v44 = vld [vmem:[%s402_s1 + $0x20] sm:$0xff] }
   0x5   :  { %v131_v43 = vpack.c.bf16 %v127_v42, %v125_v41  ;;  %v126_v45 = vld [vmem:[%s402_s1 + $0x30] sm:$0xff] }
   0x6   :  { %234 = vmatprep.subr.bf16.mxu1 %v129_v37  ;;  %153 = vmatprep.subr.bf16.mxu0 %v129_v37  ;;  %v130_v46 = vpack.c.bf16 %v126_v45, %v124_v44 }
   0x7   :  { %37 = vadd.xlane.f32.xlu0 %v36_v6  ;;  %31 = vadd.xlane.f32.xlu1 %v30_v7  ;;  %v230_v7 = vld [vmem:[%s404_s4] ss:$0 sm:$0xff] }
   0x8   :  { %236 = vmatpush1.bf16.msra.mxu1 %v128_v40  ;;  %154 = vmatpush1.bf16.msra.mxu0 %v128_v40 }
   0x9   :  { %235 = vmatprep.subr.bf16.mxu1 %v131_v43  ;;  %155 = vmatprep.subr.bf16.mxu0 %v131_v43 }
   0xb   :  { %40 = vadd.xlane.f32.xlu0 %v39_v9 }
   0xc   :  { %237 = vmatpush1.bf16.msra.mxu1 %v130_v46  ;;  %156 = vmatpush1.bf16.msra.mxu0 %v130_v46 }
  0x90   :  { %v35_v10 = vpop.xlane.xlu0 %34  ;;  %v29_v11 = vpop.xlane.xlu1 %28 }
  0x91   :  { %v45_v12 = vmul.f32 0.03125, %v35_v10  ;;  %v43_v13 = vmul.f32 0.03125, %v29_v11 }
  0x93   :  { %v300_v14 = vsub.f32 %v23_v0, %v45_v12  ;;  %v302_v15 = vsub.f32 %v21_v2, %v43_v13 }
  0x94   :  { %v38_v16 = vpop.xlane.xlu0 %37  ;;  %v32_v17 = vpop.xlane.xlu1 %31 }
  0x95   :  { %v46_v18 = vmul.f32 0.03125, %v38_v16  ;;  %v55_v19 = vmul.f32 %v300_v14, %v300_v14  ;;  %v44_v20 = vmul.f32 0.03125, %v32_v17  ;;  %v53_v21 = vmul.f32 %v302_v15, %v302_v15 }
  0x97   :  { %v308_v22 = vsub.f32 %v24_v1, %v46_v18  ;;  %v64_v23 = vsel %vm26_vm0, %v55_v19, 0.0  ;;  %v311_v24 = vsub.f32 %v22_v5, %v44_v20  ;;  %v58_v28 = vsel %vm26_vm0, %v53_v21, 0.0  ;;  %v229_v1 = vld [vmem:[%s403_s3] ss:$0 sm:$0xff] }
  0x98   :  { %v41_v25 = vpop.xlane.xlu0 %40  ;;  %65 = vadd.xlane.f32.xlu1 %v64_v23 }
  0x99   :  { %v47_v26 = vmul.f32 0.03125, %v41_v25  ;;  %v56_v27 = vmul.f32 %v308_v22, %v308_v22  ;;  %v54_v29 = vmul.f32 %v311_v24, %v311_v24 }
  0x9b   :  { %v318_v30 = vsub.f32 %v25_v8, %v47_v26  ;;  %v67_v31 = vsel %vm26_vm0, %v56_v27, 0.0  ;;  %v61_v33 = vsel %vm26_vm0, %v54_v29, 0.0  ;;  %v132_v27 = vld [vmem:[%s405_s2] sm:$0x3] }
  0x9c   :  { %68 = vadd.xlane.f32.xlu0 %v67_v31  ;;  %59 = vadd.xlane.f32.xlu1 %v58_v28 }
  0x9d   :  { %v57_v32 = vmul.f32 %v318_v30, %v318_v30 }
  0x9f   :  { %v70_v34 = vsel %vm26_vm0, %v57_v32, 0.0 }
  0xa0   :  { %71 = vadd.xlane.f32.xlu1 %v70_v34  ;;  %62 = vadd.xlane.f32.xlu0 %v61_v33 }
 0x125   :  { %v66_v48 = vpop.xlane.xlu1 %65 }
 0x126   :  { %v75_v49 = vmul.f32 0.03125, %v66_v48 }
 0x128   :  { %v80_v50 = vadd.f32 1e-06, %v75_v49 }
 0x129   :  { %v69_v51 = vpop.xlane.xlu0 %68  ;;  %v60_v52 = vpop.xlane.xlu1 %59 }
 0x12a   :  { %239 = vrsqrt.f32 %v80_v50  ;;  %v76_v53 = vmul.f32 0.03125, %v69_v51  ;;  %v73_v54 = vmul.f32 0.03125, %v60_v52 }
 0x12c   :  { %v81_v55 = vadd.f32 1e-06, %v76_v53  ;;  %v78_v56 = vadd.f32 1e-06, %v73_v54 }
 0x12d   :  { %v63_v57 = vpop.xlane.xlu0 %62  ;;  %v72_v58 = vpop.xlane.xlu1 %71 }
 0x12e   :  { %241 = vrsqrt.f32 %v81_v55  ;;  %v74_v59 = vmul.f32 0.03125, %v63_v57  ;;  %v77_v60 = vmul.f32 0.03125, %v72_v58 }
 0x12f   :  { %243 = vrsqrt.f32 %v78_v56 }
 0x130   :  { %v79_v61 = vadd.f32 1e-06, %v74_v59  ;;  %v82_v62 = vadd.f32 1e-06, %v77_v60 }
 0x132   :  { %245 = vrsqrt.f32 %v79_v61 }
 0x133   :  { %247 = vrsqrt.f32 %v82_v62 }
 0x134   :  { %v240_v63 = vpop.eup %239 }
 0x135   :  { %v90_v0 = vmul.f32 %v240_v63, %v300_v14 }
 0x137   :  { %v102_v5 = vmul.f32 %v229_v1, %v90_v0 }
 0x138   :  { %v242_v2 = vpop.eup %241 }
 0x139   :  { %v244_v3 = vpop.eup %243  ;;  %v91_v4 = vmul.f32 %v242_v2, %v308_v22  ;;  %v114_v12 = vadd.f32 %v230_v7, %v102_v5 }
 0x13a   :  { %v88_v6 = vmul.f32 %v244_v3, %v302_v15 }
 0x13b   :  { %v103_v8 = vmul.f32 %v229_v1, %v91_v4 }
 0x13c   :  { %v246_v9 = vpop.eup %245  ;;  %v100_v14 = vmul.f32 %v229_v1, %v88_v6 }
 0x13d   :  { %v248_v10 = vpop.eup %247  ;;  %v89_v11 = vmul.f32 %v246_v9, %v311_v24  ;;  %v115_v13 = vadd.f32 %v230_v7, %v103_v8  ;;  %v134_v24 = vlaneseq }
 0x13e   :  { %v92_v16 = vmul.f32 %v248_v10, %v318_v30  ;;  %v112_v15 = vadd.f32 %v230_v7, %v100_v14 }
 0x13f   :  { %v118_v17 = vpack.c.bf16 %v115_v13, %v114_v12  ;;  %v101_v18 = vmul.f32 %v229_v1, %v89_v11  ;;  %v135_v25 = vshrl.u32 %v134_v24, 7 }
 0x140   :  { %v104_v19 = vmul.f32 %v229_v1, %v92_v16 }
 0x141   :  { %232 = vmatmul.mubr.msk.bf16.vlgmr.msra.gmra.mrb[0].mxu1 %vm26_vm0, %v118_v17  ;;  %v113_v20 = vadd.f32 %v230_v7, %v101_v18  ;;  %v136_v26 = vsub.s32 0, %v135_v25  ;;  %v140_v28 = vsub.s32 1, %v135_v25 }
 0x142   :  { %205 = vmatprep.mubr.bf16.mxu1 %v249_v47  ;;  %v116_v22 = vadd.f32 %v230_v7, %v104_v19 }
 0x143   :  { %v117_v21 = vpack.c.bf16 %v113_v20, %v112_v15  ;;  %v137_v29 = vrot.slane %v132_v27, %v136_v26  ;;  %v141_v30 = vrot.slane %v132_v27, %v140_v28 }
 0x144   :  { %v119_v23 = vpack.c.bf16 %v116_v22, %v116_v22 }
 0x145   :  { %231 = vmatmul.mubr.msk.bf16.vlgmr.msra.gmra.mrb[0].mxu0 %vm26_vm0, %v117_v21 }
 0x149   :  { %233 = vmatmul.mubr.msk.bf16.gmra.mrb[4].mxu1 %vm26_vm0, %v119_v23 }
 0x214   :  { %v197_v31 = vpop.f32.mrb[0].mxu1 }
 0x215   :  { %v198_v32 = vadd.f32 %v197_v31, %v137_v29  ;;  %v199_v33 = vpop.f32.mrb[1].mxu1 }
 0x216   :  { %v200_v34 = vadd.f32 %v199_v33, %v141_v30  ;;  %v201_v35 = vpop.f32.mrb[2].mxu1 }
 0x217   :  { %219 = vst [vmem:[%s406_s5 + $0x20] sm:$0xff] %v198_v32  ;;  %v202_v36 = vadd.f32 %v201_v35, %v137_v29  ;;  %v203_v37 = vpop.f32.mrb[3].mxu1 }
 0x218   :  { %220 = vst.msk [vmem:[%s406_s5 + $0x28] sm:$0xff] %vm215_vm1, %v200_v34  ;;  %v204_v38 = vadd.f32 %v203_v37, %v141_v30  ;;  %v187_v39 = vpop.f32.mrb[0].mxu0 }
 0x219   :  { %221 = vst [vmem:[%s406_s5 + $0x30] sm:$0xff] %v202_v36  ;;  %v188_v40 = vadd.f32 %v187_v39, %v137_v29  ;;  %v189_v41 = vpop.f32.mrb[1].mxu0 }
 0x21a   :  { %222 = vst.msk [vmem:[%s406_s5 + $0x38] sm:$0xff] %vm215_vm1, %v204_v38  ;;  %v190_v42 = vadd.f32 %v189_v41, %v141_v30  ;;  %v191_v43 = vpop.f32.mrb[2].mxu0 }
 0x21b   :  { %214 = vst [vmem:[%s406_s5] sm:$0xff] %v188_v40  ;;  %v192_v44 = vadd.f32 %v191_v43, %v137_v29  ;;  %v193_v45 = vpop.f32.mrb[3].mxu0 }
 0x21c   :  { %216 = vst.msk [vmem:[%s406_s5 + $0x8] sm:$0xff] %vm215_vm1, %v190_v42  ;;  %v194_v46 = vadd.f32 %v193_v45, %v141_v30  ;;  %v207_v47 = vpop.f32.mrb[4].mxu1 }
 0x21d   :  { %217 = vst [vmem:[%s406_s5 + $0x10] sm:$0xff] %v192_v44  ;;  %v208_v48 = vadd.f32 %v207_v47, %v137_v29  ;;  %v209_v49 = vpop.f32.mrb[5].mxu1 }
 0x21e   :  { %218 = vst.msk [vmem:[%s406_s5 + $0x18] sm:$0xff] %vm215_vm1, %v194_v46  ;;  %v210_v50 = vadd.f32 %v209_v49, %v141_v30  ;;  %v211_v51 = vpop.f32.mrb[6].mxu1 }
 0x21f   :  { %223 = vst [vmem:[%s406_s5 + $0x40] sm:$0xff] %v208_v48  ;;  %v212_v52 = vpop.f32.mrb[7].mxu1 }
 0x220   :  { %224 = vst.msk [vmem:[%s406_s5 + $0x48] sm:$0xff] %vm215_vm1, %v210_v50 }

// kernel: mrm_gen_forward.57
= control target key start
LH: loop header
LB: loop body
LE: loop exit
PB: predicated region body
PF: predicated region fallthrough
CT: control target
= control target key end

     0   :  { %s2201_s12 = smov 0   ;;  %s2203_s13 = smov 0   ;;  %s3066_s0 = inlined_call_operand.vmem [shape: f32[2,17,3,4,8], index: 0, kind: input, shape index: {}, may-alias: {0,1,2}]   ;;  %s3067_s1 = inlined_call_operand.vmem [shape: f32[2,17,3,4,8], index: 1, kind: input, shape index: {}, may-alias: {0,1,2}]   ;;  %s3068_s2 = inlined_call_operand.vmem [shape: f32[2,17,3,4,8], index: 2, kind: input, shape index: {}, may-alias: {0,1,2}]   ;;  %s3069_s3 = inlined_call_operand.vmem [shape: f32[2,17,32], index: 3, kind: output, shape index: {}]  }
   0x1   :  { %s2205_s14 = smov 0  }
   0x2 LB: > { %s1900_s15 = sadd.s32 4294967295, %s2175_s14   ;;  %s2218_s16 = sadd.s32 1, %s2175_s14   ;;  %s2175_s14 = sphi %s2205_s14, %s3160_s14   ;;  %s2171_s13 = sphi %s2203_s13, %s3159_s13   ;;  %s2167_s12 = sphi %s2201_s12, %s3158_s12  }
   0x3   : > { %s17_s17 = ssub.s32 %s2175_s14, %s2218_s16  ;;  %s20_s18 = sadd.s32 1, %s2171_s13 }
   0x4   : > { %p18_p0 = scmp.eq.s32.totalorder %s17_s17, 0  ;;  %p27_p1 = scmp.ne.s32.totalorder %s2171_s13, %s2167_s12 }
   0x5   : > { %p28_p2 = scmp.eq.s32.totalorder %s2175_s14, 0  ;;  %p1903_p4 = scmp.ge.s32.totalorder %s2175_s14, 2 }
   0x6   : > { %s2227_s19 = scalar_select %p18_p0, %s2171_s13, %s20_s18  }
   0x7   : > { %p2229_p3 = por %p28_p2, %p27_p1  ;;  %131 = sbr.rel (%p1903_p4) target bundleno = 62 (0x3e), region = 16 }
   0xe   : > { %134 = sbr.rel (!%p2229_p3) target bundleno = 30 (0x1e), region = 20  ;;  %s136_s21 = sand.u32 (%p2229_p3), 1, %s2171_s13  }
   0xf   : > { %s2072_s22 = smul.u32 (%p2229_p3), 204, %s2175_s14 }
  0x10   : > { %s2071_s23 = smul.u32 (%p2229_p3), 68, %s136_s21 }
  0x11   : > { %s2241_s26 = scalar_lea.vmem (%p2229_p3), %s3066_s0, %s2072_s22 }
  0x12   : > { %v157_v0 = vld [vmem:[%s2241_s26] sm:$0xf] (%p2229_p3)  ;;  %v159_v1 = vld [vmem:[%s2241_s26 + $0xc] sm:$0xf] (%p2229_p3)  ;;  %s2245_s27 = scalar_lea.vmem (%p2229_p3), [#allocation2], %s2071_s23 }
  0x13   : > { %158 = vst [vmem:[%s2245_s27] sm:$0xf] (%p2229_p3), %v157_v0  ;;  %160 = vst [vmem:[%s2245_s27 + $0x4] sm:$0xf] (%p2229_p3), %v159_v1  ;;  %v161_v2 = vld [vmem:[%s2241_s26 + $0x18] sm:$0xf] (%p2229_p3) }
  0x14   : > { %v163_v3 = vld [vmem:[%s2241_s26 + $0x24] sm:$0xf] (%p2229_p3)  ;;  %v165_v4 = vld [vmem:[%s2241_s26 + $0x30] sm:$0xf] (%p2229_p3)  ;;  %162 = vst [vmem:[%s2245_s27 + $0x8] sm:$0xf] (%p2229_p3), %v161_v2 }
  0x15   : > { %164 = vst [vmem:[%s2245_s27 + $0xc] sm:$0xf] %v163_v3  ;;  %166 = vst [vmem:[%s2245_s27 + $0x10] sm:$0xf] %v165_v4  ;;  %v167_v5 = vld [vmem:[%s2241_s26 + $0x3c] sm:$0xf] }
  0x16   : > { %v169_v6 = vld [vmem:[%s2241_s26 + $0x48] sm:$0xf]  ;;  %v171_v7 = vld [vmem:[%s2241_s26 + $0x54] sm:$0xf]  ;;  %168 = vst [vmem:[%s2245_s27 + $0x14] sm:$0xf] %v167_v5 }
  0x17   : > { %170 = vst [vmem:[%s2245_s27 + $0x18] sm:$0xf] %v169_v6  ;;  %172 = vst [vmem:[%s2245_s27 + $0x1c] sm:$0xf] %v171_v7  ;;  %v173_v8 = vld [vmem:[%s2241_s26 + $0x60] sm:$0xf] }
  0x18   : > { %v175_v9 = vld [vmem:[%s2241_s26 + $0x6c] sm:$0xf]  ;;  %v177_v10 = vld [vmem:[%s2241_s26 + $0x78] sm:$0xf]  ;;  %174 = vst [vmem:[%s2245_s27 + $0x20] sm:$0xf] %v173_v8 }
  0x19   : > { %176 = vst [vmem:[%s2245_s27 + $0x24] sm:$0xf] %v175_v9  ;;  %178 = vst [vmem:[%s2245_s27 + $0x28] sm:$0xf] %v177_v10  ;;  %v179_v11 = vld [vmem:[%s2241_s26 + $0x84] sm:$0xf] }
  0x1a   : > { %v181_v12 = vld [vmem:[%s2241_s26 + $0x90] sm:$0xf]  ;;  %v183_v13 = vld [vmem:[%s2241_s26 + $0x9c] sm:$0xf]  ;;  %180 = vst [vmem:[%s2245_s27 + $0x2c] sm:$0xf] %v179_v11 }
  0x1b   : > { %182 = vst [vmem:[%s2245_s27 + $0x30] sm:$0xf] %v181_v12  ;;  %184 = vst [vmem:[%s2245_s27 + $0x34] sm:$0xf] %v183_v13  ;;  %v185_v14 = vld [vmem:[%s2241_s26 + $0xa8] sm:$0xf] }
  0x1c   : > { %v187_v15 = vld [vmem:[%s2241_s26 + $0xb4] sm:$0xf]  ;;  %v189_v16 = vld [vmem:[%s2241_s26 + $0xc0] sm:$0xf]  ;;  %186 = vst [vmem:[%s2245_s27 + $0x38] sm:$0xf] %v185_v14 }
  0x1d   : > { %188 = vst [vmem:[%s2245_s27 + $0x3c] sm:$0xf] %v187_v15  ;;  %190 = vst [vmem:[%s2245_s27 + $0x40] sm:$0xf] %v189_v16 }
  0x1e PF: > { %247 = sbr.rel (!%p2229_p3) target bundleno = 46 (0x2e), region = 61  ;;  %s249_s28 = sand.u32 (%p2229_p3), 1, %s2171_s13  }
  0x1f   : > { %s1905_s29 = smul.u32 (%p2229_p3), 204, %s2175_s14 }
  0x20   : > { %s2073_s30 = smul.u32 (%p2229_p3), 68, %s249_s28 }
  0x21   : > { %s2286_s6 = scalar_lea.vmem (%p2229_p3), %s3067_s1, %s1905_s29 }
  0x22   : > { %v1906_v17 = vld [vmem:[%s2286_s6 + $0x4] sm:$0xf] (%p2229_p3)  ;;  %v1907_v18 = vld [vmem:[%s2286_s6 + $0x10] sm:$0xf] (%p2229_p3)  ;;  %s2290_s7 = scalar_lea.vmem (%p2229_p3), [#allocation3], %s2073_s30 }
  0x23   : > { %272 = vst [vmem:[%s2290_s7] sm:$0xf] (%p2229_p3), %v1906_v17  ;;  %274 = vst [vmem:[%s2290_s7 + $0x4] sm:$0xf] (%p2229_p3), %v1907_v18  ;;  %v1908_v19 = vld [vmem:[%s2286_s6 + $0x1c] sm:$0xf] (%p2229_p3) }
  0x24   : > { %v1909_v20 = vld [vmem:[%s2286_s6 + $0x28] sm:$0xf] (%p2229_p3)  ;;  %v1910_v21 = vld [vmem:[%s2286_s6 + $0x34] sm:$0xf] (%p2229_p3)  ;;  %276 = vst [vmem:[%s2290_s7 + $0x8] sm:$0xf] (%p2229_p3), %v1908_v19 }
  0x25   : > { %278 = vst [vmem:[%s2290_s7 + $0xc] sm:$0xf] %v1909_v20  ;;  %280 = vst [vmem:[%s2290_s7 + $0x10] sm:$0xf] %v1910_v21  ;;  %v1911_v22 = vld [vmem:[%s2286_s6 + $0x40] sm:$0xf] }
  0x26   : > { %v1912_v23 = vld [vmem:[%s2286_s6 + $0x4c] sm:$0xf]  ;;  %v1913_v24 = vld [vmem:[%s2286_s6 + $0x58] sm:$0xf]  ;;  %282 = vst [vmem:[%s2290_s7 + $0x14] sm:$0xf] %v1911_v22 }
  0x27   : > { %284 = vst [vmem:[%s2290_s7 + $0x18] sm:$0xf] %v1912_v23  ;;  %286 = vst [vmem:[%s2290_s7 + $0x1c] sm:$0xf] %v1913_v24  ;;  %v1914_v25 = vld [vmem:[%s2286_s6 + $0x64] sm:$0xf] }
  0x28   : > { %v1915_v26 = vld [vmem:[%s2286_s6 + $0x70] sm:$0xf]  ;;  %v1916_v27 = vld [vmem:[%s2286_s6 + $0x7c] sm:$0xf]  ;;  %288 = vst [vmem:[%s2290_s7 + $0x20] sm:$0xf] %v1914_v25 }
  0x29   : > { %290 = vst [vmem:[%s2290_s7 + $0x24] sm:$0xf] %v1915_v26  ;;  %292 = vst [vmem:[%s2290_s7 + $0x28] sm:$0xf] %v1916_v27  ;;  %v1917_v28 = vld [vmem:[%s2286_s6 + $0x88] sm:$0xf] }
  0x2a   : > { %v1918_v29 = vld [vmem:[%s2286_s6 + $0x94] sm:$0xf]  ;;  %v1919_v30 = vld [vmem:[%s2286_s6 + $0xa0] sm:$0xf]  ;;  %294 = vst [vmem:[%s2290_s7 + $0x2c] sm:$0xf] %v1917_v28 }
  0x2b   : > { %296 = vst [vmem:[%s2290_s7 + $0x30] sm:$0xf] %v1918_v29  ;;  %298 = vst [vmem:[%s2290_s7 + $0x34] sm:$0xf] %v1919_v30  ;;  %v1920_v31 = vld [vmem:[%s2286_s6 + $0xac] sm:$0xf] }
  0x2c   : > { %v1921_v32 = vld [vmem:[%s2286_s6 + $0xb8] sm:$0xf]  ;;  %v1922_v33 = vld [vmem:[%s2286_s6 + $0xc4] sm:$0xf]  ;;  %300 = vst [vmem:[%s2290_s7 + $0x38] sm:$0xf] %v1920_v31 }
  0x2d   : > { %302 = vst [vmem:[%s2290_s7 + $0x3c] sm:$0xf] %v1921_v32  ;;  %304 = vst [vmem:[%s2290_s7 + $0x40] sm:$0xf] %v1922_v33 }
  0x2e PF: > { %361 = sbr.rel (!%p2229_p3) target bundleno = 62 (0x3e), region = 102  ;;  %s363_s8 = sand.u32 (%p2229_p3), 1, %s2171_s13  }
  0x2f   : > { %s1923_s9 = smul.u32 (%p2229_p3), 204, %s2175_s14 }
  0x30   : > { %s2074_s10 = smul.u32 (%p2229_p3), 68, %s363_s8 }
  0x31   : > { %s2331_s18 = scalar_lea.vmem (%p2229_p3), %s3068_s2, %s1923_s9 }
  0x32   : > { %v1924_v34 = vld [vmem:[%s2331_s18 + $0x8] sm:$0xf] (%p2229_p3)  ;;  %v1925_v35 = vld [vmem:[%s2331_s18 + $0x14] sm:$0xf] (%p2229_p3)  ;;  %s2335_s20 = scalar_lea.vmem (%p2229_p3), [#allocation4], %s2074_s10 }
  0x33   : > { %386 = vst [vmem:[%s2335_s20] sm:$0xf] (%p2229_p3), %v1924_v34  ;;  %388 = vst [vmem:[%s2335_s20 + $0x4] sm:$0xf] (%p2229_p3), %v1925_v35  ;;  %v1926_v36 = vld [vmem:[%s2331_s18 + $0x20] sm:$0xf] (%p2229_p3) }
  0x34   : > { %v1927_v37 = vld [vmem:[%s2331_s18 + $0x2c] sm:$0xf] (%p2229_p3)  ;;  %v1928_v38 = vld [vmem:[%s2331_s18 + $0x38] sm:$0xf] (%p2229_p3)  ;;  %390 = vst [vmem:[%s2335_s20 + $0x8] sm:$0xf] (%p2229_p3), %v1926_v36 }
  0x35   : > { %392 = vst [vmem:[%s2335_s20 + $0xc] sm:$0xf] %v1927_v37  ;;  %394 = vst [vmem:[%s2335_s20 + $0x10] sm:$0xf] %v1928_v38  ;;  %v1929_v39 = vld [vmem:[%s2331_s18 + $0x44] sm:$0xf] }
  0x36   : > { %v1930_v40 = vld [vmem:[%s2331_s18 + $0x50] sm:$0xf]  ;;  %v1931_v41 = vld [vmem:[%s2331_s18 + $0x5c] sm:$0xf]  ;;  %396 = vst [vmem:[%s2335_s20 + $0x14] sm:$0xf] %v1929_v39 }
  0x37   : > { %398 = vst [vmem:[%s2335_s20 + $0x18] sm:$0xf] %v1930_v40  ;;  %400 = vst [vmem:[%s2335_s20 + $0x1c] sm:$0xf] %v1931_v41  ;;  %v1932_v42 = vld [vmem:[%s2331_s18 + $0x68] sm:$0xf] }
  0x38   : > { %v1933_v43 = vld [vmem:[%s2331_s18 + $0x74] sm:$0xf]  ;;  %v1934_v44 = vld [vmem:[%s2331_s18 + $0x80] sm:$0xf]  ;;  %402 = vst [vmem:[%s2335_s20 + $0x20] sm:$0xf] %v1932_v42 }
  0x39   : > { %404 = vst [vmem:[%s2335_s20 + $0x24] sm:$0xf] %v1933_v43  ;;  %406 = vst [vmem:[%s2335_s20 + $0x28] sm:$0xf] %v1934_v44  ;;  %v1935_v45 = vld [vmem:[%s2331_s18 + $0x8c] sm:$0xf] }
  0x3a   : > { %v1936_v46 = vld [vmem:[%s2331_s18 + $0x98] sm:$0xf]  ;;  %v1937_v47 = vld [vmem:[%s2331_s18 + $0xa4] sm:$0xf]  ;;  %408 = vst [vmem:[%s2335_s20 + $0x2c] sm:$0xf] %v1935_v45 }
  0x3b   : > { %410 = vst [vmem:[%s2335_s20 + $0x30] sm:$0xf] %v1936_v46  ;;  %412 = vst [vmem:[%s2335_s20 + $0x34] sm:$0xf] %v1937_v47  ;;  %v1938_v48 = vld [vmem:[%s2331_s18 + $0xb0] sm:$0xf] }
  0x3c   : > { %v1939_v49 = vld [vmem:[%s2331_s18 + $0xbc] sm:$0xf]  ;;  %v1940_v50 = vld [vmem:[%s2331_s18 + $0xc8] sm:$0xf]  ;;  %414 = vst [vmem:[%s2335_s20 + $0x38] sm:$0xf] %v1938_v48 }
  0x3d   : > { %416 = vst [vmem:[%s2335_s20 + $0x3c] sm:$0xf] %v1939_v49  ;;  %418 = vst [vmem:[%s2335_s20 + $0x40] sm:$0xf] %v1940_v50 }
  0x3e PF: > { %p1941_p5 = scmp.ge.s32.totalorder %s2175_s14, 1  ;;  %p474_p6 = scmp.lt.s32.totalorder %s2175_s14, 3 }
  0x40   : > { %p475_p7 = pnand %p1941_p5, %p474_p6 }
  0x42   : > { %478 = sbr.rel (%p475_p7) target bundleno = 2636 (0xa4c), region = 143 }
  0x49   : > { %s481_s21 = sand.u32 1, %s2167_s12   ;;  %vm686_vm0 = vcmask 1041409   ;;  %vm689_vm1 = vcmask 1042434   ;;  %vm692_vm2 = vcmask 1043459   ;;  %vm695_vm3 = vcmask 1044484   ;;  %s2178_s25 = smov 8  }
  0x4a   : > { %s2372_s22 = smul.u32 68, %s481_s21  ;;  %vm698_vm4 = vcmask 1045509   ;;  %vm701_vm5 = vcmask 1046534   ;;  %vm704_vm6 = vcmask 1047559   ;;  %vm786_vm7 = vcmask 64512   ;;  %s2179_s26 = smov 16  }
  0x4b   : > { %vm854_vm8 = vcmask 131072   ;;  %vm847_vm9 = vcmask 138240   ;;  %vm955_vm10 = vcmask 1040384   ;;  %s2180_s27 = smov 24   ;;  %p526_p8 = scmp.lt.s32.totalorder %s1900_s15, 1  ;;  %vm1790_vm11 = vcmask 195584  }
  0x4c   : > { %s2375_s23 = scalar_lea.vmem [#allocation3], %s2372_s22  ;;  %s2431_s12 = scalar_lea.vmem [#allocation2], %s2372_s22  ;;  %vm1786_vm12 = vcmask 130048   ;;  %vm1794_vm13 = vcmask 261120   ;;  %vm1797_vm14 = vcmask 253952  }
  0x4d   : > { %v549_v51 = vld [vmem:[%s2375_s23] sm:$0xf]  ;;  %v550_v52 = vld [vmem:[%s2375_s23 + $0x4] sm:$0xf]  ;;  %v551_v53 = vld [vmem:[%s2375_s23 + $0x8] sm:$0xf] }
  0x4e   : > { %v552_v54 = vld [vmem:[%s2375_s23 + $0xc] sm:$0xf]  ;;  %v553_v55 = vld [vmem:[%s2375_s23 + $0x10] sm:$0xf]  ;;  %v554_v56 = vld [vmem:[%s2375_s23 + $0x14] sm:$0xf]  ;;  %v618_v57 = vpack.c.bf16 %v550_v52, %v550_v52  ;;  %v619_v58 = vpack.c.bf16 %v551_v53, %v551_v53  ;;  %v617_v3 = vpack.c.bf16 %v549_v51, %v549_v51 }
  0x4f   : > { %v555_v59 = vld [vmem:[%s2375_s23 + $0x18] sm:$0xf]  ;;  %v556_v60 = vld [vmem:[%s2375_s23 + $0x1c] sm:$0xf]  ;;  %v557_v61 = vld [vmem:[%s2375_s23 + $0x20] sm:$0xf]  ;;  %v620_v62 = vpack.c.bf16 %v552_v54, %v552_v54  ;;  %v621_v63 = vpack.c.bf16 %v553_v55, %v553_v55  ;;  %v622_v4 = vpack.c.bf16 %v554_v56, %v554_v56 }
  0x50   : > { %v558_v0 = vld [vmem:[%s2375_s23 + $0x24] sm:$0xf]  ;;  %v559_v1 = vld [vmem:[%s2375_s23 + $0x28] sm:$0xf]  ;;  %v560_v2 = vld [vmem:[%s2375_s23 + $0x2c] sm:$0xf]  ;;  %v623_v5 = vpack.c.bf16 %v555_v59, %v555_v59  ;;  %v624_v6 = vpack.c.bf16 %v556_v60, %v556_v60  ;;  %v625_v10 = vpack.c.bf16 %v557_v61, %v557_v61  ;;  %v2393_v17 = vunpack.c.l.b16 %v618_v57 }
  0x51   : > { %v561_v7 = vld [vmem:[%s2375_s23 + $0x30] sm:$0xf]  ;;  %v562_v8 = vld [vmem:[%s2375_s23 + $0x34] sm:$0xf]  ;;  %v563_v9 = vld [vmem:[%s2375_s23 + $0x38] sm:$0xf]  ;;  %v626_v11 = vpack.c.bf16 %v558_v0, %v558_v0  ;;  %v627_v12 = vpack.c.bf16 %v559_v1, %v559_v1  ;;  %v628_v13 = vpack.c.bf16 %v560_v2, %v560_v2  ;;  %v2395_v18 = vunpack.c.l.b16 %v619_v58 }
  0x52   : > { %v564_v14 = vld [vmem:[%s2375_s23 + $0x3c] sm:$0xf]  ;;  %v629_v15 = vpack.c.bf16 %v561_v7, %v561_v7  ;;  %v630_v16 = vpack.c.bf16 %v562_v8, %v562_v8  ;;  %v631_v19 = vpack.c.bf16 %v563_v9, %v563_v9  ;;  %v2397_v21 = vunpack.c.l.b16 %v620_v62  ;;  %v565_v39 = vld [vmem:[%s2375_s23 + $0x40] sm:$0xf]  ;;  %v532_v40 = vld [vmem:[%s2431_s12] sm:$0xf] }
  0x53   : > { %v632_v20 = vpack.c.bf16 %v564_v14, %v564_v14  ;;  %v2399_v22 = vunpack.c.l.b16 %v621_v63  ;;  %v2401_v23 = vunpack.c.l.b16 %v617_v3  ;;  %v2403_v24 = vunpack.c.l.b16 %v622_v4  ;;  %v533_v45 = vld [vmem:[%s2431_s12 + $0x4] sm:$0xf]  ;;  %v534_v46 = vld [vmem:[%s2431_s12 + $0x8] sm:$0xf]  ;;  %v535_v51 = vld [vmem:[%s2431_s12 + $0xc] sm:$0xf] }
  0x54   : > { %v2405_v25 = vunpack.c.l.b16 %v623_v5  ;;  %v2407_v26 = vunpack.c.l.b16 %v626_v11  ;;  %v2409_v27 = vunpack.c.l.b16 %v624_v6  ;;  %v2411_v28 = vunpack.c.l.b16 %v627_v12  ;;  %v536_v56 = vld [vmem:[%s2431_s12 + $0x10] sm:$0xf]  ;;  %v537_v57 = vld [vmem:[%s2431_s12 + $0x14] sm:$0xf]  ;;  %v538_v58 = vld [vmem:[%s2431_s12 + $0x18] sm:$0xf] }
  0x55   : > { %v2413_v29 = vunpack.c.l.b16 %v628_v13  ;;  %v2415_v30 = vunpack.c.l.b16 %v629_v15  ;;  %v2417_v31 = vunpack.c.l.b16 %v625_v10  ;;  %v2419_v32 = vunpack.c.l.b16 %v630_v16  ;;  %v539_v63 = vld [vmem:[%s2431_s12 + $0x1c] sm:$0xf]  ;;  %v540_v0 = vld [vmem:[%s2431_s12 + $0x20] sm:$0xf]  ;;  %v541_v1 = vld [vmem:[%s2431_s12 + $0x24] sm:$0xf] }
  0x56   : > { %v756_v33 = vrot.slane %v2393_v17, 7  ;;  %v758_v34 = vrot.slane %v2395_v18, 6  ;;  %v2423_v35 = vunpack.c.l.b16 %v631_v19  ;;  %v2425_v36 = vunpack.c.l.b16 %v632_v20  ;;  %v542_v5 = vld [vmem:[%s2431_s12 + $0x28] sm:$0xf]  ;;  %v543_v6 = vld [vmem:[%s2431_s12 + $0x2c] sm:$0xf] }
  0x57   : > { %v760_v37 = vrot.slane %v2397_v21, 5  ;;  %v762_v38 = vrot.slane %v2399_v22, 4  ;;  %v764_v42 = vrot.slane %v2403_v24, 3  ;;  %v770_v43 = vrot.slane %v2407_v26, 7  ;;  %v544_v7 = vld [vmem:[%s2431_s12 + $0x30] sm:$0xf] }
  0x58   : > { %v757_v41 = vsel %vm686_vm0, %v756_v33, %v2401_v23  ;;  %v772_v44 = vrot.slane %v2411_v28, 6  ;;  %v766_v48 = vrot.slane %v2405_v25, 2  ;;  %v774_v49 = vrot.slane %v2413_v29, 5  ;;  %v545_v11 = vld [vmem:[%s2431_s12 + $0x34] sm:$0xf]  ;;  %s2567_s24 = scalar_lea.vmem [#allocation4], %s2372_s22 }
  0x59   : > { %v759_v47 = vsel %vm689_vm1, %v758_v34, %v757_v41  ;;  %v776_v50 = vrot.slane %v2415_v30, 4  ;;  %v768_v53 = vrot.slane %v2409_v27, 1  ;;  %v771_v54 = vsel %vm686_vm0, %v770_v43, %v2417_v31  ;;  %v546_v12 = vld [vmem:[%s2431_s12 + $0x38] sm:$0xf]  ;;  %v547_v20 = vld [vmem:[%s2431_s12 + $0x3c] sm:$0xf] }
  0x5a   : > { %v761_v52 = vsel %vm692_vm2, %v760_v37, %v759_v47  ;;  %v778_v55 = vrot.slane %v2419_v32, 3  ;;  %v773_v60 = vsel %vm689_vm1, %v772_v44, %v771_v54  ;;  %v780_v61 = vrot.slane %v2423_v35, 2  ;;  %s3162_s15 = smov (!%p526_p8, %s1900_s15), 1 }
  0x5b   : > { %v763_v59 = vsel %vm695_vm3, %v762_v38, %v761_v52  ;;  %v2457_v62 = vpack.c.bf16 %v565_v39, %v565_v39  ;;  %v775_v3 = vsel %vm692_vm2, %v774_v49, %v773_v60  ;;  %v782_v4 = vrot.slane %v2425_v36, 1  ;;  %s2076_s28 = smul.u32 24, %s3162_s15 }
  0x5c   : > { %v765_v2 = vsel %vm698_vm4, %v764_v42, %v763_v59  ;;  %v583_v8 = vmul.f32 0.35355338, %v532_v40  ;;  %v777_v10 = vsel %vm695_vm3, %v776_v50, %v775_v3  ;;  %v584_v13 = vmul.f32 0.35355338, %v533_v45 }
  0x5d   : > { %v767_v9 = vsel %vm701_vm5, %v766_v48, %v765_v2  ;;  %v585_v14 = vmul.f32 0.35355338, %v534_v46  ;;  %v779_v16 = vsel %vm698_vm4, %v778_v55, %v777_v10  ;;  %v797_v19 = vsel %vm786_vm7, %v2457_v62, 0  ;;  %s530_s4 = scalar_lea.vmem %s3069_s3, %s2076_s28 }
  0x5e   : > { %v769_v15 = vsel %vm704_vm6, %v768_v53, %v767_v9  ;;  %v586_v33 = vmul.f32 0.35355338, %v535_v51  ;;  %v781_v34 = vsel %vm701_vm5, %v780_v61, %v779_v16  ;;  %v587_v37 = vmul.f32 0.35355338, %v536_v56 }
  0x5f   : > { %v588_v38 = vmul.f32 0.35355338, %v537_v57  ;;  %v589_v39 = vmul.f32 0.35355338, %v538_v58  ;;  %v783_v40 = vsel %vm704_vm6, %v782_v4, %v781_v34  ;;  %v590_v41 = vmul.f32 0.35355338, %v539_v63 }
  0x60   : > { %v591_v42 = vmul.f32 0.35355338, %v540_v0  ;;  %v592_v43 = vmul.f32 0.35355338, %v541_v1  ;;  %v784_v44 = vpack.c.b16 %v783_v40, %v769_v15  ;;  %v593_v45 = vmul.f32 0.35355338, %v542_v5 }
  0x61   : > { %v594_v46 = vmul.f32 0.35355338, %v543_v6  ;;  %v595_v47 = vmul.f32 0.35355338, %v544_v7  ;;  %v596_v48 = vmul.f32 0.35355338, %v545_v11  ;;  %v601_v52 = vpack.c.bf16 %v584_v13, %v584_v13 }
  0x62   : > { %v597_v49 = vmul.f32 0.35355338, %v546_v12  ;;  %v598_v50 = vmul.f32 0.35355338, %v547_v20  ;;  %2063 = vmatprep.subr.msk.bf16.mxu0 %vm786_vm7, %v784_v44  ;;  %v794_v51 = vsel %vm786_vm7, %v784_v44, 0  ;;  %v602_v53 = vpack.c.bf16 %v585_v14, %v585_v14 }
  0x63   : > { %v603_v54 = vpack.c.bf16 %v586_v33, %v586_v33  ;;  %v604_v55 = vpack.c.bf16 %v587_v37, %v587_v37  ;;  %2000 = vmatpush3.bf16.xpose.msra.mxu0 %v794_v51  ;;  %v600_v56 = vpack.c.bf16 %v583_v8, %v583_v8  ;;  %v605_v57 = vpack.c.bf16 %v588_v38, %v588_v38 }
  0x64   : > { %v606_v58 = vpack.c.bf16 %v589_v39, %v589_v39  ;;  %v607_v59 = vpack.c.bf16 %v590_v41, %v590_v41  ;;  %2064 = vmatprep.subr.msk.bf16.mxu0 %vm786_vm7, %v2457_v62  ;;  %v609_v60 = vpack.c.bf16 %v592_v43, %v592_v43  ;;  %v610_v61 = vpack.c.bf16 %v593_v45, %v593_v45 }
  0x65   : > { %v611_v63 = vpack.c.bf16 %v594_v46, %v594_v46  ;;  %v612_v0 = vpack.c.bf16 %v595_v47, %v595_v47  ;;  %v608_v1 = vpack.c.bf16 %v591_v42, %v591_v42  ;;  %v613_v2 = vpack.c.bf16 %v596_v48, %v596_v48 }
  0x66   : > { %v614_v3 = vpack.c.bf16 %v597_v49, %v597_v49  ;;  %v615_v4 = vpack.c.bf16 %v598_v50, %v598_v50  ;;  %v2483_v5 = vunpack.c.l.b16 %v601_v52  ;;  %v2485_v6 = vunpack.c.l.b16 %v602_v53  ;;  %v548_v50 = vld [vmem:[%s2431_s12 + $0x40] sm:$0xf] }
  0x67   : > { %v2487_v7 = vunpack.c.l.b16 %v603_v54  ;;  %v2489_v8 = vunpack.c.l.b16 %v604_v55  ;;  %v2491_v9 = vunpack.c.l.b16 %v600_v56  ;;  %v2493_v10 = vunpack.c.l.b16 %v605_v57 }
  0x68   : > { %v2495_v11 = vunpack.c.l.b16 %v606_v58  ;;  %v2497_v12 = vunpack.c.l.b16 %v607_v59  ;;  %v2499_v13 = vunpack.c.l.b16 %v609_v60  ;;  %v2501_v14 = vunpack.c.l.b16 %v610_v61 }
  0x69   : > { %v2503_v15 = vunpack.c.l.b16 %v611_v63  ;;  %v2505_v16 = vunpack.c.l.b16 %v612_v0  ;;  %v2507_v20 = vunpack.c.l.b16 %v608_v1  ;;  %v2509_v33 = vunpack.c.l.b16 %v613_v2 }
  0x6a   : > { %3101 = vst [vmem:[#allocation5_spill] sm:$0xff] %v2497_v12  ;;  %v2511_v34 = vunpack.c.l.b16 %v614_v3  ;;  %v685_v37 = vrot.slane %v2483_v5, 7  ;;  %v2514_v38 = vunpack.c.l.b16 %v615_v4  ;;  %v688_v39 = vrot.slane %v2485_v6, 6 }
  0x6b   : > { %3102 = vst [vmem:[#allocation6_spill] sm:$0xff] %v2503_v15  ;;  %v691_v40 = vrot.slane %v2487_v7, 5  ;;  %v694_v41 = vrot.slane %v2489_v8, 4  ;;  %2002 = vmatpush3.bf16.xpose.msra.mxu0 %v797_v19  ;;  %v697_v43 = vrot.slane %v2493_v10, 3  ;;  %v700_v44 = vrot.slane %v2495_v11, 2 }
  0x6c   : > { %3103 = vst [vmem:[#allocation7_spill] sm:$0xff] %v2514_v38  ;;  %v687_v42 = vsel %vm686_vm0, %v685_v37, %v2491_v9  ;;  %v706_v45 = vrot.slane %v2499_v13, 7  ;;  %v708_v47 = vrot.slane %v2501_v14, 6  ;;  %v710_v48 = vrot.slane %v2503_v15, 5 }
  0x6d   : > { %v690_v46 = vsel %vm689_vm1, %v688_v39, %v687_v42  ;;  %v712_v49 = vrot.slane %v2505_v16, 4  ;;  %v703_v52 = vrot.slane %v2497_v12, 1  ;;  %v714_v53 = vrot.slane %v2509_v33, 3 }
  0x6e   : > { %v693_v19 = vsel %vm692_vm2, %v691_v40, %v690_v46  ;;  %v707_v51 = vsel %vm686_vm0, %v706_v45, %v2507_v20  ;;  %v716_v56 = vrot.slane %v2511_v34, 2  ;;  %v718_v59 = vrot.slane %v2514_v38, 1 }
  0x6f   : > { %v696_v54 = vsel %vm695_vm3, %v694_v41, %v693_v19  ;;  %v709_v55 = vsel %vm689_vm1, %v708_v47, %v707_v51  ;;  %v599_v60 = vmul.f32 0.35355338, %v548_v50 }
  0x70   : > { %v699_v57 = vsel %vm698_vm4, %v697_v43, %v696_v54  ;;  %v711_v58 = vsel %vm692_vm2, %v710_v48, %v709_v55 }
  0x71   : > { %v702_v61 = vsel %vm701_vm5, %v700_v44, %v699_v57  ;;  %v713_v63 = vsel %vm695_vm3, %v712_v49, %v711_v58  ;;  %v2546_v4 = vpack.c.bf16 %v599_v60, %v599_v60  ;;  %v567_v60 = vld [vmem:[%s2567_s24 + $0x4] sm:$0xf] }
  0x72   : > { %v705_v0 = vsel %vm704_vm6, %v703_v52, %v702_v61  ;;  %v715_v1 = vsel %vm698_vm4, %v714_v53, %v713_v63  ;;  %v575_v61 = vld [vmem:[%s2567_s24 + $0x24] sm:$0xf]  ;;  %v568_v63 = vld [vmem:[%s2567_s24 + $0x8] sm:$0xf] }
  0x73   : > { %v717_v2 = vsel %vm701_vm5, %v716_v56, %v715_v1  ;;  %3104 = vst [vmem:[#allocation8_spill] sm:$0xff] %v2546_v4  ;;  %v635_v1 = vpack.c.bf16 %v567_v60, %v567_v60 }
  0x74   : > { %v719_v3 = vsel %vm704_vm6, %v718_v59, %v717_v2  ;;  %v566_v2 = vld [vmem:[%s2567_s24] sm:$0xf] }
  0x75   : > { %v720_v37 = vpack.c.b16 %v719_v3, %v705_v0  ;;  %v576_v0 = vld [vmem:[%s2567_s24 + $0x28] sm:$0xf]  ;;  %v569_v3 = vld [vmem:[%s2567_s24 + $0xc] sm:$0xf] }
  0x77   : > { %2003 = vmatprep.mubr.msk.bf16.mxu0 %vm786_vm7, %v720_v37  ;;  %v574_v37 = vld [vmem:[%s2567_s24 + $0x20] sm:$0xf] }
  0x78   : > { %2004 = vmatmul.mubr.msk.bf16.vlgmr.msra.gmra.mrb[0].mxu0 %vm786_vm7, %v2546_v4 }
 0x14b   : > { %v2005_v39 = vpop.f32.mrb[0].mxu0 }
 0x14c   : > { %v833_v40 = vpop.f32.mrb[1].mxu0  ;;  %v855_v41 = vsel %vm854_vm8, %v2005_v39, -inf }
 0x14d   : > { %856 = vmax.xlane.f32.xlu1 %v855_v41  ;;  %v2006_v42 = vpop.f32.mrb[2].mxu0  ;;  %v848_v43 = vsel %vm847_vm9, %v833_v40, -inf  ;;  %v644_v41 = vpack.c.bf16 %v576_v0, %v576_v0  ;;  %v573_v0 = vld [vmem:[%s2567_s24 + $0x1c] sm:$0xf] }
 0x14e   : > { %849 = vmax.xlane.f32.xlu0 %v848_v43  ;;  %v836_v44 = vpop.f32.mrb[3].mxu0  ;;  %v570_v42 = vld [vmem:[%s2567_s24 + $0x10] sm:$0xf]  ;;  %v577_v43 = vld [vmem:[%s2567_s24 + $0x2c] sm:$0xf] }
 0x14f   : > { %v851_v45 = vsel %vm847_vm9, %v836_v44, -inf }
 0x152   : > { %852 = vmax.xlane.f32.xlu0 %v851_v45  ;;  %v634_v45 = vpack.c.bf16 %v566_v2, %v566_v2  ;;  %v581_v2 = vld [vmem:[%s2567_s24 + $0x3c] sm:$0xf] }
 0x1da   : > { %v857_v46 = vpop.xlane.xlu1 %856 }
 0x1db   : > { %v860_v47 = vsub.f32 %v2005_v39, %v857_v46  ;;  %v850_v48 = vpop.xlane.xlu0 %849  ;;  %v636_v39 = vpack.c.bf16 %v568_v63, %v568_v63  ;;  %v637_v46 = vpack.c.bf16 %v569_v3, %v569_v3 }
 0x1dc   : > { %v858_v49 = vsub.f32 %v833_v40, %v850_v48  ;;  %v643_v40 = vpack.c.bf16 %v575_v61, %v575_v61  ;;  %v2579_v48 = vunpack.c.l.b16 %v635_v1  ;;  %v2587_v61 = vunpack.c.l.b16 %v634_v45 }
 0x1dd   : > { %v865_v50 = vmul.f32 1.442695, %v860_v47  ;;  %v642_v47 = vpack.c.bf16 %v574_v37, %v574_v37  ;;  %v2589_v63 = vunpack.c.l.b16 %v637_v46  ;;  %v2603_v45 = vunpack.c.l.b16 %v644_v41 }
 0x1de   : > { %v861_v19 = vmul.f32 1.442695, %v858_v49  ;;  %3105 = vst [vmem:[#allocation9_spill] sm:$0xff] %v2579_v48  ;;  %v571_v49 = vld [vmem:[%s2567_s24 + $0x14] sm:$0xf] }
 0x1df   : > { %v853_v52 = vpop.xlane.xlu0 %852  ;;  %3107 = vst [vmem:[#allocation11_spill] sm:$0xff] %v2589_v63  ;;  %v2595_v4 = vunpack.c.l.b16 %v642_v47  ;;  %3112 = vst [vmem:[#allocation16_spill] sm:$0xff] %v2603_v45 }
 0x1e0   : > { %2105 = vpow2.f32 %v861_v19  ;;  %v859_v51 = vsub.f32 %v836_v44, %v853_v52  ;;  %v578_v44 = vld [vmem:[%s2567_s24 + $0x30] sm:$0xf]  ;;  %v638_v19 = vpack.c.bf16 %v570_v42, %v570_v42  ;;  %v645_v52 = vpack.c.bf16 %v577_v43, %v577_v43 }
 0x1e1   : > { %2107 = vpow2.f32 %v865_v50  ;;  %v579_v50 = vld [vmem:[%s2567_s24 + $0x34] sm:$0xf]  ;;  %v641_v42 = vpack.c.bf16 %v573_v0, %v573_v0  ;;  %v649_v43 = vpack.c.bf16 %v581_v2, %v581_v2  ;;  %v922_v0 = vrot.slane %v2589_v63, 5 }
 0x1e2   : > { %v863_v53 = vmul.f32 1.442695, %v859_v51  ;;  %v646_v51 = vpack.c.bf16 %v578_v44, %v578_v44  ;;  %v647_v60 = vpack.c.bf16 %v579_v50, %v579_v50  ;;  %v2593_v37 = vunpack.c.l.b16 %v638_v19 }
 0x1e3   : > { %v2599_v44 = vunpack.c.l.b16 %v643_v40  ;;  %v2605_v46 = vunpack.c.l.b16 %v645_v52 }
 0x1e4   : > { %2109 = vpow2.f32 %v863_v53  ;;  %v2583_v53 = vunpack.c.l.b16 %v636_v39  ;;  %3108 = vst [vmem:[#allocation12_spill] sm:$0xff] %v2593_v37  ;;  %v2607_v50 = vunpack.c.l.b16 %v646_v51  ;;  %v2611_v19 = vunpack.c.l.b16 %v647_v60 }
 0x1e5   : > { %3110 = vst [vmem:[#allocation14_spill] sm:$0xff] %v2599_v44  ;;  %3113 = vst [vmem:[#allocation17_spill] sm:$0xff] %v2605_v46  ;;  %v924_v41 = vrot.slane %v2593_v37, 4  ;;  %v932_v2 = vrot.slane %v2599_v44, 7 }
 0x1e6   : > { %3106 = vst [vmem:[#allocation10_spill] sm:$0xff] %v2583_v53  ;;  %3114 = vst [vmem:[#allocation18_spill] sm:$0xff] %v2607_v50  ;;  %v920_v40 = vrot.slane %v2583_v53, 6 }
 0x1e7   : > { %3116 = vst [vmem:[#allocation20_spill] sm:$0xff] %v2611_v19 }
 0x1ea   : > { %v2554_v54 = vpop.eup %2105 }
 0x1eb   : > { %v867_v55 = vsel %vm847_vm9, %v2554_v54, 0.0  ;;  %v2558_v56 = vpop.eup %2107 }
 0x1ec   : > { %868 = vadd.xlane.f32.xlu1 %v867_v55  ;;  %v873_v58 = vsel %vm854_vm8, %v2558_v56, 0.0  ;;  %v572_v55 = vld [vmem:[%s2567_s24 + $0x18] sm:$0xf] }
 0x1ed   : > { %v640_v3 = vpack.c.bf16 %v572_v55, %v572_v55  ;;  %v2609_v55 = vunpack.c.l.b16 %v641_v42  ;;  %v936_v42 = vrot.slane %v2605_v46, 5 }
 0x1ee   : > { %v2560_v57 = vpop.eup %2109 }
 0x1ef   : > { %v870_v59 = vsel %vm847_vm9, %v2560_v57, 0.0  ;;  %3115 = vst [vmem:[#allocation19_spill] sm:$0xff] %v2609_v55  ;;  %v930_v60 = vrot.slane %v2609_v55, 1 }
 0x1f0   : > { %874 = vadd.xlane.f32.xlu1 %v873_v58  ;;  %871 = vadd.xlane.f32.xlu0 %v870_v59  ;;  %v580_v58 = vld [vmem:[%s2567_s24 + $0x38] sm:$0xf]  ;;  %v639_v59 = vpack.c.bf16 %v571_v49, %v571_v49  ;;  %v2601_v49 = vunpack.c.l.b16 %v640_v3 }
 0x1f1   : > { %v648_v1 = vpack.c.bf16 %v580_v58, %v580_v58  ;;  %v2615_v58 = vunpack.c.l.b16 %v649_v43  ;;  %v938_v43 = vrot.slane %v2607_v50, 4 }
 0x1f2   : > { %v2597_v39 = vunpack.c.l.b16 %v639_v59  ;;  %3111 = vst [vmem:[#allocation15_spill] sm:$0xff] %v2601_v49  ;;  %v918_v59 = vrot.slane %v2579_v48, 7  ;;  %v928_v51 = vrot.slane %v2601_v49, 2  ;;  %v940_v49 = vrot.slane %v2611_v19, 3  ;;  %v582_v48 = vld [vmem:[%s2567_s24 + $0x40] sm:$0xf] }
 0x1f3   : > { %v2613_v47 = vunpack.c.l.b16 %v648_v1  ;;  %v934_v1 = vrot.slane %v2603_v45, 6  ;;  %v2177_v19 = vmov 0  }
 0x1f4   : > { %3109 = vst [vmem:[#allocation13_spill] sm:$0xff] %v2597_v39  ;;  %v926_v52 = vrot.slane %v2597_v39, 3  ;;  %v919_v3 = vsel %vm686_vm0, %v918_v59, %v2587_v61  ;;  %v933_v39 = vsel %vm686_vm0, %v932_v2, %v2595_v4  ;;  %v944_v59 = vrot.slane %v2615_v58, 1 }
 0x1f5   : > { %3117 = vst [vmem:[#allocation21_spill] sm:$0xff] %v2613_v47  ;;  %v921_v37 = vsel %vm689_vm1, %v920_v40, %v919_v3  ;;  %v942_v55 = vrot.slane %v2613_v47, 2  ;;  %v935_v63 = vsel %vm689_vm1, %v934_v1, %v933_v39  ;;  %v2641_v40 = vpack.c.bf16 %v582_v48, %v582_v48 }
 0x1f6   : > { %v923_v44 = vsel %vm692_vm2, %v922_v0, %v921_v37  ;;  %v937_v50 = vsel %vm692_vm2, %v936_v42, %v935_v63  ;;  %v2645_v47 = vsel %vm955_vm10, 65535, %v2177_v19  ;;  %v1054_v48 = vrot.slane %v2417_v31, 1 }
 0x1f7   : > { %v925_v46 = vsel %vm695_vm3, %v924_v41, %v923_v44  ;;  %v939_v3 = vsel %vm695_vm3, %v938_v43, %v937_v50  ;;  %v1040_v44 = vrot.slane %v2401_v23, 1  ;;  %v1042_v50 = vrot.slane %v2395_v18, 7 }
 0x1f8   : > { %v927_v2 = vsel %vm698_vm4, %v926_v52, %v925_v46  ;;  %v941_v39 = vsel %vm698_vm4, %v940_v49, %v939_v3  ;;  %v959_v46 = vand.u32 %v2645_v47, %v2641_v40  ;;  %v1056_v19 = vrot.slane %v2411_v28, 7 }
 0x1f9   : > { %v929_v37 = vsel %vm701_vm5, %v928_v51, %v927_v2  ;;  %v943_v1 = vsel %vm701_vm5, %v942_v55, %v941_v39  ;;  %v1041_v49 = vsel %vm686_vm0, %v2393_v17, %v1040_v44  ;;  %v1044_v52 = vrot.slane %v2397_v21, 6 }
 0x1fa   : > { %v931_v0 = vsel %vm704_vm6, %v930_v60, %v929_v37  ;;  %v945_v63 = vsel %vm704_vm6, %v944_v59, %v943_v1  ;;  %v1055_v55 = vsel %vm686_vm0, %v2407_v26, %v1054_v48  ;;  %v1043_v51 = vsel %vm689_vm1, %v1042_v50, %v1041_v49 }
 0x1fb   : > { %v946_v41 = vpack.c.b16 %v945_v63, %v931_v0  ;;  %v1046_v60 = vrot.slane %v2399_v22, 5  ;;  %v1057_v42 = vsel %vm689_vm1, %v1056_v19, %v1055_v55  ;;  %v1058_v43 = vrot.slane %v2413_v29, 6 }
 0x1fc   : > { %v1045_v59 = vsel %vm692_vm2, %v1044_v52, %v1043_v51  ;;  %v1048_v2 = vrot.slane %v2403_v24, 4  ;;  %v1060_v3 = vrot.slane %v2415_v30, 5  ;;  %v1062_v37 = vrot.slane %v2419_v32, 4 }
 0x1fd   : > { %2007 = vmatprep.subr.bf16.mxu1 %v946_v41  ;;  %v1047_v39 = vsel %vm695_vm3, %v1046_v60, %v1045_v59  ;;  %v1050_v0 = vrot.slane %v2405_v25, 3  ;;  %v1059_v1 = vsel %vm692_vm2, %v1058_v43, %v1057_v42  ;;  %v1064_v44 = vrot.slane %v2423_v35, 3 }
 0x1fe   : > { %2008 = vmatpush3.bf16.msra.mxu1 %v946_v41  ;;  %v1049_v48 = vsel %vm698_vm4, %v1048_v2, %v1047_v39  ;;  %v1052_v63 = vrot.slane %v2409_v27, 2  ;;  %v1061_v50 = vsel %vm695_vm3, %v1060_v3, %v1059_v1  ;;  %v1066_v19 = vrot.slane %v2425_v36, 2 }
 0x1ff   : > { %2009 = vmatprep.subr.bf16.mxu1 %v959_v46  ;;  %v1051_v49 = vsel %vm701_vm5, %v1050_v0, %v1049_v48  ;;  %v1063_v41 = vsel %vm698_vm4, %v1062_v37, %v1061_v50  ;;  %v1009_v42 = vrot.slane %v2491_v9, 1  ;;  %v1023_v43 = vrot.slane %v2507_v20, 1 }
 0x200   : > { %v1053_v52 = vsel %vm704_vm6, %v1052_v63, %v1051_v49  ;;  %v1065_v55 = vsel %vm701_vm5, %v1064_v44, %v1063_v41  ;;  %v1011_v59 = vrot.slane %v2485_v6, 7  ;;  %v1025_v2 = vrot.slane %v2501_v14, 7 }
 0x201   : > { %v1067_v51 = vsel %vm704_vm6, %v1066_v19, %v1065_v55  ;;  %v1010_v3 = vsel %vm686_vm0, %v2483_v5, %v1009_v42  ;;  %v1024_v37 = vsel %vm686_vm0, %v2499_v13, %v1023_v43  ;;  %v1013_v39 = vrot.slane %v2487_v7, 6 }
 0x202   : > { %2010 = vmatpush3.bf16.msra.mxu1 %v959_v46  ;;  %v1069_v60 = vpack.c.b16 %v1067_v51, %v1053_v52  ;;  %v1027_v0 = vrot.slane %v2503_v15, 6  ;;  %v1012_v1 = vsel %vm689_vm1, %v1011_v59, %v1010_v3  ;;  %v1026_v44 = vsel %vm689_vm1, %v1025_v2, %v1024_v37 }
 0x203   : > { %v1015_v48 = vrot.slane %v2489_v8, 5  ;;  %v1029_v63 = vrot.slane %v2505_v16, 5  ;;  %v1014_v49 = vsel %vm692_vm2, %v1013_v39, %v1012_v1  ;;  %v1017_v52 = vrot.slane %v2493_v10, 4 }
 0x204   : > { %2065 = vmatprep.subr.msk.bf16.mxu1 %vm786_vm7, %v1069_v60  ;;  %v1028_v41 = vsel %vm692_vm2, %v1027_v0, %v1026_v44  ;;  %v1031_v55 = vrot.slane %v2509_v33, 4  ;;  %v1019_v43 = vrot.slane %v2495_v11, 3  ;;  %v1033_v59 = vrot.slane %v2511_v34, 3 }
 0x205   : > { %v1016_v51 = vsel %vm695_vm3, %v1015_v48, %v1014_v49  ;;  %v1030_v42 = vsel %vm695_vm3, %v1029_v63, %v1028_v41  ;;  %v2710_v37 = vunpack.c.l.b16 %v2457_v62  ;;  %v1035_v39 = vrot.slane %v2514_v38, 2 }
 0x206   : > { %v1018_v2 = vsel %vm698_vm4, %v1017_v52, %v1016_v51  ;;  %v1032_v3 = vsel %vm698_vm4, %v1031_v55, %v1030_v42 }
 0x207   : > { %v1020_v0 = vsel %vm701_vm5, %v1019_v43, %v1018_v2  ;;  %v1034_v1 = vsel %vm701_vm5, %v1033_v59, %v1032_v3  ;;  %v1078_v43 = vsel %vm786_vm7, %v1069_v60, 0 }
 0x208   : > { %v1036_v62 = vsel %vm704_vm6, %v1035_v39, %v1034_v1 }
 0x279   : > { %v869_v46 = vpop.xlane.xlu1 %868 }
 0x27a   : > { %2111 = vrcp.f32 %v869_v46  ;;  %v1021_v46 = vrot.slane %v2497_v12, 2 }
 0x27c   : > { %v1022_v49 = vsel %vm704_vm6, %v1021_v46, %v1020_v0 }
 0x27d   : > { %v875_v50 = vpop.xlane.xlu1 %874  ;;  %v872_v19 = vpop.xlane.xlu0 %871  ;;  %v1038_v42 = vpack.c.b16 %v1036_v62, %v1022_v49 }
 0x27e   : > { %2113 = vrcp.f32 %v875_v50 }
 0x27f   : > { %2115 = vrcp.f32 %v872_v19  ;;  %v1068_v19 = vrot.slane %v2710_v37, 1 }
 0x281   : > { %v1070_v59 = vpack.c.b16 %v1068_v19, %v1068_v19 }
 0x284   : > { %v2112_v44 = vpop.eup %2111 }
 0x285   : > { %v879_v41 = vmul.f32 %v2112_v44, %v2554_v54  ;;  %v1081_v54 = vsel %vm786_vm7, %v1070_v59, 0 }
 0x288   : > { %v2114_v48 = vpop.eup %2113 }
 0x289   : > { %v2116_v63 = vpop.eup %2115  ;;  %v881_v50 = vmul.f32 %v2114_v48, %v2558_v56  ;;  %v3118_v56 = vld [vmem:[#allocation8_spill] sm:$0xff] }
 0x28a   : > { %v880_v52 = vmul.f32 %v2116_v63, %v2560_v57  ;;  %v2728_v2 = vunpack.c.l.b16 %v3118_v56 }
 0x28b   : > { %v883_v55 = vpack.c.bf16 %v881_v50, %v881_v50 }
 0x28c   : > { %v882_v51 = vpack.c.bf16 %v880_v52, %v879_v41  ;;  %v1037_v57 = vrot.slane %v2728_v2, 1 }
 0x28e   : > { %2011 = vmatprep.mubr.msk.bf16.mxu1 %vm847_vm9, %v882_v51  ;;  %v1039_v3 = vpack.c.b16 %v1037_v57, %v1037_v57 }
 0x28f   : > { %2012 = vmatmul.mubr.msk.bf16.vlgmr.msra.gmra.mrb[0].mxu1 %vm847_vm9, %v883_v55 }
 0x290   : > { %2016 = vmatpush3.bf16.xpose.msra.mxu1 %v1078_v43  ;;  %2019 = vmatprep.mubr.msk.bf16.mxu1 %vm786_vm7, %v1038_v42 }
 0x291   : > { %2066 = vmatprep.subr.msk.bf16.mxu1 %vm786_vm7, %v1070_v59 }
 0x298   : > { %2018 = vmatpush3.bf16.xpose.msra.mxu1 %v1081_v54 }
 0x29f   : > { %2020 = vmatmul.mubr.msk.bf16.vlgmr.msra.gmra.mrb[4].mxu1 %vm786_vm7, %v1039_v3 }
 0x362   : > { %v2733_v60 = vpop.f32.mrb[0].mxu1 }
 0x363   : > { %3119 = vst [vmem:[#allocation8_spill] sm:$0xff] %v2733_v60  ;;  %v2735_v46 = vpop.f32.mrb[1].mxu1 }
 0x364   : > { %3120 = vst [vmem:[#allocation22_spill] sm:$0xff] %v2735_v46  ;;  %v2014_v39 = vpop.f32.mrb[2].mxu1  ;;  %v3128_v46 = vld [vmem:[#allocation13_spill] sm:$0xff] }
 0x365   : > { %v2737_v0 = vpop.f32.mrb[3].mxu1 }
 0x366   : > { %3121 = vst [vmem:[#allocation23_spill] sm:$0xff] %v2737_v0 }
 0x372   : > { %v2021_v1 = vpop.f32.mrb[4].mxu1 }
 0x373   : > { %v1117_v44 = vpop.f32.mrb[5].mxu1  ;;  %v1137_v49 = vsel %vm854_vm8, %v2021_v1, -inf }
 0x374   : > { %v2022_v48 = vpop.f32.mrb[6].mxu1  ;;  %v1131_v63 = vsel %vm847_vm9, %v1117_v44, -inf }
 0x375   : > { %1132 = vmax.xlane.f32.xlu0 %v1131_v63  ;;  %v1120_v50 = vpop.f32.mrb[7].mxu1  ;;  %v1166_v48 = vrot.slane %v2587_v61, 1  ;;  %v1180_v63 = vrot.slane %v2595_v4, 1 }
 0x376   : > { %v1134_v19 = vsel %vm847_vm9, %v1120_v50, -inf }
 0x377   : > { %1135 = vmax.xlane.f32.xlu1 %v1134_v19  ;;  %v1168_v19 = vrot.slane %v2583_v53, 7  ;;  %v3129_v53 = vld [vmem:[#allocation20_spill] sm:$0xff] }
 0x379   : > { %1138 = vmax.xlane.f32.xlu0 %v1137_v49  ;;  %v1182_v49 = vrot.slane %v2603_v45, 7  ;;  %v1174_v45 = vrot.slane %v3128_v46, 4 }
 0x402   : > { %v1133_v62 = vpop.xlane.xlu0 %1132 }
 0x403   : > { %v1140_v41 = vsub.f32 %v1117_v44, %v1133_v62  ;;  %v3122_v62 = vld [vmem:[#allocation9_spill] sm:$0xff] }
 0x404   : > { %v1136_v52 = vpop.xlane.xlu1 %1135 }
 0x405   : > { %v1143_v55 = vmul.f32 1.442695, %v1140_v41  ;;  %v1141_v51 = vsub.f32 %v1120_v50, %v1136_v52  ;;  %v2757_v50 = vunpack.c.l.b16 %v2641_v40  ;;  %v1167_v41 = vsel %vm686_vm0, %v3122_v62, %v1166_v48  ;;  %v3123_v52 = vld [vmem:[#allocation11_spill] sm:$0xff] }
 0x406   : > { %v1139_v42 = vpop.xlane.xlu0 %1138 }
 0x407   : > { %2117 = vpow2.f32 %v1143_v55  ;;  %v1145_v43 = vmul.f32 1.442695, %v1141_v51  ;;  %v1142_v59 = vsub.f32 %v2021_v1, %v1139_v42  ;;  %v1170_v55 = vrot.slane %v3123_v52, 6  ;;  %v3124_v51 = vld [vmem:[#allocation14_spill] sm:$0xff] }
 0x408   : > { %v1181_v42 = vsel %vm686_vm0, %v3124_v51, %v1180_v63  ;;  %v1188_v52 = vrot.slane %v3129_v53, 4  ;;  %v3130_v51 = vld [vmem:[#allocation15_spill] sm:$0xff] }
 0x409   : > { %2119 = vpow2.f32 %v1145_v43  ;;  %v1147_v56 = vmul.f32 1.442695, %v1142_v59  ;;  %v3125_v43 = vld [vmem:[#allocation17_spill] sm:$0xff]  ;;  %v1183_v40 = vsel %vm689_vm1, %v1182_v49, %v1181_v42  ;;  %v3132_v42 = vld [vmem:[#allocation19_spill] sm:$0xff] }
 0x40a   : > { %v1184_v59 = vrot.slane %v3125_v43, 6  ;;  %v1176_v43 = vrot.slane %v3130_v51, 3 }
 0x40b   : > { %2121 = vpow2.f32 %v1147_v56  ;;  %v1169_v56 = vsel %vm689_vm1, %v1168_v19, %v1167_v41  ;;  %v3131_v41 = vld [vmem:[#allocation21_spill] sm:$0xff] }
 0x40c   : > { %v1171_v0 = vsel %vm692_vm2, %v1170_v55, %v1169_v56  ;;  %v1185_v48 = vsel %vm692_vm2, %v1184_v59, %v1183_v40  ;;  %v1192_v56 = vrot.slane %v2615_v58, 2 }
 0x411   : > { %v2742_v54 = vpop.eup %2117 }
 0x412   : > { %v1149_v57 = vsel %vm847_vm9, %v2742_v54, 0.0 }
 0x413   : > { %v2746_v3 = vpop.eup %2119  ;;  %1150 = vadd.xlane.f32.xlu1 %v1149_v57  ;;  %v3126_v57 = vld [vmem:[#allocation12_spill] sm:$0xff] }
 0x414   : > { %v1152_v39 = vsel %vm847_vm9, %v2746_v3, 0.0 }
 0x415   : > { %v2750_v44 = vpop.eup %2121  ;;  %1153 = vadd.xlane.f32.xlu0 %v1152_v39  ;;  %v1172_v39 = vrot.slane %v3126_v57, 5  ;;  %v1190_v57 = vrot.slane %v3131_v41, 3 }
 0x416   : > { %v1155_v1 = vsel %vm854_vm8, %v2750_v44, 0.0 }
 0x417   : > { %1156 = vadd.xlane.f32.xlu1 %v1155_v1  ;;  %v3127_v1 = vld [vmem:[#allocation18_spill] sm:$0xff]  ;;  %v1173_v63 = vsel %vm695_vm3, %v1172_v39, %v1171_v0 }
 0x418   : > { %v1186_v60 = vrot.slane %v3127_v1, 5  ;;  %v1175_v49 = vsel %vm698_vm4, %v1174_v45, %v1173_v63  ;;  %v1178_v1 = vrot.slane %v3132_v42, 2  ;;  %v1287_v63 = vrot.slane %v2393_v17, 1 }
 0x419   : > { %v1177_v59 = vsel %vm701_vm5, %v1176_v43, %v1175_v49  ;;  %v1300_v43 = vrot.slane %v2417_v31, 2  ;;  %v1304_v49 = vrot.slane %v2413_v29, 7 }
 0x41a   : > { %v1187_v19 = vsel %vm695_vm3, %v1186_v60, %v1185_v48  ;;  %v1179_v0 = vsel %vm704_vm6, %v1178_v1, %v1177_v59  ;;  %v1194_v60 = vrot.slane %v2757_v50, 1  ;;  %v1306_v59 = vrot.slane %v2415_v30, 6 }
 0x41b   : > { %v1189_v55 = vsel %vm698_vm4, %v1188_v52, %v1187_v19  ;;  %v1286_v52 = vrot.slane %v2401_v23, 2  ;;  %v1290_v19 = vrot.slane %v2397_v21, 7 }
 0x41c   : > { %v1191_v40 = vsel %vm701_vm5, %v1190_v57, %v1189_v55  ;;  %v1196_v48 = vpack.c.b16 %v1194_v60, %v1194_v60  ;;  %v1301_v57 = vrot.slane %v2407_v26, 1  ;;  %v1292_v55 = vrot.slane %v2399_v22, 6 }
 0x41d   : > { %v1193_v39 = vsel %vm704_vm6, %v1192_v56, %v1191_v40  ;;  %v1288_v1 = vsel %vm686_vm0, %v1287_v63, %v1286_v52  ;;  %v1308_v60 = vrot.slane %v2419_v32, 5  ;;  %v1310_v63 = vrot.slane %v2423_v35, 4 }
 0x41e   : > { %v1195_v51 = vpack.c.b16 %v1193_v39, %v1179_v0  ;;  %v1205_v45 = vand.u32 %v1196_v48, %v2645_v47  ;;  %v1302_v56 = vsel %vm686_vm0, %v1301_v57, %v1300_v43  ;;  %v1294_v0 = vrot.slane %v2403_v24, 5 }
 0x41f   : > { %v1303_v39 = vsel %vm689_vm1, %v2411_v28, %v1302_v56  ;;  %v1298_v57 = vrot.slane %v2409_v27, 3 }
 0x420   : > { %2023 = vmatprep.subr.bf16.mxu0 %v1195_v51  ;;  %v1305_v52 = vsel %vm692_vm2, %v1304_v49, %v1303_v39 }
 0x421   : > { %2024 = vmatpush3.bf16.msra.mxu0 %v1195_v51  ;;  %v1289_v51 = vsel %vm689_vm1, %v2395_v18, %v1288_v1  ;;  %v1307_v1 = vsel %vm695_vm3, %v1306_v59, %v1305_v52  ;;  %v1269_v59 = vrot.slane %v2507_v20, 2  ;;  %v1270_v52 = vrot.slane %v2499_v13, 1 }
 0x422   : > { %2025 = vmatprep.subr.bf16.mxu0 %v1205_v45  ;;  %v1291_v40 = vsel %vm692_vm2, %v1290_v19, %v1289_v51  ;;  %v1312_v19 = vrot.slane %v2425_v36, 3  ;;  %v1309_v56 = vsel %vm698_vm4, %v1308_v60, %v1307_v1 }
 0x423   : > { %v1293_v48 = vsel %vm695_vm3, %v1292_v55, %v1291_v40  ;;  %v1311_v40 = vsel %vm701_vm5, %v1310_v63, %v1309_v56  ;;  %v1271_v60 = vsel %vm686_vm0, %v1270_v52, %v1269_v59  ;;  %v1273_v63 = vrot.slane %v2503_v15, 7 }
 0x424   : > { %v1295_v43 = vsel %vm698_vm4, %v1294_v0, %v1293_v48  ;;  %v1313_v49 = vsel %vm704_vm6, %v1312_v19, %v1311_v40  ;;  %v1255_v0 = vrot.slane %v2491_v9, 2  ;;  %v1256_v48 = vrot.slane %v2483_v5, 1 }
 0x425   : > { %2026 = vmatpush3.bf16.msra.mxu0 %v1205_v45  ;;  %v1296_v45 = vrot.slane %v2405_v25, 4  ;;  %v1272_v1 = vsel %vm689_vm1, %v2501_v14, %v1271_v60  ;;  %v1275_v56 = vrot.slane %v2505_v16, 6  ;;  %v1277_v59 = vrot.slane %v2509_v33, 5 }
 0x426   : > { %v1265_v60 = vrot.slane %v2495_v11, 4 }
 0x427   : > { %v1297_v51 = vsel %vm701_vm5, %v1296_v45, %v1295_v43  ;;  %v1257_v45 = vsel %vm686_vm0, %v1256_v48, %v1255_v0  ;;  %v1259_v43 = vrot.slane %v2487_v7, 7  ;;  %v1263_v48 = vrot.slane %v2493_v10, 5 }
 0x428   : > { %v1299_v55 = vsel %vm704_vm6, %v1298_v57, %v1297_v51  ;;  %v1258_v57 = vsel %vm689_vm1, %v2485_v6, %v1257_v45  ;;  %v1261_v51 = vrot.slane %v2489_v8, 6 }
 0x429   : > { %v1315_v39 = vpack.c.b16 %v1313_v49, %v1299_v55  ;;  %v1260_v40 = vsel %vm692_vm2, %v1259_v43, %v1258_v57  ;;  %v1274_v49 = vsel %vm692_vm2, %v1273_v63, %v1272_v1  ;;  %v1267_v63 = vrot.slane %v2497_v12, 3 }
 0x42a   : > { %v1262_v52 = vsel %vm695_vm3, %v1261_v51, %v1260_v40  ;;  %v1276_v45 = vsel %vm695_vm3, %v1275_v56, %v1274_v49  ;;  %v1281_v57 = vrot.slane %v2514_v38, 3  ;;  %v1314_v56 = vrot.slane %v2710_v37, 2 }
 0x42b   : > { %2067 = vmatprep.subr.msk.bf16.mxu0 %vm786_vm7, %v1315_v39  ;;  %v1264_v15 = vsel %vm698_vm4, %v1263_v48, %v1262_v52  ;;  %v1278_v43 = vsel %vm698_vm4, %v1277_v59, %v1276_v45 }
 0x4a0   : > { %v1151_v19 = vpop.xlane.xlu1 %1150 }
 0x4a1   : > { %2123 = vrcp.f32 %v1151_v19  ;;  %v1279_v19 = vrot.slane %v2511_v34, 4 }
 0x4a2   : > { %v1154_v55 = vpop.xlane.xlu0 %1153 }
 0x4a3   : > { %2125 = vrcp.f32 %v1154_v55  ;;  %v1266_v55 = vsel %vm701_vm5, %v1265_v60, %v1264_v15  ;;  %v1324_v60 = vsel %vm786_vm7, %v1315_v39, 0 }
 0x4a4   : > { %v1157_v0 = vpop.xlane.xlu1 %1156  ;;  %v1268_v48 = vsel %vm704_vm6, %v1267_v63, %v1266_v55 }
 0x4a5   : > { %2127 = vrcp.f32 %v1157_v0  ;;  %v1280_v0 = vsel %vm701_vm5, %v1279_v19, %v1278_v43  ;;  %v1316_v19 = vpack.c.b16 %v1314_v56, %v1314_v56 }
 0x4a6   : > { %v1282_v59 = vsel %vm704_vm6, %v1281_v57, %v1280_v0 }
 0x4a7   : > { %v1284_v12 = vpack.c.b16 %v1282_v59, %v1268_v48 }
 0x4ab   : > { %v2124_v1 = vpop.eup %2123 }
 0x4ac   : > { %v1161_v40 = vmul.f32 %v2124_v1, %v2742_v54  ;;  %v1327_v54 = vsel %vm786_vm7, %v1316_v19, 0 }
 0x4ad   : > { %v2126_v51 = vpop.eup %2125 }
 0x4ae   : > { %v1162_v49 = vmul.f32 %v2126_v51, %v2746_v3  ;;  %v1283_v3 = vrot.slane %v2728_v2, 2 }
 0x4af   : > { %v2128_v52 = vpop.eup %2127 }
 0x4b0   : > { %v1163_v45 = vmul.f32 %v2128_v52, %v2750_v44  ;;  %v1164_v38 = vpack.c.bf16 %v1162_v49, %v1161_v40  ;;  %v1285_v44 = vpack.c.b16 %v1283_v3, %v1283_v3 }
 0x4b2   : > { %2027 = vmatprep.mubr.msk.bf16.mxu0 %vm847_vm9, %v1164_v38  ;;  %v1165_v15 = vpack.c.bf16 %v1163_v45, %v1163_v45 }
 0x4b4   : > { %2028 = vmatmul.mubr.msk.bf16.vlgmr.msra.gmra.mrb[4].mxu0 %vm847_vm9, %v1165_v15 }
 0x4b5   : > { %2032 = vmatpush3.bf16.xpose.msra.mxu0 %v1324_v60  ;;  %2035 = vmatprep.mubr.msk.bf16.mxu0 %vm786_vm7, %v1284_v12 }
 0x4b6   : > { %2068 = vmatprep.subr.msk.bf16.mxu0 %vm786_vm7, %v1316_v19 }
 0x4bd   : > { %2034 = vmatpush3.bf16.xpose.msra.mxu0 %v1327_v54 }
 0x4c4   : > { %2036 = vmatmul.mubr.msk.bf16.vlgmr.msra.gmra.mrb[8].mxu0 %vm786_vm7, %v1285_v44 }
 0x587   : > { %v2862_v38 = vpop.f32.mrb[4].mxu0 }
 0x588   : > { %3133 = vst [vmem:[#allocation9_spill] sm:$0xff] %v2862_v38  ;;  %v2864_v43 = vpop.f32.mrb[5].mxu0  ;;  %v3142_v38 = vld [vmem:[#allocation18_spill] sm:$0xff] }
 0x589   : > { %3134 = vst [vmem:[#allocation13_spill] sm:$0xff] %v2864_v43  ;;  %v2030_v39 = vpop.f32.mrb[6].mxu0  ;;  %v1432_v43 = vrot.slane %v3142_v38, 6  ;;  %v1424_v38 = vrot.slane %v3132_v42, 3 }
 0x58a   : > { %v2866_v63 = vpop.f32.mrb[7].mxu0 }
 0x58b   : > { %3135 = vst [vmem:[#allocation20_spill] sm:$0xff] %v2866_v63 }
 0x597   : > { %v2037_v57 = vpop.f32.mrb[8].mxu0 }
 0x598   : > { %v1363_v1 = vpop.f32.mrb[9].mxu0  ;;  %v1383_v56 = vsel %vm854_vm8, %v2037_v57, -inf }
 0x599   : > { %v2038_v12 = vpop.f32.mrb[10].mxu0  ;;  %v1377_v55 = vsel %vm847_vm9, %v1363_v1, -inf }
 0x59a   : > { %1378 = vmax.xlane.f32.xlu0 %v1377_v55  ;;  %v1366_v0 = vpop.f32.mrb[11].mxu0  ;;  %v1412_v12 = vrot.slane %v2587_v61, 2  ;;  %v1413_v55 = vrot.slane %v3122_v62, 1 }
 0x59b   : > { %v1380_v51 = vsel %vm847_vm9, %v1366_v0, -inf }
 0x59c   : > { %1381 = vmax.xlane.f32.xlu1 %v1380_v51  ;;  %v3136_v51 = vld [vmem:[#allocation14_spill] sm:$0xff] }
 0x59e   : > { %1384 = vmax.xlane.f32.xlu0 %v1383_v56  ;;  %v1427_v56 = vrot.slane %v3136_v51, 1 }
 0x627   : > { %v1379_v40 = vpop.xlane.xlu0 %1378 }
 0x628   : > { %v1386_v49 = vsub.f32 %v1363_v1, %v1379_v40  ;;  %v1414_v40 = vsel %vm686_vm0, %v1413_v55, %v1412_v12  ;;  %v1420_v12 = vrot.slane %v3128_v46, 5 }
 0x629   : > { %v1382_v48 = vpop.xlane.xlu1 %1381 }
 0x62a   : > { %v1389_v59 = vmul.f32 1.442695, %v1386_v49  ;;  %v1387_v52 = vsub.f32 %v1366_v0, %v1382_v48  ;;  %v1426_v0 = vrot.slane %v2595_v4, 2  ;;  %v3137_v49 = vld [vmem:[#allocation11_spill] sm:$0xff] }
 0x62b   : > { %v1385_v45 = vpop.xlane.xlu0 %1384  ;;  %v1416_v48 = vrot.slane %v3137_v49, 7 }
 0x62c   : > { %2129 = vpow2.f32 %v1389_v59  ;;  %v1391_v15 = vmul.f32 1.442695, %v1387_v52  ;;  %v1388_v60 = vsub.f32 %v2037_v57, %v1385_v45  ;;  %v1428_v59 = vsel %vm686_vm0, %v1427_v56, %v1426_v0  ;;  %v3138_v52 = vld [vmem:[#allocation17_spill] sm:$0xff] }
 0x62d   : > { %v1430_v45 = vrot.slane %v3138_v52, 7  ;;  %v1434_v0 = vrot.slane %v3129_v53, 5  ;;  %v3143_v52 = vld [vmem:[#allocation15_spill] sm:$0xff] }
 0x62e   : > { %2131 = vpow2.f32 %v1391_v15  ;;  %v1393_v19 = vmul.f32 1.442695, %v1388_v60  ;;  %v3139_v15 = vld [vmem:[#allocation10_spill] sm:$0xff]  ;;  %v1422_v49 = vrot.slane %v3143_v52, 4 }
 0x62f   : > { %v1415_v60 = vsel %vm689_vm1, %v3139_v15, %v1414_v40 }
 0x630   : > { %2133 = vpow2.f32 %v1393_v19  ;;  %v3140_v19 = vld [vmem:[#allocation12_spill] sm:$0xff]  ;;  %v1417_v63 = vsel %vm692_vm2, %v1416_v48, %v1415_v60  ;;  %v1438_v60 = vrot.slane %v2615_v58, 3 }
 0x636   : > { %v2871_v54 = vpop.eup %2129 }
 0x637   : > { %v1395_v3 = vsel %vm847_vm9, %v2871_v54, 0.0 }
 0x638   : > { %v2875_v44 = vpop.eup %2131  ;;  %1396 = vadd.xlane.f32.xlu1 %v1395_v3  ;;  %v1418_v3 = vrot.slane %v3140_v19, 6  ;;  %v1436_v19 = vrot.slane %v3131_v41, 4 }
 0x639   : > { %v1398_v39 = vsel %vm847_vm9, %v2875_v44, 0.0 }
 0x63a   : > { %v2879_v1 = vpop.eup %2133  ;;  %1399 = vadd.xlane.f32.xlu0 %v1398_v39  ;;  %v3141_v39 = vld [vmem:[#allocation16_spill] sm:$0xff]  ;;  %v1419_v56 = vsel %vm695_vm3, %v1418_v3, %v1417_v63 }
 0x63b   : > { %v1401_v57 = vsel %vm854_vm8, %v2879_v1, 0.0 }
 0x63c   : > { %1402 = vadd.xlane.f32.xlu1 %v1401_v57  ;;  %v1429_v57 = vsel %vm689_vm1, %v3141_v39, %v1428_v59  ;;  %v1421_v59 = vsel %vm698_vm4, %v1420_v12, %v1419_v56  ;;  %v1533_v56 = vrot.slane %v2393_v17, 2  ;;  %v1552_v17 = vrot.slane %v2415_v30, 7 }
 0x63d   : > { %v1431_v55 = vsel %vm692_vm2, %v1430_v45, %v1429_v57  ;;  %v1423_v45 = vsel %vm701_vm5, %v1422_v49, %v1421_v59  ;;  %v1546_v49 = vrot.slane %v2417_v31, 3 }
 0x63e   : > { %v1433_v40 = vsel %vm695_vm3, %v1432_v43, %v1431_v55  ;;  %v1425_v63 = vsel %vm704_vm6, %v1424_v38, %v1423_v45  ;;  %v1440_v43 = vrot.slane %v2757_v50, 2  ;;  %v1547_v38 = vrot.slane %v2407_v26, 2 }
 0x63f   : > { %v1435_v48 = vsel %vm698_vm4, %v1434_v0, %v1433_v40  ;;  %v1532_v0 = vrot.slane %v2401_v23, 3  ;;  %v1549_v40 = vrot.slane %v2411_v28, 1  ;;  %v1554_v28 = vrot.slane %v2419_v32, 6 }
 0x640   : > { %v1437_v57 = vsel %vm701_vm5, %v1436_v19, %v1435_v48  ;;  %v1442_v55 = vpack.c.b16 %v1440_v43, %v1440_v43  ;;  %v1535_v19 = vrot.slane %v2395_v18, 1  ;;  %v1538_v48 = vrot.slane %v2399_v22, 7 }
 0x641   : > { %v1439_v3 = vsel %vm704_vm6, %v1438_v60, %v1437_v57  ;;  %v1534_v59 = vsel %vm686_vm0, %v1533_v56, %v1532_v0  ;;  %v1548_v23 = vsel %vm686_vm0, %v1547_v38, %v1546_v49  ;;  %v1540_v18 = vrot.slane %v2403_v24, 6 }
 0x642   : > { %v1441_v52 = vpack.c.b16 %v1439_v3, %v1425_v63  ;;  %v1451_v12 = vand.u32 %v1442_v55, %v2645_v47  ;;  %v1550_v26 = vsel %vm689_vm1, %v1549_v40, %v1548_v23  ;;  %v1542_v45 = vrot.slane %v2405_v25, 5 }
 0x643   : > { %v1551_v22 = vsel %vm692_vm2, %v2413_v29, %v1550_v26  ;;  %v1556_v57 = vrot.slane %v2423_v35, 5  ;;  %v1544_v63 = vrot.slane %v2409_v27, 4  ;;  %v1558_v24 = vrot.slane %v2425_v36, 4  ;;  %v3145_v26 = vld [vmem:[#allocation5_spill] sm:$0xff] }
 0x644   : > { %2039 = vmatprep.subr.bf16.mxu1 %v1441_v52  ;;  %v1501_v35 = vrot.slane %v2491_v9, 3  ;;  %v1502_v27 = vrot.slane %v2483_v5, 2  ;;  %v1516_v36 = vrot.slane %v2499_v13, 2  ;;  %v1504_v0 = vrot.slane %v2485_v6, 1  ;;  %v3144_v13 = vld [vmem:[#allocation6_spill] sm:$0xff] }
 0x645   : > { %2040 = vmatpush3.bf16.msra.mxu1 %v1441_v52  ;;  %v1536_v52 = vsel %vm689_vm1, %v1535_v19, %v1534_v59  ;;  %v1518_v56 = vrot.slane %v2501_v14, 1  ;;  %v1507_v5 = vrot.slane %v2489_v8, 7  ;;  %v1521_v9 = vrot.slane %v2505_v16, 7 }
 0x646   : > { %2041 = vmatprep.subr.bf16.mxu1 %v1451_v12  ;;  %v1537_v31 = vsel %vm692_vm2, %v2397_v21, %v1536_v52  ;;  %v1553_v21 = vsel %vm695_vm3, %v1552_v17, %v1551_v22  ;;  %v1503_v49 = vsel %vm686_vm0, %v1502_v27, %v1501_v35  ;;  %v1523_v23 = vrot.slane %v2509_v33, 6 }
 0x647   : > { %v1539_v60 = vsel %vm695_vm3, %v1538_v48, %v1537_v31  ;;  %v1555_v32 = vsel %vm698_vm4, %v1554_v28, %v1553_v21  ;;  %v1505_v38 = vsel %vm689_vm1, %v1504_v0, %v1503_v49  ;;  %v1509_v48 = vrot.slane %v2493_v10, 6 }
 0x648   : > { %v1541_v30 = vsel %vm698_vm4, %v1540_v18, %v1539_v60  ;;  %v1557_v25 = vsel %vm701_vm5, %v1556_v57, %v1555_v32  ;;  %v1506_v6 = vsel %vm692_vm2, %v2487_v7, %v1505_v38  ;;  %v1511_v16 = vrot.slane %v2495_v11, 5  ;;  %v3146_v60 = vld [vmem:[#allocation7_spill] sm:$0xff] }
 0x649   : > { %2042 = vmatpush3.bf16.msra.mxu1 %v1451_v12  ;;  %v1543_v3 = vsel %vm701_vm5, %v1542_v45, %v1541_v30  ;;  %v1559_v29 = vsel %vm704_vm6, %v1558_v24, %v1557_v25  ;;  %v1515_v12 = vrot.slane %v2507_v20, 3  ;;  %v1508_v17 = vsel %vm695_vm3, %v1507_v5, %v1506_v6 }
 0x64a   : > { %v1545_v43 = vsel %vm704_vm6, %v1544_v63, %v1543_v3  ;;  %v1525_v31 = vrot.slane %v2511_v34, 5  ;;  %v1510_v7 = vsel %vm698_vm4, %v1509_v48, %v1508_v17  ;;  %v1513_v28 = vrot.slane %v3145_v26, 4 }
 0x64b   : > { %v1561_v55 = vpack.c.b16 %v1559_v29, %v1545_v43  ;;  %v1517_v19 = vsel %vm686_vm0, %v1516_v36, %v1515_v12  ;;  %v1527_v45 = vrot.slane %v3146_v60, 4  ;;  %v1512_v33 = vsel %vm701_vm5, %v1511_v16, %v1510_v7 }
 0x64c   : > { %v1519_v40 = vsel %vm689_vm1, %v1518_v56, %v1517_v19  ;;  %v1560_v30 = vrot.slane %v2710_v37, 3  ;;  %v1514_v63 = vsel %vm704_vm6, %v1513_v28, %v1512_v33  ;;  %v1658_v7 = vrot.slane %v2587_v61, 3 }
 0x64d   : > { %2069 = vmatprep.subr.msk.bf16.mxu1 %vm786_vm7, %v1561_v55  ;;  %v1520_v14 = vsel %vm692_vm2, %v3144_v13, %v1519_v40  ;;  %v1570_v29 = vsel %vm786_vm7, %v1561_v55, 0  ;;  %v1672_v26 = vrot.slane %v2595_v4, 3  ;;  %v1673_v28 = vrot.slane %v3136_v51, 2 }
 0x64e   : > { %v1522_v8 = vsel %vm695_vm3, %v1521_v9, %v1520_v14  ;;  %v1562_v35 = vpack.c.b16 %v1560_v30, %v1560_v30  ;;  %v1661_v60 = vrot.slane %v3139_v15, 1  ;;  %v1666_v51 = vrot.slane %v3128_v46, 6  ;;  %v3150_v15 = vld [vmem:[#allocation17_spill] sm:$0xff] }
 0x64f   : > { %v1524_v18 = vsel %vm698_vm4, %v1523_v23, %v1522_v8  ;;  %v1674_v33 = vsel %vm686_vm0, %v1673_v28, %v1672_v26  ;;  %v1684_v46 = vrot.slane %v2615_v58, 4 }
 0x650   : > { %v1526_v22 = vsel %vm701_vm5, %v1525_v31, %v1524_v18  ;;  %v1573_v37 = vsel %vm786_vm7, %v1562_v35, 0  ;;  %v1659_v18 = vrot.slane %v3122_v62, 2 }
 0x651   : > { %v1528_v21 = vsel %vm704_vm6, %v1527_v45, %v1526_v22  ;;  %v1675_v45 = vrot.slane %v3141_v39, 1 }
 0x652   : > { %v1530_v43 = vpack.c.b16 %v1528_v21, %v1514_v63  ;;  %v1680_v63 = vrot.slane %v3129_v53, 6 }
 0x653   : > { %v1676_v61 = vsel %vm689_vm1, %v1675_v45, %v1674_v33 }
 0x654   : > { %v1677_v39 = vsel %vm692_vm2, %v3150_v15, %v1676_v61 }
 0x6c5   : > { %v1397_v59 = vpop.xlane.xlu1 %1396 }
 0x6c6   : > { %2135 = vrcp.f32 %v1397_v59 }
 0x6c7   : > { %v1400_v20 = vpop.xlane.xlu0 %1399 }
 0x6c8   : > { %2137 = vrcp.f32 %v1400_v20 }
 0x6c9   : > { %v1403_v52 = vpop.xlane.xlu1 %1402 }
 0x6ca   : > { %2139 = vrcp.f32 %v1403_v52 }
 0x6d0   : > { %v2136_v10 = vpop.eup %2135 }
 0x6d1   : > { %v1407_v11 = vmul.f32 %v2136_v10, %v2871_v54  ;;  %v1529_v54 = vrot.slane %v2728_v2, 3  ;;  %v1660_v10 = vsel %vm686_vm0, %v1659_v18, %v1658_v7 }
 0x6d2   : > { %v2138_v57 = vpop.eup %2137  ;;  %v1662_v22 = vsel %vm689_vm1, %v1661_v60, %v1660_v10  ;;  %v3157_v10 = vld [vmem:[#allocation8_spill] sm:$0xff] }
 0x6d3   : > { %v1408_v34 = vmul.f32 %v2138_v57, %v2875_v44  ;;  %v1531_v44 = vpack.c.b16 %v1529_v54, %v1529_v54  ;;  %v3147_v57 = vld [vmem:[#allocation12_spill] sm:$0xff] }
 0x6d4   : > { %v2140_v24 = vpop.eup %2139  ;;  %v1664_v30 = vrot.slane %v3147_v57, 7 }
 0x6d5   : > { %v1409_v3 = vmul.f32 %v2140_v24, %v2879_v1  ;;  %v1410_v32 = vpack.c.bf16 %v1408_v34, %v1407_v11  ;;  %v3148_v11 = vld [vmem:[#allocation18_spill] sm:$0xff]  ;;  %v3149_v34 = vld [vmem:[#allocation11_spill] sm:$0xff] }
 0x6d6   : > { %v1678_v62 = vrot.slane %v3148_v11, 7  ;;  %v1663_v4 = vsel %vm692_vm2, %v3149_v34, %v1662_v22  ;;  %v3151_v24 = vld [vmem:[#allocation15_spill] sm:$0xff] }
 0x6d7   : > { %2043 = vmatprep.mubr.msk.bf16.mxu1 %vm847_vm9, %v1410_v32  ;;  %v1411_v25 = vpack.c.bf16 %v1409_v3, %v1409_v3  ;;  %v1665_v21 = vsel %vm695_vm3, %v1664_v30, %v1663_v4  ;;  %v1668_v3 = vrot.slane %v3151_v24, 5 }
 0x6d8   : > { %v1679_v32 = vsel %vm695_vm3, %v1678_v62, %v1677_v39 }
 0x6d9   : > { %2044 = vmatmul.mubr.msk.bf16.vlgmr.msra.gmra.mrb[8].mxu1 %vm847_vm9, %v1411_v25  ;;  %v1667_v25 = vsel %vm698_vm4, %v1666_v51, %v1665_v21 }
 0x6da   : > { %2048 = vmatpush3.bf16.xpose.msra.mxu1 %v1570_v29  ;;  %2051 = vmatprep.mubr.msk.bf16.mxu1 %vm786_vm7, %v1530_v43  ;;  %v1682_v43 = vrot.slane %v3131_v41, 5  ;;  %v1670_v29 = vrot.slane %v3132_v42, 4  ;;  %v1669_v53 = vsel %vm701_vm5, %v1668_v3, %v1667_v25  ;;  %v3154_v42 = vld [vmem:[#allocation9_spill] sm:$0xff] }
 0x6db   : > { %2070 = vmatprep.subr.msk.bf16.mxu1 %vm786_vm7, %v1562_v35  ;;  %v1681_v35 = vsel %vm698_vm4, %v1680_v63, %v1679_v32 }
 0x6dc   : > { %v1683_v54 = vsel %vm701_vm5, %v1682_v43, %v1681_v35 }
 0x6e2   : > { %2050 = vmatpush3.bf16.xpose.msra.mxu1 %v1573_v37  ;;  %v3152_v37 = vld [vmem:[#allocation20_spill] sm:$0xff] }
 0x6e9   : > { %2052 = vmatmul.mubr.msk.bf16.vlgmr.msra.gmra.mrb[12].mxu1 %vm786_vm7, %v1531_v44  ;;  %v1671_v44 = vsel %vm704_vm6, %v1670_v29, %v1669_v53 }
 0x7ac   : > { %v2988_v1 = vpop.f32.mrb[8].mxu1 }
 0x7ad   : > { %v2990_v27 = vpop.f32.mrb[9].mxu1 }
 0x7ae   : > { %v2046_v55 = vpop.f32.mrb[10].mxu1 }
 0x7af   : > { %v2992_v12 = vpop.f32.mrb[11].mxu1  ;;  %v1685_v55 = vsel %vm704_vm6, %v1684_v46, %v1683_v54 }
 0x7b0   : > { %v1687_v41 = vpack.c.b16 %v1685_v55, %v1671_v44 }
 0x7b2   : > { %2055 = vmatprep.subr.bf16.mxu0 %v1687_v41 }
 0x7b3   : > { %2056 = vmatpush3.bf16.msra.mxu0 %v1687_v41 }
 0x7bc   : > { %v2053_v36 = vpop.f32.mrb[12].mxu1 }
 0x7bd   : > { %v1609_v0 = vpop.f32.mrb[13].mxu1  ;;  %v1629_v38 = vsel %vm854_vm8, %v2053_v36, -inf }
 0x7be   : > { %v2054_v56 = vpop.f32.mrb[14].mxu1  ;;  %v1623_v49 = vsel %vm847_vm9, %v1609_v0, -inf }
 0x7bf   : > { %1624 = vmax.xlane.f32.xlu0 %v1623_v49  ;;  %v1612_v19 = vpop.f32.mrb[15].mxu1 }
 0x7c0   : > { %v1626_v2 = vsel %vm847_vm9, %v1612_v19, -inf }
 0x7c1   : > { %1627 = vmax.xlane.f32.xlu1 %v1626_v2 }
 0x7c3   : > { %1630 = vmax.xlane.f32.xlu0 %v1629_v38 }
 0x84c   : > { %v1625_v40 = vpop.xlane.xlu0 %1624 }
 0x84d   : > { %v1632_v59 = vsub.f32 %v1609_v0, %v1625_v40  ;;  %v3153_v0 = vld [vmem:[#allocation13_spill] sm:$0xff] }
 0x84e   : > { %v1628_v5 = vpop.xlane.xlu1 %1627 }
 0x84f   : > { %v1635_v9 = vmul.f32 1.442695, %v1632_v59  ;;  %v1633_v20 = vsub.f32 %v1612_v19, %v1628_v5 }
 0x850   : > { %v1631_v6 = vpop.xlane.xlu0 %1630 }
 0x851   : > { %2141 = vpow2.f32 %v1635_v9  ;;  %v1637_v13 = vmul.f32 1.442695, %v1633_v20  ;;  %v1634_v14 = vsub.f32 %v2053_v36, %v1631_v6  ;;  %v1686_v36 = vrot.slane %v2757_v50, 3 }
 0x853   : > { %2143 = vpow2.f32 %v1637_v13  ;;  %v1639_v52 = vmul.f32 1.442695, %v1634_v14  ;;  %v1688_v58 = vpack.c.b16 %v1686_v36, %v1686_v36 }
 0x855   : > { %2145 = vpow2.f32 %v1639_v52  ;;  %v1697_v56 = vand.u32 %v1688_v58, %v2645_v47 }
 0x857   : > { %2057 = vmatprep.subr.bf16.mxu0 %v1697_v56 }
 0x858   : > { %2058 = vmatpush3.bf16.msra.mxu0 %v1697_v56 }
 0x85b   : > { %v2142_v48 = vpop.eup %2141 }
 0x85c   : > { %v1641_v23 = vsel %vm847_vm9, %v2142_v48, 0.0 }
 0x85d   : > { %v2144_v17 = vpop.eup %2143  ;;  %1642 = vadd.xlane.f32.xlu1 %v1641_v23 }
 0x85e   : > { %v1644_v8 = vsel %vm847_vm9, %v2144_v17, 0.0 }
 0x85f   : > { %v2146_v16 = vpop.eup %2145  ;;  %1645 = vadd.xlane.f32.xlu0 %v1644_v8  ;;  %v3155_v8 = vld [vmem:[#allocation22_spill] sm:$0xff] }
 0x860   : > { %v1647_v31 = vsel %vm854_vm8, %v2146_v16, 0.0 }
 0x861   : > { %1648 = vadd.xlane.f32.xlu1 %v1647_v31  ;;  %v3156_v31 = vld [vmem:[#allocation23_spill] sm:$0xff] }
 0x872   : > { %1752 = vrot.lane.b32.xlu1 %v3152_v37, %s2178_s25 }
 0x875   : > { %1750 = vrot.lane.b32.xlu0 %v3153_v0, %s2178_s25 }
 0x876   : > { %1754 = vrot.lane.b32.xlu1 %v3154_v42, %s2178_s25 }
 0x879   : > { %1764 = vrot.lane.b32.xlu0 %v2992_v12, %s2179_s26 }
 0x87a   : > { %1762 = vrot.lane.b32.xlu1 %v2990_v27, %s2179_s26 }
 0x87e   : > { %1766 = vrot.lane.b32.xlu1 %v2988_v1, %s2179_s26 }
 0x8ea   : > { %v1643_v49 = vpop.xlane.xlu1 %1642 }
 0x8eb   : > { %2147 = vrcp.f32 %v1643_v49 }
 0x8ec   : > { %v1646_v50 = vpop.xlane.xlu0 %1645 }
 0x8ed   : > { %2149 = vrcp.f32 %v1646_v50 }
 0x8ee   : > { %v1649_v19 = vpop.xlane.xlu1 %1648 }
 0x8ef   : > { %2151 = vrcp.f32 %v1649_v19 }
 0x8f0   : > { %v1751_v52 = vpop.permute.xlu0 %1750 }
 0x8f2   : > { %v1753_v13 = vpop.permute.xlu1 %1752 }
 0x8f3   : > { %v1784_v7 = vsel %vm786_vm7, %v3156_v31, %v1753_v13 }
 0x8f4   : > { %v1765_v23 = vpop.permute.xlu0 %1764 }
 0x8f5   : > { %v2148_v2 = vpop.eup %2147  ;;  %v1788_v60 = vsel %vm1786_vm12, %v1784_v7, %v1765_v23 }
 0x8f6   : > { %v1653_v40 = vmul.f32 %v2148_v2, %v2142_v48  ;;  %v1755_v14 = vpop.permute.xlu1 %1754 }
 0x8f7   : > { %v2150_v38 = vpop.eup %2149  ;;  %v1785_v33 = vsel %vm786_vm7, %v3157_v10, %v1755_v14 }
 0x8f8   : > { %v1654_v59 = vmul.f32 %v2150_v38, %v2144_v17 }
 0x8f9   : > { %v2152_v47 = vpop.eup %2151 }
 0x8fa   : > { %v1655_v5 = vmul.f32 %v2152_v47, %v2146_v16  ;;  %v1656_v12 = vpack.c.bf16 %v1654_v59, %v1653_v40  ;;  %v1763_v48 = vpop.permute.xlu1 %1762  ;;  %v1783_v16 = vsel %vm786_vm7, %v3155_v8, %v1751_v52 }
 0x8fb   : > { %v1787_v18 = vsel %vm1786_vm12, %v1783_v16, %v1763_v48 }
 0x8fc   : > { %2059 = vmatprep.mubr.msk.bf16.mxu0 %vm847_vm9, %v1656_v12  ;;  %v1657_v27 = vpack.c.bf16 %v1655_v5, %v1655_v5 }
 0x8fe   : > { %2060 = vmatmul.mubr.msk.bf16.vlgmr.msra.gmra.mrb[12].mxu0 %vm847_vm9, %v1657_v27  ;;  %v1767_v17 = vpop.permute.xlu1 %1766 }
 0x8ff   : > { %v1789_v57 = vsel %vm1786_vm12, %v1785_v33, %v1767_v17 }
 0x9d1   : > { %v2061_v1 = vpop.f32.mrb[12].mxu0 }
 0x9d2   : > { %v1733_v9 = vpop.f32.mrb[13].mxu0 }
 0x9d3   : > { %1774 = vrot.lane.b32.xlu0 %v1733_v9, %s2180_s27  ;;  %v2062_v20 = vpop.f32.mrb[14].mxu0 }
 0x9d4   : > { %v1736_v6 = vpop.f32.mrb[15].mxu0 }
 0x9d5   : > { %1776 = vrot.lane.b32.xlu1 %v1736_v6, %s2180_s27 }
 0x9d7   : > { %1778 = vrot.lane.b32.xlu0 %v2061_v1, %s2180_s27 }
 0xa45   : > { %v1775_v26 = vpop.permute.xlu0 %1774 }
 0xa46   : > { %v1791_v28 = vsel %vm1790_vm11, %v1787_v18, %v1775_v26 }
 0xa47   : > { %1795 = vst.msk [vmem:[%s530_s4] sm:$0xff] %vm1794_vm13, %v1791_v28  ;;  %v1777_v45 = vpop.permute.xlu1 %1776 }
 0xa48   : > { %v1792_v22 = vsel %vm1790_vm11, %v1788_v60, %v1777_v45 }
 0xa49   : > { %1796 = vst.msk [vmem:[%s530_s4 + $0x8] sm:$0xff] %vm1794_vm13, %v1792_v22  ;;  %v1779_v30 = vpop.permute.xlu0 %1778 }
 0xa4a   : > { %v1793_v61 = vsel %vm1790_vm11, %v1789_v57, %v1779_v30 }
 0xa4b   : > { %1798 = vst.msk [vmem:[%s530_s4 + $0x10] sm:$0x1] %vm1797_vm14, %v1793_v61 }
 0xa4c PF: > { %p10_p9 = scmp.ge.s32.totalorder %s2218_s16, 4   ;;  %s3158_s12 = smov %s2171_s13 }
 0xa4d   : > { %s3159_s13 = smov %s2227_s19  ;;  %s3160_s14 = smov %s2218_s16 }
 0xa4e   :  { %12 = sbr.rel (!%p10_p9) target bundleno = 2 (0x2), region = 206 }

// kernel: mrm_gen_forward.62
= control target key start
LH: loop header
LB: loop body
LE: loop exit
PB: predicated region body
PF: predicated region fallthrough
CT: control target
= control target key end

     0   :  { %10 = vsyncpa [#allocation3], 0  ;;  %vm61_vm0 = vcmask 523264   ;;  %s348_s0 = inlined_call_operand.vmem [shape: f32[32,192], index: 0, kind: input, shape index: {}]   ;;  %s349_s1 = inlined_call_operand.vmem [shape: f32[32,192], index: 1, kind: input, shape index: {}]   ;;  %s350_s2 = inlined_call_operand.vmem [shape: f32[32,1], index: 2, kind: input, shape index: {}]   ;;  %s351_s3 = inlined_call_operand.hbm [shape: f32[1,1], index: 3, kind: output, shape index: {0}]   ;;  %s352_s4 = inlined_call_operand.hbm [shape: f32[1,1], index: 4, kind: output, shape index: {1}]  }
   0x1   :  { %v25_v0 = vld [vmem:[%s348_s0] sm:$0xff]  ;;  %v26_v1 = vld [vmem:[%s348_s0 + $0x8] sm:$0xff]  ;;  %v27_v10 = vld [vmem:[%s348_s0 + $0x10] sm:$0xff] }
   0x2   :  { %v33_v2 = vld [vmem:[%s349_s1] sm:$0xff]  ;;  %v34_v3 = vld [vmem:[%s349_s1 + $0x8] sm:$0xff]  ;;  %v28_v14 = vld [vmem:[%s348_s0 + $0x18] sm:$0xff] }
   0x3   :  { %v41_v4 = vsub.f32 %v25_v0, %v33_v2  ;;  %v29_v5 = vld [vmem:[%s348_s0 + $0x20] sm:$0xff]  ;;  %v30_v6 = vld [vmem:[%s348_s0 + $0x28] sm:$0xff]  ;;  %v42_v7 = vsub.f32 %v26_v1, %v34_v3  ;;  %v35_v15 = vld [vmem:[%s349_s1 + $0x10] sm:$0xff] }
   0x4   :  { %v37_v8 = vld [vmem:[%s349_s1 + $0x20] sm:$0xff]  ;;  %v38_v9 = vld [vmem:[%s349_s1 + $0x28] sm:$0xff]  ;;  %v36_v16 = vld [vmem:[%s349_s1 + $0x18] sm:$0xff]  ;;  %v43_v18 = vsub.f32 %v27_v10, %v35_v15 }
   0x5   :  { %v53_v11 = vmul.f32 %v41_v4, %v41_v4  ;;  %v45_v12 = vsub.f32 %v29_v5, %v37_v8  ;;  %v46_v13 = vsub.f32 %v30_v6, %v38_v9  ;;  %v54_v17 = vmul.f32 %v42_v7, %v42_v7  ;;  %v31_v20 = vld [vmem:[%s348_s0 + $0x30] sm:$0xff]  ;;  %v32_v21 = vld [vmem:[%s348_s0 + $0x38] sm:$0xff] }
   0x6   :  { %v44_v19 = vsub.f32 %v28_v14, %v36_v16  ;;  %v39_v22 = vld [vmem:[%s349_s1 + $0x30] sm:$0xff]  ;;  %v40_v25 = vld [vmem:[%s349_s1 + $0x38] sm:$0xff] }
   0x7   :  { %v57_v23 = vmul.f32 %v45_v12, %v45_v12  ;;  %v58_v24 = vmul.f32 %v46_v13, %v46_v13  ;;  %v47_v26 = vsub.f32 %v31_v20, %v39_v22 }
   0x8   :  { %11 = vsyncpa [#allocation5], 0  ;;  %v62_v27 = vsel %vm61_vm0, %v54_v17, 0.0  ;;  %v55_v28 = vmul.f32 %v43_v18, %v43_v18  ;;  %v56_v29 = vmul.f32 %v44_v19, %v44_v19  ;;  %v48_v30 = vsub.f32 %v32_v21, %v40_v25  ;;  %v49_v40 = vld [vmem:[%s350_s2] sm:$0xff]  ;;  %v50_v42 = vld [vmem:[%s350_s2 + $0x8] sm:$0xff]  ;;  %s214_s29 = smov [#allocation4]  }
   0x9   :  { %v63_v31 = vadd.f32 %v62_v27, %v53_v11  ;;  %v70_v32 = vsel %vm61_vm0, %v58_v24, 0.0  ;;  %v59_v33 = vmul.f32 %v47_v26, %v47_v26  ;;  %vm88_vm1 = vcmask 7168   ;;  %v51_v44 = vld [vmem:[%s350_s2 + $0x10] sm:$0xff]  ;;  %v52_v47 = vld [vmem:[%s350_s2 + $0x18] sm:$0xff]  ;;  %s213_s2 = smov [#allocation2]   ;;  %s145_s30 = sshll.u32 %s214_s29, 4  ;;  %s314_s30 = int_to_ptr.vmem [resolvable:$true] %s145_s30 }
   0xa   :  { %v71_v34 = vadd.f32 %v70_v32, %v57_v23  ;;  %v66_v35 = vsel %vm61_vm0, %v56_v29, 0.0  ;;  %v60_v36 = vmul.f32 %v48_v30, %v48_v30  ;;  %v110_v41 = vsel %vm88_vm1, %v49_v40, 0.0  ;;  %s135_s27 = sshll.u32 %s213_s2, 4  ;;  %s136_s27 = int_to_ptr.vmem [resolvable:$true] %s135_s27 }
   0xb   :  { %64 = vadd.xlane.f32.xlu0 %v63_v31  ;;  %v67_v37 = vadd.f32 %v66_v35, %v55_v28  ;;  %v111_v43 = vsel %vm88_vm1, %v50_v42, 0.0  ;;  %v113_v46 = vsel %vm88_vm1, %v51_v44, 0.0  ;;  %v115_v49 = vsel %vm88_vm1, %v52_v47, 0.0  ;;  %s164_s6 = scalar_lea.vmem %s136_s27, 16  ;;  %s168_s7 = scalar_lea.vmem %s136_s27, 32 }
   0xc   :  { %72 = vadd.xlane.f32.xlu1 %v71_v34  ;;  %v74_v38 = vsel %vm61_vm0, %v60_v36, 0.0  ;;  %v112_v45 = vadd.f32 %v111_v43, %v110_v41  ;;  %vm22_vm2 = vcmask 0   ;;  %v212_v6 = vmov 0.0   ;;  %p165_p0 = scmp.ne.s32.totalorder %s136_s27, %s164_s6  ;;  %p169_p1 = scmp.lt.s32.totalorder %s136_s27, %s136_s27 }
   0xd   :  { %v75_v39 = vadd.f32 %v74_v38, %v59_v33  ;;  %23 = vst.msk [vmem:[#allocation2] sm:$0x1] %vm22_vm2, %v212_v6  ;;  %24 = vst.msk [vmem:[#allocation4] sm:$0x1] %vm22_vm2, %v212_v6  ;;  %p170_p2 = scmp.lt.s32.totalorder %s168_s7, %s164_s6 }
   0xe   :  { %v114_v48 = vadd.f32 %v113_v46, %v112_v45 }
   0xf   :  { %68 = vadd.xlane.f32.xlu0 %v67_v37  ;;  %p171_p3 = por %p170_p2, %p169_p1 }
  0x10   :  { %76 = vadd.xlane.f32.xlu1 %v75_v39  ;;  %v116_v50 = vadd.f32 %v115_v49, %v114_v48 }
  0x11   :  { %p172_p4 = pnand %p171_p3, %p165_p0 }
  0x14   :  { %117 = vadd.xlane.f32.xlu1 %v116_v50  ;;  %v83_v21 = vld [vmem:[#allocation2] sm:$0x1]  ;;  %v109_v22 = vld [vmem:[#allocation4] sm:$0x1] }
  0x98   :  { %v65_v51 = vpop.xlane.xlu0 %64 }
  0x99   :  { %v79_v52 = vmul.f32 0.0052083335, %v65_v51  ;;  %v73_v53 = vpop.xlane.xlu1 %72 }
  0x9a   :  { %v81_v54 = vmul.f32 0.0052083335, %v73_v53 }
  0x9b   :  { %v84_v56 = vmul.f32 %v79_v52, %v49_v40 }
  0x9c   :  { %v69_v55 = vpop.xlane.xlu0 %68  ;;  %v86_v60 = vmul.f32 %v81_v54, %v51_v44 }
  0x9d   :  { %v80_v57 = vmul.f32 0.0052083335, %v69_v55  ;;  %v77_v58 = vpop.xlane.xlu1 %76  ;;  %v89_v63 = vsel %vm88_vm1, %v84_v56, 0.0 }
  0x9e   :  { %v82_v59 = vmul.f32 0.0052083335, %v77_v58  ;;  %v92_v2 = vsel %vm88_vm1, %v86_v60, 0.0 }
  0x9f   :  { %v85_v61 = vmul.f32 %v80_v57, %v50_v42 }
  0xa0   :  { %v87_v62 = vmul.f32 %v82_v59, %v52_v47 }
  0xa1   :  { %v90_v0 = vsel %vm88_vm1, %v85_v61, 0.0  ;;  %v118_v7 = vpop.xlane.xlu1 %117 }
  0xa2   :  { %v91_v1 = vadd.f32 %v90_v0, %v89_v63  ;;  %v94_v3 = vsel %vm88_vm1, %v87_v62, 0.0  ;;  %v119_v8 = vrot.slane %v118_v7, 4 }
  0xa4   :  { %v93_v4 = vadd.f32 %v92_v2, %v91_v1  ;;  %v120_v9 = vadd.f32 %v119_v8, %v118_v7 }
  0xa6   :  { %v95_v5 = vadd.f32 %v94_v3, %v93_v4  ;;  %v121_v10 = vrot.slane %v120_v9, 2 }
  0xa8   :  { %96 = vadd.xlane.f32.xlu0 %v95_v5  ;;  %v122_v14 = vadd.f32 %v121_v10, %v120_v9 }
  0xaa   :  { %v123_v17 = vrot.slane %v122_v14, 1 }
  0xac   :  { %v124_v20 = vadd.f32 %v123_v17, %v122_v14 }
 0x135   :  { %v97_v11 = vpop.xlane.xlu0 %96 }
 0x136   :  { %v98_v12 = vrot.slane %v97_v11, 4 }
 0x138   :  { %v99_v13 = vadd.f32 %v98_v12, %v97_v11 }
 0x13a   :  { %v100_v15 = vrot.slane %v99_v13, 2 }
 0x13c   :  { %v101_v16 = vadd.f32 %v100_v15, %v99_v13 }
 0x13e   :  { %v102_v18 = vrot.slane %v101_v16, 1 }
 0x140   :  { %v103_v19 = vadd.f32 %v102_v18, %v101_v16 }
 0x142   :  { %157 = vpush %v103_v19 }
 0x143   :  { %159 = vpush %v124_v20 }
 0x173   :  { %s158_s28 = spop %157 }
 0x174   :  { %v105_v23 = vstv %s158_s28  ;;  %s160_s5 = spop %159 }
 0x175   :  { %v106_v24 = vadd.f32 %v105_v23, %v83_v21  ;;  %v126_v25 = vstv %s160_s5 }
 0x176   :  { %v127_v26 = vadd.f32 %v126_v25, %v109_v22 }
 0x177   :  { %108 = vst.msk [vmem:[#allocation2] sm:$0x1] %vm22_vm2, %v106_v24 }
 0x178   :  { %128 = vst.msk [vmem:[#allocation4] sm:$0x1] %vm22_vm2, %v127_v26 }
 0x179   :  { %175 = shalt.err (!%p172_p4)
}
 0x17a   :  { %s176_s10 = scalar_lea.hbm %s351_s3, 16 }
 0x17b   :  { %p177_p5 = scmp.ne.s32.totalorder %s351_s3, %s176_s10  ;;  %p180_p6 = scmp.lt.u32.totalorder %s176_s10, %s351_s3 }
 0x17d   :  { %p182_p7 = pnand %p180_p6, %p177_p5 }
 0x17f   :  { %185 = shalt.err (!%p182_p7)
}
 0x180   :  { %138 = dma.vmem_to_hbm [thread:$0]  %s136_s27, 16, %s351_s3, [#allocation3]  }
 0x181   :  { %s186_s17 = scalar_lea.vmem %s314_s30, 16  ;;  %s190_s18 = scalar_lea.vmem %s314_s30, 32 }
 0x182   :  { %p187_p8 = scmp.ne.s32.totalorder %s314_s30, %s186_s17  ;;  %p191_p9 = scmp.lt.s32.totalorder %s314_s30, %s314_s30 }
 0x183   :  { %p192_p10 = scmp.lt.s32.totalorder %s190_s18, %s186_s17 }
 0x185   :  { %p193_p11 = por %p192_p10, %p191_p9 }
 0x187   :  { %p194_p12 = pnand %p193_p11, %p187_p8 }
 0x189   :  { %197 = shalt.err (!%p194_p12)
}
 0x18a   :  { %s198_s0 = scalar_lea.hbm %s352_s4, 16 }
 0x18b   :  { %p199_p13 = scmp.ne.s32.totalorder %s352_s4, %s198_s0  ;;  %p202_p0 = scmp.lt.u32.totalorder %s198_s0, %s352_s4 }
 0x18d   :  { %p204_p1 = pnand %p202_p0, %p199_p13 }
 0x18f   :  { %207 = shalt.err (!%p204_p1)
}
 0x190   :  { %148 = dma.vmem_to_hbm [thread:$0]  %s314_s30, 16, %s352_s4, [#allocation5]  }
 0x191   :  { %208 = dma.done.wait [#allocation3], 16  }
 0x192   :  { %209 = vsyncadd [#allocation3], 4294967280 }
 0x193   :  { %210 = dma.done.wait [#allocation5], 16  }
 0x194   :  { %211 = vsyncadd [#allocation5], 4294967280 }
 0x195   :  { %155 = vsyncpa [#allocation3], 1 }
 0x196   :  { %156 = vsyncpa [#allocation5], 1 }

</bundles_post_ra>
